<compile_context>
chip_gen: v7x
topology: tpu7x:2x2x1
jax: 0.10.0
libtpu: 0.0.40
codegen_flags: <defaults>
</compile_context>

<pallas_src>
import functools

import jax
import jax.numpy as jnp
from jax.experimental import pallas as pl
from jax.experimental.pallas import tpu as pltpu

D_IN = 15000
D_H1 = 200
D_H2 = 50
D_OUT = 10

_TB_CANDIDATES = (256, 224, 192, 160, 128, 96, 64, 32, 16, 8)
_VMEM_HEADROOM = 12 << 20   # left for compiler scratch / constants


def ff_resnet_kernel(x_ref, w1_ref, b1_ref, w1r_ref, b1r_ref,
                     w2_ref, b2_ref, w3_ref, b3_ref, w3r_ref, b3r_ref,
                     o_ref):
    # In-VMEM bf16 cast of the f32 x tile (hidden under the tile's DMA); keeps
    # the big matmul strictly bf16 x bf16 on the MXU with f32 accumulation.
    x_bf16 = x_ref[...].astype(jnp.bfloat16)
    h1 = jnp.tanh(
        jnp.dot(x_bf16, w1_ref[...], preferred_element_type=jnp.float32)
        + b1_ref[...])
    # Residual block 1 (200 -> 200), f32.
    h1 = h1 + jnp.tanh(
        jnp.dot(h1, w1r_ref[...], preferred_element_type=jnp.float32)
        + b1r_ref[...])
    # 200 -> 50
    h2 = jnp.tanh(
        jnp.dot(h1, w2_ref[...], preferred_element_type=jnp.float32)
        + b2_ref[...])
    # 50 -> 10
    h3 = jnp.tanh(
        jnp.dot(h2, w3_ref[...], preferred_element_type=jnp.float32)
        + b3_ref[...])
    # Residual block 2 (10 -> 10)
    out = h3 + jnp.tanh(
        jnp.dot(h3, w3r_ref[...], preferred_element_type=jnp.float32)
        + b3r_ref[...])
    o_ref[...] = out.astype(o_ref.dtype)


def _round_up(a, m):
    return (a + m - 1) // m * m


def _padded_tile_bytes(rows, cols, itemsize):
    """Bytes of one VMEM buffer after sublane/lane layout padding."""
    sub = 8 * (4 // itemsize)          # 8 sublanes for f32, 16 for bf16
    return _round_up(rows, sub) * _round_up(cols, 128) * itemsize


def _vmem_need_bytes(tb):
    """VMEM footprint for one grid step (double-buffering assumed)."""
    need = 0
    need += 2 * _padded_tile_bytes(tb, D_IN, 4)        # x tile, f32, 2 buffers
    need += 1 * _padded_tile_bytes(tb, D_IN, 2)        # in-kernel bf16 copy of x
    need += 2 * _padded_tile_bytes(D_IN, D_H1, 2)      # W1 (bf16, resident)
    for r, c in ((1, D_H1), (D_H1, D_H1), (1, D_H1), (D_H1, D_H2), (1, D_H2),
                 (D_H2, D_OUT), (1, D_OUT), (D_OUT, D_OUT), (1, D_OUT)):
        need += 2 * _padded_tile_bytes(r, c, 4)        # small f32 weights/biases
    need += 2 * _padded_tile_bytes(tb, D_OUT, 4)       # output tile
    need += 4 * _padded_tile_bytes(tb, D_H1, 4)        # f32 epilogue temps
    return need


def _vmem_capacity_bytes():
    try:
        return int(pltpu.get_tpu_info().vmem_capacity_bytes)
    except Exception:
        return 64 << 20   # conservative: v7x per-TensorCore VMEM


@functools.lru_cache(maxsize=None)
def _max_tb():
    """Largest batch tile whose footprint fits this generation's VMEM."""
    budget = _vmem_capacity_bytes() - _VMEM_HEADROOM
    for tb in _TB_CANDIDATES:
        if _vmem_need_bytes(tb) <= budget:
            return tb
    return _TB_CANDIDATES[-1]


def prepare_params(params):
    """One-time parameter prep: W1 -> bf16, biases -> (1, N) rows, rest f32."""
    as_row = lambda b: jnp.asarray(b, jnp.float32).reshape(1, -1)
    return dict(
        w1=jnp.asarray(params["w1"], jnp.bfloat16),
        b1=as_row(params["b1"]),
        w1r=jnp.asarray(params["w1r"], jnp.float32),
        b1r=as_row(params["b1r"]),
        w2=jnp.asarray(params["w2"], jnp.float32),
        b2=as_row(params["b2"]),
        w3=jnp.asarray(params["w3"], jnp.float32),
        b3=as_row(params["b3"]),
        w3r=jnp.asarray(params["w3r"], jnp.float32),
        b3r=as_row(params["b3r"]),
    )


@jax.jit
def ff_resnet_forward(x, prep):
    """x: (B, ...) flattening to (B, 15000). Returns (B, 5, 2)."""
    B = x.shape[0]
    x2 = x.reshape(B, -1)                       # stays f32; no wrapper cast/pad
    assert x2.shape[1] == D_IN, f"expected {D_IN} features, got {x2.shape[1]}"

    max_tb = _max_tb()
    if B <= 64:
        # Single tile; batch dim equals the full array dim so no (8,128) issue.
        tb, nb = B, 1
    else:
        # At least two parallel tiles so v7x's second TensorCore gets work;
        # tb is a multiple of 8 sized to minimize ragged-edge waste.
        nb = max(2, pl.cdiv(B, max_tb))
        tb = min(max_tb, _round_up(pl.cdiv(B, nb), 8))
        nb = pl.cdiv(B, tb)

    vmem_limit = _vmem_need_bytes(tb) + (6 << 20)

    small_param_elems = (D_H1 * D_H1 + D_H1 + D_H1 + D_H1 * D_H2 + D_H2 +
                         D_H2 * D_OUT + D_OUT + D_OUT * D_OUT + D_OUT)
    cost = pl.CostEstimate(
        flops=2 * B * (D_IN * D_H1 + D_H1 * D_H1 + D_H1 * D_H2 +
                       D_H2 * D_OUT + D_OUT * D_OUT),
        transcendentals=B * (2 * D_H1 + D_H2 + 2 * D_OUT),
        bytes_accessed=(B * D_IN * 4 + D_IN * D_H1 * 2 +
                        4 * small_param_elems + B * D_OUT * 4),
    )

    full = lambda r, c: pl.BlockSpec((r, c), lambda b: (0, 0))

    out = pl.pallas_call(
        ff_resnet_kernel,
        out_shape=jax.ShapeDtypeStruct((B, D_OUT), jnp.float32),
        grid_spec=pltpu.PrefetchScalarGridSpec(
            num_scalar_prefetch=0,
            grid=(nb,),
            in_specs=[
                pl.BlockSpec((tb, D_IN), lambda b: (b, 0)),  # x batch tile (f32)
                full(D_IN, D_H1),                            # W1 (bf16, resident)
                full(1, D_H1),                               # b1
                full(D_H1, D_H1),                            # W1_res
                full(1, D_H1),                               # b1_res
                full(D_H1, D_H2),                            # W2
                full(1, D_H2),                               # b2
                full(D_H2, D_OUT),                           # W3
                full(1, D_OUT),                              # b3
                full(D_OUT, D_OUT),                          # W3_res
                full(1, D_OUT),                              # b3_res
            ],
            out_specs=pl.BlockSpec((tb, D_OUT), lambda b: (b, 0)),
        ),
        compiler_params=pltpu.CompilerParams(
            dimension_semantics=("parallel",),
            vmem_limit_bytes=int(vmem_limit),
        ),
        cost_estimate=cost,
    )(x2, prep["w1"], prep["b1"], prep["w1r"], prep["b1r"],
      prep["w2"], prep["b2"], prep["w3"], prep["b3"],
      prep["w3r"], prep["b3r"])

    return out.reshape(-1, 5, 2)


def init_params(key):
    """Deterministic init mimicking torch.nn.Linear (U[-1/sqrt(fan_in), +])."""
    def linear(key, fan_in, fan_out):
        kw, kb = jax.random.split(key)
        bound = 1.0 / jnp.sqrt(fan_in)
        w = jax.random.uniform(kw, (fan_in, fan_out), jnp.float32, -bound, bound)
        b = jax.random.uniform(kb, (fan_out,), jnp.float32, -bound, bound)
        return w, b

    keys = jax.random.split(key, 5)
    w1, b1 = linear(keys[0], D_IN, D_H1)
    w1r, b1r = linear(keys[1], D_H1, D_H1)
    w2, b2 = linear(keys[2], D_H1, D_H2)
    w3, b3 = linear(keys[3], D_H2, D_OUT)
    w3r, b3r = linear(keys[4], D_OUT, D_OUT)
    return dict(w1=w1, b1=b1, w1r=w1r, b1r=b1r, w2=w2, b2=b2,
                w3=w3, b3=b3, w3r=w3r, b3r=b3r)


def ff_resnet_ref(x, p):
    """Pure-JAX f32 reference mirroring the PyTorch forward."""
    x = x.reshape(x.shape[0], -1)
    h = jnp.tanh(x @ p["w1"] + p["b1"])
    h = h + jnp.tanh(h @ p["w1r"] + p["b1r"])
    h = jnp.tanh(h @ p["w2"] + p["b2"])
    h = jnp.tanh(h @ p["w3"] + p["b3"])
    h = h + jnp.tanh(h @ p["w3r"] + p["b3r"])
    return h.reshape(-1, 5, 2)


if __name__ == "__main__":
    key = jax.random.PRNGKey(0)
    kx, kp = jax.random.split(key)

    params = init_params(kp)
    prep = prepare_params(params)   # one-time: W1 -> bf16, biases -> (1, N)

    # Small-batch path (single tile, grid of 1).
    B = 2
    x = jax.random.normal(kx, (B, D_IN), dtype=jnp.float32)
    out = jax.block_until_ready(ff_resnet_forward(x, prep))
    ref = ff_resnet_ref(x, params)
    assert out.shape == (B, 5, 2), out.shape
    # bf16 x/W1 streaming in the first layer => loosened tolerance vs f32 ref.
    assert jnp.allclose(out, ref, rtol=2e-2, atol=2e-2), (
        float(jnp.max(jnp.abs(out - ref))))

    # Multi-tile path with a ragged last block (no wrapper pad).
    B2 = 70
    x2 = jax.random.normal(jax.random.PRNGKey(1), (B2, D_IN), dtype=jnp.float32)
    out2 = jax.block_until_ready(ff_resnet_forward(x2, prep))
    ref2 = ff_resnet_ref(x2, params)
    assert out2.shape == (B2, 5, 2), out2.shape
    assert jnp.allclose(out2, ref2, rtol=2e-2, atol=2e-2), (
        float(jnp.max(jnp.abs(out2 - ref2))))

    print("KERNEL_OK")
</pallas_src>

<mosaic_0001>
module attributes {stable_mosaic.version = 11 : i64} {
  func.func @ff_resnet_kernel(%arg0: i32, %arg1: memref<2x15000xf32, #tpu.memory_space<vmem>>, %arg2: memref<15000x200xbf16, #tpu.memory_space<vmem>>, %arg3: memref<1x200xf32, #tpu.memory_space<vmem>>, %arg4: memref<200x200xf32, #tpu.memory_space<vmem>>, %arg5: memref<1x200xf32, #tpu.memory_space<vmem>>, %arg6: memref<200x50xf32, #tpu.memory_space<vmem>>, %arg7: memref<1x50xf32, #tpu.memory_space<vmem>>, %arg8: memref<50x10xf32, #tpu.memory_space<vmem>>, %arg9: memref<1x10xf32, #tpu.memory_space<vmem>>, %arg10: memref<10x10xf32, #tpu.memory_space<vmem>>, %arg11: memref<1x10xf32, #tpu.memory_space<vmem>>, %arg12: memref<2x10xf32, #tpu.memory_space<vmem>>) attributes {dimension_semantics = [#tpu.dimension_semantics<parallel>], iteration_bounds = array<i64: 1>, scalar_prefetch = 0 : i64, scratch_operands = 0 : i64, tpu.core_type = #tpu.core_type<tc>, window_params = [{transform_indices = @transform_0, window_bounds = array<i64: 2, 15000>}, {pipeline_mode = #tpu.pipeline_mode<synchronous>, transform_indices = @transform_1, window_bounds = array<i64: 15000, 200>}, {pipeline_mode = #tpu.pipeline_mode<synchronous>, transform_indices = @transform_2, window_bounds = array<i64: 1, 200>}, {pipeline_mode = #tpu.pipeline_mode<synchronous>, transform_indices = @transform_3, window_bounds = array<i64: 200, 200>}, {pipeline_mode = #tpu.pipeline_mode<synchronous>, transform_indices = @transform_4, window_bounds = array<i64: 1, 200>}, {pipeline_mode = #tpu.pipeline_mode<synchronous>, transform_indices = @transform_5, window_bounds = array<i64: 200, 50>}, {pipeline_mode = #tpu.pipeline_mode<synchronous>, transform_indices = @transform_6, window_bounds = array<i64: 1, 50>}, {pipeline_mode = #tpu.pipeline_mode<synchronous>, transform_indices = @transform_7, window_bounds = array<i64: 50, 10>}, {pipeline_mode = #tpu.pipeline_mode<synchronous>, transform_indices = @transform_8, window_bounds = array<i64: 1, 10>}, {pipeline_mode = #tpu.pipeline_mode<synchronous>, transform_indices = @transform_9, window_bounds = array<i64: 10, 10>}, {pipeline_mode = #tpu.pipeline_mode<synchronous>, transform_indices = @transform_10, window_bounds = array<i64: 1, 10>}, {transform_indices = @transform_11, window_bounds = array<i64: 2, 10>}]} {
    %c0 = arith.constant 0 : index
    %c0_0 = arith.constant 0 : index
    %0 = vector.load %arg1[%c0, %c0_0] : memref<2x15000xf32, #tpu.memory_space<vmem>>, vector<2x15000xf32>
    %1 = arith.truncf %0 : vector<2x15000xf32> to vector<2x15000xbf16>
    %c0_1 = arith.constant 0 : index
    %c0_2 = arith.constant 0 : index
    %2 = vector.load %arg2[%c0_1, %c0_2] : memref<15000x200xbf16, #tpu.memory_space<vmem>>, vector<15000x200xbf16>
    %cst = arith.constant dense<0.000000e+00> : vector<2x200xf32>
    %3 = tpu.matmul %1, %2, %cst {dimension_numbers = #tpu.dot_dimension_numbers<[1], [0], [0], [1], [0, 0, 1, 1], [], []>} : vector<2x15000xbf16>, vector<15000x200xbf16>, vector<2x200xf32> -> vector<2x200xf32>
    %c0_3 = arith.constant 0 : index
    %c0_4 = arith.constant 0 : index
    %4 = vector.load %arg3[%c0_3, %c0_4] : memref<1x200xf32, #tpu.memory_space<vmem>>, vector<1x200xf32>
    %5 = vector.broadcast %4 : vector<1x200xf32> to vector<2x200xf32>
    %6 = arith.addf %3, %5 : vector<2x200xf32>
    %7 = math.tanh %6 : vector<2x200xf32>
    %c0_5 = arith.constant 0 : index
    %c0_6 = arith.constant 0 : index
    %8 = vector.load %arg4[%c0_5, %c0_6] : memref<200x200xf32, #tpu.memory_space<vmem>>, vector<200x200xf32>
    %cst_7 = arith.constant dense<0.000000e+00> : vector<2x200xf32>
    %9 = tpu.matmul %7, %8, %cst_7 {dimension_numbers = #tpu.dot_dimension_numbers<[1], [0], [0], [1], [0, 0, 1, 1], [], []>} : vector<2x200xf32>, vector<200x200xf32>, vector<2x200xf32> -> vector<2x200xf32>
    %c0_8 = arith.constant 0 : index
    %c0_9 = arith.constant 0 : index
    %10 = vector.load %arg5[%c0_8, %c0_9] : memref<1x200xf32, #tpu.memory_space<vmem>>, vector<1x200xf32>
    %11 = vector.broadcast %10 : vector<1x200xf32> to vector<2x200xf32>
    %12 = arith.addf %9, %11 : vector<2x200xf32>
    %13 = math.tanh %12 : vector<2x200xf32>
    %14 = arith.addf %7, %13 : vector<2x200xf32>
    %c0_10 = arith.constant 0 : index
    %c0_11 = arith.constant 0 : index
    %15 = vector.load %arg6[%c0_10, %c0_11] : memref<200x50xf32, #tpu.memory_space<vmem>>, vector<200x50xf32>
    %cst_12 = arith.constant dense<0.000000e+00> : vector<2x50xf32>
    %16 = tpu.matmul %14, %15, %cst_12 {dimension_numbers = #tpu.dot_dimension_numbers<[1], [0], [0], [1], [0, 0, 1, 1], [], []>} : vector<2x200xf32>, vector<200x50xf32>, vector<2x50xf32> -> vector<2x50xf32>
    %c0_13 = arith.constant 0 : index
    %c0_14 = arith.constant 0 : index
    %17 = vector.load %arg7[%c0_13, %c0_14] : memref<1x50xf32, #tpu.memory_space<vmem>>, vector<1x50xf32>
    %18 = vector.broadcast %17 : vector<1x50xf32> to vector<2x50xf32>
    %19 = arith.addf %16, %18 : vector<2x50xf32>
    %20 = math.tanh %19 : vector<2x50xf32>
    %c0_15 = arith.constant 0 : index
    %c0_16 = arith.constant 0 : index
    %21 = vector.load %arg8[%c0_15, %c0_16] : memref<50x10xf32, #tpu.memory_space<vmem>>, vector<50x10xf32>
    %cst_17 = arith.constant dense<0.000000e+00> : vector<2x10xf32>
    %22 = tpu.matmul %20, %21, %cst_17 {dimension_numbers = #tpu.dot_dimension_numbers<[1], [0], [0], [1], [0, 0, 1, 1], [], []>} : vector<2x50xf32>, vector<50x10xf32>, vector<2x10xf32> -> vector<2x10xf32>
    %c0_18 = arith.constant 0 : index
    %c0_19 = arith.constant 0 : index
    %23 = vector.load %arg9[%c0_18, %c0_19] : memref<1x10xf32, #tpu.memory_space<vmem>>, vector<1x10xf32>
    %24 = vector.broadcast %23 : vector<1x10xf32> to vector<2x10xf32>
    %25 = arith.addf %22, %24 : vector<2x10xf32>
    %26 = math.tanh %25 : vector<2x10xf32>
    %c0_20 = arith.constant 0 : index
    %c0_21 = arith.constant 0 : index
    %27 = vector.load %arg10[%c0_20, %c0_21] : memref<10x10xf32, #tpu.memory_space<vmem>>, vector<10x10xf32>
    %cst_22 = arith.constant dense<0.000000e+00> : vector<2x10xf32>
    %28 = tpu.matmul %26, %27, %cst_22 {dimension_numbers = #tpu.dot_dimension_numbers<[1], [0], [0], [1], [0, 0, 1, 1], [], []>} : vector<2x10xf32>, vector<10x10xf32>, vector<2x10xf32> -> vector<2x10xf32>
    %c0_23 = arith.constant 0 : index
    %c0_24 = arith.constant 0 : index
    %29 = vector.load %arg11[%c0_23, %c0_24] : memref<1x10xf32, #tpu.memory_space<vmem>>, vector<1x10xf32>
    %30 = vector.broadcast %29 : vector<1x10xf32> to vector<2x10xf32>
    %31 = arith.addf %28, %30 : vector<2x10xf32>
    %32 = math.tanh %31 : vector<2x10xf32>
    %33 = arith.addf %26, %32 : vector<2x10xf32>
    %c0_25 = arith.constant 0 : index
    %c0_26 = arith.constant 0 : index
    %34 = vector.load %arg12[%c0_25, %c0_26] : memref<2x10xf32, #tpu.memory_space<vmem>>, vector<2x10xf32>
    tpu.vector_store %arg12[%c0_25, %c0_26], %33 {strides = array<i32>} : memref<2x10xf32, #tpu.memory_space<vmem>>, vector<2x10xf32>,
    return
  }
  func.func @transform_0(%arg0: i32) -> (i32, i32) {
    %c0_i32 = arith.constant 0 : i32
    %c0_i32_0 = arith.constant 0 : i32
    return %arg0, %c0_i32 : i32, i32
  }
  func.func @transform_1(%arg0: i32) -> (i32, i32) {
    %c0_i32 = arith.constant 0 : i32
    %c0_i32_0 = arith.constant 0 : i32
    %c0_i32_1 = arith.constant 0 : i32
    return %c0_i32, %c0_i32_0 : i32, i32
  }
  func.func @transform_2(%arg0: i32) -> (i32, i32) {
    %c0_i32 = arith.constant 0 : i32
    %c0_i32_0 = arith.constant 0 : i32
    %c0_i32_1 = arith.constant 0 : i32
    return %c0_i32, %c0_i32_0 : i32, i32
  }
  func.func @transform_3(%arg0: i32) -> (i32, i32) {
    %c0_i32 = arith.constant 0 : i32
    %c0_i32_0 = arith.constant 0 : i32
    %c0_i32_1 = arith.constant 0 : i32
    return %c0_i32, %c0_i32_0 : i32, i32
  }
  func.func @transform_4(%arg0: i32) -> (i32, i32) {
    %c0_i32 = arith.constant 0 : i32
    %c0_i32_0 = arith.constant 0 : i32
    %c0_i32_1 = arith.constant 0 : i32
    return %c0_i32, %c0_i32_0 : i32, i32
  }
  func.func @transform_5(%arg0: i32) -> (i32, i32) {
    %c0_i32 = arith.constant 0 : i32
    %c0_i32_0 = arith.constant 0 : i32
    %c0_i32_1 = arith.constant 0 : i32
    return %c0_i32, %c0_i32_0 : i32, i32
  }
  func.func @transform_6(%arg0: i32) -> (i32, i32) {
    %c0_i32 = arith.constant 0 : i32
    %c0_i32_0 = arith.constant 0 : i32
    %c0_i32_1 = arith.constant 0 : i32
    return %c0_i32, %c0_i32_0 : i32, i32
  }
  func.func @transform_7(%arg0: i32) -> (i32, i32) {
    %c0_i32 = arith.constant 0 : i32
    %c0_i32_0 = arith.constant 0 : i32
    %c0_i32_1 = arith.constant 0 : i32
    return %c0_i32, %c0_i32_0 : i32, i32
  }
  func.func @transform_8(%arg0: i32) -> (i32, i32) {
    %c0_i32 = arith.constant 0 : i32
    %c0_i32_0 = arith.constant 0 : i32
    %c0_i32_1 = arith.constant 0 : i32
    return %c0_i32, %c0_i32_0 : i32, i32
  }
  func.func @transform_9(%arg0: i32) -> (i32, i32) {
    %c0_i32 = arith.constant 0 : i32
    %c0_i32_0 = arith.constant 0 : i32
    %c0_i32_1 = arith.constant 0 : i32
    return %c0_i32, %c0_i32_0 : i32, i32
  }
  func.func @transform_10(%arg0: i32) -> (i32, i32) {
    %c0_i32 = arith.constant 0 : i32
    %c0_i32_0 = arith.constant 0 : i32
    %c0_i32_1 = arith.constant 0 : i32
    return %c0_i32, %c0_i32_0 : i32, i32
  }
  func.func @transform_11(%arg0: i32) -> (i32, i32) {
    %c0_i32 = arith.constant 0 : i32
    %c0_i32_0 = arith.constant 0 : i32
    return %arg0, %c0_i32 : i32, i32
  }
}

</mosaic_0001>

<bundles_post_ra>
// kernel: ff_resnet_forward.1
= control target key start
LH: loop header
LB: loop body
LE: loop exit
PB: predicated region body
PF: predicated region fallthrough
CT: control target
= control target key end

     0   :  { %v20075_v36 = vmov 1983009808   ;;  %v103_v38 = vlaneseq  ;;  %vm12098_vm0 = vcmask 195584   ;;  %vm12102_vm1 = vcmask 1043456   ;;  %s26709_s1 = inlined_call_operand.vmem [shape: bf16[15000,200], index: 1, kind: input, shape index: {}]   ;;  %s26710_s0 = inlined_call_operand.vmem [shape: f32[2,15000], index: 0, kind: input, shape index: {}]   ;;  %s26711_s3 = inlined_call_operand.vmem [shape: f32[200,200], index: 3, kind: input, shape index: {}]   ;;  %s26712_s2 = inlined_call_operand.vmem [shape: f32[1,200], index: 2, kind: input, shape index: {}]   ;;  %s26713_s5 = inlined_call_operand.vmem [shape: f32[200,50], index: 5, kind: input, shape index: {}]   ;;  %s26714_s4 = inlined_call_operand.vmem [shape: f32[1,200], index: 4, kind: input, shape index: {}]   ;;  %s26715_s7 = inlined_call_operand.vmem [shape: f32[50,10], index: 7, kind: input, shape index: {}]   ;;  %s26716_s6 = inlined_call_operand.vmem [shape: f32[1,50], index: 6, kind: input, shape index: {}]   ;;  %s26717_s9 = inlined_call_operand.vmem [shape: f32[10,10], index: 9, kind: input, shape index: {}]   ;;  %s26718_s8 = inlined_call_operand.vmem [shape: f32[1,10], index: 8, kind: input, shape index: {}]   ;;  %s26719_s10 = inlined_call_operand.vmem [shape: f32[1,10], index: 10, kind: input, shape index: {}]   ;;  %s26720_s11 = inlined_call_operand.vmem [shape: f32[2,10], index: 11, kind: output, shape index: {}]  }
   0x1   :  { %v17219_v0 = vld [vmem:[%s26709_s1 + $0x4] ss:$8 sps:$4 sm:$0xff]   ;;  %v17223_v2 = vld [vmem:[%s26709_s1] ss:$8 sps:$4 sm:$0xff]   ;;  %v17225_v4 = vld [vmem:[%s26709_s1 + $0x14] ss:$8 sps:$4 sm:$0xff]   ;;  %v101_v37 = vunpack.c.l.s4 %v20075_v36 }
   0x2   :  { %v17221_v1 = vld [vmem:[%s26709_s1 + $0x1c04] ss:$8 sps:$4 sm:$0xff]   ;;  %12109 = vmatprep.subr.bf16.mxu1 %v17219_v0  ;;  %v17224_v3 = vld [vmem:[%s26709_s1 + $0x1c00] ss:$8 sps:$4 sm:$0xff]   ;;  %v17227_v5 = vld [vmem:[%s26709_s1 + $0x1c14] ss:$8 sps:$4 sm:$0xff]  }
   0x3   :  { %13257 = vmatprep.subr.bf16.mxu0 %v17221_v1  ;;  %12110 = vmatpush1.bf16.msra.mxu1 %v17223_v2  ;;  %v17229_v6 = vld [vmem:[%s26709_s1 + $0x10] ss:$8 sps:$4 sm:$0xff]   ;;  %v17231_v8 = vld [vmem:[%s26709_s1 + $0x24] ss:$8 sps:$4 sm:$0xff]   ;;  %v17235_v10 = vld [vmem:[%s26709_s1 + $0x20] ss:$8 sps:$4 sm:$0xff]   ;;  %v102_v42 = vunpack.c.0.s8 %v101_v37 }
   0x4   :  { %13258 = vmatpush1.bf16.msra.mxu0 %v17224_v3  ;;  %12111 = vmatprep.subr.bf16.mxu1 %v17225_v4  ;;  %v17230_v7 = vld [vmem:[%s26709_s1 + $0x1c10] ss:$8 sps:$4 sm:$0xff]   ;;  %v17233_v9 = vld [vmem:[%s26709_s1 + $0x1c24] ss:$8 sps:$4 sm:$0xff]   ;;  %v17236_v11 = vld [vmem:[%s26709_s1 + $0x1c20] ss:$8 sps:$4 sm:$0xff]  }
   0x5   :  { %13259 = vmatprep.subr.bf16.mxu0 %v17227_v5  ;;  %v17237_v12 = vld [vmem:[%s26709_s1 + $0x34] ss:$8 sps:$4 sm:$0xff]   ;;  %v17241_v14 = vld [vmem:[%s26709_s1 + $0x30] ss:$8 sps:$4 sm:$0xff]   ;;  %v17243_v16 = vld [vmem:[%s26709_s1 + $0x44] ss:$8 sps:$4 sm:$0xff]  }
   0x6   :  { %v17239_v13 = vld [vmem:[%s26709_s1 + $0x1c34] ss:$8 sps:$4 sm:$0xff]   ;;  %v17242_v15 = vld [vmem:[%s26709_s1 + $0x1c30] ss:$8 sps:$4 sm:$0xff]   ;;  %v17245_v17 = vld [vmem:[%s26709_s1 + $0x1c44] ss:$8 sps:$4 sm:$0xff]  }
   0x7   :  { %12112 = vmatpush1.bf16.msra.mxu1 %v17229_v6  ;;  %v17247_v18 = vld [vmem:[%s26709_s1 + $0x40] ss:$8 sps:$4 sm:$0xff]   ;;  %v17249_v20 = vld [vmem:[%s26709_s1 + $0x54] ss:$8 sps:$4 sm:$0xff]   ;;  %v17253_v22 = vld [vmem:[%s26709_s1 + $0x50] ss:$8 sps:$4 sm:$0xff]  }
   0x8   :  { %13260 = vmatpush1.bf16.msra.mxu0 %v17230_v7  ;;  %12113 = vmatprep.subr.bf16.mxu1 %v17231_v8  ;;  %v17248_v19 = vld [vmem:[%s26709_s1 + $0x1c40] ss:$8 sps:$4 sm:$0xff]   ;;  %v17251_v21 = vld [vmem:[%s26709_s1 + $0x1c54] ss:$8 sps:$4 sm:$0xff]   ;;  %v17254_v23 = vld [vmem:[%s26709_s1 + $0x1c50] ss:$8 sps:$4 sm:$0xff]  }
   0x9   :  { %13261 = vmatprep.subr.bf16.mxu0 %v17233_v9  ;;  %v17255_v24 = vld [vmem:[%s26709_s1 + $0x64] ss:$8 sps:$4 sm:$0xff]   ;;  %v17259_v26 = vld [vmem:[%s26709_s1 + $0x60] ss:$8 sps:$4 sm:$0xff]   ;;  %v17261_v28 = vld [vmem:[%s26709_s1 + $0x74] ss:$8 sps:$4 sm:$0xff]  }
   0xa   :  { %v17257_v25 = vld [vmem:[%s26709_s1 + $0x1c64] ss:$8 sps:$4 sm:$0xff]   ;;  %v17260_v27 = vld [vmem:[%s26709_s1 + $0x1c60] ss:$8 sps:$4 sm:$0xff]   ;;  %v17263_v29 = vld [vmem:[%s26709_s1 + $0x1c74] ss:$8 sps:$4 sm:$0xff]  }
   0xb   :  { %12114 = vmatpush1.bf16.msra.mxu1 %v17235_v10  ;;  %v17265_v30 = vld [vmem:[%s26709_s1 + $0x70] ss:$8 sps:$4 sm:$0xff]   ;;  %v17267_v32 = vld [vmem:[%s26709_s1 + $0x84] ss:$8 sps:$4 sm:$0xff]   ;;  %v17271_v34 = vld [vmem:[%s26709_s1 + $0x80] ss:$8 sps:$4 sm:$0xff]  }
   0xc   :  { %13262 = vmatpush1.bf16.msra.mxu0 %v17236_v11  ;;  %12115 = vmatprep.subr.bf16.mxu1 %v17237_v12  ;;  %v17266_v31 = vld [vmem:[%s26709_s1 + $0x1c70] ss:$8 sps:$4 sm:$0xff]   ;;  %v17269_v33 = vld [vmem:[%s26709_s1 + $0x1c84] ss:$8 sps:$4 sm:$0xff]   ;;  %v17272_v35 = vld [vmem:[%s26709_s1 + $0x1c80] ss:$8 sps:$4 sm:$0xff]  }
   0xd   :  { %13263 = vmatprep.subr.bf16.mxu0 %v17239_v13  ;;  %v17273_v39 = vld [vmem:[%s26709_s1 + $0x94] ss:$8 sps:$4 sm:$0xff]   ;;  %v17277_v41 = vld [vmem:[%s26709_s1 + $0x90] ss:$8 sps:$4 sm:$0xff]   ;;  %v20257_v43 = vshrl.u32 %v103_v38, 7  ;;  %v39_v52 = vld [vmem:[%s26710_s0] sm:$0xff] }
   0xe   :  { %v17275_v40 = vld [vmem:[%s26709_s1 + $0x1c94] ss:$8 sps:$4 sm:$0xff]   ;;  %v17278_v44 = vld [vmem:[%s26709_s1 + $0x1c90] ss:$8 sps:$4 sm:$0xff]   ;;  %v17279_v45 = vld [vmem:[%s26709_s1 + $0xa4] ss:$8 sps:$4 sm:$0xff]   ;;  %v99_v8 = vcombine.high %v39_v52, %v39_v52 }
   0xf   :  { %12116 = vmatpush1.bf16.msra.mxu1 %v17241_v14  ;;  %v17281_v46 = vld [vmem:[%s26709_s1 + $0x1ca4] ss:$8 sps:$4 sm:$0xff]   ;;  %v17283_v47 = vld [vmem:[%s26709_s1 + $0xa0] ss:$8 sps:$4 sm:$0xff]   ;;  %v20275_v49 = vsub.s32 %v102_v42, %v20257_v43  ;;  %v17285_v50 = vld [vmem:[%s26709_s1 + $0xb4] ss:$8 sps:$4 sm:$0xff]  }
  0x10   :  { %13264 = vmatpush1.bf16.msra.mxu0 %v17242_v15  ;;  %12117 = vmatprep.subr.bf16.mxu1 %v17243_v16  ;;  %v17284_v48 = vld [vmem:[%s26709_s1 + $0x1ca0] ss:$8 sps:$4 sm:$0xff]   ;;  %v17287_v51 = vld [vmem:[%s26709_s1 + $0x1cb4] ss:$8 sps:$4 sm:$0xff]   ;;  %v17289_v53 = vld [vmem:[%s26709_s1 + $0xb0] ss:$8 sps:$4 sm:$0xff]  }
  0x11   :  { %13265 = vmatprep.subr.bf16.mxu0 %v17245_v17  ;;  %v20290_v54 = vrot.slane %v39_v52, %v20275_v49  ;;  %v17290_v55 = vld [vmem:[%s26709_s1 + $0x1cb0] ss:$8 sps:$4 sm:$0xff]   ;;  %v17291_v57 = vld [vmem:[%s26709_s1 + $0xc4] ss:$8 sps:$4 sm:$0xff]   ;;  %v17295_v63 = vld [vmem:[%s26709_s1 + $0xc0] ss:$8 sps:$4 sm:$0xff]   ;;  %v20344_v14 = vrot.slane %v99_v8, %v20275_v49 }
  0x12   :  { %v53_v56 = vld [vmem:[%s26710_s0 + $0x70] sm:$0xff]  ;;  %v17293_v58 = vld [vmem:[%s26709_s1 + $0x1cc4] ss:$8 sps:$4 sm:$0xff]   ;;  %v17296_v0 = vld [vmem:[%s26709_s1 + $0x1cc0] ss:$8 sps:$4 sm:$0xff]   ;;  %vm14592_vm2 = vcmask 588800  }
  0x13   :  { %12118 = vmatpush1.bf16.msra.mxu1 %v17247_v18  ;;  %v114_v59 = vcombine.high %v20290_v54, %v20290_v54  ;;  %v344_v60 = vrot.slane %v53_v56, %v20275_v49  ;;  %v17297_v1 = vld [vmem:[%s26709_s1 + $0xd4] ss:$8 sps:$4 sm:$0xff]   ;;  %v17301_v4 = vld [vmem:[%s26709_s1 + $0xd0] ss:$8 sps:$4 sm:$0xff]   ;;  %v17303_v6 = vld [vmem:[%s26709_s1 + $0xe4] ss:$8 sps:$4 sm:$0xff]   ;;  %v337_v9 = vcombine.high %v53_v56, %v53_v56 }
  0x14   :  { %13266 = vmatpush1.bf16.msra.mxu0 %v17248_v19  ;;  %12119 = vmatprep.subr.bf16.mxu1 %v17249_v20  ;;  %v17299_v2 = vld [vmem:[%s26709_s1 + $0x1cd4] ss:$8 sps:$4 sm:$0xff]   ;;  %v17302_v5 = vld [vmem:[%s26709_s1 + $0x1cd0] ss:$8 sps:$4 sm:$0xff]   ;;  %v17305_v7 = vld [vmem:[%s26709_s1 + $0x1ce4] ss:$8 sps:$4 sm:$0xff]   ;;  %v115_v20 = vcombine.high %v20344_v14, %v20344_v14 }
  0x15   :  { %13267 = vmatprep.subr.bf16.mxu0 %v17251_v21  ;;  %v719_v61 = vpack.c.bf16 %v114_v59, %v114_v59  ;;  %v352_v62 = vcombine.high %v344_v60, %v344_v60  ;;  %v17307_v10 = vld [vmem:[%s26709_s1 + $0xe0] ss:$8 sps:$4 sm:$0xff]   ;;  %v17309_v12 = vld [vmem:[%s26709_s1 + $0xf4] ss:$8 sps:$4 sm:$0xff]   ;;  %v20347_v15 = vrot.slane %v337_v9, %v20275_v49  ;;  %v17313_v16 = vld [vmem:[%s26709_s1 + $0xf0] ss:$8 sps:$4 sm:$0xff]  }
  0x16   :  { %v17308_v11 = vld [vmem:[%s26709_s1 + $0x1ce0] ss:$8 sps:$4 sm:$0xff]   ;;  %v17311_v13 = vld [vmem:[%s26709_s1 + $0x1cf4] ss:$8 sps:$4 sm:$0xff]   ;;  %v17314_v17 = vld [vmem:[%s26709_s1 + $0x1cf0] ss:$8 sps:$4 sm:$0xff]  }
  0x17   :  { %12120 = vmatpush1.bf16.msra.mxu1 %v17253_v22  ;;  %v775_v3 = vpack.c.bf16 %v352_v62, %v352_v62  ;;  %12141 = vmatprep.mubr.bf16.mxu1 %v719_v61  ;;  %v17318_v18 = vld [vmem:[%s26709_s1 + $0x104] ss:$8 sps:$4 sm:$0xff]   ;;  %v353_v21 = vcombine.high %v20347_v15, %v20347_v15  ;;  %v718_v22 = vpack.c.bf16 %v20290_v54, %v20290_v54  ;;  %v17337_v36 = vld [vmem:[%s26709_s1 + $0x134] ss:$8 sps:$4 sm:$0xff]   ;;  %v17335_v38 = vld [vmem:[%s26709_s1 + $0x130] ss:$8 sps:$4 sm:$0xff]  }
  0x18   :  { %13268 = vmatpush1.bf16.msra.mxu0 %v17254_v23  ;;  %12121 = vmatprep.subr.bf16.mxu1 %v17255_v24  ;;  %v17322_v19 = vld [vmem:[%s26709_s1 + $0x1d04] ss:$8 sps:$4 sm:$0xff]   ;;  %v774_v23 = vpack.c.bf16 %v344_v60, %v344_v60  ;;  %v17316_v24 = vld [vmem:[%s26709_s1 + $0x100] ss:$8 sps:$4 sm:$0xff]   ;;  %v17340_v37 = vld [vmem:[%s26709_s1 + $0x1d34] ss:$8 sps:$4 sm:$0xff]  }
  0x19   :  { %13269 = vmatprep.subr.bf16.mxu0 %v17257_v25  ;;  %13289 = vmatprep.mubr.bf16.mxu0 %v775_v3  ;;  %v17320_v25 = vld [vmem:[%s26709_s1 + $0x1d00] ss:$8 sps:$4 sm:$0xff]   ;;  %v17361_v54 = vld [vmem:[%s26709_s1 + $0x174] ss:$8 sps:$4 sm:$0xff]   ;;  %v17359_v56 = vld [vmem:[%s26709_s1 + $0x170] ss:$8 sps:$4 sm:$0xff]  }
  0x1a   :  { %v17341_v42 = vld [vmem:[%s26709_s1 + $0x140] ss:$8 sps:$4 sm:$0xff]   ;;  %v17370_v59 = vld [vmem:[%s26709_s1 + $0x1d84] ss:$8 sps:$4 sm:$0xff]   ;;  %v17373_v62 = vld [vmem:[%s26709_s1 + $0x194] ss:$8 sps:$4 sm:$0xff]  }
  0x1b   :  { %12122 = vmatpush1.bf16.msra.mxu1 %v17259_v26  ;;  %v17325_v26 = vld [vmem:[%s26709_s1 + $0x114] ss:$8 sps:$4 sm:$0xff]   ;;  %v17353_v52 = vld [vmem:[%s26709_s1 + $0x160] ss:$8 sps:$4 sm:$0xff]   ;;  %v17382_v3 = vld [vmem:[%s26709_s1 + $0x1da4] ss:$8 sps:$4 sm:$0xff]  }
  0x1c   :  { %13270 = vmatpush1.bf16.msra.mxu0 %v17260_v27  ;;  %12123 = vmatprep.subr.bf16.mxu1 %v17261_v28  ;;  %v17328_v27 = vld [vmem:[%s26709_s1 + $0x1d14] ss:$8 sps:$4 sm:$0xff]   ;;  %v721_v28 = vpack.c.bf16 %v115_v20, %v115_v20  ;;  %v17365_v60 = vld [vmem:[%s26709_s1 + $0x180] ss:$8 sps:$4 sm:$0xff]   ;;  %v17383_v8 = vld [vmem:[%s26709_s1 + $0x1b0] ss:$8 sps:$4 sm:$0xff]  }
  0x1d   :  { %13271 = vmatprep.subr.bf16.mxu0 %v17263_v29  ;;  %v777_v29 = vpack.c.bf16 %v353_v21, %v353_v21  ;;  %v17368_v61 = vld [vmem:[%s26709_s1 + $0x1d80] ss:$8 sps:$4 sm:$0xff]   ;;  %v17386_v9 = vld [vmem:[%s26709_s1 + $0x1db0] ss:$8 sps:$4 sm:$0xff]   ;;  %v17403_v20 = vld [vmem:[%s26709_s1 + $0x1e4] ss:$8 sps:$4 sm:$0xff]  }
  0x1e   :  { %v17406_v21 = vld [vmem:[%s26709_s1 + $0x1de4] ss:$8 sps:$4 sm:$0xff]   ;;  %vm20078_vm3 = vmmov 0   ;;  %vm14795_vm4 = vcmask 1041408   ;;  %vm14791_vm5 = vcmask 408576   ;;  %vm20079_vm6 = vmmov 1  }
  0x1f   :  { %12124 = vmatpush1.bf16.msra.mxu1 %v17265_v30  ;;  %v17323_v30 = vld [vmem:[%s26709_s1 + $0x110] ss:$8 sps:$4 sm:$0xff]   ;;  %vm16982_vm7 = vmpackc.low %vm14795_vm4, %vm20079_vm6  ;;  %vm14879_vm8 = vcmask 80896   ;;  %vm14958_vm9 = vcmask 74752  }
  0x20   :  { %13272 = vmatpush1.bf16.msra.mxu0 %v17266_v31  ;;  %12125 = vmatprep.subr.bf16.mxu1 %v17267_v32  ;;  %v17326_v31 = vld [vmem:[%s26709_s1 + $0x1d10] ss:$8 sps:$4 sm:$0xff]   ;;  %v17331_v32 = vld [vmem:[%s26709_s1 + $0x124] ss:$8 sps:$4 sm:$0xff]  }
  0x21   :  { %13273 = vmatprep.subr.bf16.mxu0 %v17269_v33  ;;  %v17334_v33 = vld [vmem:[%s26709_s1 + $0x1d24] ss:$8 sps:$4 sm:$0xff]  }
  0x23   :  { %12126 = vmatpush1.bf16.msra.mxu1 %v17271_v34  ;;  %v17329_v34 = vld [vmem:[%s26709_s1 + $0x120] ss:$8 sps:$4 sm:$0xff]  }
  0x24   :  { %13274 = vmatpush1.bf16.msra.mxu0 %v17272_v35  ;;  %12127 = vmatprep.subr.bf16.mxu1 %v17273_v39  ;;  %v17332_v35 = vld [vmem:[%s26709_s1 + $0x1d20] ss:$8 sps:$4 sm:$0xff]   ;;  %v17338_v39 = vld [vmem:[%s26709_s1 + $0x1d30] ss:$8 sps:$4 sm:$0xff]  }
  0x25   :  { %13275 = vmatprep.subr.bf16.mxu0 %v17275_v40  ;;  %v17343_v40 = vld [vmem:[%s26709_s1 + $0x144] ss:$8 sps:$4 sm:$0xff]  }
  0x27   :  { %12128 = vmatpush1.bf16.msra.mxu1 %v17277_v41  ;;  %v17346_v41 = vld [vmem:[%s26709_s1 + $0x1d44] ss:$8 sps:$4 sm:$0xff]  }
  0x28   :  { %13276 = vmatpush1.bf16.msra.mxu0 %v17278_v44  ;;  %12129 = vmatprep.subr.bf16.mxu1 %v17279_v45  ;;  %v17344_v44 = vld [vmem:[%s26709_s1 + $0x1d40] ss:$8 sps:$4 sm:$0xff]   ;;  %v17349_v45 = vld [vmem:[%s26709_s1 + $0x154] ss:$8 sps:$4 sm:$0xff]  }
  0x29   :  { %13277 = vmatprep.subr.bf16.mxu0 %v17281_v46  ;;  %v17352_v46 = vld [vmem:[%s26709_s1 + $0x1d54] ss:$8 sps:$4 sm:$0xff]  }
  0x2b   :  { %12130 = vmatpush1.bf16.msra.mxu1 %v17283_v47  ;;  %v17347_v47 = vld [vmem:[%s26709_s1 + $0x150] ss:$8 sps:$4 sm:$0xff]  }
  0x2c   :  { %13278 = vmatpush1.bf16.msra.mxu0 %v17284_v48  ;;  %12131 = vmatprep.subr.bf16.mxu1 %v17285_v50  ;;  %v17350_v48 = vld [vmem:[%s26709_s1 + $0x1d50] ss:$8 sps:$4 sm:$0xff]   ;;  %v17355_v50 = vld [vmem:[%s26709_s1 + $0x164] ss:$8 sps:$4 sm:$0xff]  }
  0x2d   :  { %13279 = vmatprep.subr.bf16.mxu0 %v17287_v51  ;;  %v17358_v51 = vld [vmem:[%s26709_s1 + $0x1d64] ss:$8 sps:$4 sm:$0xff]  }
  0x2f   :  { %12132 = vmatpush1.bf16.msra.mxu1 %v17289_v53  ;;  %v17356_v53 = vld [vmem:[%s26709_s1 + $0x1d60] ss:$8 sps:$4 sm:$0xff]  }
  0x30   :  { %13280 = vmatpush1.bf16.msra.mxu0 %v17290_v55  ;;  %12133 = vmatprep.subr.bf16.mxu1 %v17291_v57  ;;  %v17364_v55 = vld [vmem:[%s26709_s1 + $0x1d74] ss:$8 sps:$4 sm:$0xff]   ;;  %v17362_v57 = vld [vmem:[%s26709_s1 + $0x1d70] ss:$8 sps:$4 sm:$0xff]  }
  0x31   :  { %13281 = vmatprep.subr.bf16.mxu0 %v17293_v58  ;;  %v17367_v58 = vld [vmem:[%s26709_s1 + $0x184] ss:$8 sps:$4 sm:$0xff]  }
  0x33   :  { %12134 = vmatpush1.bf16.msra.mxu1 %v17295_v63  ;;  %v17376_v63 = vld [vmem:[%s26709_s1 + $0x1d94] ss:$8 sps:$4 sm:$0xff]  }
  0x34   :  { %13282 = vmatpush1.bf16.msra.mxu0 %v17296_v0  ;;  %12135 = vmatprep.subr.bf16.mxu1 %v17297_v1  ;;  %v17371_v0 = vld [vmem:[%s26709_s1 + $0x190] ss:$8 sps:$4 sm:$0xff]  }
  0x35   :  { %13283 = vmatprep.subr.bf16.mxu0 %v17299_v2  ;;  %v17374_v1 = vld [vmem:[%s26709_s1 + $0x1d90] ss:$8 sps:$4 sm:$0xff]   ;;  %v17379_v2 = vld [vmem:[%s26709_s1 + $0x1a4] ss:$8 sps:$4 sm:$0xff]  }
  0x37   :  { %12136 = vmatpush1.bf16.msra.mxu1 %v17301_v4  ;;  %v17377_v4 = vld [vmem:[%s26709_s1 + $0x1a0] ss:$8 sps:$4 sm:$0xff]  }
  0x38   :  { %13284 = vmatpush1.bf16.msra.mxu0 %v17302_v5  ;;  %12137 = vmatprep.subr.bf16.mxu1 %v17303_v6  ;;  %v17380_v5 = vld [vmem:[%s26709_s1 + $0x1da0] ss:$8 sps:$4 sm:$0xff]   ;;  %v17385_v6 = vld [vmem:[%s26709_s1 + $0x1b4] ss:$8 sps:$4 sm:$0xff]  }
  0x39   :  { %13285 = vmatprep.subr.bf16.mxu0 %v17305_v7  ;;  %v17388_v7 = vld [vmem:[%s26709_s1 + $0x1db4] ss:$8 sps:$4 sm:$0xff]  }
  0x3b   :  { %12138 = vmatpush1.bf16.msra.mxu1 %v17307_v10  ;;  %v17391_v10 = vld [vmem:[%s26709_s1 + $0x1c4] ss:$8 sps:$4 sm:$0xff]  }
  0x3c   :  { %13286 = vmatpush1.bf16.msra.mxu0 %v17308_v11  ;;  %12139 = vmatprep.subr.bf16.mxu1 %v17309_v12  ;;  %v17394_v11 = vld [vmem:[%s26709_s1 + $0x1dc4] ss:$8 sps:$4 sm:$0xff]   ;;  %v17389_v12 = vld [vmem:[%s26709_s1 + $0x1c0] ss:$8 sps:$4 sm:$0xff]  }
  0x3d   :  { %13287 = vmatprep.subr.bf16.mxu0 %v17311_v13  ;;  %v17392_v13 = vld [vmem:[%s26709_s1 + $0x1dc0] ss:$8 sps:$4 sm:$0xff]  }
  0x3f   :  { %12140 = vmatpush1.bf16.msra.mxu1 %v17313_v16  ;;  %v17397_v16 = vld [vmem:[%s26709_s1 + $0x1d4] ss:$8 sps:$4 sm:$0xff]  }
  0x40   :  { %13288 = vmatpush1.bf16.msra.mxu0 %v17314_v17  ;;  %12150 = vmatprep.subr.bf16.mxu1 %v17318_v18  ;;  %v17400_v17 = vld [vmem:[%s26709_s1 + $0x1dd4] ss:$8 sps:$4 sm:$0xff]   ;;  %v17395_v18 = vld [vmem:[%s26709_s1 + $0x1d0] ss:$8 sps:$4 sm:$0xff]  }
  0x41   :  { %13298 = vmatprep.subr.bf16.mxu0 %v17322_v19  ;;  %v17398_v19 = vld [vmem:[%s26709_s1 + $0x1dd0] ss:$8 sps:$4 sm:$0xff]  }
  0x42   :  { %12142 = vmatmul.mubr.bf16.vlgmr.msra.gmra.mrb[0].mxu1 %v718_v22  ;;  %v17401_v22 = vld [vmem:[%s26709_s1 + $0x1e0] ss:$8 sps:$4 sm:$0xff]  }
  0x43   :  { %13290 = vmatmul.mubr.bf16.vlgmr.msra.gmra.mrb[0].mxu0 %v774_v23  ;;  %12151 = vmatpush1.bf16.msra.mxu1 %v17316_v24  ;;  %v17404_v23 = vld [vmem:[%s26709_s1 + $0x1de0] ss:$8 sps:$4 sm:$0xff]   ;;  %v17409_v24 = vld [vmem:[%s26709_s1 + $0x1f4] ss:$8 sps:$4 sm:$0xff]  }
  0x44   :  { %13299 = vmatpush1.bf16.msra.mxu0 %v17320_v25  ;;  %12152 = vmatprep.subr.bf16.mxu1 %v17325_v26  ;;  %v17412_v25 = vld [vmem:[%s26709_s1 + $0x1df4] ss:$8 sps:$4 sm:$0xff]   ;;  %v17407_v26 = vld [vmem:[%s26709_s1 + $0x1f0] ss:$8 sps:$4 sm:$0xff]  }
  0x45   :  { %13300 = vmatprep.subr.bf16.mxu0 %v17328_v27  ;;  %12182 = vmatprep.mubr.bf16.mxu1 %v721_v28  ;;  %v17410_v27 = vld [vmem:[%s26709_s1 + $0x1df0] ss:$8 sps:$4 sm:$0xff]   ;;  %v17415_v28 = vld [vmem:[%s26709_s1 + $0x204] ss:$8 sps:$4 sm:$0xff]  }
  0x46   :  { %13330 = vmatprep.mubr.bf16.mxu0 %v777_v29  ;;  %v17418_v29 = vld [vmem:[%s26709_s1 + $0x1e04] ss:$8 sps:$4 sm:$0xff]  }
  0x47   :  { %12153 = vmatpush1.bf16.msra.mxu1 %v17323_v30  ;;  %v17413_v30 = vld [vmem:[%s26709_s1 + $0x200] ss:$8 sps:$4 sm:$0xff]  }
  0x48   :  { %13301 = vmatpush1.bf16.msra.mxu0 %v17326_v31  ;;  %12154 = vmatprep.subr.bf16.mxu1 %v17331_v32  ;;  %v720_v31 = vpack.c.bf16 %v20344_v14, %v20344_v14  ;;  %v776_v32 = vpack.c.bf16 %v20347_v15, %v20347_v15  ;;  %v17424_v14 = vld [vmem:[%s26709_s1 + $0x1e14] ss:$8 sps:$4 sm:$0xff]  }
  0x49   :  { %13302 = vmatprep.subr.bf16.mxu0 %v17334_v33  ;;  %v17416_v33 = vld [vmem:[%s26709_s1 + $0x1e00] ss:$8 sps:$4 sm:$0xff]  }
  0x4b   :  { %12155 = vmatpush1.bf16.msra.mxu1 %v17329_v34  ;;  %v17421_v34 = vld [vmem:[%s26709_s1 + $0x214] ss:$8 sps:$4 sm:$0xff]  }
  0x4c   :  { %13303 = vmatpush1.bf16.msra.mxu0 %v17332_v35  ;;  %12156 = vmatprep.subr.bf16.mxu1 %v17337_v36  ;;  %v20575_v35 = vld [vmem:[%s26710_s0 + $0x8] sm:$0xff]  ;;  %v20587_v36 = vld [vmem:[%s26710_s0 + $0x78] sm:$0xff] }
  0x4d   :  { %13304 = vmatprep.subr.bf16.mxu0 %v17340_v37  ;;  %v20582_v15 = vrot.slane %v20575_v35, %v20275_v49  ;;  %v17419_v37 = vld [vmem:[%s26709_s1 + $0x210] ss:$8 sps:$4 sm:$0xff]  }
  0x4f   :  { %12157 = vmatpush1.bf16.msra.mxu1 %v17335_v38  ;;  %v17422_v38 = vld [vmem:[%s26709_s1 + $0x1e10] ss:$8 sps:$4 sm:$0xff]  }
  0x50   :  { %13305 = vmatpush1.bf16.msra.mxu0 %v17338_v39  ;;  %12158 = vmatprep.subr.bf16.mxu1 %v17343_v40  ;;  %v131_v39 = vcombine.high %v20582_v15, %v20582_v15  ;;  %v20599_v40 = vrot.slane %v20587_v36, %v20275_v49 }
  0x51   :  { %13306 = vmatprep.subr.bf16.mxu0 %v17346_v41  ;;  %v17427_v41 = vld [vmem:[%s26709_s1 + $0x224] ss:$8 sps:$4 sm:$0xff]  }
  0x53   :  { %12159 = vmatpush1.bf16.msra.mxu1 %v17341_v42  ;;  %v17430_v42 = vld [vmem:[%s26709_s1 + $0x1e24] ss:$8 sps:$4 sm:$0xff]  }
  0x54   :  { %13307 = vmatpush1.bf16.msra.mxu0 %v17344_v44  ;;  %12160 = vmatprep.subr.bf16.mxu1 %v17349_v45  ;;  %v723_v44 = vpack.c.bf16 %v131_v39, %v131_v39  ;;  %v369_v45 = vcombine.high %v20599_v40, %v20599_v40  ;;  %v17505_v39 = vld [vmem:[%s26709_s1 + $0x2f4] ss:$8 sps:$4 sm:$0xff]  }
  0x55   :  { %13308 = vmatprep.subr.bf16.mxu0 %v17352_v46  ;;  %v17425_v46 = vld [vmem:[%s26709_s1 + $0x220] ss:$8 sps:$4 sm:$0xff]  }
  0x57   :  { %12161 = vmatpush1.bf16.msra.mxu1 %v17347_v47  ;;  %v17428_v47 = vld [vmem:[%s26709_s1 + $0x1e20] ss:$8 sps:$4 sm:$0xff]  }
  0x58   :  { %13309 = vmatpush1.bf16.msra.mxu0 %v17350_v48  ;;  %12162 = vmatprep.subr.bf16.mxu1 %v17355_v50  ;;  %v779_v48 = vpack.c.bf16 %v369_v45, %v369_v45  ;;  %v17433_v50 = vld [vmem:[%s26709_s1 + $0x234] ss:$8 sps:$4 sm:$0xff]   ;;  %v17511_v45 = vld [vmem:[%s26709_s1 + $0x304] ss:$8 sps:$4 sm:$0xff]  }
  0x59   :  { %13310 = vmatprep.subr.bf16.mxu0 %v17358_v51  ;;  %v17436_v51 = vld [vmem:[%s26709_s1 + $0x1e34] ss:$8 sps:$4 sm:$0xff]  }
  0x5b   :  { %12163 = vmatpush1.bf16.msra.mxu1 %v17353_v52  ;;  %v17431_v52 = vld [vmem:[%s26709_s1 + $0x230] ss:$8 sps:$4 sm:$0xff]  }
  0x5c   :  { %13311 = vmatpush1.bf16.msra.mxu0 %v17356_v53  ;;  %12164 = vmatprep.subr.bf16.mxu1 %v17361_v54  ;;  %v17434_v53 = vld [vmem:[%s26709_s1 + $0x1e30] ss:$8 sps:$4 sm:$0xff]   ;;  %v17439_v54 = vld [vmem:[%s26709_s1 + $0x244] ss:$8 sps:$4 sm:$0xff]  }
  0x5d   :  { %13312 = vmatprep.subr.bf16.mxu0 %v17364_v55  ;;  %v17442_v55 = vld [vmem:[%s26709_s1 + $0x1e44] ss:$8 sps:$4 sm:$0xff]  }
  0x5f   :  { %12165 = vmatpush1.bf16.msra.mxu1 %v17359_v56  ;;  %v17437_v56 = vld [vmem:[%s26709_s1 + $0x240] ss:$8 sps:$4 sm:$0xff]  }
  0x60   :  { %13313 = vmatpush1.bf16.msra.mxu0 %v17362_v57  ;;  %12166 = vmatprep.subr.bf16.mxu1 %v17367_v58  ;;  %v17440_v57 = vld [vmem:[%s26709_s1 + $0x1e40] ss:$8 sps:$4 sm:$0xff]   ;;  %v17445_v58 = vld [vmem:[%s26709_s1 + $0x254] ss:$8 sps:$4 sm:$0xff]  }
  0x61   :  { %13314 = vmatprep.subr.bf16.mxu0 %v17370_v59  ;;  %v17448_v59 = vld [vmem:[%s26709_s1 + $0x1e54] ss:$8 sps:$4 sm:$0xff]  }
  0x63   :  { %12167 = vmatpush1.bf16.msra.mxu1 %v17365_v60  ;;  %v17443_v60 = vld [vmem:[%s26709_s1 + $0x250] ss:$8 sps:$4 sm:$0xff]  }
  0x64   :  { %13315 = vmatpush1.bf16.msra.mxu0 %v17368_v61  ;;  %12168 = vmatprep.subr.bf16.mxu1 %v17373_v62  ;;  %v17446_v61 = vld [vmem:[%s26709_s1 + $0x1e50] ss:$8 sps:$4 sm:$0xff]   ;;  %v17451_v62 = vld [vmem:[%s26709_s1 + $0x264] ss:$8 sps:$4 sm:$0xff]  }
  0x65   :  { %13316 = vmatprep.subr.bf16.mxu0 %v17376_v63  ;;  %v17454_v63 = vld [vmem:[%s26709_s1 + $0x1e64] ss:$8 sps:$4 sm:$0xff]  }
  0x67   :  { %12169 = vmatpush1.bf16.msra.mxu1 %v17371_v0  ;;  %v17449_v0 = vld [vmem:[%s26709_s1 + $0x260] ss:$8 sps:$4 sm:$0xff]  }
  0x68   :  { %13317 = vmatpush1.bf16.msra.mxu0 %v17374_v1  ;;  %12170 = vmatprep.subr.bf16.mxu1 %v17379_v2  ;;  %v17452_v1 = vld [vmem:[%s26709_s1 + $0x1e60] ss:$8 sps:$4 sm:$0xff]   ;;  %v17457_v2 = vld [vmem:[%s26709_s1 + $0x274] ss:$8 sps:$4 sm:$0xff]  }
  0x69   :  { %13318 = vmatprep.subr.bf16.mxu0 %v17382_v3  ;;  %v17460_v3 = vld [vmem:[%s26709_s1 + $0x1e74] ss:$8 sps:$4 sm:$0xff]  }
  0x6b   :  { %12171 = vmatpush1.bf16.msra.mxu1 %v17377_v4  ;;  %v17455_v4 = vld [vmem:[%s26709_s1 + $0x270] ss:$8 sps:$4 sm:$0xff]  }
  0x6c   :  { %13319 = vmatpush1.bf16.msra.mxu0 %v17380_v5  ;;  %12172 = vmatprep.subr.bf16.mxu1 %v17385_v6  ;;  %v17458_v5 = vld [vmem:[%s26709_s1 + $0x1e70] ss:$8 sps:$4 sm:$0xff]   ;;  %v17463_v6 = vld [vmem:[%s26709_s1 + $0x284] ss:$8 sps:$4 sm:$0xff]  }
  0x6d   :  { %13320 = vmatprep.subr.bf16.mxu0 %v17388_v7  ;;  %v17466_v7 = vld [vmem:[%s26709_s1 + $0x1e84] ss:$8 sps:$4 sm:$0xff]  }
  0x6f   :  { %12173 = vmatpush1.bf16.msra.mxu1 %v17383_v8  ;;  %v17461_v8 = vld [vmem:[%s26709_s1 + $0x280] ss:$8 sps:$4 sm:$0xff]  }
  0x70   :  { %13321 = vmatpush1.bf16.msra.mxu0 %v17386_v9  ;;  %12174 = vmatprep.subr.bf16.mxu1 %v17391_v10  ;;  %v17464_v9 = vld [vmem:[%s26709_s1 + $0x1e80] ss:$8 sps:$4 sm:$0xff]   ;;  %v17469_v10 = vld [vmem:[%s26709_s1 + $0x294] ss:$8 sps:$4 sm:$0xff]  }
  0x71   :  { %13322 = vmatprep.subr.bf16.mxu0 %v17394_v11  ;;  %v17472_v11 = vld [vmem:[%s26709_s1 + $0x1e94] ss:$8 sps:$4 sm:$0xff]  }
  0x73   :  { %12175 = vmatpush1.bf16.msra.mxu1 %v17389_v12  ;;  %v17467_v12 = vld [vmem:[%s26709_s1 + $0x290] ss:$8 sps:$4 sm:$0xff]  }
  0x74   :  { %13323 = vmatpush1.bf16.msra.mxu0 %v17392_v13  ;;  %12176 = vmatprep.subr.bf16.mxu1 %v17397_v16  ;;  %v17470_v13 = vld [vmem:[%s26709_s1 + $0x1e90] ss:$8 sps:$4 sm:$0xff]   ;;  %v17475_v16 = vld [vmem:[%s26709_s1 + $0x2a4] ss:$8 sps:$4 sm:$0xff]  }
  0x75   :  { %13324 = vmatprep.subr.bf16.mxu0 %v17400_v17  ;;  %v17478_v17 = vld [vmem:[%s26709_s1 + $0x1ea4] ss:$8 sps:$4 sm:$0xff]  }
  0x77   :  { %12177 = vmatpush1.bf16.msra.mxu1 %v17395_v18  ;;  %v17473_v18 = vld [vmem:[%s26709_s1 + $0x2a0] ss:$8 sps:$4 sm:$0xff]  }
  0x78   :  { %13325 = vmatpush1.bf16.msra.mxu0 %v17398_v19  ;;  %12178 = vmatprep.subr.bf16.mxu1 %v17403_v20  ;;  %v17476_v19 = vld [vmem:[%s26709_s1 + $0x1ea0] ss:$8 sps:$4 sm:$0xff]   ;;  %v17481_v20 = vld [vmem:[%s26709_s1 + $0x2b4] ss:$8 sps:$4 sm:$0xff]  }
  0x79   :  { %13326 = vmatprep.subr.bf16.mxu0 %v17406_v21  ;;  %v17484_v21 = vld [vmem:[%s26709_s1 + $0x1eb4] ss:$8 sps:$4 sm:$0xff]  }
  0x7b   :  { %12179 = vmatpush1.bf16.msra.mxu1 %v17401_v22  ;;  %v17479_v22 = vld [vmem:[%s26709_s1 + $0x2b0] ss:$8 sps:$4 sm:$0xff]  }
  0x7c   :  { %13327 = vmatpush1.bf16.msra.mxu0 %v17404_v23  ;;  %12180 = vmatprep.subr.bf16.mxu1 %v17409_v24  ;;  %v17482_v23 = vld [vmem:[%s26709_s1 + $0x1eb0] ss:$8 sps:$4 sm:$0xff]   ;;  %v17487_v24 = vld [vmem:[%s26709_s1 + $0x2c4] ss:$8 sps:$4 sm:$0xff]  }
  0x7d   :  { %13328 = vmatprep.subr.bf16.mxu0 %v17412_v25  ;;  %v17490_v25 = vld [vmem:[%s26709_s1 + $0x1ec4] ss:$8 sps:$4 sm:$0xff]  }
  0x7f   :  { %12181 = vmatpush1.bf16.msra.mxu1 %v17407_v26  ;;  %v17485_v26 = vld [vmem:[%s26709_s1 + $0x2c0] ss:$8 sps:$4 sm:$0xff]  }
  0x80   :  { %13329 = vmatpush1.bf16.msra.mxu0 %v17410_v27  ;;  %12191 = vmatprep.subr.bf16.mxu1 %v17415_v28  ;;  %v17488_v27 = vld [vmem:[%s26709_s1 + $0x1ec0] ss:$8 sps:$4 sm:$0xff]   ;;  %v17493_v28 = vld [vmem:[%s26709_s1 + $0x2d4] ss:$8 sps:$4 sm:$0xff]  }
  0x81   :  { %13339 = vmatprep.subr.bf16.mxu0 %v17418_v29  ;;  %v17496_v29 = vld [vmem:[%s26709_s1 + $0x1ed4] ss:$8 sps:$4 sm:$0xff]  }
  0x82   :  { %12183 = vmatmul.mubr.bf16.vlgmr.msra.gmra.mrb[0].mxu1 %v720_v31  ;;  %v17494_v31 = vld [vmem:[%s26709_s1 + $0x1ed0] ss:$8 sps:$4 sm:$0xff]  }
  0x83   :  { %13331 = vmatmul.mubr.bf16.vlgmr.msra.gmra.mrb[0].mxu0 %v776_v32  ;;  %12192 = vmatpush1.bf16.msra.mxu1 %v17413_v30  ;;  %v17491_v30 = vld [vmem:[%s26709_s1 + $0x2d0] ss:$8 sps:$4 sm:$0xff]   ;;  %v17499_v32 = vld [vmem:[%s26709_s1 + $0x2e4] ss:$8 sps:$4 sm:$0xff]  }
  0x84   :  { %13340 = vmatpush1.bf16.msra.mxu0 %v17416_v33  ;;  %12193 = vmatprep.subr.bf16.mxu1 %v17421_v34  ;;  %v17502_v33 = vld [vmem:[%s26709_s1 + $0x1ee4] ss:$8 sps:$4 sm:$0xff]   ;;  %v116_v34 = vcombine.high %v20575_v35, %v20575_v35  ;;  %v17508_v35 = vld [vmem:[%s26709_s1 + $0x1ef4] ss:$8 sps:$4 sm:$0xff]  }
  0x85   :  { %13341 = vmatprep.subr.bf16.mxu0 %v17424_v14  ;;  %12223 = vmatprep.mubr.bf16.mxu1 %v723_v44  ;;  %v354_v14 = vcombine.high %v20587_v36, %v20587_v36  ;;  %v17506_v44 = vld [vmem:[%s26709_s1 + $0x1ef0] ss:$8 sps:$4 sm:$0xff]  }
  0x86   :  { %13371 = vmatprep.mubr.bf16.mxu0 %v779_v48  ;;  %v20770_v36 = vrot.slane %v116_v34, %v20275_v49  ;;  %v17575_v34 = vld [vmem:[%s26709_s1 + $0x3b0] ss:$8 sps:$4 sm:$0xff]  }
  0x87   :  { %12194 = vmatpush1.bf16.msra.mxu1 %v17419_v37  ;;  %v17497_v37 = vld [vmem:[%s26709_s1 + $0x2e0] ss:$8 sps:$4 sm:$0xff]  }
  0x88   :  { %13342 = vmatpush1.bf16.msra.mxu0 %v17422_v38  ;;  %12195 = vmatprep.subr.bf16.mxu1 %v17427_v41  ;;  %v17500_v38 = vld [vmem:[%s26709_s1 + $0x1ee0] ss:$8 sps:$4 sm:$0xff]   ;;  %v20773_v41 = vrot.slane %v354_v14, %v20275_v49  ;;  %v17578_v14 = vld [vmem:[%s26709_s1 + $0x1fb0] ss:$8 sps:$4 sm:$0xff]  }
  0x89   :  { %13343 = vmatprep.subr.bf16.mxu0 %v17430_v42  ;;  %v17503_v42 = vld [vmem:[%s26709_s1 + $0x2f0] ss:$8 sps:$4 sm:$0xff]  }
  0x8a   :  { %v370_v48 = vcombine.high %v20773_v41, %v20773_v41 }
  0x8b   :  { %12196 = vmatpush1.bf16.msra.mxu1 %v17425_v46  ;;  %v17514_v46 = vld [vmem:[%s26709_s1 + $0x1f04] ss:$8 sps:$4 sm:$0xff]  }
  0x8c   :  { %13344 = vmatpush1.bf16.msra.mxu0 %v17428_v47  ;;  %12197 = vmatprep.subr.bf16.mxu1 %v17433_v50  ;;  %v132_v47 = vcombine.high %v20770_v36, %v20770_v36  ;;  %v17509_v50 = vld [vmem:[%s26709_s1 + $0x300] ss:$8 sps:$4 sm:$0xff]  }
  0x8d   :  { %13345 = vmatprep.subr.bf16.mxu0 %v17436_v51  ;;  %v17512_v51 = vld [vmem:[%s26709_s1 + $0x1f00] ss:$8 sps:$4 sm:$0xff]  }
  0x8f   :  { %12198 = vmatpush1.bf16.msra.mxu1 %v17431_v52  ;;  %v722_v52 = vpack.c.bf16 %v20582_v15, %v20582_v15  ;;  %v17515_v15 = vld [vmem:[%s26709_s1 + $0x310] ss:$8 sps:$4 sm:$0xff]  }
  0x90   :  { %13346 = vmatpush1.bf16.msra.mxu0 %v17434_v53  ;;  %12199 = vmatprep.subr.bf16.mxu1 %v17439_v54  ;;  %v778_v53 = vpack.c.bf16 %v20599_v40, %v20599_v40  ;;  %v17517_v54 = vld [vmem:[%s26709_s1 + $0x314] ss:$8 sps:$4 sm:$0xff]   ;;  %v17518_v40 = vld [vmem:[%s26709_s1 + $0x1f10] ss:$8 sps:$4 sm:$0xff]  }
  0x91   :  { %13347 = vmatprep.subr.bf16.mxu0 %v17442_v55  ;;  %v17520_v55 = vld [vmem:[%s26709_s1 + $0x1f14] ss:$8 sps:$4 sm:$0xff]  }
  0x93   :  { %12200 = vmatpush1.bf16.msra.mxu1 %v17437_v56  ;;  %v725_v56 = vpack.c.bf16 %v132_v47, %v132_v47  ;;  %v17595_v47 = vld [vmem:[%s26709_s1 + $0x3e4] ss:$8 sps:$4 sm:$0xff]  }
  0x94   :  { %13348 = vmatpush1.bf16.msra.mxu0 %v17440_v57  ;;  %12201 = vmatprep.subr.bf16.mxu1 %v17445_v58  ;;  %v781_v57 = vpack.c.bf16 %v370_v48, %v370_v48  ;;  %v17523_v58 = vld [vmem:[%s26709_s1 + $0x324] ss:$8 sps:$4 sm:$0xff]  }
  0x95   :  { %13349 = vmatprep.subr.bf16.mxu0 %v17448_v59  ;;  %v17526_v59 = vld [vmem:[%s26709_s1 + $0x1f24] ss:$8 sps:$4 sm:$0xff]  }
  0x96   :  { %v17598_v48 = vld [vmem:[%s26709_s1 + $0x1fe4] ss:$8 sps:$4 sm:$0xff]  }
  0x97   :  { %12202 = vmatpush1.bf16.msra.mxu1 %v17443_v60  ;;  %v17521_v60 = vld [vmem:[%s26709_s1 + $0x320] ss:$8 sps:$4 sm:$0xff]  }
  0x98   :  { %13350 = vmatpush1.bf16.msra.mxu0 %v17446_v61  ;;  %12203 = vmatprep.subr.bf16.mxu1 %v17451_v62  ;;  %v17524_v61 = vld [vmem:[%s26709_s1 + $0x1f20] ss:$8 sps:$4 sm:$0xff]   ;;  %v17529_v62 = vld [vmem:[%s26709_s1 + $0x334] ss:$8 sps:$4 sm:$0xff]  }
  0x99   :  { %13351 = vmatprep.subr.bf16.mxu0 %v17454_v63  ;;  %v17532_v63 = vld [vmem:[%s26709_s1 + $0x1f34] ss:$8 sps:$4 sm:$0xff]  }
  0x9b   :  { %12204 = vmatpush1.bf16.msra.mxu1 %v17449_v0  ;;  %v17527_v0 = vld [vmem:[%s26709_s1 + $0x330] ss:$8 sps:$4 sm:$0xff]  }
  0x9c   :  { %13352 = vmatpush1.bf16.msra.mxu0 %v17452_v1  ;;  %12205 = vmatprep.subr.bf16.mxu1 %v17457_v2  ;;  %v17530_v1 = vld [vmem:[%s26709_s1 + $0x1f30] ss:$8 sps:$4 sm:$0xff]   ;;  %v17535_v2 = vld [vmem:[%s26709_s1 + $0x344] ss:$8 sps:$4 sm:$0xff]  }
  0x9d   :  { %13353 = vmatprep.subr.bf16.mxu0 %v17460_v3  ;;  %v17538_v3 = vld [vmem:[%s26709_s1 + $0x1f44] ss:$8 sps:$4 sm:$0xff]  }
  0x9f   :  { %12206 = vmatpush1.bf16.msra.mxu1 %v17455_v4  ;;  %v17533_v4 = vld [vmem:[%s26709_s1 + $0x340] ss:$8 sps:$4 sm:$0xff]  }
  0xa0   :  { %13354 = vmatpush1.bf16.msra.mxu0 %v17458_v5  ;;  %12207 = vmatprep.subr.bf16.mxu1 %v17463_v6  ;;  %v17536_v5 = vld [vmem:[%s26709_s1 + $0x1f40] ss:$8 sps:$4 sm:$0xff]   ;;  %v17541_v6 = vld [vmem:[%s26709_s1 + $0x354] ss:$8 sps:$4 sm:$0xff]  }
  0xa1   :  { %13355 = vmatprep.subr.bf16.mxu0 %v17466_v7  ;;  %v17544_v7 = vld [vmem:[%s26709_s1 + $0x1f54] ss:$8 sps:$4 sm:$0xff]  }
  0xa3   :  { %12208 = vmatpush1.bf16.msra.mxu1 %v17461_v8  ;;  %v17539_v8 = vld [vmem:[%s26709_s1 + $0x350] ss:$8 sps:$4 sm:$0xff]  }
  0xa4   :  { %13356 = vmatpush1.bf16.msra.mxu0 %v17464_v9  ;;  %12209 = vmatprep.subr.bf16.mxu1 %v17469_v10  ;;  %v17542_v9 = vld [vmem:[%s26709_s1 + $0x1f50] ss:$8 sps:$4 sm:$0xff]   ;;  %v17547_v10 = vld [vmem:[%s26709_s1 + $0x364] ss:$8 sps:$4 sm:$0xff]  }
  0xa5   :  { %13357 = vmatprep.subr.bf16.mxu0 %v17472_v11  ;;  %v17550_v11 = vld [vmem:[%s26709_s1 + $0x1f64] ss:$8 sps:$4 sm:$0xff]  }
  0xa7   :  { %12210 = vmatpush1.bf16.msra.mxu1 %v17467_v12  ;;  %v17545_v12 = vld [vmem:[%s26709_s1 + $0x360] ss:$8 sps:$4 sm:$0xff]  }
  0xa8   :  { %13358 = vmatpush1.bf16.msra.mxu0 %v17470_v13  ;;  %12211 = vmatprep.subr.bf16.mxu1 %v17475_v16  ;;  %v17548_v13 = vld [vmem:[%s26709_s1 + $0x1f60] ss:$8 sps:$4 sm:$0xff]   ;;  %v17553_v16 = vld [vmem:[%s26709_s1 + $0x374] ss:$8 sps:$4 sm:$0xff]  }
  0xa9   :  { %13359 = vmatprep.subr.bf16.mxu0 %v17478_v17  ;;  %v17556_v17 = vld [vmem:[%s26709_s1 + $0x1f74] ss:$8 sps:$4 sm:$0xff]  }
  0xab   :  { %12212 = vmatpush1.bf16.msra.mxu1 %v17473_v18  ;;  %v17551_v18 = vld [vmem:[%s26709_s1 + $0x370] ss:$8 sps:$4 sm:$0xff]  }
  0xac   :  { %13360 = vmatpush1.bf16.msra.mxu0 %v17476_v19  ;;  %12213 = vmatprep.subr.bf16.mxu1 %v17481_v20  ;;  %v17554_v19 = vld [vmem:[%s26709_s1 + $0x1f70] ss:$8 sps:$4 sm:$0xff]   ;;  %v17559_v20 = vld [vmem:[%s26709_s1 + $0x384] ss:$8 sps:$4 sm:$0xff]  }
  0xad   :  { %13361 = vmatprep.subr.bf16.mxu0 %v17484_v21  ;;  %v17562_v21 = vld [vmem:[%s26709_s1 + $0x1f84] ss:$8 sps:$4 sm:$0xff]  }
  0xaf   :  { %12214 = vmatpush1.bf16.msra.mxu1 %v17479_v22  ;;  %v17557_v22 = vld [vmem:[%s26709_s1 + $0x380] ss:$8 sps:$4 sm:$0xff]  }
  0xb0   :  { %13362 = vmatpush1.bf16.msra.mxu0 %v17482_v23  ;;  %12215 = vmatprep.subr.bf16.mxu1 %v17487_v24  ;;  %v17560_v23 = vld [vmem:[%s26709_s1 + $0x1f80] ss:$8 sps:$4 sm:$0xff]   ;;  %v17565_v24 = vld [vmem:[%s26709_s1 + $0x394] ss:$8 sps:$4 sm:$0xff]  }
  0xb1   :  { %13363 = vmatprep.subr.bf16.mxu0 %v17490_v25  ;;  %v17568_v25 = vld [vmem:[%s26709_s1 + $0x1f94] ss:$8 sps:$4 sm:$0xff]  }
  0xb3   :  { %12216 = vmatpush1.bf16.msra.mxu1 %v17485_v26  ;;  %v17563_v26 = vld [vmem:[%s26709_s1 + $0x390] ss:$8 sps:$4 sm:$0xff]  }
  0xb4   :  { %13364 = vmatpush1.bf16.msra.mxu0 %v17488_v27  ;;  %12217 = vmatprep.subr.bf16.mxu1 %v17493_v28  ;;  %v17566_v27 = vld [vmem:[%s26709_s1 + $0x1f90] ss:$8 sps:$4 sm:$0xff]   ;;  %v17571_v28 = vld [vmem:[%s26709_s1 + $0x3a4] ss:$8 sps:$4 sm:$0xff]  }
  0xb5   :  { %13365 = vmatprep.subr.bf16.mxu0 %v17496_v29  ;;  %v17574_v29 = vld [vmem:[%s26709_s1 + $0x1fa4] ss:$8 sps:$4 sm:$0xff]  }
  0xb7   :  { %12218 = vmatpush1.bf16.msra.mxu1 %v17491_v30  ;;  %v17569_v30 = vld [vmem:[%s26709_s1 + $0x3a0] ss:$8 sps:$4 sm:$0xff]  }
  0xb8   :  { %13366 = vmatpush1.bf16.msra.mxu0 %v17494_v31  ;;  %12219 = vmatprep.subr.bf16.mxu1 %v17499_v32  ;;  %v17572_v31 = vld [vmem:[%s26709_s1 + $0x1fa0] ss:$8 sps:$4 sm:$0xff]   ;;  %v17577_v32 = vld [vmem:[%s26709_s1 + $0x3b4] ss:$8 sps:$4 sm:$0xff]  }
  0xb9   :  { %13367 = vmatprep.subr.bf16.mxu0 %v17502_v33  ;;  %v17580_v33 = vld [vmem:[%s26709_s1 + $0x1fb4] ss:$8 sps:$4 sm:$0xff]  }
  0xbb   :  { %12220 = vmatpush1.bf16.msra.mxu1 %v17497_v37  ;;  %v17583_v37 = vld [vmem:[%s26709_s1 + $0x3c4] ss:$8 sps:$4 sm:$0xff]  }
  0xbc   :  { %13368 = vmatpush1.bf16.msra.mxu0 %v17500_v38  ;;  %12221 = vmatprep.subr.bf16.mxu1 %v17505_v39  ;;  %v17586_v38 = vld [vmem:[%s26709_s1 + $0x1fc4] ss:$8 sps:$4 sm:$0xff]   ;;  %v17581_v39 = vld [vmem:[%s26709_s1 + $0x3c0] ss:$8 sps:$4 sm:$0xff]  }
  0xbd   :  { %13369 = vmatprep.subr.bf16.mxu0 %v17508_v35  ;;  %v17584_v35 = vld [vmem:[%s26709_s1 + $0x1fc0] ss:$8 sps:$4 sm:$0xff]  }
  0xbf   :  { %12222 = vmatpush1.bf16.msra.mxu1 %v17503_v42  ;;  %v17589_v42 = vld [vmem:[%s26709_s1 + $0x3d4] ss:$8 sps:$4 sm:$0xff]  }
  0xc0   :  { %13370 = vmatpush1.bf16.msra.mxu0 %v17506_v44  ;;  %12232 = vmatprep.subr.bf16.mxu1 %v17511_v45  ;;  %v17592_v44 = vld [vmem:[%s26709_s1 + $0x1fd4] ss:$8 sps:$4 sm:$0xff]   ;;  %v17587_v45 = vld [vmem:[%s26709_s1 + $0x3d0] ss:$8 sps:$4 sm:$0xff]  }
  0xc1   :  { %13380 = vmatprep.subr.bf16.mxu0 %v17514_v46  ;;  %v17590_v46 = vld [vmem:[%s26709_s1 + $0x1fd0] ss:$8 sps:$4 sm:$0xff]  }
  0xc2   :  { %12224 = vmatmul.mubr.bf16.vlgmr.msra.gmra.mrb[0].mxu1 %v722_v52  ;;  %v17593_v52 = vld [vmem:[%s26709_s1 + $0x3e0] ss:$8 sps:$4 sm:$0xff]  }
  0xc3   :  { %13372 = vmatmul.mubr.bf16.vlgmr.msra.gmra.mrb[0].mxu0 %v778_v53  ;;  %12233 = vmatpush1.bf16.msra.mxu1 %v17509_v50  ;;  %v20966_v50 = vld [vmem:[%s26710_s0 + $0x10] sm:$0xff]  ;;  %v17596_v53 = vld [vmem:[%s26709_s1 + $0x1fe0] ss:$8 sps:$4 sm:$0xff]  }
  0xc4   :  { %13381 = vmatpush1.bf16.msra.mxu0 %v17512_v51  ;;  %12234 = vmatprep.subr.bf16.mxu1 %v17517_v54  ;;  %v20971_v51 = vld [vmem:[%s26710_s0 + $0x80] sm:$0xff]  ;;  %v17601_v54 = vld [vmem:[%s26709_s1 + $0x3f4] ss:$8 sps:$4 sm:$0xff]  }
  0xc5   :  { %13382 = vmatprep.subr.bf16.mxu0 %v17520_v55  ;;  %12264 = vmatprep.mubr.bf16.mxu1 %v725_v56  ;;  %v17604_v55 = vld [vmem:[%s26709_s1 + $0x1ff4] ss:$8 sps:$4 sm:$0xff]   ;;  %v20987_v56 = vrot.slane %v20966_v50, %v20275_v49 }
  0xc6   :  { %13412 = vmatprep.mubr.bf16.mxu0 %v781_v57  ;;  %v20991_v57 = vrot.slane %v20971_v51, %v20275_v49 }
  0xc7   :  { %12235 = vmatpush1.bf16.msra.mxu1 %v17515_v15  ;;  %v17599_v15 = vld [vmem:[%s26709_s1 + $0x3f0] ss:$8 sps:$4 sm:$0xff]  }
  0xc8   :  { %13383 = vmatpush1.bf16.msra.mxu0 %v17518_v40  ;;  %12236 = vmatprep.subr.bf16.mxu1 %v17523_v58  ;;  %v17602_v40 = vld [vmem:[%s26709_s1 + $0x1ff0] ss:$8 sps:$4 sm:$0xff]   ;;  %v17608_v58 = vld [vmem:[%s26709_s1 + $0x404] ss:$8 sps:$4 sm:$0xff]  }
  0xc9   :  { %13384 = vmatprep.subr.bf16.mxu0 %v17526_v59  ;;  %v17612_v59 = vld [vmem:[%s26709_s1 + $0x2004] ss:$8 sps:$4 sm:$0xff]  }
  0xcb   :  { %12237 = vmatpush1.bf16.msra.mxu1 %v17521_v60  ;;  %v148_v60 = vcombine.high %v20987_v56, %v20987_v56 }
  0xcc   :  { %13385 = vmatpush1.bf16.msra.mxu0 %v17524_v61  ;;  %12238 = vmatprep.subr.bf16.mxu1 %v17529_v62  ;;  %v386_v61 = vcombine.high %v20991_v57, %v20991_v57  ;;  %v724_v62 = vpack.c.bf16 %v20770_v36, %v20770_v36  ;;  %v17618_v36 = vld [vmem:[%s26709_s1 + $0x2014] ss:$8 sps:$4 sm:$0xff]  }
  0xcd   :  { %13386 = vmatprep.subr.bf16.mxu0 %v17532_v63  ;;  %v780_v63 = vpack.c.bf16 %v20773_v41, %v20773_v41  ;;  %v727_v41 = vpack.c.bf16 %v148_v60, %v148_v60  ;;  %v17685_v60 = vld [vmem:[%s26709_s1 + $0x4d0] ss:$8 sps:$4 sm:$0xff]  }
  0xcf   :  { %12239 = vmatpush1.bf16.msra.mxu1 %v17527_v0  ;;  %v17606_v0 = vld [vmem:[%s26709_s1 + $0x400] ss:$8 sps:$4 sm:$0xff]  }
  0xd0   :  { %13387 = vmatpush1.bf16.msra.mxu0 %v17530_v1  ;;  %12240 = vmatprep.subr.bf16.mxu1 %v17535_v2  ;;  %v17610_v1 = vld [vmem:[%s26709_s1 + $0x2000] ss:$8 sps:$4 sm:$0xff]   ;;  %v17615_v2 = vld [vmem:[%s26709_s1 + $0x414] ss:$8 sps:$4 sm:$0xff]  }
  0xd1   :  { %13388 = vmatprep.subr.bf16.mxu0 %v17538_v3  ;;  %v783_v3 = vpack.c.bf16 %v386_v61, %v386_v61  ;;  %v17688_v61 = vld [vmem:[%s26709_s1 + $0x20d0] ss:$8 sps:$4 sm:$0xff]  }
  0xd3   :  { %12241 = vmatpush1.bf16.msra.mxu1 %v17533_v4  ;;  %v17613_v4 = vld [vmem:[%s26709_s1 + $0x410] ss:$8 sps:$4 sm:$0xff]  }
  0xd4   :  { %13389 = vmatpush1.bf16.msra.mxu0 %v17536_v5  ;;  %12242 = vmatprep.subr.bf16.mxu1 %v17541_v6  ;;  %v17616_v5 = vld [vmem:[%s26709_s1 + $0x2010] ss:$8 sps:$4 sm:$0xff]   ;;  %v17621_v6 = vld [vmem:[%s26709_s1 + $0x424] ss:$8 sps:$4 sm:$0xff]  }
  0xd5   :  { %13390 = vmatprep.subr.bf16.mxu0 %v17544_v7  ;;  %v17624_v7 = vld [vmem:[%s26709_s1 + $0x2024] ss:$8 sps:$4 sm:$0xff]  }
  0xd7   :  { %12243 = vmatpush1.bf16.msra.mxu1 %v17539_v8  ;;  %v17619_v8 = vld [vmem:[%s26709_s1 + $0x420] ss:$8 sps:$4 sm:$0xff]  }
  0xd8   :  { %13391 = vmatpush1.bf16.msra.mxu0 %v17542_v9  ;;  %12244 = vmatprep.subr.bf16.mxu1 %v17547_v10  ;;  %v17622_v9 = vld [vmem:[%s26709_s1 + $0x2020] ss:$8 sps:$4 sm:$0xff]   ;;  %v17627_v10 = vld [vmem:[%s26709_s1 + $0x434] ss:$8 sps:$4 sm:$0xff]  }
  0xd9   :  { %13392 = vmatprep.subr.bf16.mxu0 %v17550_v11  ;;  %v17630_v11 = vld [vmem:[%s26709_s1 + $0x2034] ss:$8 sps:$4 sm:$0xff]  }
  0xdb   :  { %12245 = vmatpush1.bf16.msra.mxu1 %v17545_v12  ;;  %v17625_v12 = vld [vmem:[%s26709_s1 + $0x430] ss:$8 sps:$4 sm:$0xff]  }
  0xdc   :  { %13393 = vmatpush1.bf16.msra.mxu0 %v17548_v13  ;;  %12246 = vmatprep.subr.bf16.mxu1 %v17553_v16  ;;  %v17628_v13 = vld [vmem:[%s26709_s1 + $0x2030] ss:$8 sps:$4 sm:$0xff]   ;;  %v17633_v16 = vld [vmem:[%s26709_s1 + $0x444] ss:$8 sps:$4 sm:$0xff]  }
  0xdd   :  { %13394 = vmatprep.subr.bf16.mxu0 %v17556_v17  ;;  %v17636_v17 = vld [vmem:[%s26709_s1 + $0x2044] ss:$8 sps:$4 sm:$0xff]  }
  0xdf   :  { %12247 = vmatpush1.bf16.msra.mxu1 %v17551_v18  ;;  %v17631_v18 = vld [vmem:[%s26709_s1 + $0x440] ss:$8 sps:$4 sm:$0xff]  }
  0xe0   :  { %13395 = vmatpush1.bf16.msra.mxu0 %v17554_v19  ;;  %12248 = vmatprep.subr.bf16.mxu1 %v17559_v20  ;;  %v17634_v19 = vld [vmem:[%s26709_s1 + $0x2040] ss:$8 sps:$4 sm:$0xff]   ;;  %v17639_v20 = vld [vmem:[%s26709_s1 + $0x454] ss:$8 sps:$4 sm:$0xff]  }
  0xe1   :  { %13396 = vmatprep.subr.bf16.mxu0 %v17562_v21  ;;  %v17642_v21 = vld [vmem:[%s26709_s1 + $0x2054] ss:$8 sps:$4 sm:$0xff]  }
  0xe3   :  { %12249 = vmatpush1.bf16.msra.mxu1 %v17557_v22  ;;  %v17637_v22 = vld [vmem:[%s26709_s1 + $0x450] ss:$8 sps:$4 sm:$0xff]  }
  0xe4   :  { %13397 = vmatpush1.bf16.msra.mxu0 %v17560_v23  ;;  %12250 = vmatprep.subr.bf16.mxu1 %v17565_v24  ;;  %v17640_v23 = vld [vmem:[%s26709_s1 + $0x2050] ss:$8 sps:$4 sm:$0xff]   ;;  %v17645_v24 = vld [vmem:[%s26709_s1 + $0x464] ss:$8 sps:$4 sm:$0xff]  }
  0xe5   :  { %13398 = vmatprep.subr.bf16.mxu0 %v17568_v25  ;;  %v17648_v25 = vld [vmem:[%s26709_s1 + $0x2064] ss:$8 sps:$4 sm:$0xff]  }
  0xe7   :  { %12251 = vmatpush1.bf16.msra.mxu1 %v17563_v26  ;;  %v17643_v26 = vld [vmem:[%s26709_s1 + $0x460] ss:$8 sps:$4 sm:$0xff]  }
  0xe8   :  { %13399 = vmatpush1.bf16.msra.mxu0 %v17566_v27  ;;  %12252 = vmatprep.subr.bf16.mxu1 %v17571_v28  ;;  %v17646_v27 = vld [vmem:[%s26709_s1 + $0x2060] ss:$8 sps:$4 sm:$0xff]   ;;  %v17651_v28 = vld [vmem:[%s26709_s1 + $0x474] ss:$8 sps:$4 sm:$0xff]  }
  0xe9   :  { %13400 = vmatprep.subr.bf16.mxu0 %v17574_v29  ;;  %v17654_v29 = vld [vmem:[%s26709_s1 + $0x2074] ss:$8 sps:$4 sm:$0xff]  }
  0xeb   :  { %12253 = vmatpush1.bf16.msra.mxu1 %v17569_v30  ;;  %v17649_v30 = vld [vmem:[%s26709_s1 + $0x470] ss:$8 sps:$4 sm:$0xff]  }
  0xec   :  { %13401 = vmatpush1.bf16.msra.mxu0 %v17572_v31  ;;  %12254 = vmatprep.subr.bf16.mxu1 %v17577_v32  ;;  %v17652_v31 = vld [vmem:[%s26709_s1 + $0x2070] ss:$8 sps:$4 sm:$0xff]   ;;  %v17657_v32 = vld [vmem:[%s26709_s1 + $0x484] ss:$8 sps:$4 sm:$0xff]  }
  0xed   :  { %13402 = vmatprep.subr.bf16.mxu0 %v17580_v33  ;;  %v17660_v33 = vld [vmem:[%s26709_s1 + $0x2084] ss:$8 sps:$4 sm:$0xff]  }
  0xef   :  { %12255 = vmatpush1.bf16.msra.mxu1 %v17575_v34  ;;  %v17655_v34 = vld [vmem:[%s26709_s1 + $0x480] ss:$8 sps:$4 sm:$0xff]  }
  0xf0   :  { %13403 = vmatpush1.bf16.msra.mxu0 %v17578_v14  ;;  %12256 = vmatprep.subr.bf16.mxu1 %v17583_v37  ;;  %v17658_v14 = vld [vmem:[%s26709_s1 + $0x2080] ss:$8 sps:$4 sm:$0xff]   ;;  %v17663_v37 = vld [vmem:[%s26709_s1 + $0x494] ss:$8 sps:$4 sm:$0xff]  }
  0xf1   :  { %13404 = vmatprep.subr.bf16.mxu0 %v17586_v38  ;;  %v17666_v38 = vld [vmem:[%s26709_s1 + $0x2094] ss:$8 sps:$4 sm:$0xff]  }
  0xf3   :  { %12257 = vmatpush1.bf16.msra.mxu1 %v17581_v39  ;;  %v17661_v39 = vld [vmem:[%s26709_s1 + $0x490] ss:$8 sps:$4 sm:$0xff]  }
  0xf4   :  { %13405 = vmatpush1.bf16.msra.mxu0 %v17584_v35  ;;  %12258 = vmatprep.subr.bf16.mxu1 %v17589_v42  ;;  %v17664_v35 = vld [vmem:[%s26709_s1 + $0x2090] ss:$8 sps:$4 sm:$0xff]   ;;  %v17669_v42 = vld [vmem:[%s26709_s1 + $0x4a4] ss:$8 sps:$4 sm:$0xff]  }
  0xf5   :  { %13406 = vmatprep.subr.bf16.mxu0 %v17592_v44  ;;  %v17672_v44 = vld [vmem:[%s26709_s1 + $0x20a4] ss:$8 sps:$4 sm:$0xff]  }
  0xf7   :  { %12259 = vmatpush1.bf16.msra.mxu1 %v17587_v45  ;;  %v17667_v45 = vld [vmem:[%s26709_s1 + $0x4a0] ss:$8 sps:$4 sm:$0xff]  }
  0xf8   :  { %13407 = vmatpush1.bf16.msra.mxu0 %v17590_v46  ;;  %12260 = vmatprep.subr.bf16.mxu1 %v17595_v47  ;;  %v17670_v46 = vld [vmem:[%s26709_s1 + $0x20a0] ss:$8 sps:$4 sm:$0xff]   ;;  %v17675_v47 = vld [vmem:[%s26709_s1 + $0x4b4] ss:$8 sps:$4 sm:$0xff]  }
  0xf9   :  { %13408 = vmatprep.subr.bf16.mxu0 %v17598_v48  ;;  %v17678_v48 = vld [vmem:[%s26709_s1 + $0x20b4] ss:$8 sps:$4 sm:$0xff]  }
  0xfb   :  { %12261 = vmatpush1.bf16.msra.mxu1 %v17593_v52  ;;  %v17673_v52 = vld [vmem:[%s26709_s1 + $0x4b0] ss:$8 sps:$4 sm:$0xff]  }
  0xfc   :  { %13409 = vmatpush1.bf16.msra.mxu0 %v17596_v53  ;;  %12262 = vmatprep.subr.bf16.mxu1 %v17601_v54  ;;  %v17676_v53 = vld [vmem:[%s26709_s1 + $0x20b0] ss:$8 sps:$4 sm:$0xff]   ;;  %v17681_v54 = vld [vmem:[%s26709_s1 + $0x4c4] ss:$8 sps:$4 sm:$0xff]  }
  0xfd   :  { %13410 = vmatprep.subr.bf16.mxu0 %v17604_v55  ;;  %v17684_v55 = vld [vmem:[%s26709_s1 + $0x20c4] ss:$8 sps:$4 sm:$0xff]  }
  0xff   :  { %12263 = vmatpush1.bf16.msra.mxu1 %v17599_v15  ;;  %v17679_v15 = vld [vmem:[%s26709_s1 + $0x4c0] ss:$8 sps:$4 sm:$0xff]  }
 0x100   :  { %13411 = vmatpush1.bf16.msra.mxu0 %v17602_v40  ;;  %12273 = vmatprep.subr.bf16.mxu1 %v17608_v58  ;;  %v17682_v40 = vld [vmem:[%s26709_s1 + $0x20c0] ss:$8 sps:$4 sm:$0xff]   ;;  %v17687_v58 = vld [vmem:[%s26709_s1 + $0x4d4] ss:$8 sps:$4 sm:$0xff]  }
 0x101   :  { %13421 = vmatprep.subr.bf16.mxu0 %v17612_v59  ;;  %v17690_v59 = vld [vmem:[%s26709_s1 + $0x20d4] ss:$8 sps:$4 sm:$0xff]  }
 0x102   :  { %12265 = vmatmul.mubr.bf16.vlgmr.msra.gmra.mrb[0].mxu1 %v724_v62  ;;  %v17693_v62 = vld [vmem:[%s26709_s1 + $0x4e4] ss:$8 sps:$4 sm:$0xff]  }
 0x103   :  { %13413 = vmatmul.mubr.bf16.vlgmr.msra.gmra.mrb[0].mxu0 %v780_v63  ;;  %12274 = vmatpush1.bf16.msra.mxu1 %v17606_v0  ;;  %v17696_v63 = vld [vmem:[%s26709_s1 + $0x20e4] ss:$8 sps:$4 sm:$0xff]   ;;  %v133_v0 = vcombine.high %v20966_v50, %v20966_v50  ;;  %v17702_v50 = vld [vmem:[%s26709_s1 + $0x20f4] ss:$8 sps:$4 sm:$0xff]  }
 0x104   :  { %13422 = vmatpush1.bf16.msra.mxu0 %v17610_v1  ;;  %12275 = vmatprep.subr.bf16.mxu1 %v17615_v2  ;;  %v371_v1 = vcombine.high %v20971_v51, %v20971_v51  ;;  %v17691_v2 = vld [vmem:[%s26709_s1 + $0x4e0] ss:$8 sps:$4 sm:$0xff]  }
 0x105   :  { %13423 = vmatprep.subr.bf16.mxu0 %v17618_v36  ;;  %12305 = vmatprep.mubr.bf16.mxu1 %v727_v41  ;;  %v17694_v36 = vld [vmem:[%s26709_s1 + $0x20e0] ss:$8 sps:$4 sm:$0xff]   ;;  %v17699_v41 = vld [vmem:[%s26709_s1 + $0x4f4] ss:$8 sps:$4 sm:$0xff]   ;;  %v21198_v51 = vrot.slane %v133_v0, %v20275_v49  ;;  %v17769_v0 = vld [vmem:[%s26709_s1 + $0x5b0] ss:$8 sps:$4 sm:$0xff]  }
 0x106   :  { %13453 = vmatprep.mubr.bf16.mxu0 %v783_v3  ;;  %v21201_v3 = vrot.slane %v371_v1, %v20275_v49  ;;  %v17772_v1 = vld [vmem:[%s26709_s1 + $0x21b0] ss:$8 sps:$4 sm:$0xff]  }
 0x107   :  { %12276 = vmatpush1.bf16.msra.mxu1 %v17613_v4  ;;  %v17697_v4 = vld [vmem:[%s26709_s1 + $0x4f0] ss:$8 sps:$4 sm:$0xff]  }
 0x108   :  { %13424 = vmatpush1.bf16.msra.mxu0 %v17616_v5  ;;  %12277 = vmatprep.subr.bf16.mxu1 %v17621_v6  ;;  %v17700_v5 = vld [vmem:[%s26709_s1 + $0x20f0] ss:$8 sps:$4 sm:$0xff]   ;;  %v17705_v6 = vld [vmem:[%s26709_s1 + $0x504] ss:$8 sps:$4 sm:$0xff]  }
 0x109   :  { %13425 = vmatprep.subr.bf16.mxu0 %v17624_v7  ;;  %v17708_v7 = vld [vmem:[%s26709_s1 + $0x2104] ss:$8 sps:$4 sm:$0xff]  }
 0x10b   :  { %12278 = vmatpush1.bf16.msra.mxu1 %v17619_v8  ;;  %v149_v8 = vcombine.high %v21198_v51, %v21198_v51 }
 0x10c   :  { %13426 = vmatpush1.bf16.msra.mxu0 %v17622_v9  ;;  %12279 = vmatprep.subr.bf16.mxu1 %v17627_v10  ;;  %v387_v9 = vcombine.high %v21201_v3, %v21201_v3  ;;  %v726_v10 = vpack.c.bf16 %v20987_v56, %v20987_v56  ;;  %v17714_v56 = vld [vmem:[%s26709_s1 + $0x2114] ss:$8 sps:$4 sm:$0xff]  }
 0x10d   :  { %13427 = vmatprep.subr.bf16.mxu0 %v17630_v11  ;;  %v782_v11 = vpack.c.bf16 %v20991_v57, %v20991_v57  ;;  %v729_v57 = vpack.c.bf16 %v149_v8, %v149_v8  ;;  %v17789_v8 = vld [vmem:[%s26709_s1 + $0x5e4] ss:$8 sps:$4 sm:$0xff]  }
 0x10f   :  { %12280 = vmatpush1.bf16.msra.mxu1 %v17625_v12  ;;  %v17703_v12 = vld [vmem:[%s26709_s1 + $0x500] ss:$8 sps:$4 sm:$0xff]  }
 0x110   :  { %13428 = vmatpush1.bf16.msra.mxu0 %v17628_v13  ;;  %12281 = vmatprep.subr.bf16.mxu1 %v17633_v16  ;;  %v17706_v13 = vld [vmem:[%s26709_s1 + $0x2100] ss:$8 sps:$4 sm:$0xff]   ;;  %v17711_v16 = vld [vmem:[%s26709_s1 + $0x514] ss:$8 sps:$4 sm:$0xff]  }
 0x111   :  { %13429 = vmatprep.subr.bf16.mxu0 %v17636_v17  ;;  %v785_v17 = vpack.c.bf16 %v387_v9, %v387_v9  ;;  %v17792_v9 = vld [vmem:[%s26709_s1 + $0x21e4] ss:$8 sps:$4 sm:$0xff]  }
 0x113   :  { %12282 = vmatpush1.bf16.msra.mxu1 %v17631_v18  ;;  %v17709_v18 = vld [vmem:[%s26709_s1 + $0x510] ss:$8 sps:$4 sm:$0xff]  }
 0x114   :  { %13430 = vmatpush1.bf16.msra.mxu0 %v17634_v19  ;;  %12283 = vmatprep.subr.bf16.mxu1 %v17639_v20  ;;  %v17712_v19 = vld [vmem:[%s26709_s1 + $0x2110] ss:$8 sps:$4 sm:$0xff]   ;;  %v17717_v20 = vld [vmem:[%s26709_s1 + $0x524] ss:$8 sps:$4 sm:$0xff]  }
 0x115   :  { %13431 = vmatprep.subr.bf16.mxu0 %v17642_v21  ;;  %v17720_v21 = vld [vmem:[%s26709_s1 + $0x2124] ss:$8 sps:$4 sm:$0xff]  }
 0x117   :  { %12284 = vmatpush1.bf16.msra.mxu1 %v17637_v22  ;;  %v17715_v22 = vld [vmem:[%s26709_s1 + $0x520] ss:$8 sps:$4 sm:$0xff]  }
 0x118   :  { %13432 = vmatpush1.bf16.msra.mxu0 %v17640_v23  ;;  %12285 = vmatprep.subr.bf16.mxu1 %v17645_v24  ;;  %v17718_v23 = vld [vmem:[%s26709_s1 + $0x2120] ss:$8 sps:$4 sm:$0xff]   ;;  %v17723_v24 = vld [vmem:[%s26709_s1 + $0x534] ss:$8 sps:$4 sm:$0xff]  }
 0x119   :  { %13433 = vmatprep.subr.bf16.mxu0 %v17648_v25  ;;  %v17726_v25 = vld [vmem:[%s26709_s1 + $0x2134] ss:$8 sps:$4 sm:$0xff]  }
 0x11b   :  { %12286 = vmatpush1.bf16.msra.mxu1 %v17643_v26  ;;  %v17721_v26 = vld [vmem:[%s26709_s1 + $0x530] ss:$8 sps:$4 sm:$0xff]  }
 0x11c   :  { %13434 = vmatpush1.bf16.msra.mxu0 %v17646_v27  ;;  %12287 = vmatprep.subr.bf16.mxu1 %v17651_v28  ;;  %v17724_v27 = vld [vmem:[%s26709_s1 + $0x2130] ss:$8 sps:$4 sm:$0xff]   ;;  %v17729_v28 = vld [vmem:[%s26709_s1 + $0x544] ss:$8 sps:$4 sm:$0xff]  }
 0x11d   :  { %13435 = vmatprep.subr.bf16.mxu0 %v17654_v29  ;;  %v17732_v29 = vld [vmem:[%s26709_s1 + $0x2144] ss:$8 sps:$4 sm:$0xff]  }
 0x11f   :  { %12288 = vmatpush1.bf16.msra.mxu1 %v17649_v30  ;;  %v17727_v30 = vld [vmem:[%s26709_s1 + $0x540] ss:$8 sps:$4 sm:$0xff]  }
 0x120   :  { %13436 = vmatpush1.bf16.msra.mxu0 %v17652_v31  ;;  %12289 = vmatprep.subr.bf16.mxu1 %v17657_v32  ;;  %v17730_v31 = vld [vmem:[%s26709_s1 + $0x2140] ss:$8 sps:$4 sm:$0xff]   ;;  %v17735_v32 = vld [vmem:[%s26709_s1 + $0x554] ss:$8 sps:$4 sm:$0xff]  }
 0x121   :  { %13437 = vmatprep.subr.bf16.mxu0 %v17660_v33  ;;  %v17738_v33 = vld [vmem:[%s26709_s1 + $0x2154] ss:$8 sps:$4 sm:$0xff]  }
 0x123   :  { %12290 = vmatpush1.bf16.msra.mxu1 %v17655_v34  ;;  %v17733_v34 = vld [vmem:[%s26709_s1 + $0x550] ss:$8 sps:$4 sm:$0xff]  }
 0x124   :  { %13438 = vmatpush1.bf16.msra.mxu0 %v17658_v14  ;;  %12291 = vmatprep.subr.bf16.mxu1 %v17663_v37  ;;  %v17736_v14 = vld [vmem:[%s26709_s1 + $0x2150] ss:$8 sps:$4 sm:$0xff]   ;;  %v17741_v37 = vld [vmem:[%s26709_s1 + $0x564] ss:$8 sps:$4 sm:$0xff]  }
 0x125   :  { %13439 = vmatprep.subr.bf16.mxu0 %v17666_v38  ;;  %v17744_v38 = vld [vmem:[%s26709_s1 + $0x2164] ss:$8 sps:$4 sm:$0xff]  }
 0x127   :  { %12292 = vmatpush1.bf16.msra.mxu1 %v17661_v39  ;;  %v17739_v39 = vld [vmem:[%s26709_s1 + $0x560] ss:$8 sps:$4 sm:$0xff]  }
 0x128   :  { %13440 = vmatpush1.bf16.msra.mxu0 %v17664_v35  ;;  %12293 = vmatprep.subr.bf16.mxu1 %v17669_v42  ;;  %v17742_v35 = vld [vmem:[%s26709_s1 + $0x2160] ss:$8 sps:$4 sm:$0xff]   ;;  %v17747_v42 = vld [vmem:[%s26709_s1 + $0x574] ss:$8 sps:$4 sm:$0xff]  }
 0x129   :  { %13441 = vmatprep.subr.bf16.mxu0 %v17672_v44  ;;  %v17750_v44 = vld [vmem:[%s26709_s1 + $0x2174] ss:$8 sps:$4 sm:$0xff]  }
 0x12b   :  { %12294 = vmatpush1.bf16.msra.mxu1 %v17667_v45  ;;  %v17745_v45 = vld [vmem:[%s26709_s1 + $0x570] ss:$8 sps:$4 sm:$0xff]  }
 0x12c   :  { %13442 = vmatpush1.bf16.msra.mxu0 %v17670_v46  ;;  %12295 = vmatprep.subr.bf16.mxu1 %v17675_v47  ;;  %v17748_v46 = vld [vmem:[%s26709_s1 + $0x2170] ss:$8 sps:$4 sm:$0xff]   ;;  %v17753_v47 = vld [vmem:[%s26709_s1 + $0x584] ss:$8 sps:$4 sm:$0xff]  }
 0x12d   :  { %13443 = vmatprep.subr.bf16.mxu0 %v17678_v48  ;;  %v17756_v48 = vld [vmem:[%s26709_s1 + $0x2184] ss:$8 sps:$4 sm:$0xff]  }
 0x12f   :  { %12296 = vmatpush1.bf16.msra.mxu1 %v17673_v52  ;;  %v17751_v52 = vld [vmem:[%s26709_s1 + $0x580] ss:$8 sps:$4 sm:$0xff]  }
 0x130   :  { %13444 = vmatpush1.bf16.msra.mxu0 %v17676_v53  ;;  %12297 = vmatprep.subr.bf16.mxu1 %v17681_v54  ;;  %v17754_v53 = vld [vmem:[%s26709_s1 + $0x2180] ss:$8 sps:$4 sm:$0xff]   ;;  %v17759_v54 = vld [vmem:[%s26709_s1 + $0x594] ss:$8 sps:$4 sm:$0xff]  }
 0x131   :  { %13445 = vmatprep.subr.bf16.mxu0 %v17684_v55  ;;  %v17762_v55 = vld [vmem:[%s26709_s1 + $0x2194] ss:$8 sps:$4 sm:$0xff]  }
 0x133   :  { %12298 = vmatpush1.bf16.msra.mxu1 %v17679_v15  ;;  %v17757_v15 = vld [vmem:[%s26709_s1 + $0x590] ss:$8 sps:$4 sm:$0xff]  }
 0x134   :  { %13446 = vmatpush1.bf16.msra.mxu0 %v17682_v40  ;;  %12299 = vmatprep.subr.bf16.mxu1 %v17687_v58  ;;  %v17760_v40 = vld [vmem:[%s26709_s1 + $0x2190] ss:$8 sps:$4 sm:$0xff]   ;;  %v17765_v58 = vld [vmem:[%s26709_s1 + $0x5a4] ss:$8 sps:$4 sm:$0xff]  }
 0x135   :  { %13447 = vmatprep.subr.bf16.mxu0 %v17690_v59  ;;  %v17768_v59 = vld [vmem:[%s26709_s1 + $0x21a4] ss:$8 sps:$4 sm:$0xff]  }
 0x137   :  { %12300 = vmatpush1.bf16.msra.mxu1 %v17685_v60  ;;  %v17763_v60 = vld [vmem:[%s26709_s1 + $0x5a0] ss:$8 sps:$4 sm:$0xff]  }
 0x138   :  { %13448 = vmatpush1.bf16.msra.mxu0 %v17688_v61  ;;  %12301 = vmatprep.subr.bf16.mxu1 %v17693_v62  ;;  %v17766_v61 = vld [vmem:[%s26709_s1 + $0x21a0] ss:$8 sps:$4 sm:$0xff]   ;;  %v17771_v62 = vld [vmem:[%s26709_s1 + $0x5b4] ss:$8 sps:$4 sm:$0xff]  }
 0x139   :  { %13449 = vmatprep.subr.bf16.mxu0 %v17696_v63  ;;  %v17774_v63 = vld [vmem:[%s26709_s1 + $0x21b4] ss:$8 sps:$4 sm:$0xff]  }
 0x13b   :  { %12302 = vmatpush1.bf16.msra.mxu1 %v17691_v2  ;;  %v17777_v2 = vld [vmem:[%s26709_s1 + $0x5c4] ss:$8 sps:$4 sm:$0xff]  }
 0x13c   :  { %13450 = vmatpush1.bf16.msra.mxu0 %v17694_v36  ;;  %12303 = vmatprep.subr.bf16.mxu1 %v17699_v41  ;;  %v17780_v36 = vld [vmem:[%s26709_s1 + $0x21c4] ss:$8 sps:$4 sm:$0xff]   ;;  %v17775_v41 = vld [vmem:[%s26709_s1 + $0x5c0] ss:$8 sps:$4 sm:$0xff]  }
 0x13d   :  { %13451 = vmatprep.subr.bf16.mxu0 %v17702_v50  ;;  %v17778_v50 = vld [vmem:[%s26709_s1 + $0x21c0] ss:$8 sps:$4 sm:$0xff]  }
 0x13f   :  { %12304 = vmatpush1.bf16.msra.mxu1 %v17697_v4  ;;  %v17783_v4 = vld [vmem:[%s26709_s1 + $0x5d4] ss:$8 sps:$4 sm:$0xff]  }
 0x140   :  { %13452 = vmatpush1.bf16.msra.mxu0 %v17700_v5  ;;  %12314 = vmatprep.subr.bf16.mxu1 %v17705_v6  ;;  %v17786_v5 = vld [vmem:[%s26709_s1 + $0x21d4] ss:$8 sps:$4 sm:$0xff]   ;;  %v17781_v6 = vld [vmem:[%s26709_s1 + $0x5d0] ss:$8 sps:$4 sm:$0xff]  }
 0x141   :  { %13462 = vmatprep.subr.bf16.mxu0 %v17708_v7  ;;  %v17784_v7 = vld [vmem:[%s26709_s1 + $0x21d0] ss:$8 sps:$4 sm:$0xff]  }
 0x142   :  { %12306 = vmatmul.mubr.bf16.vlgmr.msra.gmra.mrb[0].mxu1 %v726_v10  ;;  %v21394_v10 = vld [vmem:[%s26710_s0 + $0x18] sm:$0xff] }
 0x143   :  { %13454 = vmatmul.mubr.bf16.vlgmr.msra.gmra.mrb[0].mxu0 %v782_v11  ;;  %12315 = vmatpush1.bf16.msra.mxu1 %v17703_v12  ;;  %v21399_v11 = vld [vmem:[%s26710_s0 + $0x88] sm:$0xff] }
 0x144   :  { %13463 = vmatpush1.bf16.msra.mxu0 %v17706_v13  ;;  %12316 = vmatprep.subr.bf16.mxu1 %v17711_v16  ;;  %v17787_v12 = vld [vmem:[%s26709_s1 + $0x5e0] ss:$8 sps:$4 sm:$0xff]   ;;  %v17795_v16 = vld [vmem:[%s26709_s1 + $0x5f4] ss:$8 sps:$4 sm:$0xff]  }
 0x145   :  { %13464 = vmatprep.subr.bf16.mxu0 %v17714_v56  ;;  %12346 = vmatprep.mubr.bf16.mxu1 %v729_v57  ;;  %v17790_v13 = vld [vmem:[%s26709_s1 + $0x21e0] ss:$8 sps:$4 sm:$0xff]   ;;  %v17798_v56 = vld [vmem:[%s26709_s1 + $0x21f4] ss:$8 sps:$4 sm:$0xff]   ;;  %v21415_v57 = vrot.slane %v21394_v10, %v20275_v49 }
 0x146   :  { %13494 = vmatprep.mubr.bf16.mxu0 %v785_v17  ;;  %v21419_v17 = vrot.slane %v21399_v11, %v20275_v49 }
 0x147   :  { %12317 = vmatpush1.bf16.msra.mxu1 %v17709_v18  ;;  %v17793_v18 = vld [vmem:[%s26709_s1 + $0x5f0] ss:$8 sps:$4 sm:$0xff]  }
 0x148   :  { %13465 = vmatpush1.bf16.msra.mxu0 %v17712_v19  ;;  %12318 = vmatprep.subr.bf16.mxu1 %v17717_v20  ;;  %v17796_v19 = vld [vmem:[%s26709_s1 + $0x21f0] ss:$8 sps:$4 sm:$0xff]   ;;  %v17802_v20 = vld [vmem:[%s26709_s1 + $0x604] ss:$8 sps:$4 sm:$0xff]  }
 0x149   :  { %13466 = vmatprep.subr.bf16.mxu0 %v17720_v21  ;;  %v17806_v21 = vld [vmem:[%s26709_s1 + $0x2204] ss:$8 sps:$4 sm:$0xff]  }
 0x14b   :  { %12319 = vmatpush1.bf16.msra.mxu1 %v17715_v22  ;;  %v165_v22 = vcombine.high %v21415_v57, %v21415_v57 }
 0x14c   :  { %13467 = vmatpush1.bf16.msra.mxu0 %v17718_v23  ;;  %12320 = vmatprep.subr.bf16.mxu1 %v17723_v24  ;;  %v403_v23 = vcombine.high %v21419_v17, %v21419_v17  ;;  %v728_v24 = vpack.c.bf16 %v21198_v51, %v21198_v51  ;;  %v17812_v51 = vld [vmem:[%s26709_s1 + $0x2214] ss:$8 sps:$4 sm:$0xff]  }
 0x14d   :  { %13468 = vmatprep.subr.bf16.mxu0 %v17726_v25  ;;  %v784_v25 = vpack.c.bf16 %v21201_v3, %v21201_v3  ;;  %v731_v3 = vpack.c.bf16 %v165_v22, %v165_v22  ;;  %v17879_v22 = vld [vmem:[%s26709_s1 + $0x6d0] ss:$8 sps:$4 sm:$0xff]  }
 0x14f   :  { %12321 = vmatpush1.bf16.msra.mxu1 %v17721_v26  ;;  %v17800_v26 = vld [vmem:[%s26709_s1 + $0x600] ss:$8 sps:$4 sm:$0xff]  }
 0x150   :  { %13469 = vmatpush1.bf16.msra.mxu0 %v17724_v27  ;;  %12322 = vmatprep.subr.bf16.mxu1 %v17729_v28  ;;  %v17804_v27 = vld [vmem:[%s26709_s1 + $0x2200] ss:$8 sps:$4 sm:$0xff]   ;;  %v17809_v28 = vld [vmem:[%s26709_s1 + $0x614] ss:$8 sps:$4 sm:$0xff]  }
 0x151   :  { %13470 = vmatprep.subr.bf16.mxu0 %v17732_v29  ;;  %v787_v29 = vpack.c.bf16 %v403_v23, %v403_v23  ;;  %v17882_v23 = vld [vmem:[%s26709_s1 + $0x22d0] ss:$8 sps:$4 sm:$0xff]  }
 0x153   :  { %12323 = vmatpush1.bf16.msra.mxu1 %v17727_v30  ;;  %v17807_v30 = vld [vmem:[%s26709_s1 + $0x610] ss:$8 sps:$4 sm:$0xff]  }
 0x154   :  { %13471 = vmatpush1.bf16.msra.mxu0 %v17730_v31  ;;  %12324 = vmatprep.subr.bf16.mxu1 %v17735_v32  ;;  %v17810_v31 = vld [vmem:[%s26709_s1 + $0x2210] ss:$8 sps:$4 sm:$0xff]   ;;  %v17815_v32 = vld [vmem:[%s26709_s1 + $0x624] ss:$8 sps:$4 sm:$0xff]  }
 0x155   :  { %13472 = vmatprep.subr.bf16.mxu0 %v17738_v33  ;;  %v17818_v33 = vld [vmem:[%s26709_s1 + $0x2224] ss:$8 sps:$4 sm:$0xff]  }
 0x157   :  { %12325 = vmatpush1.bf16.msra.mxu1 %v17733_v34  ;;  %v17813_v34 = vld [vmem:[%s26709_s1 + $0x620] ss:$8 sps:$4 sm:$0xff]  }
 0x158   :  { %13473 = vmatpush1.bf16.msra.mxu0 %v17736_v14  ;;  %12326 = vmatprep.subr.bf16.mxu1 %v17741_v37  ;;  %v17816_v14 = vld [vmem:[%s26709_s1 + $0x2220] ss:$8 sps:$4 sm:$0xff]   ;;  %v17821_v37 = vld [vmem:[%s26709_s1 + $0x634] ss:$8 sps:$4 sm:$0xff]  }
 0x159   :  { %13474 = vmatprep.subr.bf16.mxu0 %v17744_v38  ;;  %v17824_v38 = vld [vmem:[%s26709_s1 + $0x2234] ss:$8 sps:$4 sm:$0xff]  }
 0x15b   :  { %12327 = vmatpush1.bf16.msra.mxu1 %v17739_v39  ;;  %v17819_v39 = vld [vmem:[%s26709_s1 + $0x630] ss:$8 sps:$4 sm:$0xff]  }
 0x15c   :  { %13475 = vmatpush1.bf16.msra.mxu0 %v17742_v35  ;;  %12328 = vmatprep.subr.bf16.mxu1 %v17747_v42  ;;  %v17822_v35 = vld [vmem:[%s26709_s1 + $0x2230] ss:$8 sps:$4 sm:$0xff]   ;;  %v17827_v42 = vld [vmem:[%s26709_s1 + $0x644] ss:$8 sps:$4 sm:$0xff]  }
 0x15d   :  { %13476 = vmatprep.subr.bf16.mxu0 %v17750_v44  ;;  %v17830_v44 = vld [vmem:[%s26709_s1 + $0x2244] ss:$8 sps:$4 sm:$0xff]  }
 0x15f   :  { %12329 = vmatpush1.bf16.msra.mxu1 %v17745_v45  ;;  %v17825_v45 = vld [vmem:[%s26709_s1 + $0x640] ss:$8 sps:$4 sm:$0xff]  }
 0x160   :  { %13477 = vmatpush1.bf16.msra.mxu0 %v17748_v46  ;;  %12330 = vmatprep.subr.bf16.mxu1 %v17753_v47  ;;  %v17828_v46 = vld [vmem:[%s26709_s1 + $0x2240] ss:$8 sps:$4 sm:$0xff]   ;;  %v17833_v47 = vld [vmem:[%s26709_s1 + $0x654] ss:$8 sps:$4 sm:$0xff]  }
 0x161   :  { %13478 = vmatprep.subr.bf16.mxu0 %v17756_v48  ;;  %v17836_v48 = vld [vmem:[%s26709_s1 + $0x2254] ss:$8 sps:$4 sm:$0xff]  }
 0x163   :  { %12331 = vmatpush1.bf16.msra.mxu1 %v17751_v52  ;;  %v17831_v52 = vld [vmem:[%s26709_s1 + $0x650] ss:$8 sps:$4 sm:$0xff]  }
 0x164   :  { %13479 = vmatpush1.bf16.msra.mxu0 %v17754_v53  ;;  %12332 = vmatprep.subr.bf16.mxu1 %v17759_v54  ;;  %v17834_v53 = vld [vmem:[%s26709_s1 + $0x2250] ss:$8 sps:$4 sm:$0xff]   ;;  %v17839_v54 = vld [vmem:[%s26709_s1 + $0x664] ss:$8 sps:$4 sm:$0xff]  }
 0x165   :  { %13480 = vmatprep.subr.bf16.mxu0 %v17762_v55  ;;  %v17842_v55 = vld [vmem:[%s26709_s1 + $0x2264] ss:$8 sps:$4 sm:$0xff]  }
 0x167   :  { %12333 = vmatpush1.bf16.msra.mxu1 %v17757_v15  ;;  %v17837_v15 = vld [vmem:[%s26709_s1 + $0x660] ss:$8 sps:$4 sm:$0xff]  }
 0x168   :  { %13481 = vmatpush1.bf16.msra.mxu0 %v17760_v40  ;;  %12334 = vmatprep.subr.bf16.mxu1 %v17765_v58  ;;  %v17840_v40 = vld [vmem:[%s26709_s1 + $0x2260] ss:$8 sps:$4 sm:$0xff]   ;;  %v17845_v58 = vld [vmem:[%s26709_s1 + $0x674] ss:$8 sps:$4 sm:$0xff]  }
 0x169   :  { %13482 = vmatprep.subr.bf16.mxu0 %v17768_v59  ;;  %v17848_v59 = vld [vmem:[%s26709_s1 + $0x2274] ss:$8 sps:$4 sm:$0xff]  }
 0x16b   :  { %12335 = vmatpush1.bf16.msra.mxu1 %v17763_v60  ;;  %v17843_v60 = vld [vmem:[%s26709_s1 + $0x670] ss:$8 sps:$4 sm:$0xff]  }
 0x16c   :  { %13483 = vmatpush1.bf16.msra.mxu0 %v17766_v61  ;;  %12336 = vmatprep.subr.bf16.mxu1 %v17771_v62  ;;  %v17846_v61 = vld [vmem:[%s26709_s1 + $0x2270] ss:$8 sps:$4 sm:$0xff]   ;;  %v17851_v62 = vld [vmem:[%s26709_s1 + $0x684] ss:$8 sps:$4 sm:$0xff]  }
 0x16d   :  { %13484 = vmatprep.subr.bf16.mxu0 %v17774_v63  ;;  %v17854_v63 = vld [vmem:[%s26709_s1 + $0x2284] ss:$8 sps:$4 sm:$0xff]  }
 0x16f   :  { %12337 = vmatpush1.bf16.msra.mxu1 %v17769_v0  ;;  %v17849_v0 = vld [vmem:[%s26709_s1 + $0x680] ss:$8 sps:$4 sm:$0xff]  }
 0x170   :  { %13485 = vmatpush1.bf16.msra.mxu0 %v17772_v1  ;;  %12338 = vmatprep.subr.bf16.mxu1 %v17777_v2  ;;  %v17852_v1 = vld [vmem:[%s26709_s1 + $0x2280] ss:$8 sps:$4 sm:$0xff]   ;;  %v17857_v2 = vld [vmem:[%s26709_s1 + $0x694] ss:$8 sps:$4 sm:$0xff]  }
 0x171   :  { %13486 = vmatprep.subr.bf16.mxu0 %v17780_v36  ;;  %v17860_v36 = vld [vmem:[%s26709_s1 + $0x2294] ss:$8 sps:$4 sm:$0xff]  }
 0x173   :  { %12339 = vmatpush1.bf16.msra.mxu1 %v17775_v41  ;;  %v17855_v41 = vld [vmem:[%s26709_s1 + $0x690] ss:$8 sps:$4 sm:$0xff]  }
 0x174   :  { %13487 = vmatpush1.bf16.msra.mxu0 %v17778_v50  ;;  %12340 = vmatprep.subr.bf16.mxu1 %v17783_v4  ;;  %v17858_v50 = vld [vmem:[%s26709_s1 + $0x2290] ss:$8 sps:$4 sm:$0xff]   ;;  %v17863_v4 = vld [vmem:[%s26709_s1 + $0x6a4] ss:$8 sps:$4 sm:$0xff]  }
 0x175   :  { %13488 = vmatprep.subr.bf16.mxu0 %v17786_v5  ;;  %v17866_v5 = vld [vmem:[%s26709_s1 + $0x22a4] ss:$8 sps:$4 sm:$0xff]  }
 0x177   :  { %12341 = vmatpush1.bf16.msra.mxu1 %v17781_v6  ;;  %v17861_v6 = vld [vmem:[%s26709_s1 + $0x6a0] ss:$8 sps:$4 sm:$0xff]  }
 0x178   :  { %13489 = vmatpush1.bf16.msra.mxu0 %v17784_v7  ;;  %12342 = vmatprep.subr.bf16.mxu1 %v17789_v8  ;;  %v17864_v7 = vld [vmem:[%s26709_s1 + $0x22a0] ss:$8 sps:$4 sm:$0xff]   ;;  %v17869_v8 = vld [vmem:[%s26709_s1 + $0x6b4] ss:$8 sps:$4 sm:$0xff]  }
 0x179   :  { %13490 = vmatprep.subr.bf16.mxu0 %v17792_v9  ;;  %v17872_v9 = vld [vmem:[%s26709_s1 + $0x22b4] ss:$8 sps:$4 sm:$0xff]  }
 0x17b   :  { %12343 = vmatpush1.bf16.msra.mxu1 %v17787_v12  ;;  %v17867_v12 = vld [vmem:[%s26709_s1 + $0x6b0] ss:$8 sps:$4 sm:$0xff]  }
 0x17c   :  { %13491 = vmatpush1.bf16.msra.mxu0 %v17790_v13  ;;  %12344 = vmatprep.subr.bf16.mxu1 %v17795_v16  ;;  %v17870_v13 = vld [vmem:[%s26709_s1 + $0x22b0] ss:$8 sps:$4 sm:$0xff]   ;;  %v17875_v16 = vld [vmem:[%s26709_s1 + $0x6c4] ss:$8 sps:$4 sm:$0xff]  }
 0x17d   :  { %13492 = vmatprep.subr.bf16.mxu0 %v17798_v56  ;;  %v17878_v56 = vld [vmem:[%s26709_s1 + $0x22c4] ss:$8 sps:$4 sm:$0xff]  }
 0x17f   :  { %12345 = vmatpush1.bf16.msra.mxu1 %v17793_v18  ;;  %v17873_v18 = vld [vmem:[%s26709_s1 + $0x6c0] ss:$8 sps:$4 sm:$0xff]  }
 0x180   :  { %13493 = vmatpush1.bf16.msra.mxu0 %v17796_v19  ;;  %12355 = vmatprep.subr.bf16.mxu1 %v17802_v20  ;;  %v17876_v19 = vld [vmem:[%s26709_s1 + $0x22c0] ss:$8 sps:$4 sm:$0xff]   ;;  %v17881_v20 = vld [vmem:[%s26709_s1 + $0x6d4] ss:$8 sps:$4 sm:$0xff]  }
 0x181   :  { %13503 = vmatprep.subr.bf16.mxu0 %v17806_v21  ;;  %v17884_v21 = vld [vmem:[%s26709_s1 + $0x22d4] ss:$8 sps:$4 sm:$0xff]  }
 0x182   :  { %12347 = vmatmul.mubr.bf16.vlgmr.msra.gmra.mrb[0].mxu1 %v728_v24  ;;  %v17887_v24 = vld [vmem:[%s26709_s1 + $0x6e4] ss:$8 sps:$4 sm:$0xff]  }
 0x183   :  { %13495 = vmatmul.mubr.bf16.vlgmr.msra.gmra.mrb[0].mxu0 %v784_v25  ;;  %12356 = vmatpush1.bf16.msra.mxu1 %v17800_v26  ;;  %v17890_v25 = vld [vmem:[%s26709_s1 + $0x22e4] ss:$8 sps:$4 sm:$0xff]   ;;  %v150_v26 = vcombine.high %v21394_v10, %v21394_v10  ;;  %v17896_v10 = vld [vmem:[%s26709_s1 + $0x22f4] ss:$8 sps:$4 sm:$0xff]  }
 0x184   :  { %13504 = vmatpush1.bf16.msra.mxu0 %v17804_v27  ;;  %12357 = vmatprep.subr.bf16.mxu1 %v17809_v28  ;;  %v388_v27 = vcombine.high %v21399_v11, %v21399_v11  ;;  %v17885_v28 = vld [vmem:[%s26709_s1 + $0x6e0] ss:$8 sps:$4 sm:$0xff]  }
 0x185   :  { %13505 = vmatprep.subr.bf16.mxu0 %v17812_v51  ;;  %12387 = vmatprep.mubr.bf16.mxu1 %v731_v3  ;;  %v17888_v51 = vld [vmem:[%s26709_s1 + $0x22e0] ss:$8 sps:$4 sm:$0xff]   ;;  %v17893_v3 = vld [vmem:[%s26709_s1 + $0x6f4] ss:$8 sps:$4 sm:$0xff]   ;;  %v21626_v11 = vrot.slane %v150_v26, %v20275_v49  ;;  %v17963_v26 = vld [vmem:[%s26709_s1 + $0x7b0] ss:$8 sps:$4 sm:$0xff]  }
 0x186   :  { %13535 = vmatprep.mubr.bf16.mxu0 %v787_v29  ;;  %v21629_v29 = vrot.slane %v388_v27, %v20275_v49  ;;  %v17966_v27 = vld [vmem:[%s26709_s1 + $0x23b0] ss:$8 sps:$4 sm:$0xff]  }
 0x187   :  { %12358 = vmatpush1.bf16.msra.mxu1 %v17807_v30  ;;  %v17891_v30 = vld [vmem:[%s26709_s1 + $0x6f0] ss:$8 sps:$4 sm:$0xff]  }
 0x188   :  { %13506 = vmatpush1.bf16.msra.mxu0 %v17810_v31  ;;  %12359 = vmatprep.subr.bf16.mxu1 %v17815_v32  ;;  %v17894_v31 = vld [vmem:[%s26709_s1 + $0x22f0] ss:$8 sps:$4 sm:$0xff]   ;;  %v17899_v32 = vld [vmem:[%s26709_s1 + $0x704] ss:$8 sps:$4 sm:$0xff]  }
 0x189   :  { %13507 = vmatprep.subr.bf16.mxu0 %v17818_v33  ;;  %v17902_v33 = vld [vmem:[%s26709_s1 + $0x2304] ss:$8 sps:$4 sm:$0xff]  }
 0x18b   :  { %12360 = vmatpush1.bf16.msra.mxu1 %v17813_v34  ;;  %v166_v34 = vcombine.high %v21626_v11, %v21626_v11 }
 0x18c   :  { %13508 = vmatpush1.bf16.msra.mxu0 %v17816_v14  ;;  %12361 = vmatprep.subr.bf16.mxu1 %v17821_v37  ;;  %v404_v14 = vcombine.high %v21629_v29, %v21629_v29  ;;  %v730_v37 = vpack.c.bf16 %v21415_v57, %v21415_v57  ;;  %v17908_v57 = vld [vmem:[%s26709_s1 + $0x2314] ss:$8 sps:$4 sm:$0xff]  }
 0x18d   :  { %13509 = vmatprep.subr.bf16.mxu0 %v17824_v38  ;;  %v786_v38 = vpack.c.bf16 %v21419_v17, %v21419_v17  ;;  %v733_v17 = vpack.c.bf16 %v166_v34, %v166_v34  ;;  %v17983_v34 = vld [vmem:[%s26709_s1 + $0x7e4] ss:$8 sps:$4 sm:$0xff]  }
 0x18f   :  { %12362 = vmatpush1.bf16.msra.mxu1 %v17819_v39  ;;  %v17897_v39 = vld [vmem:[%s26709_s1 + $0x700] ss:$8 sps:$4 sm:$0xff]  }
 0x190   :  { %13510 = vmatpush1.bf16.msra.mxu0 %v17822_v35  ;;  %12363 = vmatprep.subr.bf16.mxu1 %v17827_v42  ;;  %v17900_v35 = vld [vmem:[%s26709_s1 + $0x2300] ss:$8 sps:$4 sm:$0xff]   ;;  %v17905_v42 = vld [vmem:[%s26709_s1 + $0x714] ss:$8 sps:$4 sm:$0xff]  }
 0x191   :  { %13511 = vmatprep.subr.bf16.mxu0 %v17830_v44  ;;  %v789_v44 = vpack.c.bf16 %v404_v14, %v404_v14  ;;  %v17986_v14 = vld [vmem:[%s26709_s1 + $0x23e4] ss:$8 sps:$4 sm:$0xff]  }
 0x193   :  { %12364 = vmatpush1.bf16.msra.mxu1 %v17825_v45  ;;  %v17903_v45 = vld [vmem:[%s26709_s1 + $0x710] ss:$8 sps:$4 sm:$0xff]  }
 0x194   :  { %13512 = vmatpush1.bf16.msra.mxu0 %v17828_v46  ;;  %12365 = vmatprep.subr.bf16.mxu1 %v17833_v47  ;;  %v17906_v46 = vld [vmem:[%s26709_s1 + $0x2310] ss:$8 sps:$4 sm:$0xff]   ;;  %v17911_v47 = vld [vmem:[%s26709_s1 + $0x724] ss:$8 sps:$4 sm:$0xff]  }
 0x195   :  { %13513 = vmatprep.subr.bf16.mxu0 %v17836_v48  ;;  %v17914_v48 = vld [vmem:[%s26709_s1 + $0x2324] ss:$8 sps:$4 sm:$0xff]  }
 0x197   :  { %12366 = vmatpush1.bf16.msra.mxu1 %v17831_v52  ;;  %v17909_v52 = vld [vmem:[%s26709_s1 + $0x720] ss:$8 sps:$4 sm:$0xff]  }
 0x198   :  { %13514 = vmatpush1.bf16.msra.mxu0 %v17834_v53  ;;  %12367 = vmatprep.subr.bf16.mxu1 %v17839_v54  ;;  %v17912_v53 = vld [vmem:[%s26709_s1 + $0x2320] ss:$8 sps:$4 sm:$0xff]   ;;  %v17917_v54 = vld [vmem:[%s26709_s1 + $0x734] ss:$8 sps:$4 sm:$0xff]  }
 0x199   :  { %13515 = vmatprep.subr.bf16.mxu0 %v17842_v55  ;;  %v17920_v55 = vld [vmem:[%s26709_s1 + $0x2334] ss:$8 sps:$4 sm:$0xff]  }
 0x19b   :  { %12368 = vmatpush1.bf16.msra.mxu1 %v17837_v15  ;;  %v17915_v15 = vld [vmem:[%s26709_s1 + $0x730] ss:$8 sps:$4 sm:$0xff]  }
 0x19c   :  { %13516 = vmatpush1.bf16.msra.mxu0 %v17840_v40  ;;  %12369 = vmatprep.subr.bf16.mxu1 %v17845_v58  ;;  %v17918_v40 = vld [vmem:[%s26709_s1 + $0x2330] ss:$8 sps:$4 sm:$0xff]   ;;  %v17923_v58 = vld [vmem:[%s26709_s1 + $0x744] ss:$8 sps:$4 sm:$0xff]  }
 0x19d   :  { %13517 = vmatprep.subr.bf16.mxu0 %v17848_v59  ;;  %v17926_v59 = vld [vmem:[%s26709_s1 + $0x2344] ss:$8 sps:$4 sm:$0xff]  }
 0x19f   :  { %12370 = vmatpush1.bf16.msra.mxu1 %v17843_v60  ;;  %v17921_v60 = vld [vmem:[%s26709_s1 + $0x740] ss:$8 sps:$4 sm:$0xff]  }
 0x1a0   :  { %13518 = vmatpush1.bf16.msra.mxu0 %v17846_v61  ;;  %12371 = vmatprep.subr.bf16.mxu1 %v17851_v62  ;;  %v17924_v61 = vld [vmem:[%s26709_s1 + $0x2340] ss:$8 sps:$4 sm:$0xff]   ;;  %v17929_v62 = vld [vmem:[%s26709_s1 + $0x754] ss:$8 sps:$4 sm:$0xff]  }
 0x1a1   :  { %13519 = vmatprep.subr.bf16.mxu0 %v17854_v63  ;;  %v17932_v63 = vld [vmem:[%s26709_s1 + $0x2354] ss:$8 sps:$4 sm:$0xff]  }
 0x1a3   :  { %12372 = vmatpush1.bf16.msra.mxu1 %v17849_v0  ;;  %v17927_v0 = vld [vmem:[%s26709_s1 + $0x750] ss:$8 sps:$4 sm:$0xff]  }
 0x1a4   :  { %13520 = vmatpush1.bf16.msra.mxu0 %v17852_v1  ;;  %12373 = vmatprep.subr.bf16.mxu1 %v17857_v2  ;;  %v17930_v1 = vld [vmem:[%s26709_s1 + $0x2350] ss:$8 sps:$4 sm:$0xff]   ;;  %v17935_v2 = vld [vmem:[%s26709_s1 + $0x764] ss:$8 sps:$4 sm:$0xff]  }
 0x1a5   :  { %13521 = vmatprep.subr.bf16.mxu0 %v17860_v36  ;;  %v17938_v36 = vld [vmem:[%s26709_s1 + $0x2364] ss:$8 sps:$4 sm:$0xff]  }
 0x1a7   :  { %12374 = vmatpush1.bf16.msra.mxu1 %v17855_v41  ;;  %v17933_v41 = vld [vmem:[%s26709_s1 + $0x760] ss:$8 sps:$4 sm:$0xff]  }
 0x1a8   :  { %13522 = vmatpush1.bf16.msra.mxu0 %v17858_v50  ;;  %12375 = vmatprep.subr.bf16.mxu1 %v17863_v4  ;;  %v17936_v50 = vld [vmem:[%s26709_s1 + $0x2360] ss:$8 sps:$4 sm:$0xff]   ;;  %v17941_v4 = vld [vmem:[%s26709_s1 + $0x774] ss:$8 sps:$4 sm:$0xff]  }
 0x1a9   :  { %13523 = vmatprep.subr.bf16.mxu0 %v17866_v5  ;;  %v17944_v5 = vld [vmem:[%s26709_s1 + $0x2374] ss:$8 sps:$4 sm:$0xff]  }
 0x1ab   :  { %12376 = vmatpush1.bf16.msra.mxu1 %v17861_v6  ;;  %v17939_v6 = vld [vmem:[%s26709_s1 + $0x770] ss:$8 sps:$4 sm:$0xff]  }
 0x1ac   :  { %13524 = vmatpush1.bf16.msra.mxu0 %v17864_v7  ;;  %12377 = vmatprep.subr.bf16.mxu1 %v17869_v8  ;;  %v17942_v7 = vld [vmem:[%s26709_s1 + $0x2370] ss:$8 sps:$4 sm:$0xff]   ;;  %v17947_v8 = vld [vmem:[%s26709_s1 + $0x784] ss:$8 sps:$4 sm:$0xff]  }
 0x1ad   :  { %13525 = vmatprep.subr.bf16.mxu0 %v17872_v9  ;;  %v17950_v9 = vld [vmem:[%s26709_s1 + $0x2384] ss:$8 sps:$4 sm:$0xff]  }
 0x1af   :  { %12378 = vmatpush1.bf16.msra.mxu1 %v17867_v12  ;;  %v17945_v12 = vld [vmem:[%s26709_s1 + $0x780] ss:$8 sps:$4 sm:$0xff]  }
 0x1b0   :  { %13526 = vmatpush1.bf16.msra.mxu0 %v17870_v13  ;;  %12379 = vmatprep.subr.bf16.mxu1 %v17875_v16  ;;  %v17948_v13 = vld [vmem:[%s26709_s1 + $0x2380] ss:$8 sps:$4 sm:$0xff]   ;;  %v17953_v16 = vld [vmem:[%s26709_s1 + $0x794] ss:$8 sps:$4 sm:$0xff]  }
 0x1b1   :  { %13527 = vmatprep.subr.bf16.mxu0 %v17878_v56  ;;  %v17956_v56 = vld [vmem:[%s26709_s1 + $0x2394] ss:$8 sps:$4 sm:$0xff]  }
 0x1b3   :  { %12380 = vmatpush1.bf16.msra.mxu1 %v17873_v18  ;;  %v17951_v18 = vld [vmem:[%s26709_s1 + $0x790] ss:$8 sps:$4 sm:$0xff]  }
 0x1b4   :  { %13528 = vmatpush1.bf16.msra.mxu0 %v17876_v19  ;;  %12381 = vmatprep.subr.bf16.mxu1 %v17881_v20  ;;  %v17954_v19 = vld [vmem:[%s26709_s1 + $0x2390] ss:$8 sps:$4 sm:$0xff]   ;;  %v17959_v20 = vld [vmem:[%s26709_s1 + $0x7a4] ss:$8 sps:$4 sm:$0xff]  }
 0x1b5   :  { %13529 = vmatprep.subr.bf16.mxu0 %v17884_v21  ;;  %v17962_v21 = vld [vmem:[%s26709_s1 + $0x23a4] ss:$8 sps:$4 sm:$0xff]  }
 0x1b7   :  { %12382 = vmatpush1.bf16.msra.mxu1 %v17879_v22  ;;  %v17957_v22 = vld [vmem:[%s26709_s1 + $0x7a0] ss:$8 sps:$4 sm:$0xff]  }
 0x1b8   :  { %13530 = vmatpush1.bf16.msra.mxu0 %v17882_v23  ;;  %12383 = vmatprep.subr.bf16.mxu1 %v17887_v24  ;;  %v17960_v23 = vld [vmem:[%s26709_s1 + $0x23a0] ss:$8 sps:$4 sm:$0xff]   ;;  %v17965_v24 = vld [vmem:[%s26709_s1 + $0x7b4] ss:$8 sps:$4 sm:$0xff]  }
 0x1b9   :  { %13531 = vmatprep.subr.bf16.mxu0 %v17890_v25  ;;  %v17968_v25 = vld [vmem:[%s26709_s1 + $0x23b4] ss:$8 sps:$4 sm:$0xff]  }
 0x1bb   :  { %12384 = vmatpush1.bf16.msra.mxu1 %v17885_v28  ;;  %v17971_v28 = vld [vmem:[%s26709_s1 + $0x7c4] ss:$8 sps:$4 sm:$0xff]  }
 0x1bc   :  { %13532 = vmatpush1.bf16.msra.mxu0 %v17888_v51  ;;  %12385 = vmatprep.subr.bf16.mxu1 %v17893_v3  ;;  %v17974_v51 = vld [vmem:[%s26709_s1 + $0x23c4] ss:$8 sps:$4 sm:$0xff]   ;;  %v17969_v3 = vld [vmem:[%s26709_s1 + $0x7c0] ss:$8 sps:$4 sm:$0xff]  }
 0x1bd   :  { %13533 = vmatprep.subr.bf16.mxu0 %v17896_v10  ;;  %v17972_v10 = vld [vmem:[%s26709_s1 + $0x23c0] ss:$8 sps:$4 sm:$0xff]  }
 0x1bf   :  { %12386 = vmatpush1.bf16.msra.mxu1 %v17891_v30  ;;  %v17977_v30 = vld [vmem:[%s26709_s1 + $0x7d4] ss:$8 sps:$4 sm:$0xff]  }
 0x1c0   :  { %13534 = vmatpush1.bf16.msra.mxu0 %v17894_v31  ;;  %12396 = vmatprep.subr.bf16.mxu1 %v17899_v32  ;;  %v17980_v31 = vld [vmem:[%s26709_s1 + $0x23d4] ss:$8 sps:$4 sm:$0xff]   ;;  %v17975_v32 = vld [vmem:[%s26709_s1 + $0x7d0] ss:$8 sps:$4 sm:$0xff]  }
 0x1c1   :  { %13544 = vmatprep.subr.bf16.mxu0 %v17902_v33  ;;  %v17978_v33 = vld [vmem:[%s26709_s1 + $0x23d0] ss:$8 sps:$4 sm:$0xff]  }
 0x1c2   :  { %12388 = vmatmul.mubr.bf16.vlgmr.msra.gmra.mrb[0].mxu1 %v730_v37  ;;  %v21822_v37 = vld [vmem:[%s26710_s0 + $0x20] sm:$0xff] }
 0x1c3   :  { %13536 = vmatmul.mubr.bf16.vlgmr.msra.gmra.mrb[0].mxu0 %v786_v38  ;;  %12397 = vmatpush1.bf16.msra.mxu1 %v17897_v39  ;;  %v21827_v38 = vld [vmem:[%s26710_s0 + $0x90] sm:$0xff]  ;;  %v17981_v39 = vld [vmem:[%s26709_s1 + $0x7e0] ss:$8 sps:$4 sm:$0xff]  }
 0x1c4   :  { %13545 = vmatpush1.bf16.msra.mxu0 %v17900_v35  ;;  %12398 = vmatprep.subr.bf16.mxu1 %v17905_v42  ;;  %v17984_v35 = vld [vmem:[%s26709_s1 + $0x23e0] ss:$8 sps:$4 sm:$0xff]   ;;  %v17989_v42 = vld [vmem:[%s26709_s1 + $0x7f4] ss:$8 sps:$4 sm:$0xff]  }
 0x1c5   :  { %13546 = vmatprep.subr.bf16.mxu0 %v17908_v57  ;;  %12428 = vmatprep.mubr.bf16.mxu1 %v733_v17  ;;  %v17992_v57 = vld [vmem:[%s26709_s1 + $0x23f4] ss:$8 sps:$4 sm:$0xff]   ;;  %v21843_v17 = vrot.slane %v21822_v37, %v20275_v49 }
 0x1c6   :  { %13576 = vmatprep.mubr.bf16.mxu0 %v789_v44  ;;  %v21847_v44 = vrot.slane %v21827_v38, %v20275_v49 }
 0x1c7   :  { %12399 = vmatpush1.bf16.msra.mxu1 %v17903_v45  ;;  %v17987_v45 = vld [vmem:[%s26709_s1 + $0x7f0] ss:$8 sps:$4 sm:$0xff]  }
 0x1c8   :  { %13547 = vmatpush1.bf16.msra.mxu0 %v17906_v46  ;;  %12400 = vmatprep.subr.bf16.mxu1 %v17911_v47  ;;  %v17990_v46 = vld [vmem:[%s26709_s1 + $0x23f0] ss:$8 sps:$4 sm:$0xff]   ;;  %v17996_v47 = vld [vmem:[%s26709_s1 + $0x804] ss:$8 sps:$4 sm:$0xff]  }
 0x1c9   :  { %13548 = vmatprep.subr.bf16.mxu0 %v17914_v48  ;;  %v18000_v48 = vld [vmem:[%s26709_s1 + $0x2404] ss:$8 sps:$4 sm:$0xff]  }
 0x1cb   :  { %12401 = vmatpush1.bf16.msra.mxu1 %v17909_v52  ;;  %v182_v52 = vcombine.high %v21843_v17, %v21843_v17 }
 0x1cc   :  { %13549 = vmatpush1.bf16.msra.mxu0 %v17912_v53  ;;  %12402 = vmatprep.subr.bf16.mxu1 %v17917_v54  ;;  %v420_v53 = vcombine.high %v21847_v44, %v21847_v44  ;;  %v732_v54 = vpack.c.bf16 %v21626_v11, %v21626_v11  ;;  %v18006_v11 = vld [vmem:[%s26709_s1 + $0x2414] ss:$8 sps:$4 sm:$0xff]  }
 0x1cd   :  { %13550 = vmatprep.subr.bf16.mxu0 %v17920_v55  ;;  %v788_v55 = vpack.c.bf16 %v21629_v29, %v21629_v29  ;;  %v735_v29 = vpack.c.bf16 %v182_v52, %v182_v52  ;;  %v18073_v52 = vld [vmem:[%s26709_s1 + $0x8d0] ss:$8 sps:$4 sm:$0xff]  }
 0x1cf   :  { %12403 = vmatpush1.bf16.msra.mxu1 %v17915_v15  ;;  %v17994_v15 = vld [vmem:[%s26709_s1 + $0x800] ss:$8 sps:$4 sm:$0xff]  }
 0x1d0   :  { %13551 = vmatpush1.bf16.msra.mxu0 %v17918_v40  ;;  %12404 = vmatprep.subr.bf16.mxu1 %v17923_v58  ;;  %v17998_v40 = vld [vmem:[%s26709_s1 + $0x2400] ss:$8 sps:$4 sm:$0xff]   ;;  %v18003_v58 = vld [vmem:[%s26709_s1 + $0x814] ss:$8 sps:$4 sm:$0xff]  }
 0x1d1   :  { %13552 = vmatprep.subr.bf16.mxu0 %v17926_v59  ;;  %v791_v59 = vpack.c.bf16 %v420_v53, %v420_v53  ;;  %v18076_v53 = vld [vmem:[%s26709_s1 + $0x24d0] ss:$8 sps:$4 sm:$0xff]  }
 0x1d3   :  { %12405 = vmatpush1.bf16.msra.mxu1 %v17921_v60  ;;  %v18001_v60 = vld [vmem:[%s26709_s1 + $0x810] ss:$8 sps:$4 sm:$0xff]  }
 0x1d4   :  { %13553 = vmatpush1.bf16.msra.mxu0 %v17924_v61  ;;  %12406 = vmatprep.subr.bf16.mxu1 %v17929_v62  ;;  %v18004_v61 = vld [vmem:[%s26709_s1 + $0x2410] ss:$8 sps:$4 sm:$0xff]   ;;  %v18009_v62 = vld [vmem:[%s26709_s1 + $0x824] ss:$8 sps:$4 sm:$0xff]  }
 0x1d5   :  { %13554 = vmatprep.subr.bf16.mxu0 %v17932_v63  ;;  %v18012_v63 = vld [vmem:[%s26709_s1 + $0x2424] ss:$8 sps:$4 sm:$0xff]  }
 0x1d7   :  { %12407 = vmatpush1.bf16.msra.mxu1 %v17927_v0  ;;  %v18007_v0 = vld [vmem:[%s26709_s1 + $0x820] ss:$8 sps:$4 sm:$0xff]  }
 0x1d8   :  { %13555 = vmatpush1.bf16.msra.mxu0 %v17930_v1  ;;  %12408 = vmatprep.subr.bf16.mxu1 %v17935_v2  ;;  %v18010_v1 = vld [vmem:[%s26709_s1 + $0x2420] ss:$8 sps:$4 sm:$0xff]   ;;  %v18015_v2 = vld [vmem:[%s26709_s1 + $0x834] ss:$8 sps:$4 sm:$0xff]  }
 0x1d9   :  { %13556 = vmatprep.subr.bf16.mxu0 %v17938_v36  ;;  %v18018_v36 = vld [vmem:[%s26709_s1 + $0x2434] ss:$8 sps:$4 sm:$0xff]  }
 0x1db   :  { %12409 = vmatpush1.bf16.msra.mxu1 %v17933_v41  ;;  %v18013_v41 = vld [vmem:[%s26709_s1 + $0x830] ss:$8 sps:$4 sm:$0xff]  }
 0x1dc   :  { %13557 = vmatpush1.bf16.msra.mxu0 %v17936_v50  ;;  %12410 = vmatprep.subr.bf16.mxu1 %v17941_v4  ;;  %v18016_v50 = vld [vmem:[%s26709_s1 + $0x2430] ss:$8 sps:$4 sm:$0xff]   ;;  %v18021_v4 = vld [vmem:[%s26709_s1 + $0x844] ss:$8 sps:$4 sm:$0xff]  }
 0x1dd   :  { %13558 = vmatprep.subr.bf16.mxu0 %v17944_v5  ;;  %v18024_v5 = vld [vmem:[%s26709_s1 + $0x2444] ss:$8 sps:$4 sm:$0xff]  }
 0x1df   :  { %12411 = vmatpush1.bf16.msra.mxu1 %v17939_v6  ;;  %v18019_v6 = vld [vmem:[%s26709_s1 + $0x840] ss:$8 sps:$4 sm:$0xff]  }
 0x1e0   :  { %13559 = vmatpush1.bf16.msra.mxu0 %v17942_v7  ;;  %12412 = vmatprep.subr.bf16.mxu1 %v17947_v8  ;;  %v18022_v7 = vld [vmem:[%s26709_s1 + $0x2440] ss:$8 sps:$4 sm:$0xff]   ;;  %v18027_v8 = vld [vmem:[%s26709_s1 + $0x854] ss:$8 sps:$4 sm:$0xff]  }
 0x1e1   :  { %13560 = vmatprep.subr.bf16.mxu0 %v17950_v9  ;;  %v18030_v9 = vld [vmem:[%s26709_s1 + $0x2454] ss:$8 sps:$4 sm:$0xff]  }
 0x1e3   :  { %12413 = vmatpush1.bf16.msra.mxu1 %v17945_v12  ;;  %v18025_v12 = vld [vmem:[%s26709_s1 + $0x850] ss:$8 sps:$4 sm:$0xff]  }
 0x1e4   :  { %13561 = vmatpush1.bf16.msra.mxu0 %v17948_v13  ;;  %12414 = vmatprep.subr.bf16.mxu1 %v17953_v16  ;;  %v18028_v13 = vld [vmem:[%s26709_s1 + $0x2450] ss:$8 sps:$4 sm:$0xff]   ;;  %v18033_v16 = vld [vmem:[%s26709_s1 + $0x864] ss:$8 sps:$4 sm:$0xff]  }
 0x1e5   :  { %13562 = vmatprep.subr.bf16.mxu0 %v17956_v56  ;;  %v18036_v56 = vld [vmem:[%s26709_s1 + $0x2464] ss:$8 sps:$4 sm:$0xff]  }
 0x1e7   :  { %12415 = vmatpush1.bf16.msra.mxu1 %v17951_v18  ;;  %v18031_v18 = vld [vmem:[%s26709_s1 + $0x860] ss:$8 sps:$4 sm:$0xff]  }
 0x1e8   :  { %13563 = vmatpush1.bf16.msra.mxu0 %v17954_v19  ;;  %12416 = vmatprep.subr.bf16.mxu1 %v17959_v20  ;;  %v18034_v19 = vld [vmem:[%s26709_s1 + $0x2460] ss:$8 sps:$4 sm:$0xff]   ;;  %v18039_v20 = vld [vmem:[%s26709_s1 + $0x874] ss:$8 sps:$4 sm:$0xff]  }
 0x1e9   :  { %13564 = vmatprep.subr.bf16.mxu0 %v17962_v21  ;;  %v18042_v21 = vld [vmem:[%s26709_s1 + $0x2474] ss:$8 sps:$4 sm:$0xff]  }
 0x1eb   :  { %12417 = vmatpush1.bf16.msra.mxu1 %v17957_v22  ;;  %v18037_v22 = vld [vmem:[%s26709_s1 + $0x870] ss:$8 sps:$4 sm:$0xff]  }
 0x1ec   :  { %13565 = vmatpush1.bf16.msra.mxu0 %v17960_v23  ;;  %12418 = vmatprep.subr.bf16.mxu1 %v17965_v24  ;;  %v18040_v23 = vld [vmem:[%s26709_s1 + $0x2470] ss:$8 sps:$4 sm:$0xff]   ;;  %v18045_v24 = vld [vmem:[%s26709_s1 + $0x884] ss:$8 sps:$4 sm:$0xff]  }
 0x1ed   :  { %13566 = vmatprep.subr.bf16.mxu0 %v17968_v25  ;;  %v18048_v25 = vld [vmem:[%s26709_s1 + $0x2484] ss:$8 sps:$4 sm:$0xff]  }
 0x1ef   :  { %12419 = vmatpush1.bf16.msra.mxu1 %v17963_v26  ;;  %v18043_v26 = vld [vmem:[%s26709_s1 + $0x880] ss:$8 sps:$4 sm:$0xff]  }
 0x1f0   :  { %13567 = vmatpush1.bf16.msra.mxu0 %v17966_v27  ;;  %12420 = vmatprep.subr.bf16.mxu1 %v17971_v28  ;;  %v18046_v27 = vld [vmem:[%s26709_s1 + $0x2480] ss:$8 sps:$4 sm:$0xff]   ;;  %v18051_v28 = vld [vmem:[%s26709_s1 + $0x894] ss:$8 sps:$4 sm:$0xff]  }
 0x1f1   :  { %13568 = vmatprep.subr.bf16.mxu0 %v17974_v51  ;;  %v18054_v51 = vld [vmem:[%s26709_s1 + $0x2494] ss:$8 sps:$4 sm:$0xff]  }
 0x1f3   :  { %12421 = vmatpush1.bf16.msra.mxu1 %v17969_v3  ;;  %v18049_v3 = vld [vmem:[%s26709_s1 + $0x890] ss:$8 sps:$4 sm:$0xff]  }
 0x1f4   :  { %13569 = vmatpush1.bf16.msra.mxu0 %v17972_v10  ;;  %12422 = vmatprep.subr.bf16.mxu1 %v17977_v30  ;;  %v18052_v10 = vld [vmem:[%s26709_s1 + $0x2490] ss:$8 sps:$4 sm:$0xff]   ;;  %v18057_v30 = vld [vmem:[%s26709_s1 + $0x8a4] ss:$8 sps:$4 sm:$0xff]  }
 0x1f5   :  { %13570 = vmatprep.subr.bf16.mxu0 %v17980_v31  ;;  %v18060_v31 = vld [vmem:[%s26709_s1 + $0x24a4] ss:$8 sps:$4 sm:$0xff]  }
 0x1f7   :  { %12423 = vmatpush1.bf16.msra.mxu1 %v17975_v32  ;;  %v18055_v32 = vld [vmem:[%s26709_s1 + $0x8a0] ss:$8 sps:$4 sm:$0xff]  }
 0x1f8   :  { %13571 = vmatpush1.bf16.msra.mxu0 %v17978_v33  ;;  %12424 = vmatprep.subr.bf16.mxu1 %v17983_v34  ;;  %v18058_v33 = vld [vmem:[%s26709_s1 + $0x24a0] ss:$8 sps:$4 sm:$0xff]   ;;  %v18063_v34 = vld [vmem:[%s26709_s1 + $0x8b4] ss:$8 sps:$4 sm:$0xff]  }
 0x1f9   :  { %13572 = vmatprep.subr.bf16.mxu0 %v17986_v14  ;;  %v18066_v14 = vld [vmem:[%s26709_s1 + $0x24b4] ss:$8 sps:$4 sm:$0xff]  }
 0x1fb   :  { %12425 = vmatpush1.bf16.msra.mxu1 %v17981_v39  ;;  %v18061_v39 = vld [vmem:[%s26709_s1 + $0x8b0] ss:$8 sps:$4 sm:$0xff]  }
 0x1fc   :  { %13573 = vmatpush1.bf16.msra.mxu0 %v17984_v35  ;;  %12426 = vmatprep.subr.bf16.mxu1 %v17989_v42  ;;  %v18064_v35 = vld [vmem:[%s26709_s1 + $0x24b0] ss:$8 sps:$4 sm:$0xff]   ;;  %v18069_v42 = vld [vmem:[%s26709_s1 + $0x8c4] ss:$8 sps:$4 sm:$0xff]  }
 0x1fd   :  { %13574 = vmatprep.subr.bf16.mxu0 %v17992_v57  ;;  %v18072_v57 = vld [vmem:[%s26709_s1 + $0x24c4] ss:$8 sps:$4 sm:$0xff]  }
 0x1ff   :  { %12427 = vmatpush1.bf16.msra.mxu1 %v17987_v45  ;;  %v18067_v45 = vld [vmem:[%s26709_s1 + $0x8c0] ss:$8 sps:$4 sm:$0xff]  }
 0x200   :  { %13575 = vmatpush1.bf16.msra.mxu0 %v17990_v46  ;;  %12437 = vmatprep.subr.bf16.mxu1 %v17996_v47  ;;  %v18070_v46 = vld [vmem:[%s26709_s1 + $0x24c0] ss:$8 sps:$4 sm:$0xff]   ;;  %v18075_v47 = vld [vmem:[%s26709_s1 + $0x8d4] ss:$8 sps:$4 sm:$0xff]  }
 0x201   :  { %13585 = vmatprep.subr.bf16.mxu0 %v18000_v48  ;;  %v18078_v48 = vld [vmem:[%s26709_s1 + $0x24d4] ss:$8 sps:$4 sm:$0xff]  }
 0x202   :  { %12429 = vmatmul.mubr.bf16.vlgmr.msra.gmra.mrb[0].mxu1 %v732_v54  ;;  %v18081_v54 = vld [vmem:[%s26709_s1 + $0x8e4] ss:$8 sps:$4 sm:$0xff]  }
 0x203   :  { %13577 = vmatmul.mubr.bf16.vlgmr.msra.gmra.mrb[0].mxu0 %v788_v55  ;;  %12438 = vmatpush1.bf16.msra.mxu1 %v17994_v15  ;;  %v18084_v55 = vld [vmem:[%s26709_s1 + $0x24e4] ss:$8 sps:$4 sm:$0xff]   ;;  %v167_v15 = vcombine.high %v21822_v37, %v21822_v37  ;;  %v18090_v37 = vld [vmem:[%s26709_s1 + $0x24f4] ss:$8 sps:$4 sm:$0xff]  }
 0x204   :  { %13586 = vmatpush1.bf16.msra.mxu0 %v17998_v40  ;;  %12439 = vmatprep.subr.bf16.mxu1 %v18003_v58  ;;  %v405_v40 = vcombine.high %v21827_v38, %v21827_v38  ;;  %v18079_v58 = vld [vmem:[%s26709_s1 + $0x8e0] ss:$8 sps:$4 sm:$0xff]  }
 0x205   :  { %13587 = vmatprep.subr.bf16.mxu0 %v18006_v11  ;;  %12469 = vmatprep.mubr.bf16.mxu1 %v735_v29  ;;  %v18082_v11 = vld [vmem:[%s26709_s1 + $0x24e0] ss:$8 sps:$4 sm:$0xff]   ;;  %v18087_v29 = vld [vmem:[%s26709_s1 + $0x8f4] ss:$8 sps:$4 sm:$0xff]   ;;  %v22054_v38 = vrot.slane %v167_v15, %v20275_v49  ;;  %v18157_v15 = vld [vmem:[%s26709_s1 + $0x9b0] ss:$8 sps:$4 sm:$0xff]  }
 0x206   :  { %13617 = vmatprep.mubr.bf16.mxu0 %v791_v59  ;;  %v22057_v59 = vrot.slane %v405_v40, %v20275_v49  ;;  %v18160_v40 = vld [vmem:[%s26709_s1 + $0x25b0] ss:$8 sps:$4 sm:$0xff]  }
 0x207   :  { %12440 = vmatpush1.bf16.msra.mxu1 %v18001_v60  ;;  %v18085_v60 = vld [vmem:[%s26709_s1 + $0x8f0] ss:$8 sps:$4 sm:$0xff]  }
 0x208   :  { %13588 = vmatpush1.bf16.msra.mxu0 %v18004_v61  ;;  %12441 = vmatprep.subr.bf16.mxu1 %v18009_v62  ;;  %v18088_v61 = vld [vmem:[%s26709_s1 + $0x24f0] ss:$8 sps:$4 sm:$0xff]   ;;  %v18093_v62 = vld [vmem:[%s26709_s1 + $0x904] ss:$8 sps:$4 sm:$0xff]  }
 0x209   :  { %13589 = vmatprep.subr.bf16.mxu0 %v18012_v63  ;;  %v18096_v63 = vld [vmem:[%s26709_s1 + $0x2504] ss:$8 sps:$4 sm:$0xff]  }
 0x20b   :  { %12442 = vmatpush1.bf16.msra.mxu1 %v18007_v0  ;;  %v183_v0 = vcombine.high %v22054_v38, %v22054_v38 }
 0x20c   :  { %13590 = vmatpush1.bf16.msra.mxu0 %v18010_v1  ;;  %12443 = vmatprep.subr.bf16.mxu1 %v18015_v2  ;;  %v421_v1 = vcombine.high %v22057_v59, %v22057_v59  ;;  %v734_v2 = vpack.c.bf16 %v21843_v17, %v21843_v17  ;;  %v18102_v17 = vld [vmem:[%s26709_s1 + $0x2514] ss:$8 sps:$4 sm:$0xff]  }
 0x20d   :  { %13591 = vmatprep.subr.bf16.mxu0 %v18018_v36  ;;  %v790_v36 = vpack.c.bf16 %v21847_v44, %v21847_v44  ;;  %v737_v44 = vpack.c.bf16 %v183_v0, %v183_v0  ;;  %v18177_v0 = vld [vmem:[%s26709_s1 + $0x9e4] ss:$8 sps:$4 sm:$0xff]  }
 0x20f   :  { %12444 = vmatpush1.bf16.msra.mxu1 %v18013_v41  ;;  %v18091_v41 = vld [vmem:[%s26709_s1 + $0x900] ss:$8 sps:$4 sm:$0xff]  }
 0x210   :  { %13592 = vmatpush1.bf16.msra.mxu0 %v18016_v50  ;;  %12445 = vmatprep.subr.bf16.mxu1 %v18021_v4  ;;  %v18094_v50 = vld [vmem:[%s26709_s1 + $0x2500] ss:$8 sps:$4 sm:$0xff]   ;;  %v18099_v4 = vld [vmem:[%s26709_s1 + $0x914] ss:$8 sps:$4 sm:$0xff]  }
 0x211   :  { %13593 = vmatprep.subr.bf16.mxu0 %v18024_v5  ;;  %v793_v5 = vpack.c.bf16 %v421_v1, %v421_v1  ;;  %v18180_v1 = vld [vmem:[%s26709_s1 + $0x25e4] ss:$8 sps:$4 sm:$0xff]  }
 0x213   :  { %12446 = vmatpush1.bf16.msra.mxu1 %v18019_v6  ;;  %v18097_v6 = vld [vmem:[%s26709_s1 + $0x910] ss:$8 sps:$4 sm:$0xff]  }
 0x214   :  { %13594 = vmatpush1.bf16.msra.mxu0 %v18022_v7  ;;  %12447 = vmatprep.subr.bf16.mxu1 %v18027_v8  ;;  %v18100_v7 = vld [vmem:[%s26709_s1 + $0x2510] ss:$8 sps:$4 sm:$0xff]   ;;  %v18105_v8 = vld [vmem:[%s26709_s1 + $0x924] ss:$8 sps:$4 sm:$0xff]  }
 0x215   :  { %13595 = vmatprep.subr.bf16.mxu0 %v18030_v9  ;;  %v18108_v9 = vld [vmem:[%s26709_s1 + $0x2524] ss:$8 sps:$4 sm:$0xff]  }
 0x217   :  { %12448 = vmatpush1.bf16.msra.mxu1 %v18025_v12  ;;  %v18103_v12 = vld [vmem:[%s26709_s1 + $0x920] ss:$8 sps:$4 sm:$0xff]  }
 0x218   :  { %13596 = vmatpush1.bf16.msra.mxu0 %v18028_v13  ;;  %12449 = vmatprep.subr.bf16.mxu1 %v18033_v16  ;;  %v18106_v13 = vld [vmem:[%s26709_s1 + $0x2520] ss:$8 sps:$4 sm:$0xff]   ;;  %v18111_v16 = vld [vmem:[%s26709_s1 + $0x934] ss:$8 sps:$4 sm:$0xff]  }
 0x219   :  { %13597 = vmatprep.subr.bf16.mxu0 %v18036_v56  ;;  %v18114_v56 = vld [vmem:[%s26709_s1 + $0x2534] ss:$8 sps:$4 sm:$0xff]  }
 0x21b   :  { %12450 = vmatpush1.bf16.msra.mxu1 %v18031_v18  ;;  %v18109_v18 = vld [vmem:[%s26709_s1 + $0x930] ss:$8 sps:$4 sm:$0xff]  }
 0x21c   :  { %13598 = vmatpush1.bf16.msra.mxu0 %v18034_v19  ;;  %12451 = vmatprep.subr.bf16.mxu1 %v18039_v20  ;;  %v18112_v19 = vld [vmem:[%s26709_s1 + $0x2530] ss:$8 sps:$4 sm:$0xff]   ;;  %v18117_v20 = vld [vmem:[%s26709_s1 + $0x944] ss:$8 sps:$4 sm:$0xff]  }
 0x21d   :  { %13599 = vmatprep.subr.bf16.mxu0 %v18042_v21  ;;  %v18120_v21 = vld [vmem:[%s26709_s1 + $0x2544] ss:$8 sps:$4 sm:$0xff]  }
 0x21f   :  { %12452 = vmatpush1.bf16.msra.mxu1 %v18037_v22  ;;  %v18115_v22 = vld [vmem:[%s26709_s1 + $0x940] ss:$8 sps:$4 sm:$0xff]  }
 0x220   :  { %13600 = vmatpush1.bf16.msra.mxu0 %v18040_v23  ;;  %12453 = vmatprep.subr.bf16.mxu1 %v18045_v24  ;;  %v18118_v23 = vld [vmem:[%s26709_s1 + $0x2540] ss:$8 sps:$4 sm:$0xff]   ;;  %v18123_v24 = vld [vmem:[%s26709_s1 + $0x954] ss:$8 sps:$4 sm:$0xff]  }
 0x221   :  { %13601 = vmatprep.subr.bf16.mxu0 %v18048_v25  ;;  %v18126_v25 = vld [vmem:[%s26709_s1 + $0x2554] ss:$8 sps:$4 sm:$0xff]  }
 0x223   :  { %12454 = vmatpush1.bf16.msra.mxu1 %v18043_v26  ;;  %v18121_v26 = vld [vmem:[%s26709_s1 + $0x950] ss:$8 sps:$4 sm:$0xff]  }
 0x224   :  { %13602 = vmatpush1.bf16.msra.mxu0 %v18046_v27  ;;  %12455 = vmatprep.subr.bf16.mxu1 %v18051_v28  ;;  %v18124_v27 = vld [vmem:[%s26709_s1 + $0x2550] ss:$8 sps:$4 sm:$0xff]   ;;  %v18129_v28 = vld [vmem:[%s26709_s1 + $0x964] ss:$8 sps:$4 sm:$0xff]  }
 0x225   :  { %13603 = vmatprep.subr.bf16.mxu0 %v18054_v51  ;;  %v18132_v51 = vld [vmem:[%s26709_s1 + $0x2564] ss:$8 sps:$4 sm:$0xff]  }
 0x227   :  { %12456 = vmatpush1.bf16.msra.mxu1 %v18049_v3  ;;  %v18127_v3 = vld [vmem:[%s26709_s1 + $0x960] ss:$8 sps:$4 sm:$0xff]  }
 0x228   :  { %13604 = vmatpush1.bf16.msra.mxu0 %v18052_v10  ;;  %12457 = vmatprep.subr.bf16.mxu1 %v18057_v30  ;;  %v18130_v10 = vld [vmem:[%s26709_s1 + $0x2560] ss:$8 sps:$4 sm:$0xff]   ;;  %v18135_v30 = vld [vmem:[%s26709_s1 + $0x974] ss:$8 sps:$4 sm:$0xff]  }
 0x229   :  { %13605 = vmatprep.subr.bf16.mxu0 %v18060_v31  ;;  %v18138_v31 = vld [vmem:[%s26709_s1 + $0x2574] ss:$8 sps:$4 sm:$0xff]  }
 0x22b   :  { %12458 = vmatpush1.bf16.msra.mxu1 %v18055_v32  ;;  %v18133_v32 = vld [vmem:[%s26709_s1 + $0x970] ss:$8 sps:$4 sm:$0xff]  }
 0x22c   :  { %13606 = vmatpush1.bf16.msra.mxu0 %v18058_v33  ;;  %12459 = vmatprep.subr.bf16.mxu1 %v18063_v34  ;;  %v18136_v33 = vld [vmem:[%s26709_s1 + $0x2570] ss:$8 sps:$4 sm:$0xff]   ;;  %v18141_v34 = vld [vmem:[%s26709_s1 + $0x984] ss:$8 sps:$4 sm:$0xff]  }
 0x22d   :  { %13607 = vmatprep.subr.bf16.mxu0 %v18066_v14  ;;  %v18144_v14 = vld [vmem:[%s26709_s1 + $0x2584] ss:$8 sps:$4 sm:$0xff]  }
 0x22f   :  { %12460 = vmatpush1.bf16.msra.mxu1 %v18061_v39  ;;  %v18139_v39 = vld [vmem:[%s26709_s1 + $0x980] ss:$8 sps:$4 sm:$0xff]  }
 0x230   :  { %13608 = vmatpush1.bf16.msra.mxu0 %v18064_v35  ;;  %12461 = vmatprep.subr.bf16.mxu1 %v18069_v42  ;;  %v18142_v35 = vld [vmem:[%s26709_s1 + $0x2580] ss:$8 sps:$4 sm:$0xff]   ;;  %v18147_v42 = vld [vmem:[%s26709_s1 + $0x994] ss:$8 sps:$4 sm:$0xff]  }
 0x231   :  { %13609 = vmatprep.subr.bf16.mxu0 %v18072_v57  ;;  %v18150_v57 = vld [vmem:[%s26709_s1 + $0x2594] ss:$8 sps:$4 sm:$0xff]  }
 0x233   :  { %12462 = vmatpush1.bf16.msra.mxu1 %v18067_v45  ;;  %v18145_v45 = vld [vmem:[%s26709_s1 + $0x990] ss:$8 sps:$4 sm:$0xff]  }
 0x234   :  { %13610 = vmatpush1.bf16.msra.mxu0 %v18070_v46  ;;  %12463 = vmatprep.subr.bf16.mxu1 %v18075_v47  ;;  %v18148_v46 = vld [vmem:[%s26709_s1 + $0x2590] ss:$8 sps:$4 sm:$0xff]   ;;  %v18153_v47 = vld [vmem:[%s26709_s1 + $0x9a4] ss:$8 sps:$4 sm:$0xff]  }
 0x235   :  { %13611 = vmatprep.subr.bf16.mxu0 %v18078_v48  ;;  %v18156_v48 = vld [vmem:[%s26709_s1 + $0x25a4] ss:$8 sps:$4 sm:$0xff]  }
 0x237   :  { %12464 = vmatpush1.bf16.msra.mxu1 %v18073_v52  ;;  %v18151_v52 = vld [vmem:[%s26709_s1 + $0x9a0] ss:$8 sps:$4 sm:$0xff]  }
 0x238   :  { %13612 = vmatpush1.bf16.msra.mxu0 %v18076_v53  ;;  %12465 = vmatprep.subr.bf16.mxu1 %v18081_v54  ;;  %v18154_v53 = vld [vmem:[%s26709_s1 + $0x25a0] ss:$8 sps:$4 sm:$0xff]   ;;  %v18159_v54 = vld [vmem:[%s26709_s1 + $0x9b4] ss:$8 sps:$4 sm:$0xff]  }
 0x239   :  { %13613 = vmatprep.subr.bf16.mxu0 %v18084_v55  ;;  %v18162_v55 = vld [vmem:[%s26709_s1 + $0x25b4] ss:$8 sps:$4 sm:$0xff]  }
 0x23b   :  { %12466 = vmatpush1.bf16.msra.mxu1 %v18079_v58  ;;  %v18165_v58 = vld [vmem:[%s26709_s1 + $0x9c4] ss:$8 sps:$4 sm:$0xff]  }
 0x23c   :  { %13614 = vmatpush1.bf16.msra.mxu0 %v18082_v11  ;;  %12467 = vmatprep.subr.bf16.mxu1 %v18087_v29  ;;  %v18168_v11 = vld [vmem:[%s26709_s1 + $0x25c4] ss:$8 sps:$4 sm:$0xff]   ;;  %v18163_v29 = vld [vmem:[%s26709_s1 + $0x9c0] ss:$8 sps:$4 sm:$0xff]  }
 0x23d   :  { %13615 = vmatprep.subr.bf16.mxu0 %v18090_v37  ;;  %v18166_v37 = vld [vmem:[%s26709_s1 + $0x25c0] ss:$8 sps:$4 sm:$0xff]  }
 0x23f   :  { %12468 = vmatpush1.bf16.msra.mxu1 %v18085_v60  ;;  %v18171_v60 = vld [vmem:[%s26709_s1 + $0x9d4] ss:$8 sps:$4 sm:$0xff]  }
 0x240   :  { %13616 = vmatpush1.bf16.msra.mxu0 %v18088_v61  ;;  %12478 = vmatprep.subr.bf16.mxu1 %v18093_v62  ;;  %v18174_v61 = vld [vmem:[%s26709_s1 + $0x25d4] ss:$8 sps:$4 sm:$0xff]   ;;  %v18169_v62 = vld [vmem:[%s26709_s1 + $0x9d0] ss:$8 sps:$4 sm:$0xff]  }
 0x241   :  { %13626 = vmatprep.subr.bf16.mxu0 %v18096_v63  ;;  %v18172_v63 = vld [vmem:[%s26709_s1 + $0x25d0] ss:$8 sps:$4 sm:$0xff]  }
 0x242   :  { %12470 = vmatmul.mubr.bf16.vlgmr.msra.gmra.mrb[0].mxu1 %v734_v2  ;;  %v22250_v2 = vld [vmem:[%s26710_s0 + $0x28] sm:$0xff] }
 0x243   :  { %13618 = vmatmul.mubr.bf16.vlgmr.msra.gmra.mrb[0].mxu0 %v790_v36  ;;  %12479 = vmatpush1.bf16.msra.mxu1 %v18091_v41  ;;  %v22255_v36 = vld [vmem:[%s26710_s0 + $0x98] sm:$0xff]  ;;  %v18175_v41 = vld [vmem:[%s26709_s1 + $0x9e0] ss:$8 sps:$4 sm:$0xff]  }
 0x244   :  { %13627 = vmatpush1.bf16.msra.mxu0 %v18094_v50  ;;  %12480 = vmatprep.subr.bf16.mxu1 %v18099_v4  ;;  %v18178_v50 = vld [vmem:[%s26709_s1 + $0x25e0] ss:$8 sps:$4 sm:$0xff]   ;;  %v18183_v4 = vld [vmem:[%s26709_s1 + $0x9f4] ss:$8 sps:$4 sm:$0xff]  }
 0x245   :  { %13628 = vmatprep.subr.bf16.mxu0 %v18102_v17  ;;  %12510 = vmatprep.mubr.bf16.mxu1 %v737_v44  ;;  %v18186_v17 = vld [vmem:[%s26709_s1 + $0x25f4] ss:$8 sps:$4 sm:$0xff]   ;;  %v22271_v44 = vrot.slane %v22250_v2, %v20275_v49 }
 0x246   :  { %13658 = vmatprep.mubr.bf16.mxu0 %v793_v5  ;;  %v22275_v5 = vrot.slane %v22255_v36, %v20275_v49 }
 0x247   :  { %12481 = vmatpush1.bf16.msra.mxu1 %v18097_v6  ;;  %v18181_v6 = vld [vmem:[%s26709_s1 + $0x9f0] ss:$8 sps:$4 sm:$0xff]  }
 0x248   :  { %13629 = vmatpush1.bf16.msra.mxu0 %v18100_v7  ;;  %12482 = vmatprep.subr.bf16.mxu1 %v18105_v8  ;;  %v18184_v7 = vld [vmem:[%s26709_s1 + $0x25f0] ss:$8 sps:$4 sm:$0xff]   ;;  %v18190_v8 = vld [vmem:[%s26709_s1 + $0xa04] ss:$8 sps:$4 sm:$0xff]  }
 0x249   :  { %13630 = vmatprep.subr.bf16.mxu0 %v18108_v9  ;;  %v18194_v9 = vld [vmem:[%s26709_s1 + $0x2604] ss:$8 sps:$4 sm:$0xff]  }
 0x24b   :  { %12483 = vmatpush1.bf16.msra.mxu1 %v18103_v12  ;;  %v199_v12 = vcombine.high %v22271_v44, %v22271_v44 }
 0x24c   :  { %13631 = vmatpush1.bf16.msra.mxu0 %v18106_v13  ;;  %12484 = vmatprep.subr.bf16.mxu1 %v18111_v16  ;;  %v437_v13 = vcombine.high %v22275_v5, %v22275_v5  ;;  %v736_v16 = vpack.c.bf16 %v22054_v38, %v22054_v38  ;;  %v18200_v38 = vld [vmem:[%s26709_s1 + $0x2614] ss:$8 sps:$4 sm:$0xff]  }
 0x24d   :  { %13632 = vmatprep.subr.bf16.mxu0 %v18114_v56  ;;  %v792_v56 = vpack.c.bf16 %v22057_v59, %v22057_v59  ;;  %v739_v59 = vpack.c.bf16 %v199_v12, %v199_v12  ;;  %v18267_v12 = vld [vmem:[%s26709_s1 + $0xad0] ss:$8 sps:$4 sm:$0xff]  }
 0x24f   :  { %12485 = vmatpush1.bf16.msra.mxu1 %v18109_v18  ;;  %v18188_v18 = vld [vmem:[%s26709_s1 + $0xa00] ss:$8 sps:$4 sm:$0xff]  }
 0x250   :  { %13633 = vmatpush1.bf16.msra.mxu0 %v18112_v19  ;;  %12486 = vmatprep.subr.bf16.mxu1 %v18117_v20  ;;  %v18192_v19 = vld [vmem:[%s26709_s1 + $0x2600] ss:$8 sps:$4 sm:$0xff]   ;;  %v18197_v20 = vld [vmem:[%s26709_s1 + $0xa14] ss:$8 sps:$4 sm:$0xff]  }
 0x251   :  { %13634 = vmatprep.subr.bf16.mxu0 %v18120_v21  ;;  %v795_v21 = vpack.c.bf16 %v437_v13, %v437_v13  ;;  %v18270_v13 = vld [vmem:[%s26709_s1 + $0x26d0] ss:$8 sps:$4 sm:$0xff]  }
 0x253   :  { %12487 = vmatpush1.bf16.msra.mxu1 %v18115_v22  ;;  %v18195_v22 = vld [vmem:[%s26709_s1 + $0xa10] ss:$8 sps:$4 sm:$0xff]  }
 0x254   :  { %13635 = vmatpush1.bf16.msra.mxu0 %v18118_v23  ;;  %12488 = vmatprep.subr.bf16.mxu1 %v18123_v24  ;;  %v18198_v23 = vld [vmem:[%s26709_s1 + $0x2610] ss:$8 sps:$4 sm:$0xff]   ;;  %v18203_v24 = vld [vmem:[%s26709_s1 + $0xa24] ss:$8 sps:$4 sm:$0xff]  }
 0x255   :  { %13636 = vmatprep.subr.bf16.mxu0 %v18126_v25  ;;  %v18206_v25 = vld [vmem:[%s26709_s1 + $0x2624] ss:$8 sps:$4 sm:$0xff]  }
 0x257   :  { %12489 = vmatpush1.bf16.msra.mxu1 %v18121_v26  ;;  %v18201_v26 = vld [vmem:[%s26709_s1 + $0xa20] ss:$8 sps:$4 sm:$0xff]  }
 0x258   :  { %13637 = vmatpush1.bf16.msra.mxu0 %v18124_v27  ;;  %12490 = vmatprep.subr.bf16.mxu1 %v18129_v28  ;;  %v18204_v27 = vld [vmem:[%s26709_s1 + $0x2620] ss:$8 sps:$4 sm:$0xff]   ;;  %v18209_v28 = vld [vmem:[%s26709_s1 + $0xa34] ss:$8 sps:$4 sm:$0xff]  }
 0x259   :  { %13638 = vmatprep.subr.bf16.mxu0 %v18132_v51  ;;  %v18212_v51 = vld [vmem:[%s26709_s1 + $0x2634] ss:$8 sps:$4 sm:$0xff]  }
 0x25b   :  { %12491 = vmatpush1.bf16.msra.mxu1 %v18127_v3  ;;  %v18207_v3 = vld [vmem:[%s26709_s1 + $0xa30] ss:$8 sps:$4 sm:$0xff]  }
 0x25c   :  { %13639 = vmatpush1.bf16.msra.mxu0 %v18130_v10  ;;  %12492 = vmatprep.subr.bf16.mxu1 %v18135_v30  ;;  %v18210_v10 = vld [vmem:[%s26709_s1 + $0x2630] ss:$8 sps:$4 sm:$0xff]   ;;  %v18215_v30 = vld [vmem:[%s26709_s1 + $0xa44] ss:$8 sps:$4 sm:$0xff]  }
 0x25d   :  { %13640 = vmatprep.subr.bf16.mxu0 %v18138_v31  ;;  %v18218_v31 = vld [vmem:[%s26709_s1 + $0x2644] ss:$8 sps:$4 sm:$0xff]  }
 0x25f   :  { %12493 = vmatpush1.bf16.msra.mxu1 %v18133_v32  ;;  %v18213_v32 = vld [vmem:[%s26709_s1 + $0xa40] ss:$8 sps:$4 sm:$0xff]  }
 0x260   :  { %13641 = vmatpush1.bf16.msra.mxu0 %v18136_v33  ;;  %12494 = vmatprep.subr.bf16.mxu1 %v18141_v34  ;;  %v18216_v33 = vld [vmem:[%s26709_s1 + $0x2640] ss:$8 sps:$4 sm:$0xff]   ;;  %v18221_v34 = vld [vmem:[%s26709_s1 + $0xa54] ss:$8 sps:$4 sm:$0xff]  }
 0x261   :  { %13642 = vmatprep.subr.bf16.mxu0 %v18144_v14  ;;  %v18224_v14 = vld [vmem:[%s26709_s1 + $0x2654] ss:$8 sps:$4 sm:$0xff]  }
 0x263   :  { %12495 = vmatpush1.bf16.msra.mxu1 %v18139_v39  ;;  %v18219_v39 = vld [vmem:[%s26709_s1 + $0xa50] ss:$8 sps:$4 sm:$0xff]  }
 0x264   :  { %13643 = vmatpush1.bf16.msra.mxu0 %v18142_v35  ;;  %12496 = vmatprep.subr.bf16.mxu1 %v18147_v42  ;;  %v18222_v35 = vld [vmem:[%s26709_s1 + $0x2650] ss:$8 sps:$4 sm:$0xff]   ;;  %v18227_v42 = vld [vmem:[%s26709_s1 + $0xa64] ss:$8 sps:$4 sm:$0xff]  }
 0x265   :  { %13644 = vmatprep.subr.bf16.mxu0 %v18150_v57  ;;  %v18230_v57 = vld [vmem:[%s26709_s1 + $0x2664] ss:$8 sps:$4 sm:$0xff]  }
 0x267   :  { %12497 = vmatpush1.bf16.msra.mxu1 %v18145_v45  ;;  %v18225_v45 = vld [vmem:[%s26709_s1 + $0xa60] ss:$8 sps:$4 sm:$0xff]  }
 0x268   :  { %13645 = vmatpush1.bf16.msra.mxu0 %v18148_v46  ;;  %12498 = vmatprep.subr.bf16.mxu1 %v18153_v47  ;;  %v18228_v46 = vld [vmem:[%s26709_s1 + $0x2660] ss:$8 sps:$4 sm:$0xff]   ;;  %v18233_v47 = vld [vmem:[%s26709_s1 + $0xa74] ss:$8 sps:$4 sm:$0xff]  }
 0x269   :  { %13646 = vmatprep.subr.bf16.mxu0 %v18156_v48  ;;  %v18236_v48 = vld [vmem:[%s26709_s1 + $0x2674] ss:$8 sps:$4 sm:$0xff]  }
 0x26b   :  { %12499 = vmatpush1.bf16.msra.mxu1 %v18151_v52  ;;  %v18231_v52 = vld [vmem:[%s26709_s1 + $0xa70] ss:$8 sps:$4 sm:$0xff]  }
 0x26c   :  { %13647 = vmatpush1.bf16.msra.mxu0 %v18154_v53  ;;  %12500 = vmatprep.subr.bf16.mxu1 %v18159_v54  ;;  %v18234_v53 = vld [vmem:[%s26709_s1 + $0x2670] ss:$8 sps:$4 sm:$0xff]   ;;  %v18239_v54 = vld [vmem:[%s26709_s1 + $0xa84] ss:$8 sps:$4 sm:$0xff]  }
 0x26d   :  { %13648 = vmatprep.subr.bf16.mxu0 %v18162_v55  ;;  %v18242_v55 = vld [vmem:[%s26709_s1 + $0x2684] ss:$8 sps:$4 sm:$0xff]  }
 0x26f   :  { %12501 = vmatpush1.bf16.msra.mxu1 %v18157_v15  ;;  %v18237_v15 = vld [vmem:[%s26709_s1 + $0xa80] ss:$8 sps:$4 sm:$0xff]  }
 0x270   :  { %13649 = vmatpush1.bf16.msra.mxu0 %v18160_v40  ;;  %12502 = vmatprep.subr.bf16.mxu1 %v18165_v58  ;;  %v18240_v40 = vld [vmem:[%s26709_s1 + $0x2680] ss:$8 sps:$4 sm:$0xff]   ;;  %v18245_v58 = vld [vmem:[%s26709_s1 + $0xa94] ss:$8 sps:$4 sm:$0xff]  }
 0x271   :  { %13650 = vmatprep.subr.bf16.mxu0 %v18168_v11  ;;  %v18248_v11 = vld [vmem:[%s26709_s1 + $0x2694] ss:$8 sps:$4 sm:$0xff]  }
 0x273   :  { %12503 = vmatpush1.bf16.msra.mxu1 %v18163_v29  ;;  %v18243_v29 = vld [vmem:[%s26709_s1 + $0xa90] ss:$8 sps:$4 sm:$0xff]  }
 0x274   :  { %13651 = vmatpush1.bf16.msra.mxu0 %v18166_v37  ;;  %12504 = vmatprep.subr.bf16.mxu1 %v18171_v60  ;;  %v18246_v37 = vld [vmem:[%s26709_s1 + $0x2690] ss:$8 sps:$4 sm:$0xff]   ;;  %v18251_v60 = vld [vmem:[%s26709_s1 + $0xaa4] ss:$8 sps:$4 sm:$0xff]  }
 0x275   :  { %13652 = vmatprep.subr.bf16.mxu0 %v18174_v61  ;;  %v18254_v61 = vld [vmem:[%s26709_s1 + $0x26a4] ss:$8 sps:$4 sm:$0xff]  }
 0x277   :  { %12505 = vmatpush1.bf16.msra.mxu1 %v18169_v62  ;;  %v18249_v62 = vld [vmem:[%s26709_s1 + $0xaa0] ss:$8 sps:$4 sm:$0xff]  }
 0x278   :  { %13653 = vmatpush1.bf16.msra.mxu0 %v18172_v63  ;;  %12506 = vmatprep.subr.bf16.mxu1 %v18177_v0  ;;  %v18252_v63 = vld [vmem:[%s26709_s1 + $0x26a0] ss:$8 sps:$4 sm:$0xff]   ;;  %v18257_v0 = vld [vmem:[%s26709_s1 + $0xab4] ss:$8 sps:$4 sm:$0xff]  }
 0x279   :  { %13654 = vmatprep.subr.bf16.mxu0 %v18180_v1  ;;  %v18260_v1 = vld [vmem:[%s26709_s1 + $0x26b4] ss:$8 sps:$4 sm:$0xff]  }
 0x27b   :  { %12507 = vmatpush1.bf16.msra.mxu1 %v18175_v41  ;;  %v18255_v41 = vld [vmem:[%s26709_s1 + $0xab0] ss:$8 sps:$4 sm:$0xff]  }
 0x27c   :  { %13655 = vmatpush1.bf16.msra.mxu0 %v18178_v50  ;;  %12508 = vmatprep.subr.bf16.mxu1 %v18183_v4  ;;  %v18258_v50 = vld [vmem:[%s26709_s1 + $0x26b0] ss:$8 sps:$4 sm:$0xff]   ;;  %v18263_v4 = vld [vmem:[%s26709_s1 + $0xac4] ss:$8 sps:$4 sm:$0xff]  }
 0x27d   :  { %13656 = vmatprep.subr.bf16.mxu0 %v18186_v17  ;;  %v18266_v17 = vld [vmem:[%s26709_s1 + $0x26c4] ss:$8 sps:$4 sm:$0xff]  }
 0x27f   :  { %12509 = vmatpush1.bf16.msra.mxu1 %v18181_v6  ;;  %v18261_v6 = vld [vmem:[%s26709_s1 + $0xac0] ss:$8 sps:$4 sm:$0xff]  }
 0x280   :  { %13657 = vmatpush1.bf16.msra.mxu0 %v18184_v7  ;;  %12519 = vmatprep.subr.bf16.mxu1 %v18190_v8  ;;  %v18264_v7 = vld [vmem:[%s26709_s1 + $0x26c0] ss:$8 sps:$4 sm:$0xff]   ;;  %v18269_v8 = vld [vmem:[%s26709_s1 + $0xad4] ss:$8 sps:$4 sm:$0xff]  }
 0x281   :  { %13667 = vmatprep.subr.bf16.mxu0 %v18194_v9  ;;  %v18272_v9 = vld [vmem:[%s26709_s1 + $0x26d4] ss:$8 sps:$4 sm:$0xff]  }
 0x282   :  { %12511 = vmatmul.mubr.bf16.vlgmr.msra.gmra.mrb[0].mxu1 %v736_v16  ;;  %v18275_v16 = vld [vmem:[%s26709_s1 + $0xae4] ss:$8 sps:$4 sm:$0xff]  }
 0x283   :  { %13659 = vmatmul.mubr.bf16.vlgmr.msra.gmra.mrb[0].mxu0 %v792_v56  ;;  %12520 = vmatpush1.bf16.msra.mxu1 %v18188_v18  ;;  %v18278_v56 = vld [vmem:[%s26709_s1 + $0x26e4] ss:$8 sps:$4 sm:$0xff]   ;;  %v184_v18 = vcombine.high %v22250_v2, %v22250_v2  ;;  %v18284_v2 = vld [vmem:[%s26709_s1 + $0x26f4] ss:$8 sps:$4 sm:$0xff]  }
 0x284   :  { %13668 = vmatpush1.bf16.msra.mxu0 %v18192_v19  ;;  %12521 = vmatprep.subr.bf16.mxu1 %v18197_v20  ;;  %v422_v19 = vcombine.high %v22255_v36, %v22255_v36  ;;  %v18273_v20 = vld [vmem:[%s26709_s1 + $0xae0] ss:$8 sps:$4 sm:$0xff]  }
 0x285   :  { %13669 = vmatprep.subr.bf16.mxu0 %v18200_v38  ;;  %12551 = vmatprep.mubr.bf16.mxu1 %v739_v59  ;;  %v18276_v38 = vld [vmem:[%s26709_s1 + $0x26e0] ss:$8 sps:$4 sm:$0xff]   ;;  %v18281_v59 = vld [vmem:[%s26709_s1 + $0xaf4] ss:$8 sps:$4 sm:$0xff]   ;;  %v22482_v36 = vrot.slane %v184_v18, %v20275_v49  ;;  %v18351_v18 = vld [vmem:[%s26709_s1 + $0xbb0] ss:$8 sps:$4 sm:$0xff]  }
 0x286   :  { %13699 = vmatprep.mubr.bf16.mxu0 %v795_v21  ;;  %v22485_v21 = vrot.slane %v422_v19, %v20275_v49  ;;  %v18354_v19 = vld [vmem:[%s26709_s1 + $0x27b0] ss:$8 sps:$4 sm:$0xff]  }
 0x287   :  { %12522 = vmatpush1.bf16.msra.mxu1 %v18195_v22  ;;  %v18279_v22 = vld [vmem:[%s26709_s1 + $0xaf0] ss:$8 sps:$4 sm:$0xff]  }
 0x288   :  { %13670 = vmatpush1.bf16.msra.mxu0 %v18198_v23  ;;  %12523 = vmatprep.subr.bf16.mxu1 %v18203_v24  ;;  %v18282_v23 = vld [vmem:[%s26709_s1 + $0x26f0] ss:$8 sps:$4 sm:$0xff]   ;;  %v18287_v24 = vld [vmem:[%s26709_s1 + $0xb04] ss:$8 sps:$4 sm:$0xff]  }
 0x289   :  { %13671 = vmatprep.subr.bf16.mxu0 %v18206_v25  ;;  %v18290_v25 = vld [vmem:[%s26709_s1 + $0x2704] ss:$8 sps:$4 sm:$0xff]  }
 0x28b   :  { %12524 = vmatpush1.bf16.msra.mxu1 %v18201_v26  ;;  %v200_v26 = vcombine.high %v22482_v36, %v22482_v36 }
 0x28c   :  { %13672 = vmatpush1.bf16.msra.mxu0 %v18204_v27  ;;  %12525 = vmatprep.subr.bf16.mxu1 %v18209_v28  ;;  %v438_v27 = vcombine.high %v22485_v21, %v22485_v21  ;;  %v738_v28 = vpack.c.bf16 %v22271_v44, %v22271_v44  ;;  %v18296_v44 = vld [vmem:[%s26709_s1 + $0x2714] ss:$8 sps:$4 sm:$0xff]  }
 0x28d   :  { %13673 = vmatprep.subr.bf16.mxu0 %v18212_v51  ;;  %v794_v51 = vpack.c.bf16 %v22275_v5, %v22275_v5  ;;  %v741_v5 = vpack.c.bf16 %v200_v26, %v200_v26  ;;  %v18371_v26 = vld [vmem:[%s26709_s1 + $0xbe4] ss:$8 sps:$4 sm:$0xff]  }
 0x28f   :  { %12526 = vmatpush1.bf16.msra.mxu1 %v18207_v3  ;;  %v18285_v3 = vld [vmem:[%s26709_s1 + $0xb00] ss:$8 sps:$4 sm:$0xff]  }
 0x290   :  { %13674 = vmatpush1.bf16.msra.mxu0 %v18210_v10  ;;  %12527 = vmatprep.subr.bf16.mxu1 %v18215_v30  ;;  %v18288_v10 = vld [vmem:[%s26709_s1 + $0x2700] ss:$8 sps:$4 sm:$0xff]   ;;  %v18293_v30 = vld [vmem:[%s26709_s1 + $0xb14] ss:$8 sps:$4 sm:$0xff]  }
 0x291   :  { %13675 = vmatprep.subr.bf16.mxu0 %v18218_v31  ;;  %v797_v31 = vpack.c.bf16 %v438_v27, %v438_v27  ;;  %v18374_v27 = vld [vmem:[%s26709_s1 + $0x27e4] ss:$8 sps:$4 sm:$0xff]  }
 0x293   :  { %12528 = vmatpush1.bf16.msra.mxu1 %v18213_v32  ;;  %v18291_v32 = vld [vmem:[%s26709_s1 + $0xb10] ss:$8 sps:$4 sm:$0xff]  }
 0x294   :  { %13676 = vmatpush1.bf16.msra.mxu0 %v18216_v33  ;;  %12529 = vmatprep.subr.bf16.mxu1 %v18221_v34  ;;  %v18294_v33 = vld [vmem:[%s26709_s1 + $0x2710] ss:$8 sps:$4 sm:$0xff]   ;;  %v18299_v34 = vld [vmem:[%s26709_s1 + $0xb24] ss:$8 sps:$4 sm:$0xff]  }
 0x295   :  { %13677 = vmatprep.subr.bf16.mxu0 %v18224_v14  ;;  %v18302_v14 = vld [vmem:[%s26709_s1 + $0x2724] ss:$8 sps:$4 sm:$0xff]  }
 0x297   :  { %12530 = vmatpush1.bf16.msra.mxu1 %v18219_v39  ;;  %v18297_v39 = vld [vmem:[%s26709_s1 + $0xb20] ss:$8 sps:$4 sm:$0xff]  }
 0x298   :  { %13678 = vmatpush1.bf16.msra.mxu0 %v18222_v35  ;;  %12531 = vmatprep.subr.bf16.mxu1 %v18227_v42  ;;  %v18300_v35 = vld [vmem:[%s26709_s1 + $0x2720] ss:$8 sps:$4 sm:$0xff]   ;;  %v18305_v42 = vld [vmem:[%s26709_s1 + $0xb34] ss:$8 sps:$4 sm:$0xff]  }
 0x299   :  { %13679 = vmatprep.subr.bf16.mxu0 %v18230_v57  ;;  %v18308_v57 = vld [vmem:[%s26709_s1 + $0x2734] ss:$8 sps:$4 sm:$0xff]  }
 0x29b   :  { %12532 = vmatpush1.bf16.msra.mxu1 %v18225_v45  ;;  %v18303_v45 = vld [vmem:[%s26709_s1 + $0xb30] ss:$8 sps:$4 sm:$0xff]  }
 0x29c   :  { %13680 = vmatpush1.bf16.msra.mxu0 %v18228_v46  ;;  %12533 = vmatprep.subr.bf16.mxu1 %v18233_v47  ;;  %v18306_v46 = vld [vmem:[%s26709_s1 + $0x2730] ss:$8 sps:$4 sm:$0xff]   ;;  %v18311_v47 = vld [vmem:[%s26709_s1 + $0xb44] ss:$8 sps:$4 sm:$0xff]  }
 0x29d   :  { %13681 = vmatprep.subr.bf16.mxu0 %v18236_v48  ;;  %v18314_v48 = vld [vmem:[%s26709_s1 + $0x2744] ss:$8 sps:$4 sm:$0xff]  }
 0x29f   :  { %12534 = vmatpush1.bf16.msra.mxu1 %v18231_v52  ;;  %v18309_v52 = vld [vmem:[%s26709_s1 + $0xb40] ss:$8 sps:$4 sm:$0xff]  }
 0x2a0   :  { %13682 = vmatpush1.bf16.msra.mxu0 %v18234_v53  ;;  %12535 = vmatprep.subr.bf16.mxu1 %v18239_v54  ;;  %v18312_v53 = vld [vmem:[%s26709_s1 + $0x2740] ss:$8 sps:$4 sm:$0xff]   ;;  %v18317_v54 = vld [vmem:[%s26709_s1 + $0xb54] ss:$8 sps:$4 sm:$0xff]  }
 0x2a1   :  { %13683 = vmatprep.subr.bf16.mxu0 %v18242_v55  ;;  %v18320_v55 = vld [vmem:[%s26709_s1 + $0x2754] ss:$8 sps:$4 sm:$0xff]  }
 0x2a3   :  { %12536 = vmatpush1.bf16.msra.mxu1 %v18237_v15  ;;  %v18315_v15 = vld [vmem:[%s26709_s1 + $0xb50] ss:$8 sps:$4 sm:$0xff]  }
 0x2a4   :  { %13684 = vmatpush1.bf16.msra.mxu0 %v18240_v40  ;;  %12537 = vmatprep.subr.bf16.mxu1 %v18245_v58  ;;  %v18318_v40 = vld [vmem:[%s26709_s1 + $0x2750] ss:$8 sps:$4 sm:$0xff]   ;;  %v18323_v58 = vld [vmem:[%s26709_s1 + $0xb64] ss:$8 sps:$4 sm:$0xff]  }
 0x2a5   :  { %13685 = vmatprep.subr.bf16.mxu0 %v18248_v11  ;;  %v18326_v11 = vld [vmem:[%s26709_s1 + $0x2764] ss:$8 sps:$4 sm:$0xff]  }
 0x2a7   :  { %12538 = vmatpush1.bf16.msra.mxu1 %v18243_v29  ;;  %v18321_v29 = vld [vmem:[%s26709_s1 + $0xb60] ss:$8 sps:$4 sm:$0xff]  }
 0x2a8   :  { %13686 = vmatpush1.bf16.msra.mxu0 %v18246_v37  ;;  %12539 = vmatprep.subr.bf16.mxu1 %v18251_v60  ;;  %v18324_v37 = vld [vmem:[%s26709_s1 + $0x2760] ss:$8 sps:$4 sm:$0xff]   ;;  %v18329_v60 = vld [vmem:[%s26709_s1 + $0xb74] ss:$8 sps:$4 sm:$0xff]  }
 0x2a9   :  { %13687 = vmatprep.subr.bf16.mxu0 %v18254_v61  ;;  %v18332_v61 = vld [vmem:[%s26709_s1 + $0x2774] ss:$8 sps:$4 sm:$0xff]  }
 0x2ab   :  { %12540 = vmatpush1.bf16.msra.mxu1 %v18249_v62  ;;  %v18327_v62 = vld [vmem:[%s26709_s1 + $0xb70] ss:$8 sps:$4 sm:$0xff]  }
 0x2ac   :  { %13688 = vmatpush1.bf16.msra.mxu0 %v18252_v63  ;;  %12541 = vmatprep.subr.bf16.mxu1 %v18257_v0  ;;  %v18330_v63 = vld [vmem:[%s26709_s1 + $0x2770] ss:$8 sps:$4 sm:$0xff]   ;;  %v18335_v0 = vld [vmem:[%s26709_s1 + $0xb84] ss:$8 sps:$4 sm:$0xff]  }
 0x2ad   :  { %13689 = vmatprep.subr.bf16.mxu0 %v18260_v1  ;;  %v18338_v1 = vld [vmem:[%s26709_s1 + $0x2784] ss:$8 sps:$4 sm:$0xff]  }
 0x2af   :  { %12542 = vmatpush1.bf16.msra.mxu1 %v18255_v41  ;;  %v18333_v41 = vld [vmem:[%s26709_s1 + $0xb80] ss:$8 sps:$4 sm:$0xff]  }
 0x2b0   :  { %13690 = vmatpush1.bf16.msra.mxu0 %v18258_v50  ;;  %12543 = vmatprep.subr.bf16.mxu1 %v18263_v4  ;;  %v18336_v50 = vld [vmem:[%s26709_s1 + $0x2780] ss:$8 sps:$4 sm:$0xff]   ;;  %v18341_v4 = vld [vmem:[%s26709_s1 + $0xb94] ss:$8 sps:$4 sm:$0xff]  }
 0x2b1   :  { %13691 = vmatprep.subr.bf16.mxu0 %v18266_v17  ;;  %v18344_v17 = vld [vmem:[%s26709_s1 + $0x2794] ss:$8 sps:$4 sm:$0xff]  }
 0x2b3   :  { %12544 = vmatpush1.bf16.msra.mxu1 %v18261_v6  ;;  %v18339_v6 = vld [vmem:[%s26709_s1 + $0xb90] ss:$8 sps:$4 sm:$0xff]  }
 0x2b4   :  { %13692 = vmatpush1.bf16.msra.mxu0 %v18264_v7  ;;  %12545 = vmatprep.subr.bf16.mxu1 %v18269_v8  ;;  %v18342_v7 = vld [vmem:[%s26709_s1 + $0x2790] ss:$8 sps:$4 sm:$0xff]   ;;  %v18347_v8 = vld [vmem:[%s26709_s1 + $0xba4] ss:$8 sps:$4 sm:$0xff]  }
 0x2b5   :  { %13693 = vmatprep.subr.bf16.mxu0 %v18272_v9  ;;  %v18350_v9 = vld [vmem:[%s26709_s1 + $0x27a4] ss:$8 sps:$4 sm:$0xff]  }
 0x2b7   :  { %12546 = vmatpush1.bf16.msra.mxu1 %v18267_v12  ;;  %v18345_v12 = vld [vmem:[%s26709_s1 + $0xba0] ss:$8 sps:$4 sm:$0xff]  }
 0x2b8   :  { %13694 = vmatpush1.bf16.msra.mxu0 %v18270_v13  ;;  %12547 = vmatprep.subr.bf16.mxu1 %v18275_v16  ;;  %v18348_v13 = vld [vmem:[%s26709_s1 + $0x27a0] ss:$8 sps:$4 sm:$0xff]   ;;  %v18353_v16 = vld [vmem:[%s26709_s1 + $0xbb4] ss:$8 sps:$4 sm:$0xff]  }
 0x2b9   :  { %13695 = vmatprep.subr.bf16.mxu0 %v18278_v56  ;;  %v18356_v56 = vld [vmem:[%s26709_s1 + $0x27b4] ss:$8 sps:$4 sm:$0xff]  }
 0x2bb   :  { %12548 = vmatpush1.bf16.msra.mxu1 %v18273_v20  ;;  %v18359_v20 = vld [vmem:[%s26709_s1 + $0xbc4] ss:$8 sps:$4 sm:$0xff]  }
 0x2bc   :  { %13696 = vmatpush1.bf16.msra.mxu0 %v18276_v38  ;;  %12549 = vmatprep.subr.bf16.mxu1 %v18281_v59  ;;  %v18362_v38 = vld [vmem:[%s26709_s1 + $0x27c4] ss:$8 sps:$4 sm:$0xff]   ;;  %v18357_v59 = vld [vmem:[%s26709_s1 + $0xbc0] ss:$8 sps:$4 sm:$0xff]  }
 0x2bd   :  { %13697 = vmatprep.subr.bf16.mxu0 %v18284_v2  ;;  %v18360_v2 = vld [vmem:[%s26709_s1 + $0x27c0] ss:$8 sps:$4 sm:$0xff]  }
 0x2bf   :  { %12550 = vmatpush1.bf16.msra.mxu1 %v18279_v22  ;;  %v18365_v22 = vld [vmem:[%s26709_s1 + $0xbd4] ss:$8 sps:$4 sm:$0xff]  }
 0x2c0   :  { %13698 = vmatpush1.bf16.msra.mxu0 %v18282_v23  ;;  %12560 = vmatprep.subr.bf16.mxu1 %v18287_v24  ;;  %v18368_v23 = vld [vmem:[%s26709_s1 + $0x27d4] ss:$8 sps:$4 sm:$0xff]   ;;  %v18363_v24 = vld [vmem:[%s26709_s1 + $0xbd0] ss:$8 sps:$4 sm:$0xff]  }
 0x2c1   :  { %13708 = vmatprep.subr.bf16.mxu0 %v18290_v25  ;;  %v18366_v25 = vld [vmem:[%s26709_s1 + $0x27d0] ss:$8 sps:$4 sm:$0xff]  }
 0x2c2   :  { %12552 = vmatmul.mubr.bf16.vlgmr.msra.gmra.mrb[0].mxu1 %v738_v28  ;;  %v22678_v28 = vld [vmem:[%s26710_s0 + $0x30] sm:$0xff] }
 0x2c3   :  { %13700 = vmatmul.mubr.bf16.vlgmr.msra.gmra.mrb[0].mxu0 %v794_v51  ;;  %12561 = vmatpush1.bf16.msra.mxu1 %v18285_v3  ;;  %v22683_v51 = vld [vmem:[%s26710_s0 + $0xa0] sm:$0xff] }
 0x2c4   :  { %13709 = vmatpush1.bf16.msra.mxu0 %v18288_v10  ;;  %12562 = vmatprep.subr.bf16.mxu1 %v18293_v30  ;;  %v18369_v3 = vld [vmem:[%s26709_s1 + $0xbe0] ss:$8 sps:$4 sm:$0xff]   ;;  %v18377_v30 = vld [vmem:[%s26709_s1 + $0xbf4] ss:$8 sps:$4 sm:$0xff]  }
 0x2c5   :  { %13710 = vmatprep.subr.bf16.mxu0 %v18296_v44  ;;  %12592 = vmatprep.mubr.bf16.mxu1 %v741_v5  ;;  %v18372_v10 = vld [vmem:[%s26709_s1 + $0x27e0] ss:$8 sps:$4 sm:$0xff]   ;;  %v18380_v44 = vld [vmem:[%s26709_s1 + $0x27f4] ss:$8 sps:$4 sm:$0xff]   ;;  %v22699_v5 = vrot.slane %v22678_v28, %v20275_v49 }
 0x2c6   :  { %13740 = vmatprep.mubr.bf16.mxu0 %v797_v31  ;;  %v22703_v31 = vrot.slane %v22683_v51, %v20275_v49 }
 0x2c7   :  { %12563 = vmatpush1.bf16.msra.mxu1 %v18291_v32  ;;  %v18375_v32 = vld [vmem:[%s26709_s1 + $0xbf0] ss:$8 sps:$4 sm:$0xff]  }
 0x2c8   :  { %13711 = vmatpush1.bf16.msra.mxu0 %v18294_v33  ;;  %12564 = vmatprep.subr.bf16.mxu1 %v18299_v34  ;;  %v18378_v33 = vld [vmem:[%s26709_s1 + $0x27f0] ss:$8 sps:$4 sm:$0xff]   ;;  %v18384_v34 = vld [vmem:[%s26709_s1 + $0xc04] ss:$8 sps:$4 sm:$0xff]  }
 0x2c9   :  { %13712 = vmatprep.subr.bf16.mxu0 %v18302_v14  ;;  %v18388_v14 = vld [vmem:[%s26709_s1 + $0x2804] ss:$8 sps:$4 sm:$0xff]  }
 0x2cb   :  { %12565 = vmatpush1.bf16.msra.mxu1 %v18297_v39  ;;  %v216_v39 = vcombine.high %v22699_v5, %v22699_v5 }
 0x2cc   :  { %13713 = vmatpush1.bf16.msra.mxu0 %v18300_v35  ;;  %12566 = vmatprep.subr.bf16.mxu1 %v18305_v42  ;;  %v454_v35 = vcombine.high %v22703_v31, %v22703_v31  ;;  %v740_v42 = vpack.c.bf16 %v22482_v36, %v22482_v36  ;;  %v18394_v36 = vld [vmem:[%s26709_s1 + $0x2814] ss:$8 sps:$4 sm:$0xff]  }
 0x2cd   :  { %13714 = vmatprep.subr.bf16.mxu0 %v18308_v57  ;;  %v796_v57 = vpack.c.bf16 %v22485_v21, %v22485_v21  ;;  %v743_v21 = vpack.c.bf16 %v216_v39, %v216_v39  ;;  %v18461_v39 = vld [vmem:[%s26709_s1 + $0xcd0] ss:$8 sps:$4 sm:$0xff]  }
 0x2cf   :  { %12567 = vmatpush1.bf16.msra.mxu1 %v18303_v45  ;;  %v18382_v45 = vld [vmem:[%s26709_s1 + $0xc00] ss:$8 sps:$4 sm:$0xff]  }
 0x2d0   :  { %13715 = vmatpush1.bf16.msra.mxu0 %v18306_v46  ;;  %12568 = vmatprep.subr.bf16.mxu1 %v18311_v47  ;;  %v18386_v46 = vld [vmem:[%s26709_s1 + $0x2800] ss:$8 sps:$4 sm:$0xff]   ;;  %v18391_v47 = vld [vmem:[%s26709_s1 + $0xc14] ss:$8 sps:$4 sm:$0xff]  }
 0x2d1   :  { %13716 = vmatprep.subr.bf16.mxu0 %v18314_v48  ;;  %v799_v48 = vpack.c.bf16 %v454_v35, %v454_v35  ;;  %v18464_v35 = vld [vmem:[%s26709_s1 + $0x28d0] ss:$8 sps:$4 sm:$0xff]  }
 0x2d3   :  { %12569 = vmatpush1.bf16.msra.mxu1 %v18309_v52  ;;  %v18389_v52 = vld [vmem:[%s26709_s1 + $0xc10] ss:$8 sps:$4 sm:$0xff]  }
 0x2d4   :  { %13717 = vmatpush1.bf16.msra.mxu0 %v18312_v53  ;;  %12570 = vmatprep.subr.bf16.mxu1 %v18317_v54  ;;  %v18392_v53 = vld [vmem:[%s26709_s1 + $0x2810] ss:$8 sps:$4 sm:$0xff]   ;;  %v18397_v54 = vld [vmem:[%s26709_s1 + $0xc24] ss:$8 sps:$4 sm:$0xff]  }
 0x2d5   :  { %13718 = vmatprep.subr.bf16.mxu0 %v18320_v55  ;;  %v18400_v55 = vld [vmem:[%s26709_s1 + $0x2824] ss:$8 sps:$4 sm:$0xff]  }
 0x2d7   :  { %12571 = vmatpush1.bf16.msra.mxu1 %v18315_v15  ;;  %v18395_v15 = vld [vmem:[%s26709_s1 + $0xc20] ss:$8 sps:$4 sm:$0xff]  }
 0x2d8   :  { %13719 = vmatpush1.bf16.msra.mxu0 %v18318_v40  ;;  %12572 = vmatprep.subr.bf16.mxu1 %v18323_v58  ;;  %v18398_v40 = vld [vmem:[%s26709_s1 + $0x2820] ss:$8 sps:$4 sm:$0xff]   ;;  %v18403_v58 = vld [vmem:[%s26709_s1 + $0xc34] ss:$8 sps:$4 sm:$0xff]  }
 0x2d9   :  { %13720 = vmatprep.subr.bf16.mxu0 %v18326_v11  ;;  %v18406_v11 = vld [vmem:[%s26709_s1 + $0x2834] ss:$8 sps:$4 sm:$0xff]  }
 0x2db   :  { %12573 = vmatpush1.bf16.msra.mxu1 %v18321_v29  ;;  %v18401_v29 = vld [vmem:[%s26709_s1 + $0xc30] ss:$8 sps:$4 sm:$0xff]  }
 0x2dc   :  { %13721 = vmatpush1.bf16.msra.mxu0 %v18324_v37  ;;  %12574 = vmatprep.subr.bf16.mxu1 %v18329_v60  ;;  %v18404_v37 = vld [vmem:[%s26709_s1 + $0x2830] ss:$8 sps:$4 sm:$0xff]   ;;  %v18409_v60 = vld [vmem:[%s26709_s1 + $0xc44] ss:$8 sps:$4 sm:$0xff]  }
 0x2dd   :  { %13722 = vmatprep.subr.bf16.mxu0 %v18332_v61  ;;  %v18412_v61 = vld [vmem:[%s26709_s1 + $0x2844] ss:$8 sps:$4 sm:$0xff]  }
 0x2df   :  { %12575 = vmatpush1.bf16.msra.mxu1 %v18327_v62  ;;  %v18407_v62 = vld [vmem:[%s26709_s1 + $0xc40] ss:$8 sps:$4 sm:$0xff]  }
 0x2e0   :  { %13723 = vmatpush1.bf16.msra.mxu0 %v18330_v63  ;;  %12576 = vmatprep.subr.bf16.mxu1 %v18335_v0  ;;  %v18410_v63 = vld [vmem:[%s26709_s1 + $0x2840] ss:$8 sps:$4 sm:$0xff]   ;;  %v18415_v0 = vld [vmem:[%s26709_s1 + $0xc54] ss:$8 sps:$4 sm:$0xff]  }
 0x2e1   :  { %13724 = vmatprep.subr.bf16.mxu0 %v18338_v1  ;;  %v18418_v1 = vld [vmem:[%s26709_s1 + $0x2854] ss:$8 sps:$4 sm:$0xff]  }
 0x2e3   :  { %12577 = vmatpush1.bf16.msra.mxu1 %v18333_v41  ;;  %v18413_v41 = vld [vmem:[%s26709_s1 + $0xc50] ss:$8 sps:$4 sm:$0xff]  }
 0x2e4   :  { %13725 = vmatpush1.bf16.msra.mxu0 %v18336_v50  ;;  %12578 = vmatprep.subr.bf16.mxu1 %v18341_v4  ;;  %v18416_v50 = vld [vmem:[%s26709_s1 + $0x2850] ss:$8 sps:$4 sm:$0xff]   ;;  %v18421_v4 = vld [vmem:[%s26709_s1 + $0xc64] ss:$8 sps:$4 sm:$0xff]  }
 0x2e5   :  { %13726 = vmatprep.subr.bf16.mxu0 %v18344_v17  ;;  %v18424_v17 = vld [vmem:[%s26709_s1 + $0x2864] ss:$8 sps:$4 sm:$0xff]  }
 0x2e7   :  { %12579 = vmatpush1.bf16.msra.mxu1 %v18339_v6  ;;  %v18419_v6 = vld [vmem:[%s26709_s1 + $0xc60] ss:$8 sps:$4 sm:$0xff]  }
 0x2e8   :  { %13727 = vmatpush1.bf16.msra.mxu0 %v18342_v7  ;;  %12580 = vmatprep.subr.bf16.mxu1 %v18347_v8  ;;  %v18422_v7 = vld [vmem:[%s26709_s1 + $0x2860] ss:$8 sps:$4 sm:$0xff]   ;;  %v18427_v8 = vld [vmem:[%s26709_s1 + $0xc74] ss:$8 sps:$4 sm:$0xff]  }
 0x2e9   :  { %13728 = vmatprep.subr.bf16.mxu0 %v18350_v9  ;;  %v18430_v9 = vld [vmem:[%s26709_s1 + $0x2874] ss:$8 sps:$4 sm:$0xff]  }
 0x2eb   :  { %12581 = vmatpush1.bf16.msra.mxu1 %v18345_v12  ;;  %v18425_v12 = vld [vmem:[%s26709_s1 + $0xc70] ss:$8 sps:$4 sm:$0xff]  }
 0x2ec   :  { %13729 = vmatpush1.bf16.msra.mxu0 %v18348_v13  ;;  %12582 = vmatprep.subr.bf16.mxu1 %v18353_v16  ;;  %v18428_v13 = vld [vmem:[%s26709_s1 + $0x2870] ss:$8 sps:$4 sm:$0xff]   ;;  %v18433_v16 = vld [vmem:[%s26709_s1 + $0xc84] ss:$8 sps:$4 sm:$0xff]  }
 0x2ed   :  { %13730 = vmatprep.subr.bf16.mxu0 %v18356_v56  ;;  %v18436_v56 = vld [vmem:[%s26709_s1 + $0x2884] ss:$8 sps:$4 sm:$0xff]  }
 0x2ef   :  { %12583 = vmatpush1.bf16.msra.mxu1 %v18351_v18  ;;  %v18431_v18 = vld [vmem:[%s26709_s1 + $0xc80] ss:$8 sps:$4 sm:$0xff]  }
 0x2f0   :  { %13731 = vmatpush1.bf16.msra.mxu0 %v18354_v19  ;;  %12584 = vmatprep.subr.bf16.mxu1 %v18359_v20  ;;  %v18434_v19 = vld [vmem:[%s26709_s1 + $0x2880] ss:$8 sps:$4 sm:$0xff]   ;;  %v18439_v20 = vld [vmem:[%s26709_s1 + $0xc94] ss:$8 sps:$4 sm:$0xff]  }
 0x2f1   :  { %13732 = vmatprep.subr.bf16.mxu0 %v18362_v38  ;;  %v18442_v38 = vld [vmem:[%s26709_s1 + $0x2894] ss:$8 sps:$4 sm:$0xff]  }
 0x2f3   :  { %12585 = vmatpush1.bf16.msra.mxu1 %v18357_v59  ;;  %v18437_v59 = vld [vmem:[%s26709_s1 + $0xc90] ss:$8 sps:$4 sm:$0xff]  }
 0x2f4   :  { %13733 = vmatpush1.bf16.msra.mxu0 %v18360_v2  ;;  %12586 = vmatprep.subr.bf16.mxu1 %v18365_v22  ;;  %v18440_v2 = vld [vmem:[%s26709_s1 + $0x2890] ss:$8 sps:$4 sm:$0xff]   ;;  %v18445_v22 = vld [vmem:[%s26709_s1 + $0xca4] ss:$8 sps:$4 sm:$0xff]  }
 0x2f5   :  { %13734 = vmatprep.subr.bf16.mxu0 %v18368_v23  ;;  %v18448_v23 = vld [vmem:[%s26709_s1 + $0x28a4] ss:$8 sps:$4 sm:$0xff]  }
 0x2f7   :  { %12587 = vmatpush1.bf16.msra.mxu1 %v18363_v24  ;;  %v18443_v24 = vld [vmem:[%s26709_s1 + $0xca0] ss:$8 sps:$4 sm:$0xff]  }
 0x2f8   :  { %13735 = vmatpush1.bf16.msra.mxu0 %v18366_v25  ;;  %12588 = vmatprep.subr.bf16.mxu1 %v18371_v26  ;;  %v18446_v25 = vld [vmem:[%s26709_s1 + $0x28a0] ss:$8 sps:$4 sm:$0xff]   ;;  %v18451_v26 = vld [vmem:[%s26709_s1 + $0xcb4] ss:$8 sps:$4 sm:$0xff]  }
 0x2f9   :  { %13736 = vmatprep.subr.bf16.mxu0 %v18374_v27  ;;  %v18454_v27 = vld [vmem:[%s26709_s1 + $0x28b4] ss:$8 sps:$4 sm:$0xff]  }
 0x2fb   :  { %12589 = vmatpush1.bf16.msra.mxu1 %v18369_v3  ;;  %v18449_v3 = vld [vmem:[%s26709_s1 + $0xcb0] ss:$8 sps:$4 sm:$0xff]  }
 0x2fc   :  { %13737 = vmatpush1.bf16.msra.mxu0 %v18372_v10  ;;  %12590 = vmatprep.subr.bf16.mxu1 %v18377_v30  ;;  %v18452_v10 = vld [vmem:[%s26709_s1 + $0x28b0] ss:$8 sps:$4 sm:$0xff]   ;;  %v18457_v30 = vld [vmem:[%s26709_s1 + $0xcc4] ss:$8 sps:$4 sm:$0xff]  }
 0x2fd   :  { %13738 = vmatprep.subr.bf16.mxu0 %v18380_v44  ;;  %v18460_v44 = vld [vmem:[%s26709_s1 + $0x28c4] ss:$8 sps:$4 sm:$0xff]  }
 0x2ff   :  { %12591 = vmatpush1.bf16.msra.mxu1 %v18375_v32  ;;  %v18455_v32 = vld [vmem:[%s26709_s1 + $0xcc0] ss:$8 sps:$4 sm:$0xff]  }
 0x300   :  { %13739 = vmatpush1.bf16.msra.mxu0 %v18378_v33  ;;  %12601 = vmatprep.subr.bf16.mxu1 %v18384_v34  ;;  %v18458_v33 = vld [vmem:[%s26709_s1 + $0x28c0] ss:$8 sps:$4 sm:$0xff]   ;;  %v18463_v34 = vld [vmem:[%s26709_s1 + $0xcd4] ss:$8 sps:$4 sm:$0xff]  }
 0x301   :  { %13749 = vmatprep.subr.bf16.mxu0 %v18388_v14  ;;  %v18466_v14 = vld [vmem:[%s26709_s1 + $0x28d4] ss:$8 sps:$4 sm:$0xff]  }
 0x302   :  { %12593 = vmatmul.mubr.bf16.vlgmr.msra.gmra.mrb[0].mxu1 %v740_v42  ;;  %v18469_v42 = vld [vmem:[%s26709_s1 + $0xce4] ss:$8 sps:$4 sm:$0xff]  }
 0x303   :  { %13741 = vmatmul.mubr.bf16.vlgmr.msra.gmra.mrb[0].mxu0 %v796_v57  ;;  %12602 = vmatpush1.bf16.msra.mxu1 %v18382_v45  ;;  %v18472_v57 = vld [vmem:[%s26709_s1 + $0x28e4] ss:$8 sps:$4 sm:$0xff]   ;;  %v201_v45 = vcombine.high %v22678_v28, %v22678_v28  ;;  %v18478_v28 = vld [vmem:[%s26709_s1 + $0x28f4] ss:$8 sps:$4 sm:$0xff]  }
 0x304   :  { %13750 = vmatpush1.bf16.msra.mxu0 %v18386_v46  ;;  %12603 = vmatprep.subr.bf16.mxu1 %v18391_v47  ;;  %v439_v46 = vcombine.high %v22683_v51, %v22683_v51  ;;  %v18467_v47 = vld [vmem:[%s26709_s1 + $0xce0] ss:$8 sps:$4 sm:$0xff]  }
 0x305   :  { %13751 = vmatprep.subr.bf16.mxu0 %v18394_v36  ;;  %12633 = vmatprep.mubr.bf16.mxu1 %v743_v21  ;;  %v18470_v36 = vld [vmem:[%s26709_s1 + $0x28e0] ss:$8 sps:$4 sm:$0xff]   ;;  %v18475_v21 = vld [vmem:[%s26709_s1 + $0xcf4] ss:$8 sps:$4 sm:$0xff]   ;;  %v22910_v51 = vrot.slane %v201_v45, %v20275_v49  ;;  %v18545_v45 = vld [vmem:[%s26709_s1 + $0xdb0] ss:$8 sps:$4 sm:$0xff]  }
 0x306   :  { %13781 = vmatprep.mubr.bf16.mxu0 %v799_v48  ;;  %v22913_v48 = vrot.slane %v439_v46, %v20275_v49  ;;  %v18548_v46 = vld [vmem:[%s26709_s1 + $0x29b0] ss:$8 sps:$4 sm:$0xff]  }
 0x307   :  { %12604 = vmatpush1.bf16.msra.mxu1 %v18389_v52  ;;  %v18473_v52 = vld [vmem:[%s26709_s1 + $0xcf0] ss:$8 sps:$4 sm:$0xff]  }
 0x308   :  { %13752 = vmatpush1.bf16.msra.mxu0 %v18392_v53  ;;  %12605 = vmatprep.subr.bf16.mxu1 %v18397_v54  ;;  %v18476_v53 = vld [vmem:[%s26709_s1 + $0x28f0] ss:$8 sps:$4 sm:$0xff]   ;;  %v18481_v54 = vld [vmem:[%s26709_s1 + $0xd04] ss:$8 sps:$4 sm:$0xff]  }
 0x309   :  { %13753 = vmatprep.subr.bf16.mxu0 %v18400_v55  ;;  %v18484_v55 = vld [vmem:[%s26709_s1 + $0x2904] ss:$8 sps:$4 sm:$0xff]  }
 0x30b   :  { %12606 = vmatpush1.bf16.msra.mxu1 %v18395_v15  ;;  %v217_v15 = vcombine.high %v22910_v51, %v22910_v51 }
 0x30c   :  { %13754 = vmatpush1.bf16.msra.mxu0 %v18398_v40  ;;  %12607 = vmatprep.subr.bf16.mxu1 %v18403_v58  ;;  %v455_v40 = vcombine.high %v22913_v48, %v22913_v48  ;;  %v742_v58 = vpack.c.bf16 %v22699_v5, %v22699_v5  ;;  %v18490_v5 = vld [vmem:[%s26709_s1 + $0x2914] ss:$8 sps:$4 sm:$0xff]  }
 0x30d   :  { %13755 = vmatprep.subr.bf16.mxu0 %v18406_v11  ;;  %v798_v11 = vpack.c.bf16 %v22703_v31, %v22703_v31  ;;  %v745_v31 = vpack.c.bf16 %v217_v15, %v217_v15  ;;  %v18565_v15 = vld [vmem:[%s26709_s1 + $0xde4] ss:$8 sps:$4 sm:$0xff]  }
 0x30f   :  { %12608 = vmatpush1.bf16.msra.mxu1 %v18401_v29  ;;  %v18479_v29 = vld [vmem:[%s26709_s1 + $0xd00] ss:$8 sps:$4 sm:$0xff]  }
 0x310   :  { %13756 = vmatpush1.bf16.msra.mxu0 %v18404_v37  ;;  %12609 = vmatprep.subr.bf16.mxu1 %v18409_v60  ;;  %v18482_v37 = vld [vmem:[%s26709_s1 + $0x2900] ss:$8 sps:$4 sm:$0xff]   ;;  %v18487_v60 = vld [vmem:[%s26709_s1 + $0xd14] ss:$8 sps:$4 sm:$0xff]  }
 0x311   :  { %13757 = vmatprep.subr.bf16.mxu0 %v18412_v61  ;;  %v801_v61 = vpack.c.bf16 %v455_v40, %v455_v40  ;;  %v18568_v40 = vld [vmem:[%s26709_s1 + $0x29e4] ss:$8 sps:$4 sm:$0xff]  }
 0x313   :  { %12610 = vmatpush1.bf16.msra.mxu1 %v18407_v62  ;;  %v18485_v62 = vld [vmem:[%s26709_s1 + $0xd10] ss:$8 sps:$4 sm:$0xff]  }
 0x314   :  { %13758 = vmatpush1.bf16.msra.mxu0 %v18410_v63  ;;  %12611 = vmatprep.subr.bf16.mxu1 %v18415_v0  ;;  %v18488_v63 = vld [vmem:[%s26709_s1 + $0x2910] ss:$8 sps:$4 sm:$0xff]   ;;  %v18493_v0 = vld [vmem:[%s26709_s1 + $0xd24] ss:$8 sps:$4 sm:$0xff]  }
 0x315   :  { %13759 = vmatprep.subr.bf16.mxu0 %v18418_v1  ;;  %v18496_v1 = vld [vmem:[%s26709_s1 + $0x2924] ss:$8 sps:$4 sm:$0xff]  }
 0x317   :  { %12612 = vmatpush1.bf16.msra.mxu1 %v18413_v41  ;;  %v18491_v41 = vld [vmem:[%s26709_s1 + $0xd20] ss:$8 sps:$4 sm:$0xff]  }
 0x318   :  { %13760 = vmatpush1.bf16.msra.mxu0 %v18416_v50  ;;  %12613 = vmatprep.subr.bf16.mxu1 %v18421_v4  ;;  %v18494_v50 = vld [vmem:[%s26709_s1 + $0x2920] ss:$8 sps:$4 sm:$0xff]   ;;  %v18499_v4 = vld [vmem:[%s26709_s1 + $0xd34] ss:$8 sps:$4 sm:$0xff]  }
 0x319   :  { %13761 = vmatprep.subr.bf16.mxu0 %v18424_v17  ;;  %v18502_v17 = vld [vmem:[%s26709_s1 + $0x2934] ss:$8 sps:$4 sm:$0xff]  }
 0x31b   :  { %12614 = vmatpush1.bf16.msra.mxu1 %v18419_v6  ;;  %v18497_v6 = vld [vmem:[%s26709_s1 + $0xd30] ss:$8 sps:$4 sm:$0xff]  }
 0x31c   :  { %13762 = vmatpush1.bf16.msra.mxu0 %v18422_v7  ;;  %12615 = vmatprep.subr.bf16.mxu1 %v18427_v8  ;;  %v18500_v7 = vld [vmem:[%s26709_s1 + $0x2930] ss:$8 sps:$4 sm:$0xff]   ;;  %v18505_v8 = vld [vmem:[%s26709_s1 + $0xd44] ss:$8 sps:$4 sm:$0xff]  }
 0x31d   :  { %13763 = vmatprep.subr.bf16.mxu0 %v18430_v9  ;;  %v18508_v9 = vld [vmem:[%s26709_s1 + $0x2944] ss:$8 sps:$4 sm:$0xff]  }
 0x31f   :  { %12616 = vmatpush1.bf16.msra.mxu1 %v18425_v12  ;;  %v18503_v12 = vld [vmem:[%s26709_s1 + $0xd40] ss:$8 sps:$4 sm:$0xff]  }
 0x320   :  { %13764 = vmatpush1.bf16.msra.mxu0 %v18428_v13  ;;  %12617 = vmatprep.subr.bf16.mxu1 %v18433_v16  ;;  %v18506_v13 = vld [vmem:[%s26709_s1 + $0x2940] ss:$8 sps:$4 sm:$0xff]   ;;  %v18511_v16 = vld [vmem:[%s26709_s1 + $0xd54] ss:$8 sps:$4 sm:$0xff]  }
 0x321   :  { %13765 = vmatprep.subr.bf16.mxu0 %v18436_v56  ;;  %v18514_v56 = vld [vmem:[%s26709_s1 + $0x2954] ss:$8 sps:$4 sm:$0xff]  }
 0x323   :  { %12618 = vmatpush1.bf16.msra.mxu1 %v18431_v18  ;;  %v18509_v18 = vld [vmem:[%s26709_s1 + $0xd50] ss:$8 sps:$4 sm:$0xff]  }
 0x324   :  { %13766 = vmatpush1.bf16.msra.mxu0 %v18434_v19  ;;  %12619 = vmatprep.subr.bf16.mxu1 %v18439_v20  ;;  %v18512_v19 = vld [vmem:[%s26709_s1 + $0x2950] ss:$8 sps:$4 sm:$0xff]   ;;  %v18517_v20 = vld [vmem:[%s26709_s1 + $0xd64] ss:$8 sps:$4 sm:$0xff]  }
 0x325   :  { %13767 = vmatprep.subr.bf16.mxu0 %v18442_v38  ;;  %v18520_v38 = vld [vmem:[%s26709_s1 + $0x2964] ss:$8 sps:$4 sm:$0xff]  }
 0x327   :  { %12620 = vmatpush1.bf16.msra.mxu1 %v18437_v59  ;;  %v18515_v59 = vld [vmem:[%s26709_s1 + $0xd60] ss:$8 sps:$4 sm:$0xff]  }
 0x328   :  { %13768 = vmatpush1.bf16.msra.mxu0 %v18440_v2  ;;  %12621 = vmatprep.subr.bf16.mxu1 %v18445_v22  ;;  %v18518_v2 = vld [vmem:[%s26709_s1 + $0x2960] ss:$8 sps:$4 sm:$0xff]   ;;  %v18523_v22 = vld [vmem:[%s26709_s1 + $0xd74] ss:$8 sps:$4 sm:$0xff]  }
 0x329   :  { %13769 = vmatprep.subr.bf16.mxu0 %v18448_v23  ;;  %v18526_v23 = vld [vmem:[%s26709_s1 + $0x2974] ss:$8 sps:$4 sm:$0xff]  }
 0x32b   :  { %12622 = vmatpush1.bf16.msra.mxu1 %v18443_v24  ;;  %v18521_v24 = vld [vmem:[%s26709_s1 + $0xd70] ss:$8 sps:$4 sm:$0xff]  }
 0x32c   :  { %13770 = vmatpush1.bf16.msra.mxu0 %v18446_v25  ;;  %12623 = vmatprep.subr.bf16.mxu1 %v18451_v26  ;;  %v18524_v25 = vld [vmem:[%s26709_s1 + $0x2970] ss:$8 sps:$4 sm:$0xff]   ;;  %v18529_v26 = vld [vmem:[%s26709_s1 + $0xd84] ss:$8 sps:$4 sm:$0xff]  }
 0x32d   :  { %13771 = vmatprep.subr.bf16.mxu0 %v18454_v27  ;;  %v18532_v27 = vld [vmem:[%s26709_s1 + $0x2984] ss:$8 sps:$4 sm:$0xff]  }
 0x32f   :  { %12624 = vmatpush1.bf16.msra.mxu1 %v18449_v3  ;;  %v18527_v3 = vld [vmem:[%s26709_s1 + $0xd80] ss:$8 sps:$4 sm:$0xff]  }
 0x330   :  { %13772 = vmatpush1.bf16.msra.mxu0 %v18452_v10  ;;  %12625 = vmatprep.subr.bf16.mxu1 %v18457_v30  ;;  %v18530_v10 = vld [vmem:[%s26709_s1 + $0x2980] ss:$8 sps:$4 sm:$0xff]   ;;  %v18535_v30 = vld [vmem:[%s26709_s1 + $0xd94] ss:$8 sps:$4 sm:$0xff]  }
 0x331   :  { %13773 = vmatprep.subr.bf16.mxu0 %v18460_v44  ;;  %v18538_v44 = vld [vmem:[%s26709_s1 + $0x2994] ss:$8 sps:$4 sm:$0xff]  }
 0x333   :  { %12626 = vmatpush1.bf16.msra.mxu1 %v18455_v32  ;;  %v18533_v32 = vld [vmem:[%s26709_s1 + $0xd90] ss:$8 sps:$4 sm:$0xff]  }
 0x334   :  { %13774 = vmatpush1.bf16.msra.mxu0 %v18458_v33  ;;  %12627 = vmatprep.subr.bf16.mxu1 %v18463_v34  ;;  %v18536_v33 = vld [vmem:[%s26709_s1 + $0x2990] ss:$8 sps:$4 sm:$0xff]   ;;  %v18541_v34 = vld [vmem:[%s26709_s1 + $0xda4] ss:$8 sps:$4 sm:$0xff]  }
 0x335   :  { %13775 = vmatprep.subr.bf16.mxu0 %v18466_v14  ;;  %v18544_v14 = vld [vmem:[%s26709_s1 + $0x29a4] ss:$8 sps:$4 sm:$0xff]  }
 0x337   :  { %12628 = vmatpush1.bf16.msra.mxu1 %v18461_v39  ;;  %v18539_v39 = vld [vmem:[%s26709_s1 + $0xda0] ss:$8 sps:$4 sm:$0xff]  }
 0x338   :  { %13776 = vmatpush1.bf16.msra.mxu0 %v18464_v35  ;;  %12629 = vmatprep.subr.bf16.mxu1 %v18469_v42  ;;  %v18542_v35 = vld [vmem:[%s26709_s1 + $0x29a0] ss:$8 sps:$4 sm:$0xff]   ;;  %v18547_v42 = vld [vmem:[%s26709_s1 + $0xdb4] ss:$8 sps:$4 sm:$0xff]  }
 0x339   :  { %13777 = vmatprep.subr.bf16.mxu0 %v18472_v57  ;;  %v18550_v57 = vld [vmem:[%s26709_s1 + $0x29b4] ss:$8 sps:$4 sm:$0xff]  }
 0x33b   :  { %12630 = vmatpush1.bf16.msra.mxu1 %v18467_v47  ;;  %v18553_v47 = vld [vmem:[%s26709_s1 + $0xdc4] ss:$8 sps:$4 sm:$0xff]  }
 0x33c   :  { %13778 = vmatpush1.bf16.msra.mxu0 %v18470_v36  ;;  %12631 = vmatprep.subr.bf16.mxu1 %v18475_v21  ;;  %v18556_v36 = vld [vmem:[%s26709_s1 + $0x29c4] ss:$8 sps:$4 sm:$0xff]   ;;  %v18551_v21 = vld [vmem:[%s26709_s1 + $0xdc0] ss:$8 sps:$4 sm:$0xff]  }
 0x33d   :  { %13779 = vmatprep.subr.bf16.mxu0 %v18478_v28  ;;  %v18554_v28 = vld [vmem:[%s26709_s1 + $0x29c0] ss:$8 sps:$4 sm:$0xff]  }
 0x33f   :  { %12632 = vmatpush1.bf16.msra.mxu1 %v18473_v52  ;;  %v18559_v52 = vld [vmem:[%s26709_s1 + $0xdd4] ss:$8 sps:$4 sm:$0xff]  }
 0x340   :  { %13780 = vmatpush1.bf16.msra.mxu0 %v18476_v53  ;;  %12642 = vmatprep.subr.bf16.mxu1 %v18481_v54  ;;  %v18562_v53 = vld [vmem:[%s26709_s1 + $0x29d4] ss:$8 sps:$4 sm:$0xff]   ;;  %v18557_v54 = vld [vmem:[%s26709_s1 + $0xdd0] ss:$8 sps:$4 sm:$0xff]  }
 0x341   :  { %13790 = vmatprep.subr.bf16.mxu0 %v18484_v55  ;;  %v18560_v55 = vld [vmem:[%s26709_s1 + $0x29d0] ss:$8 sps:$4 sm:$0xff]  }
 0x342   :  { %12634 = vmatmul.mubr.bf16.vlgmr.msra.gmra.mrb[0].mxu1 %v742_v58  ;;  %v23106_v58 = vld [vmem:[%s26710_s0 + $0x38] sm:$0xff] }
 0x343   :  { %13782 = vmatmul.mubr.bf16.vlgmr.msra.gmra.mrb[0].mxu0 %v798_v11  ;;  %12643 = vmatpush1.bf16.msra.mxu1 %v18479_v29  ;;  %v23111_v11 = vld [vmem:[%s26710_s0 + $0xa8] sm:$0xff] }
 0x344   :  { %13791 = vmatpush1.bf16.msra.mxu0 %v18482_v37  ;;  %12644 = vmatprep.subr.bf16.mxu1 %v18487_v60  ;;  %v18563_v29 = vld [vmem:[%s26709_s1 + $0xde0] ss:$8 sps:$4 sm:$0xff]   ;;  %v18571_v60 = vld [vmem:[%s26709_s1 + $0xdf4] ss:$8 sps:$4 sm:$0xff]  }
 0x345   :  { %13792 = vmatprep.subr.bf16.mxu0 %v18490_v5  ;;  %12674 = vmatprep.mubr.bf16.mxu1 %v745_v31  ;;  %v18566_v37 = vld [vmem:[%s26709_s1 + $0x29e0] ss:$8 sps:$4 sm:$0xff]   ;;  %v18574_v5 = vld [vmem:[%s26709_s1 + $0x29f4] ss:$8 sps:$4 sm:$0xff]   ;;  %v23127_v31 = vrot.slane %v23106_v58, %v20275_v49 }
 0x346   :  { %13822 = vmatprep.mubr.bf16.mxu0 %v801_v61  ;;  %v23131_v61 = vrot.slane %v23111_v11, %v20275_v49 }
 0x347   :  { %12645 = vmatpush1.bf16.msra.mxu1 %v18485_v62  ;;  %v18569_v62 = vld [vmem:[%s26709_s1 + $0xdf0] ss:$8 sps:$4 sm:$0xff]  }
 0x348   :  { %13793 = vmatpush1.bf16.msra.mxu0 %v18488_v63  ;;  %12646 = vmatprep.subr.bf16.mxu1 %v18493_v0  ;;  %v18572_v63 = vld [vmem:[%s26709_s1 + $0x29f0] ss:$8 sps:$4 sm:$0xff]   ;;  %v18578_v0 = vld [vmem:[%s26709_s1 + $0xe04] ss:$8 sps:$4 sm:$0xff]  }
 0x349   :  { %13794 = vmatprep.subr.bf16.mxu0 %v18496_v1  ;;  %v18582_v1 = vld [vmem:[%s26709_s1 + $0x2a04] ss:$8 sps:$4 sm:$0xff]  }
 0x34b   :  { %12647 = vmatpush1.bf16.msra.mxu1 %v18491_v41  ;;  %v233_v41 = vcombine.high %v23127_v31, %v23127_v31 }
 0x34c   :  { %13795 = vmatpush1.bf16.msra.mxu0 %v18494_v50  ;;  %12648 = vmatprep.subr.bf16.mxu1 %v18499_v4  ;;  %v471_v50 = vcombine.high %v23131_v61, %v23131_v61  ;;  %v744_v4 = vpack.c.bf16 %v22910_v51, %v22910_v51  ;;  %v18588_v51 = vld [vmem:[%s26709_s1 + $0x2a14] ss:$8 sps:$4 sm:$0xff]  }
 0x34d   :  { %13796 = vmatprep.subr.bf16.mxu0 %v18502_v17  ;;  %v800_v17 = vpack.c.bf16 %v22913_v48, %v22913_v48  ;;  %v747_v48 = vpack.c.bf16 %v233_v41, %v233_v41  ;;  %v18655_v41 = vld [vmem:[%s26709_s1 + $0xed0] ss:$8 sps:$4 sm:$0xff]  }
 0x34f   :  { %12649 = vmatpush1.bf16.msra.mxu1 %v18497_v6  ;;  %v18576_v6 = vld [vmem:[%s26709_s1 + $0xe00] ss:$8 sps:$4 sm:$0xff]  }
 0x350   :  { %13797 = vmatpush1.bf16.msra.mxu0 %v18500_v7  ;;  %12650 = vmatprep.subr.bf16.mxu1 %v18505_v8  ;;  %v18580_v7 = vld [vmem:[%s26709_s1 + $0x2a00] ss:$8 sps:$4 sm:$0xff]   ;;  %v18585_v8 = vld [vmem:[%s26709_s1 + $0xe14] ss:$8 sps:$4 sm:$0xff]  }
 0x351   :  { %13798 = vmatprep.subr.bf16.mxu0 %v18508_v9  ;;  %v803_v9 = vpack.c.bf16 %v471_v50, %v471_v50  ;;  %v18658_v50 = vld [vmem:[%s26709_s1 + $0x2ad0] ss:$8 sps:$4 sm:$0xff]  }
 0x353   :  { %12651 = vmatpush1.bf16.msra.mxu1 %v18503_v12  ;;  %v18583_v12 = vld [vmem:[%s26709_s1 + $0xe10] ss:$8 sps:$4 sm:$0xff]  }
 0x354   :  { %13799 = vmatpush1.bf16.msra.mxu0 %v18506_v13  ;;  %12652 = vmatprep.subr.bf16.mxu1 %v18511_v16  ;;  %v18586_v13 = vld [vmem:[%s26709_s1 + $0x2a10] ss:$8 sps:$4 sm:$0xff]   ;;  %v18591_v16 = vld [vmem:[%s26709_s1 + $0xe24] ss:$8 sps:$4 sm:$0xff]  }
 0x355   :  { %13800 = vmatprep.subr.bf16.mxu0 %v18514_v56  ;;  %v18594_v56 = vld [vmem:[%s26709_s1 + $0x2a24] ss:$8 sps:$4 sm:$0xff]  }
 0x357   :  { %12653 = vmatpush1.bf16.msra.mxu1 %v18509_v18  ;;  %v18589_v18 = vld [vmem:[%s26709_s1 + $0xe20] ss:$8 sps:$4 sm:$0xff]  }
 0x358   :  { %13801 = vmatpush1.bf16.msra.mxu0 %v18512_v19  ;;  %12654 = vmatprep.subr.bf16.mxu1 %v18517_v20  ;;  %v18592_v19 = vld [vmem:[%s26709_s1 + $0x2a20] ss:$8 sps:$4 sm:$0xff]   ;;  %v18597_v20 = vld [vmem:[%s26709_s1 + $0xe34] ss:$8 sps:$4 sm:$0xff]  }
 0x359   :  { %13802 = vmatprep.subr.bf16.mxu0 %v18520_v38  ;;  %v18600_v38 = vld [vmem:[%s26709_s1 + $0x2a34] ss:$8 sps:$4 sm:$0xff]  }
 0x35b   :  { %12655 = vmatpush1.bf16.msra.mxu1 %v18515_v59  ;;  %v18595_v59 = vld [vmem:[%s26709_s1 + $0xe30] ss:$8 sps:$4 sm:$0xff]  }
 0x35c   :  { %13803 = vmatpush1.bf16.msra.mxu0 %v18518_v2  ;;  %12656 = vmatprep.subr.bf16.mxu1 %v18523_v22  ;;  %v18598_v2 = vld [vmem:[%s26709_s1 + $0x2a30] ss:$8 sps:$4 sm:$0xff]   ;;  %v18603_v22 = vld [vmem:[%s26709_s1 + $0xe44] ss:$8 sps:$4 sm:$0xff]  }
 0x35d   :  { %13804 = vmatprep.subr.bf16.mxu0 %v18526_v23  ;;  %v18606_v23 = vld [vmem:[%s26709_s1 + $0x2a44] ss:$8 sps:$4 sm:$0xff]  }
 0x35f   :  { %12657 = vmatpush1.bf16.msra.mxu1 %v18521_v24  ;;  %v18601_v24 = vld [vmem:[%s26709_s1 + $0xe40] ss:$8 sps:$4 sm:$0xff]  }
 0x360   :  { %13805 = vmatpush1.bf16.msra.mxu0 %v18524_v25  ;;  %12658 = vmatprep.subr.bf16.mxu1 %v18529_v26  ;;  %v18604_v25 = vld [vmem:[%s26709_s1 + $0x2a40] ss:$8 sps:$4 sm:$0xff]   ;;  %v18609_v26 = vld [vmem:[%s26709_s1 + $0xe54] ss:$8 sps:$4 sm:$0xff]  }
 0x361   :  { %13806 = vmatprep.subr.bf16.mxu0 %v18532_v27  ;;  %v18612_v27 = vld [vmem:[%s26709_s1 + $0x2a54] ss:$8 sps:$4 sm:$0xff]  }
 0x363   :  { %12659 = vmatpush1.bf16.msra.mxu1 %v18527_v3  ;;  %v18607_v3 = vld [vmem:[%s26709_s1 + $0xe50] ss:$8 sps:$4 sm:$0xff]  }
 0x364   :  { %13807 = vmatpush1.bf16.msra.mxu0 %v18530_v10  ;;  %12660 = vmatprep.subr.bf16.mxu1 %v18535_v30  ;;  %v18610_v10 = vld [vmem:[%s26709_s1 + $0x2a50] ss:$8 sps:$4 sm:$0xff]   ;;  %v18615_v30 = vld [vmem:[%s26709_s1 + $0xe64] ss:$8 sps:$4 sm:$0xff]  }
 0x365   :  { %13808 = vmatprep.subr.bf16.mxu0 %v18538_v44  ;;  %v18618_v44 = vld [vmem:[%s26709_s1 + $0x2a64] ss:$8 sps:$4 sm:$0xff]  }
 0x367   :  { %12661 = vmatpush1.bf16.msra.mxu1 %v18533_v32  ;;  %v18613_v32 = vld [vmem:[%s26709_s1 + $0xe60] ss:$8 sps:$4 sm:$0xff]  }
 0x368   :  { %13809 = vmatpush1.bf16.msra.mxu0 %v18536_v33  ;;  %12662 = vmatprep.subr.bf16.mxu1 %v18541_v34  ;;  %v18616_v33 = vld [vmem:[%s26709_s1 + $0x2a60] ss:$8 sps:$4 sm:$0xff]   ;;  %v18621_v34 = vld [vmem:[%s26709_s1 + $0xe74] ss:$8 sps:$4 sm:$0xff]  }
 0x369   :  { %13810 = vmatprep.subr.bf16.mxu0 %v18544_v14  ;;  %v18624_v14 = vld [vmem:[%s26709_s1 + $0x2a74] ss:$8 sps:$4 sm:$0xff]  }
 0x36b   :  { %12663 = vmatpush1.bf16.msra.mxu1 %v18539_v39  ;;  %v18619_v39 = vld [vmem:[%s26709_s1 + $0xe70] ss:$8 sps:$4 sm:$0xff]  }
 0x36c   :  { %13811 = vmatpush1.bf16.msra.mxu0 %v18542_v35  ;;  %12664 = vmatprep.subr.bf16.mxu1 %v18547_v42  ;;  %v18622_v35 = vld [vmem:[%s26709_s1 + $0x2a70] ss:$8 sps:$4 sm:$0xff]   ;;  %v18627_v42 = vld [vmem:[%s26709_s1 + $0xe84] ss:$8 sps:$4 sm:$0xff]  }
 0x36d   :  { %13812 = vmatprep.subr.bf16.mxu0 %v18550_v57  ;;  %v18630_v57 = vld [vmem:[%s26709_s1 + $0x2a84] ss:$8 sps:$4 sm:$0xff]  }
 0x36f   :  { %12665 = vmatpush1.bf16.msra.mxu1 %v18545_v45  ;;  %v18625_v45 = vld [vmem:[%s26709_s1 + $0xe80] ss:$8 sps:$4 sm:$0xff]  }
 0x370   :  { %13813 = vmatpush1.bf16.msra.mxu0 %v18548_v46  ;;  %12666 = vmatprep.subr.bf16.mxu1 %v18553_v47  ;;  %v18628_v46 = vld [vmem:[%s26709_s1 + $0x2a80] ss:$8 sps:$4 sm:$0xff]   ;;  %v18633_v47 = vld [vmem:[%s26709_s1 + $0xe94] ss:$8 sps:$4 sm:$0xff]  }
 0x371   :  { %13814 = vmatprep.subr.bf16.mxu0 %v18556_v36  ;;  %v18636_v36 = vld [vmem:[%s26709_s1 + $0x2a94] ss:$8 sps:$4 sm:$0xff]  }
 0x373   :  { %12667 = vmatpush1.bf16.msra.mxu1 %v18551_v21  ;;  %v18631_v21 = vld [vmem:[%s26709_s1 + $0xe90] ss:$8 sps:$4 sm:$0xff]  }
 0x374   :  { %13815 = vmatpush1.bf16.msra.mxu0 %v18554_v28  ;;  %12668 = vmatprep.subr.bf16.mxu1 %v18559_v52  ;;  %v18634_v28 = vld [vmem:[%s26709_s1 + $0x2a90] ss:$8 sps:$4 sm:$0xff]   ;;  %v18639_v52 = vld [vmem:[%s26709_s1 + $0xea4] ss:$8 sps:$4 sm:$0xff]  }
 0x375   :  { %13816 = vmatprep.subr.bf16.mxu0 %v18562_v53  ;;  %v18642_v53 = vld [vmem:[%s26709_s1 + $0x2aa4] ss:$8 sps:$4 sm:$0xff]  }
 0x377   :  { %12669 = vmatpush1.bf16.msra.mxu1 %v18557_v54  ;;  %v18637_v54 = vld [vmem:[%s26709_s1 + $0xea0] ss:$8 sps:$4 sm:$0xff]  }
 0x378   :  { %13817 = vmatpush1.bf16.msra.mxu0 %v18560_v55  ;;  %12670 = vmatprep.subr.bf16.mxu1 %v18565_v15  ;;  %v18640_v55 = vld [vmem:[%s26709_s1 + $0x2aa0] ss:$8 sps:$4 sm:$0xff]   ;;  %v18645_v15 = vld [vmem:[%s26709_s1 + $0xeb4] ss:$8 sps:$4 sm:$0xff]  }
 0x379   :  { %13818 = vmatprep.subr.bf16.mxu0 %v18568_v40  ;;  %v18648_v40 = vld [vmem:[%s26709_s1 + $0x2ab4] ss:$8 sps:$4 sm:$0xff]  }
 0x37b   :  { %12671 = vmatpush1.bf16.msra.mxu1 %v18563_v29  ;;  %v18643_v29 = vld [vmem:[%s26709_s1 + $0xeb0] ss:$8 sps:$4 sm:$0xff]  }
 0x37c   :  { %13819 = vmatpush1.bf16.msra.mxu0 %v18566_v37  ;;  %12672 = vmatprep.subr.bf16.mxu1 %v18571_v60  ;;  %v18646_v37 = vld [vmem:[%s26709_s1 + $0x2ab0] ss:$8 sps:$4 sm:$0xff]   ;;  %v18651_v60 = vld [vmem:[%s26709_s1 + $0xec4] ss:$8 sps:$4 sm:$0xff]  }
 0x37d   :  { %13820 = vmatprep.subr.bf16.mxu0 %v18574_v5  ;;  %v18654_v5 = vld [vmem:[%s26709_s1 + $0x2ac4] ss:$8 sps:$4 sm:$0xff]  }
 0x37f   :  { %12673 = vmatpush1.bf16.msra.mxu1 %v18569_v62  ;;  %v18649_v62 = vld [vmem:[%s26709_s1 + $0xec0] ss:$8 sps:$4 sm:$0xff]  }
 0x380   :  { %13821 = vmatpush1.bf16.msra.mxu0 %v18572_v63  ;;  %12683 = vmatprep.subr.bf16.mxu1 %v18578_v0  ;;  %v18652_v63 = vld [vmem:[%s26709_s1 + $0x2ac0] ss:$8 sps:$4 sm:$0xff]   ;;  %v18657_v0 = vld [vmem:[%s26709_s1 + $0xed4] ss:$8 sps:$4 sm:$0xff]  }
 0x381   :  { %13831 = vmatprep.subr.bf16.mxu0 %v18582_v1  ;;  %v18660_v1 = vld [vmem:[%s26709_s1 + $0x2ad4] ss:$8 sps:$4 sm:$0xff]  }
 0x382   :  { %12675 = vmatmul.mubr.bf16.vlgmr.msra.gmra.mrb[0].mxu1 %v744_v4  ;;  %v18663_v4 = vld [vmem:[%s26709_s1 + $0xee4] ss:$8 sps:$4 sm:$0xff]  }
 0x383   :  { %13823 = vmatmul.mubr.bf16.vlgmr.msra.gmra.mrb[0].mxu0 %v800_v17  ;;  %12684 = vmatpush1.bf16.msra.mxu1 %v18576_v6  ;;  %v18666_v17 = vld [vmem:[%s26709_s1 + $0x2ae4] ss:$8 sps:$4 sm:$0xff]   ;;  %v218_v6 = vcombine.high %v23106_v58, %v23106_v58  ;;  %v18672_v58 = vld [vmem:[%s26709_s1 + $0x2af4] ss:$8 sps:$4 sm:$0xff]  }
 0x384   :  { %13832 = vmatpush1.bf16.msra.mxu0 %v18580_v7  ;;  %12685 = vmatprep.subr.bf16.mxu1 %v18585_v8  ;;  %v456_v7 = vcombine.high %v23111_v11, %v23111_v11  ;;  %v18661_v8 = vld [vmem:[%s26709_s1 + $0xee0] ss:$8 sps:$4 sm:$0xff]  }
 0x385   :  { %13833 = vmatprep.subr.bf16.mxu0 %v18588_v51  ;;  %12715 = vmatprep.mubr.bf16.mxu1 %v747_v48  ;;  %v18664_v51 = vld [vmem:[%s26709_s1 + $0x2ae0] ss:$8 sps:$4 sm:$0xff]   ;;  %v18669_v48 = vld [vmem:[%s26709_s1 + $0xef4] ss:$8 sps:$4 sm:$0xff]   ;;  %v23338_v11 = vrot.slane %v218_v6, %v20275_v49  ;;  %v18739_v6 = vld [vmem:[%s26709_s1 + $0xfb0] ss:$8 sps:$4 sm:$0xff]  }
 0x386   :  { %13863 = vmatprep.mubr.bf16.mxu0 %v803_v9  ;;  %v23341_v9 = vrot.slane %v456_v7, %v20275_v49  ;;  %v18742_v7 = vld [vmem:[%s26709_s1 + $0x2bb0] ss:$8 sps:$4 sm:$0xff]  }
 0x387   :  { %12686 = vmatpush1.bf16.msra.mxu1 %v18583_v12  ;;  %v18667_v12 = vld [vmem:[%s26709_s1 + $0xef0] ss:$8 sps:$4 sm:$0xff]  }
 0x388   :  { %13834 = vmatpush1.bf16.msra.mxu0 %v18586_v13  ;;  %12687 = vmatprep.subr.bf16.mxu1 %v18591_v16  ;;  %v18670_v13 = vld [vmem:[%s26709_s1 + $0x2af0] ss:$8 sps:$4 sm:$0xff]   ;;  %v18675_v16 = vld [vmem:[%s26709_s1 + $0xf04] ss:$8 sps:$4 sm:$0xff]  }
 0x389   :  { %13835 = vmatprep.subr.bf16.mxu0 %v18594_v56  ;;  %v18678_v56 = vld [vmem:[%s26709_s1 + $0x2b04] ss:$8 sps:$4 sm:$0xff]  }
 0x38b   :  { %12688 = vmatpush1.bf16.msra.mxu1 %v18589_v18  ;;  %v234_v18 = vcombine.high %v23338_v11, %v23338_v11 }
 0x38c   :  { %13836 = vmatpush1.bf16.msra.mxu0 %v18592_v19  ;;  %12689 = vmatprep.subr.bf16.mxu1 %v18597_v20  ;;  %v472_v19 = vcombine.high %v23341_v9, %v23341_v9  ;;  %v746_v20 = vpack.c.bf16 %v23127_v31, %v23127_v31  ;;  %v18684_v31 = vld [vmem:[%s26709_s1 + $0x2b14] ss:$8 sps:$4 sm:$0xff]  }
 0x38d   :  { %13837 = vmatprep.subr.bf16.mxu0 %v18600_v38  ;;  %v802_v38 = vpack.c.bf16 %v23131_v61, %v23131_v61  ;;  %v749_v61 = vpack.c.bf16 %v234_v18, %v234_v18  ;;  %v18759_v18 = vld [vmem:[%s26709_s1 + $0xfe4] ss:$8 sps:$4 sm:$0xff]  }
 0x38f   :  { %12690 = vmatpush1.bf16.msra.mxu1 %v18595_v59  ;;  %v18673_v59 = vld [vmem:[%s26709_s1 + $0xf00] ss:$8 sps:$4 sm:$0xff]  }
 0x390   :  { %13838 = vmatpush1.bf16.msra.mxu0 %v18598_v2  ;;  %12691 = vmatprep.subr.bf16.mxu1 %v18603_v22  ;;  %v18676_v2 = vld [vmem:[%s26709_s1 + $0x2b00] ss:$8 sps:$4 sm:$0xff]   ;;  %v18681_v22 = vld [vmem:[%s26709_s1 + $0xf14] ss:$8 sps:$4 sm:$0xff]  }
 0x391   :  { %13839 = vmatprep.subr.bf16.mxu0 %v18606_v23  ;;  %v805_v23 = vpack.c.bf16 %v472_v19, %v472_v19  ;;  %v18762_v19 = vld [vmem:[%s26709_s1 + $0x2be4] ss:$8 sps:$4 sm:$0xff]  }
 0x393   :  { %12692 = vmatpush1.bf16.msra.mxu1 %v18601_v24  ;;  %v18679_v24 = vld [vmem:[%s26709_s1 + $0xf10] ss:$8 sps:$4 sm:$0xff]  }
 0x394   :  { %13840 = vmatpush1.bf16.msra.mxu0 %v18604_v25  ;;  %12693 = vmatprep.subr.bf16.mxu1 %v18609_v26  ;;  %v18682_v25 = vld [vmem:[%s26709_s1 + $0x2b10] ss:$8 sps:$4 sm:$0xff]   ;;  %v18687_v26 = vld [vmem:[%s26709_s1 + $0xf24] ss:$8 sps:$4 sm:$0xff]  }
 0x395   :  { %13841 = vmatprep.subr.bf16.mxu0 %v18612_v27  ;;  %v18690_v27 = vld [vmem:[%s26709_s1 + $0x2b24] ss:$8 sps:$4 sm:$0xff]  }
 0x397   :  { %12694 = vmatpush1.bf16.msra.mxu1 %v18607_v3  ;;  %v18685_v3 = vld [vmem:[%s26709_s1 + $0xf20] ss:$8 sps:$4 sm:$0xff]  }
 0x398   :  { %13842 = vmatpush1.bf16.msra.mxu0 %v18610_v10  ;;  %12695 = vmatprep.subr.bf16.mxu1 %v18615_v30  ;;  %v18688_v10 = vld [vmem:[%s26709_s1 + $0x2b20] ss:$8 sps:$4 sm:$0xff]   ;;  %v18693_v30 = vld [vmem:[%s26709_s1 + $0xf34] ss:$8 sps:$4 sm:$0xff]  }
 0x399   :  { %13843 = vmatprep.subr.bf16.mxu0 %v18618_v44  ;;  %v18696_v44 = vld [vmem:[%s26709_s1 + $0x2b34] ss:$8 sps:$4 sm:$0xff]  }
 0x39b   :  { %12696 = vmatpush1.bf16.msra.mxu1 %v18613_v32  ;;  %v18691_v32 = vld [vmem:[%s26709_s1 + $0xf30] ss:$8 sps:$4 sm:$0xff]  }
 0x39c   :  { %13844 = vmatpush1.bf16.msra.mxu0 %v18616_v33  ;;  %12697 = vmatprep.subr.bf16.mxu1 %v18621_v34  ;;  %v18694_v33 = vld [vmem:[%s26709_s1 + $0x2b30] ss:$8 sps:$4 sm:$0xff]   ;;  %v18699_v34 = vld [vmem:[%s26709_s1 + $0xf44] ss:$8 sps:$4 sm:$0xff]  }
 0x39d   :  { %13845 = vmatprep.subr.bf16.mxu0 %v18624_v14  ;;  %v18702_v14 = vld [vmem:[%s26709_s1 + $0x2b44] ss:$8 sps:$4 sm:$0xff]  }
 0x39f   :  { %12698 = vmatpush1.bf16.msra.mxu1 %v18619_v39  ;;  %v18697_v39 = vld [vmem:[%s26709_s1 + $0xf40] ss:$8 sps:$4 sm:$0xff]  }
 0x3a0   :  { %13846 = vmatpush1.bf16.msra.mxu0 %v18622_v35  ;;  %12699 = vmatprep.subr.bf16.mxu1 %v18627_v42  ;;  %v18700_v35 = vld [vmem:[%s26709_s1 + $0x2b40] ss:$8 sps:$4 sm:$0xff]   ;;  %v18705_v42 = vld [vmem:[%s26709_s1 + $0xf54] ss:$8 sps:$4 sm:$0xff]  }
 0x3a1   :  { %13847 = vmatprep.subr.bf16.mxu0 %v18630_v57  ;;  %v18708_v57 = vld [vmem:[%s26709_s1 + $0x2b54] ss:$8 sps:$4 sm:$0xff]  }
 0x3a3   :  { %12700 = vmatpush1.bf16.msra.mxu1 %v18625_v45  ;;  %v18703_v45 = vld [vmem:[%s26709_s1 + $0xf50] ss:$8 sps:$4 sm:$0xff]  }
 0x3a4   :  { %13848 = vmatpush1.bf16.msra.mxu0 %v18628_v46  ;;  %12701 = vmatprep.subr.bf16.mxu1 %v18633_v47  ;;  %v18706_v46 = vld [vmem:[%s26709_s1 + $0x2b50] ss:$8 sps:$4 sm:$0xff]   ;;  %v18711_v47 = vld [vmem:[%s26709_s1 + $0xf64] ss:$8 sps:$4 sm:$0xff]  }
 0x3a5   :  { %13849 = vmatprep.subr.bf16.mxu0 %v18636_v36  ;;  %v18714_v36 = vld [vmem:[%s26709_s1 + $0x2b64] ss:$8 sps:$4 sm:$0xff]  }
 0x3a7   :  { %12702 = vmatpush1.bf16.msra.mxu1 %v18631_v21  ;;  %v18709_v21 = vld [vmem:[%s26709_s1 + $0xf60] ss:$8 sps:$4 sm:$0xff]  }
 0x3a8   :  { %13850 = vmatpush1.bf16.msra.mxu0 %v18634_v28  ;;  %12703 = vmatprep.subr.bf16.mxu1 %v18639_v52  ;;  %v18712_v28 = vld [vmem:[%s26709_s1 + $0x2b60] ss:$8 sps:$4 sm:$0xff]   ;;  %v18717_v52 = vld [vmem:[%s26709_s1 + $0xf74] ss:$8 sps:$4 sm:$0xff]  }
 0x3a9   :  { %13851 = vmatprep.subr.bf16.mxu0 %v18642_v53  ;;  %v18720_v53 = vld [vmem:[%s26709_s1 + $0x2b74] ss:$8 sps:$4 sm:$0xff]  }
 0x3ab   :  { %12704 = vmatpush1.bf16.msra.mxu1 %v18637_v54  ;;  %v18715_v54 = vld [vmem:[%s26709_s1 + $0xf70] ss:$8 sps:$4 sm:$0xff]  }
 0x3ac   :  { %13852 = vmatpush1.bf16.msra.mxu0 %v18640_v55  ;;  %12705 = vmatprep.subr.bf16.mxu1 %v18645_v15  ;;  %v18718_v55 = vld [vmem:[%s26709_s1 + $0x2b70] ss:$8 sps:$4 sm:$0xff]   ;;  %v18723_v15 = vld [vmem:[%s26709_s1 + $0xf84] ss:$8 sps:$4 sm:$0xff]  }
 0x3ad   :  { %13853 = vmatprep.subr.bf16.mxu0 %v18648_v40  ;;  %v18726_v40 = vld [vmem:[%s26709_s1 + $0x2b84] ss:$8 sps:$4 sm:$0xff]  }
 0x3af   :  { %12706 = vmatpush1.bf16.msra.mxu1 %v18643_v29  ;;  %v18721_v29 = vld [vmem:[%s26709_s1 + $0xf80] ss:$8 sps:$4 sm:$0xff]  }
 0x3b0   :  { %13854 = vmatpush1.bf16.msra.mxu0 %v18646_v37  ;;  %12707 = vmatprep.subr.bf16.mxu1 %v18651_v60  ;;  %v18724_v37 = vld [vmem:[%s26709_s1 + $0x2b80] ss:$8 sps:$4 sm:$0xff]   ;;  %v18729_v60 = vld [vmem:[%s26709_s1 + $0xf94] ss:$8 sps:$4 sm:$0xff]  }
 0x3b1   :  { %13855 = vmatprep.subr.bf16.mxu0 %v18654_v5  ;;  %v18732_v5 = vld [vmem:[%s26709_s1 + $0x2b94] ss:$8 sps:$4 sm:$0xff]  }
 0x3b3   :  { %12708 = vmatpush1.bf16.msra.mxu1 %v18649_v62  ;;  %v18727_v62 = vld [vmem:[%s26709_s1 + $0xf90] ss:$8 sps:$4 sm:$0xff]  }
 0x3b4   :  { %13856 = vmatpush1.bf16.msra.mxu0 %v18652_v63  ;;  %12709 = vmatprep.subr.bf16.mxu1 %v18657_v0  ;;  %v18730_v63 = vld [vmem:[%s26709_s1 + $0x2b90] ss:$8 sps:$4 sm:$0xff]   ;;  %v18735_v0 = vld [vmem:[%s26709_s1 + $0xfa4] ss:$8 sps:$4 sm:$0xff]  }
 0x3b5   :  { %13857 = vmatprep.subr.bf16.mxu0 %v18660_v1  ;;  %v18738_v1 = vld [vmem:[%s26709_s1 + $0x2ba4] ss:$8 sps:$4 sm:$0xff]  }
 0x3b7   :  { %12710 = vmatpush1.bf16.msra.mxu1 %v18655_v41  ;;  %v18733_v41 = vld [vmem:[%s26709_s1 + $0xfa0] ss:$8 sps:$4 sm:$0xff]  }
 0x3b8   :  { %13858 = vmatpush1.bf16.msra.mxu0 %v18658_v50  ;;  %12711 = vmatprep.subr.bf16.mxu1 %v18663_v4  ;;  %v18736_v50 = vld [vmem:[%s26709_s1 + $0x2ba0] ss:$8 sps:$4 sm:$0xff]   ;;  %v18741_v4 = vld [vmem:[%s26709_s1 + $0xfb4] ss:$8 sps:$4 sm:$0xff]  }
 0x3b9   :  { %13859 = vmatprep.subr.bf16.mxu0 %v18666_v17  ;;  %v18744_v17 = vld [vmem:[%s26709_s1 + $0x2bb4] ss:$8 sps:$4 sm:$0xff]  }
 0x3bb   :  { %12712 = vmatpush1.bf16.msra.mxu1 %v18661_v8  ;;  %v18747_v8 = vld [vmem:[%s26709_s1 + $0xfc4] ss:$8 sps:$4 sm:$0xff]  }
 0x3bc   :  { %13860 = vmatpush1.bf16.msra.mxu0 %v18664_v51  ;;  %12713 = vmatprep.subr.bf16.mxu1 %v18669_v48  ;;  %v18750_v51 = vld [vmem:[%s26709_s1 + $0x2bc4] ss:$8 sps:$4 sm:$0xff]   ;;  %v18745_v48 = vld [vmem:[%s26709_s1 + $0xfc0] ss:$8 sps:$4 sm:$0xff]  }
 0x3bd   :  { %13861 = vmatprep.subr.bf16.mxu0 %v18672_v58  ;;  %v18748_v58 = vld [vmem:[%s26709_s1 + $0x2bc0] ss:$8 sps:$4 sm:$0xff]  }
 0x3bf   :  { %12714 = vmatpush1.bf16.msra.mxu1 %v18667_v12  ;;  %v18753_v12 = vld [vmem:[%s26709_s1 + $0xfd4] ss:$8 sps:$4 sm:$0xff]  }
 0x3c0   :  { %13862 = vmatpush1.bf16.msra.mxu0 %v18670_v13  ;;  %12724 = vmatprep.subr.bf16.mxu1 %v18675_v16  ;;  %v18756_v13 = vld [vmem:[%s26709_s1 + $0x2bd4] ss:$8 sps:$4 sm:$0xff]   ;;  %v18751_v16 = vld [vmem:[%s26709_s1 + $0xfd0] ss:$8 sps:$4 sm:$0xff]  }
 0x3c1   :  { %13872 = vmatprep.subr.bf16.mxu0 %v18678_v56  ;;  %v18754_v56 = vld [vmem:[%s26709_s1 + $0x2bd0] ss:$8 sps:$4 sm:$0xff]  }
 0x3c2   :  { %12716 = vmatmul.mubr.bf16.vlgmr.msra.gmra.mrb[0].mxu1 %v746_v20  ;;  %v23534_v20 = vld [vmem:[%s26710_s0 + $0x40] sm:$0xff] }
 0x3c3   :  { %13864 = vmatmul.mubr.bf16.vlgmr.msra.gmra.mrb[0].mxu0 %v802_v38  ;;  %12725 = vmatpush1.bf16.msra.mxu1 %v18673_v59  ;;  %v23539_v38 = vld [vmem:[%s26710_s0 + $0xb0] sm:$0xff]  ;;  %v18757_v59 = vld [vmem:[%s26709_s1 + $0xfe0] ss:$8 sps:$4 sm:$0xff]  }
 0x3c4   :  { %13873 = vmatpush1.bf16.msra.mxu0 %v18676_v2  ;;  %12726 = vmatprep.subr.bf16.mxu1 %v18681_v22  ;;  %v18760_v2 = vld [vmem:[%s26709_s1 + $0x2be0] ss:$8 sps:$4 sm:$0xff]   ;;  %v18765_v22 = vld [vmem:[%s26709_s1 + $0xff4] ss:$8 sps:$4 sm:$0xff]  }
 0x3c5   :  { %13874 = vmatprep.subr.bf16.mxu0 %v18684_v31  ;;  %12756 = vmatprep.mubr.bf16.mxu1 %v749_v61  ;;  %v18768_v31 = vld [vmem:[%s26709_s1 + $0x2bf4] ss:$8 sps:$4 sm:$0xff]   ;;  %v23555_v61 = vrot.slane %v23534_v20, %v20275_v49 }
 0x3c6   :  { %13904 = vmatprep.mubr.bf16.mxu0 %v805_v23  ;;  %v23559_v23 = vrot.slane %v23539_v38, %v20275_v49 }
 0x3c7   :  { %12727 = vmatpush1.bf16.msra.mxu1 %v18679_v24  ;;  %v18763_v24 = vld [vmem:[%s26709_s1 + $0xff0] ss:$8 sps:$4 sm:$0xff]  }
 0x3c8   :  { %13875 = vmatpush1.bf16.msra.mxu0 %v18682_v25  ;;  %12728 = vmatprep.subr.bf16.mxu1 %v18687_v26  ;;  %v18766_v25 = vld [vmem:[%s26709_s1 + $0x2bf0] ss:$8 sps:$4 sm:$0xff]   ;;  %v18772_v26 = vld [vmem:[%s26709_s1 + $0x1004] ss:$8 sps:$4 sm:$0xff]  }
 0x3c9   :  { %13876 = vmatprep.subr.bf16.mxu0 %v18690_v27  ;;  %v18776_v27 = vld [vmem:[%s26709_s1 + $0x2c04] ss:$8 sps:$4 sm:$0xff]  }
 0x3cb   :  { %12729 = vmatpush1.bf16.msra.mxu1 %v18685_v3  ;;  %v250_v3 = vcombine.high %v23555_v61, %v23555_v61 }
 0x3cc   :  { %13877 = vmatpush1.bf16.msra.mxu0 %v18688_v10  ;;  %12730 = vmatprep.subr.bf16.mxu1 %v18693_v30  ;;  %v488_v10 = vcombine.high %v23559_v23, %v23559_v23  ;;  %v748_v30 = vpack.c.bf16 %v23338_v11, %v23338_v11  ;;  %v18782_v11 = vld [vmem:[%s26709_s1 + $0x2c14] ss:$8 sps:$4 sm:$0xff]  }
 0x3cd   :  { %13878 = vmatprep.subr.bf16.mxu0 %v18696_v44  ;;  %v804_v44 = vpack.c.bf16 %v23341_v9, %v23341_v9  ;;  %v751_v9 = vpack.c.bf16 %v250_v3, %v250_v3  ;;  %v18849_v3 = vld [vmem:[%s26709_s1 + $0x10d0] ss:$8 sps:$4 sm:$0xff]  }
 0x3cf   :  { %12731 = vmatpush1.bf16.msra.mxu1 %v18691_v32  ;;  %v18770_v32 = vld [vmem:[%s26709_s1 + $0x1000] ss:$8 sps:$4 sm:$0xff]  }
 0x3d0   :  { %13879 = vmatpush1.bf16.msra.mxu0 %v18694_v33  ;;  %12732 = vmatprep.subr.bf16.mxu1 %v18699_v34  ;;  %v18774_v33 = vld [vmem:[%s26709_s1 + $0x2c00] ss:$8 sps:$4 sm:$0xff]   ;;  %v18779_v34 = vld [vmem:[%s26709_s1 + $0x1014] ss:$8 sps:$4 sm:$0xff]  }
 0x3d1   :  { %13880 = vmatprep.subr.bf16.mxu0 %v18702_v14  ;;  %v807_v14 = vpack.c.bf16 %v488_v10, %v488_v10  ;;  %v18852_v10 = vld [vmem:[%s26709_s1 + $0x2cd0] ss:$8 sps:$4 sm:$0xff]  }
 0x3d3   :  { %12733 = vmatpush1.bf16.msra.mxu1 %v18697_v39  ;;  %v18777_v39 = vld [vmem:[%s26709_s1 + $0x1010] ss:$8 sps:$4 sm:$0xff]  }
 0x3d4   :  { %13881 = vmatpush1.bf16.msra.mxu0 %v18700_v35  ;;  %12734 = vmatprep.subr.bf16.mxu1 %v18705_v42  ;;  %v18780_v35 = vld [vmem:[%s26709_s1 + $0x2c10] ss:$8 sps:$4 sm:$0xff]   ;;  %v18785_v42 = vld [vmem:[%s26709_s1 + $0x1024] ss:$8 sps:$4 sm:$0xff]  }
 0x3d5   :  { %13882 = vmatprep.subr.bf16.mxu0 %v18708_v57  ;;  %v18788_v57 = vld [vmem:[%s26709_s1 + $0x2c24] ss:$8 sps:$4 sm:$0xff]  }
 0x3d7   :  { %12735 = vmatpush1.bf16.msra.mxu1 %v18703_v45  ;;  %v18783_v45 = vld [vmem:[%s26709_s1 + $0x1020] ss:$8 sps:$4 sm:$0xff]  }
 0x3d8   :  { %13883 = vmatpush1.bf16.msra.mxu0 %v18706_v46  ;;  %12736 = vmatprep.subr.bf16.mxu1 %v18711_v47  ;;  %v18786_v46 = vld [vmem:[%s26709_s1 + $0x2c20] ss:$8 sps:$4 sm:$0xff]   ;;  %v18791_v47 = vld [vmem:[%s26709_s1 + $0x1034] ss:$8 sps:$4 sm:$0xff]  }
 0x3d9   :  { %13884 = vmatprep.subr.bf16.mxu0 %v18714_v36  ;;  %v18794_v36 = vld [vmem:[%s26709_s1 + $0x2c34] ss:$8 sps:$4 sm:$0xff]  }
 0x3db   :  { %12737 = vmatpush1.bf16.msra.mxu1 %v18709_v21  ;;  %v18789_v21 = vld [vmem:[%s26709_s1 + $0x1030] ss:$8 sps:$4 sm:$0xff]  }
 0x3dc   :  { %13885 = vmatpush1.bf16.msra.mxu0 %v18712_v28  ;;  %12738 = vmatprep.subr.bf16.mxu1 %v18717_v52  ;;  %v18792_v28 = vld [vmem:[%s26709_s1 + $0x2c30] ss:$8 sps:$4 sm:$0xff]   ;;  %v18797_v52 = vld [vmem:[%s26709_s1 + $0x1044] ss:$8 sps:$4 sm:$0xff]  }
 0x3dd   :  { %13886 = vmatprep.subr.bf16.mxu0 %v18720_v53  ;;  %v18800_v53 = vld [vmem:[%s26709_s1 + $0x2c44] ss:$8 sps:$4 sm:$0xff]  }
 0x3df   :  { %12739 = vmatpush1.bf16.msra.mxu1 %v18715_v54  ;;  %v18795_v54 = vld [vmem:[%s26709_s1 + $0x1040] ss:$8 sps:$4 sm:$0xff]  }
 0x3e0   :  { %13887 = vmatpush1.bf16.msra.mxu0 %v18718_v55  ;;  %12740 = vmatprep.subr.bf16.mxu1 %v18723_v15  ;;  %v18798_v55 = vld [vmem:[%s26709_s1 + $0x2c40] ss:$8 sps:$4 sm:$0xff]   ;;  %v18803_v15 = vld [vmem:[%s26709_s1 + $0x1054] ss:$8 sps:$4 sm:$0xff]  }
 0x3e1   :  { %13888 = vmatprep.subr.bf16.mxu0 %v18726_v40  ;;  %v18806_v40 = vld [vmem:[%s26709_s1 + $0x2c54] ss:$8 sps:$4 sm:$0xff]  }
 0x3e3   :  { %12741 = vmatpush1.bf16.msra.mxu1 %v18721_v29  ;;  %v18801_v29 = vld [vmem:[%s26709_s1 + $0x1050] ss:$8 sps:$4 sm:$0xff]  }
 0x3e4   :  { %13889 = vmatpush1.bf16.msra.mxu0 %v18724_v37  ;;  %12742 = vmatprep.subr.bf16.mxu1 %v18729_v60  ;;  %v18804_v37 = vld [vmem:[%s26709_s1 + $0x2c50] ss:$8 sps:$4 sm:$0xff]   ;;  %v18809_v60 = vld [vmem:[%s26709_s1 + $0x1064] ss:$8 sps:$4 sm:$0xff]  }
 0x3e5   :  { %13890 = vmatprep.subr.bf16.mxu0 %v18732_v5  ;;  %v18812_v5 = vld [vmem:[%s26709_s1 + $0x2c64] ss:$8 sps:$4 sm:$0xff]  }
 0x3e7   :  { %12743 = vmatpush1.bf16.msra.mxu1 %v18727_v62  ;;  %v18807_v62 = vld [vmem:[%s26709_s1 + $0x1060] ss:$8 sps:$4 sm:$0xff]  }
 0x3e8   :  { %13891 = vmatpush1.bf16.msra.mxu0 %v18730_v63  ;;  %12744 = vmatprep.subr.bf16.mxu1 %v18735_v0  ;;  %v18810_v63 = vld [vmem:[%s26709_s1 + $0x2c60] ss:$8 sps:$4 sm:$0xff]   ;;  %v18815_v0 = vld [vmem:[%s26709_s1 + $0x1074] ss:$8 sps:$4 sm:$0xff]  }
 0x3e9   :  { %13892 = vmatprep.subr.bf16.mxu0 %v18738_v1  ;;  %v18818_v1 = vld [vmem:[%s26709_s1 + $0x2c74] ss:$8 sps:$4 sm:$0xff]  }
 0x3eb   :  { %12745 = vmatpush1.bf16.msra.mxu1 %v18733_v41  ;;  %v18813_v41 = vld [vmem:[%s26709_s1 + $0x1070] ss:$8 sps:$4 sm:$0xff]  }
 0x3ec   :  { %13893 = vmatpush1.bf16.msra.mxu0 %v18736_v50  ;;  %12746 = vmatprep.subr.bf16.mxu1 %v18741_v4  ;;  %v18816_v50 = vld [vmem:[%s26709_s1 + $0x2c70] ss:$8 sps:$4 sm:$0xff]   ;;  %v18821_v4 = vld [vmem:[%s26709_s1 + $0x1084] ss:$8 sps:$4 sm:$0xff]  }
 0x3ed   :  { %13894 = vmatprep.subr.bf16.mxu0 %v18744_v17  ;;  %v18824_v17 = vld [vmem:[%s26709_s1 + $0x2c84] ss:$8 sps:$4 sm:$0xff]  }
 0x3ef   :  { %12747 = vmatpush1.bf16.msra.mxu1 %v18739_v6  ;;  %v18819_v6 = vld [vmem:[%s26709_s1 + $0x1080] ss:$8 sps:$4 sm:$0xff]  }
 0x3f0   :  { %13895 = vmatpush1.bf16.msra.mxu0 %v18742_v7  ;;  %12748 = vmatprep.subr.bf16.mxu1 %v18747_v8  ;;  %v18822_v7 = vld [vmem:[%s26709_s1 + $0x2c80] ss:$8 sps:$4 sm:$0xff]   ;;  %v18827_v8 = vld [vmem:[%s26709_s1 + $0x1094] ss:$8 sps:$4 sm:$0xff]  }
 0x3f1   :  { %13896 = vmatprep.subr.bf16.mxu0 %v18750_v51  ;;  %v18830_v51 = vld [vmem:[%s26709_s1 + $0x2c94] ss:$8 sps:$4 sm:$0xff]  }
 0x3f3   :  { %12749 = vmatpush1.bf16.msra.mxu1 %v18745_v48  ;;  %v18825_v48 = vld [vmem:[%s26709_s1 + $0x1090] ss:$8 sps:$4 sm:$0xff]  }
 0x3f4   :  { %13897 = vmatpush1.bf16.msra.mxu0 %v18748_v58  ;;  %12750 = vmatprep.subr.bf16.mxu1 %v18753_v12  ;;  %v18828_v58 = vld [vmem:[%s26709_s1 + $0x2c90] ss:$8 sps:$4 sm:$0xff]   ;;  %v18833_v12 = vld [vmem:[%s26709_s1 + $0x10a4] ss:$8 sps:$4 sm:$0xff]  }
 0x3f5   :  { %13898 = vmatprep.subr.bf16.mxu0 %v18756_v13  ;;  %v18836_v13 = vld [vmem:[%s26709_s1 + $0x2ca4] ss:$8 sps:$4 sm:$0xff]  }
 0x3f7   :  { %12751 = vmatpush1.bf16.msra.mxu1 %v18751_v16  ;;  %v18831_v16 = vld [vmem:[%s26709_s1 + $0x10a0] ss:$8 sps:$4 sm:$0xff]  }
 0x3f8   :  { %13899 = vmatpush1.bf16.msra.mxu0 %v18754_v56  ;;  %12752 = vmatprep.subr.bf16.mxu1 %v18759_v18  ;;  %v18834_v56 = vld [vmem:[%s26709_s1 + $0x2ca0] ss:$8 sps:$4 sm:$0xff]   ;;  %v18839_v18 = vld [vmem:[%s26709_s1 + $0x10b4] ss:$8 sps:$4 sm:$0xff]  }
 0x3f9   :  { %13900 = vmatprep.subr.bf16.mxu0 %v18762_v19  ;;  %v18842_v19 = vld [vmem:[%s26709_s1 + $0x2cb4] ss:$8 sps:$4 sm:$0xff]  }
 0x3fb   :  { %12753 = vmatpush1.bf16.msra.mxu1 %v18757_v59  ;;  %v18837_v59 = vld [vmem:[%s26709_s1 + $0x10b0] ss:$8 sps:$4 sm:$0xff]  }
 0x3fc   :  { %13901 = vmatpush1.bf16.msra.mxu0 %v18760_v2  ;;  %12754 = vmatprep.subr.bf16.mxu1 %v18765_v22  ;;  %v18840_v2 = vld [vmem:[%s26709_s1 + $0x2cb0] ss:$8 sps:$4 sm:$0xff]   ;;  %v18845_v22 = vld [vmem:[%s26709_s1 + $0x10c4] ss:$8 sps:$4 sm:$0xff]  }
 0x3fd   :  { %13902 = vmatprep.subr.bf16.mxu0 %v18768_v31  ;;  %v18848_v31 = vld [vmem:[%s26709_s1 + $0x2cc4] ss:$8 sps:$4 sm:$0xff]  }
 0x3ff   :  { %12755 = vmatpush1.bf16.msra.mxu1 %v18763_v24  ;;  %v18843_v24 = vld [vmem:[%s26709_s1 + $0x10c0] ss:$8 sps:$4 sm:$0xff]  }
 0x400   :  { %13903 = vmatpush1.bf16.msra.mxu0 %v18766_v25  ;;  %12765 = vmatprep.subr.bf16.mxu1 %v18772_v26  ;;  %v18846_v25 = vld [vmem:[%s26709_s1 + $0x2cc0] ss:$8 sps:$4 sm:$0xff]   ;;  %v18851_v26 = vld [vmem:[%s26709_s1 + $0x10d4] ss:$8 sps:$4 sm:$0xff]  }
 0x401   :  { %13913 = vmatprep.subr.bf16.mxu0 %v18776_v27  ;;  %v18854_v27 = vld [vmem:[%s26709_s1 + $0x2cd4] ss:$8 sps:$4 sm:$0xff]  }
 0x402   :  { %12757 = vmatmul.mubr.bf16.vlgmr.msra.gmra.mrb[0].mxu1 %v748_v30  ;;  %v18857_v30 = vld [vmem:[%s26709_s1 + $0x10e4] ss:$8 sps:$4 sm:$0xff]  }
 0x403   :  { %13905 = vmatmul.mubr.bf16.vlgmr.msra.gmra.mrb[0].mxu0 %v804_v44  ;;  %12766 = vmatpush1.bf16.msra.mxu1 %v18770_v32  ;;  %v18860_v44 = vld [vmem:[%s26709_s1 + $0x2ce4] ss:$8 sps:$4 sm:$0xff]   ;;  %v235_v32 = vcombine.high %v23534_v20, %v23534_v20  ;;  %v18866_v20 = vld [vmem:[%s26709_s1 + $0x2cf4] ss:$8 sps:$4 sm:$0xff]  }
 0x404   :  { %13914 = vmatpush1.bf16.msra.mxu0 %v18774_v33  ;;  %12767 = vmatprep.subr.bf16.mxu1 %v18779_v34  ;;  %v473_v33 = vcombine.high %v23539_v38, %v23539_v38  ;;  %v18855_v34 = vld [vmem:[%s26709_s1 + $0x10e0] ss:$8 sps:$4 sm:$0xff]  }
 0x405   :  { %13915 = vmatprep.subr.bf16.mxu0 %v18782_v11  ;;  %12797 = vmatprep.mubr.bf16.mxu1 %v751_v9  ;;  %v18858_v11 = vld [vmem:[%s26709_s1 + $0x2ce0] ss:$8 sps:$4 sm:$0xff]   ;;  %v18863_v9 = vld [vmem:[%s26709_s1 + $0x10f4] ss:$8 sps:$4 sm:$0xff]   ;;  %v23766_v38 = vrot.slane %v235_v32, %v20275_v49  ;;  %v18933_v32 = vld [vmem:[%s26709_s1 + $0x11b0] ss:$8 sps:$4 sm:$0xff]  }
 0x406   :  { %13945 = vmatprep.mubr.bf16.mxu0 %v807_v14  ;;  %v23769_v14 = vrot.slane %v473_v33, %v20275_v49  ;;  %v18936_v33 = vld [vmem:[%s26709_s1 + $0x2db0] ss:$8 sps:$4 sm:$0xff]  }
 0x407   :  { %12768 = vmatpush1.bf16.msra.mxu1 %v18777_v39  ;;  %v18861_v39 = vld [vmem:[%s26709_s1 + $0x10f0] ss:$8 sps:$4 sm:$0xff]  }
 0x408   :  { %13916 = vmatpush1.bf16.msra.mxu0 %v18780_v35  ;;  %12769 = vmatprep.subr.bf16.mxu1 %v18785_v42  ;;  %v18864_v35 = vld [vmem:[%s26709_s1 + $0x2cf0] ss:$8 sps:$4 sm:$0xff]   ;;  %v18869_v42 = vld [vmem:[%s26709_s1 + $0x1104] ss:$8 sps:$4 sm:$0xff]  }
 0x409   :  { %13917 = vmatprep.subr.bf16.mxu0 %v18788_v57  ;;  %v18872_v57 = vld [vmem:[%s26709_s1 + $0x2d04] ss:$8 sps:$4 sm:$0xff]  }
 0x40b   :  { %12770 = vmatpush1.bf16.msra.mxu1 %v18783_v45  ;;  %v251_v45 = vcombine.high %v23766_v38, %v23766_v38 }
 0x40c   :  { %13918 = vmatpush1.bf16.msra.mxu0 %v18786_v46  ;;  %12771 = vmatprep.subr.bf16.mxu1 %v18791_v47  ;;  %v489_v46 = vcombine.high %v23769_v14, %v23769_v14  ;;  %v750_v47 = vpack.c.bf16 %v23555_v61, %v23555_v61  ;;  %v18878_v61 = vld [vmem:[%s26709_s1 + $0x2d14] ss:$8 sps:$4 sm:$0xff]  }
 0x40d   :  { %13919 = vmatprep.subr.bf16.mxu0 %v18794_v36  ;;  %v806_v36 = vpack.c.bf16 %v23559_v23, %v23559_v23  ;;  %v753_v23 = vpack.c.bf16 %v251_v45, %v251_v45  ;;  %v18953_v45 = vld [vmem:[%s26709_s1 + $0x11e4] ss:$8 sps:$4 sm:$0xff]  }
 0x40f   :  { %12772 = vmatpush1.bf16.msra.mxu1 %v18789_v21  ;;  %v18867_v21 = vld [vmem:[%s26709_s1 + $0x1100] ss:$8 sps:$4 sm:$0xff]  }
 0x410   :  { %13920 = vmatpush1.bf16.msra.mxu0 %v18792_v28  ;;  %12773 = vmatprep.subr.bf16.mxu1 %v18797_v52  ;;  %v18870_v28 = vld [vmem:[%s26709_s1 + $0x2d00] ss:$8 sps:$4 sm:$0xff]   ;;  %v18875_v52 = vld [vmem:[%s26709_s1 + $0x1114] ss:$8 sps:$4 sm:$0xff]  }
 0x411   :  { %13921 = vmatprep.subr.bf16.mxu0 %v18800_v53  ;;  %v809_v53 = vpack.c.bf16 %v489_v46, %v489_v46  ;;  %v18956_v46 = vld [vmem:[%s26709_s1 + $0x2de4] ss:$8 sps:$4 sm:$0xff]  }
 0x413   :  { %12774 = vmatpush1.bf16.msra.mxu1 %v18795_v54  ;;  %v18873_v54 = vld [vmem:[%s26709_s1 + $0x1110] ss:$8 sps:$4 sm:$0xff]  }
 0x414   :  { %13922 = vmatpush1.bf16.msra.mxu0 %v18798_v55  ;;  %12775 = vmatprep.subr.bf16.mxu1 %v18803_v15  ;;  %v18876_v55 = vld [vmem:[%s26709_s1 + $0x2d10] ss:$8 sps:$4 sm:$0xff]   ;;  %v18881_v15 = vld [vmem:[%s26709_s1 + $0x1124] ss:$8 sps:$4 sm:$0xff]  }
 0x415   :  { %13923 = vmatprep.subr.bf16.mxu0 %v18806_v40  ;;  %v18884_v40 = vld [vmem:[%s26709_s1 + $0x2d24] ss:$8 sps:$4 sm:$0xff]  }
 0x417   :  { %12776 = vmatpush1.bf16.msra.mxu1 %v18801_v29  ;;  %v18879_v29 = vld [vmem:[%s26709_s1 + $0x1120] ss:$8 sps:$4 sm:$0xff]  }
 0x418   :  { %13924 = vmatpush1.bf16.msra.mxu0 %v18804_v37  ;;  %12777 = vmatprep.subr.bf16.mxu1 %v18809_v60  ;;  %v18882_v37 = vld [vmem:[%s26709_s1 + $0x2d20] ss:$8 sps:$4 sm:$0xff]   ;;  %v18887_v60 = vld [vmem:[%s26709_s1 + $0x1134] ss:$8 sps:$4 sm:$0xff]  }
 0x419   :  { %13925 = vmatprep.subr.bf16.mxu0 %v18812_v5  ;;  %v18890_v5 = vld [vmem:[%s26709_s1 + $0x2d34] ss:$8 sps:$4 sm:$0xff]  }
 0x41b   :  { %12778 = vmatpush1.bf16.msra.mxu1 %v18807_v62  ;;  %v18885_v62 = vld [vmem:[%s26709_s1 + $0x1130] ss:$8 sps:$4 sm:$0xff]  }
 0x41c   :  { %13926 = vmatpush1.bf16.msra.mxu0 %v18810_v63  ;;  %12779 = vmatprep.subr.bf16.mxu1 %v18815_v0  ;;  %v18888_v63 = vld [vmem:[%s26709_s1 + $0x2d30] ss:$8 sps:$4 sm:$0xff]   ;;  %v18893_v0 = vld [vmem:[%s26709_s1 + $0x1144] ss:$8 sps:$4 sm:$0xff]  }
 0x41d   :  { %13927 = vmatprep.subr.bf16.mxu0 %v18818_v1  ;;  %v18896_v1 = vld [vmem:[%s26709_s1 + $0x2d44] ss:$8 sps:$4 sm:$0xff]  }
 0x41f   :  { %12780 = vmatpush1.bf16.msra.mxu1 %v18813_v41  ;;  %v18891_v41 = vld [vmem:[%s26709_s1 + $0x1140] ss:$8 sps:$4 sm:$0xff]  }
 0x420   :  { %13928 = vmatpush1.bf16.msra.mxu0 %v18816_v50  ;;  %12781 = vmatprep.subr.bf16.mxu1 %v18821_v4  ;;  %v18894_v50 = vld [vmem:[%s26709_s1 + $0x2d40] ss:$8 sps:$4 sm:$0xff]   ;;  %v18899_v4 = vld [vmem:[%s26709_s1 + $0x1154] ss:$8 sps:$4 sm:$0xff]  }
 0x421   :  { %13929 = vmatprep.subr.bf16.mxu0 %v18824_v17  ;;  %v18902_v17 = vld [vmem:[%s26709_s1 + $0x2d54] ss:$8 sps:$4 sm:$0xff]  }
 0x423   :  { %12782 = vmatpush1.bf16.msra.mxu1 %v18819_v6  ;;  %v18897_v6 = vld [vmem:[%s26709_s1 + $0x1150] ss:$8 sps:$4 sm:$0xff]  }
 0x424   :  { %13930 = vmatpush1.bf16.msra.mxu0 %v18822_v7  ;;  %12783 = vmatprep.subr.bf16.mxu1 %v18827_v8  ;;  %v18900_v7 = vld [vmem:[%s26709_s1 + $0x2d50] ss:$8 sps:$4 sm:$0xff]   ;;  %v18905_v8 = vld [vmem:[%s26709_s1 + $0x1164] ss:$8 sps:$4 sm:$0xff]  }
 0x425   :  { %13931 = vmatprep.subr.bf16.mxu0 %v18830_v51  ;;  %v18908_v51 = vld [vmem:[%s26709_s1 + $0x2d64] ss:$8 sps:$4 sm:$0xff]  }
 0x427   :  { %12784 = vmatpush1.bf16.msra.mxu1 %v18825_v48  ;;  %v18903_v48 = vld [vmem:[%s26709_s1 + $0x1160] ss:$8 sps:$4 sm:$0xff]  }
 0x428   :  { %13932 = vmatpush1.bf16.msra.mxu0 %v18828_v58  ;;  %12785 = vmatprep.subr.bf16.mxu1 %v18833_v12  ;;  %v18906_v58 = vld [vmem:[%s26709_s1 + $0x2d60] ss:$8 sps:$4 sm:$0xff]   ;;  %v18911_v12 = vld [vmem:[%s26709_s1 + $0x1174] ss:$8 sps:$4 sm:$0xff]  }
 0x429   :  { %13933 = vmatprep.subr.bf16.mxu0 %v18836_v13  ;;  %v18914_v13 = vld [vmem:[%s26709_s1 + $0x2d74] ss:$8 sps:$4 sm:$0xff]  }
 0x42b   :  { %12786 = vmatpush1.bf16.msra.mxu1 %v18831_v16  ;;  %v18909_v16 = vld [vmem:[%s26709_s1 + $0x1170] ss:$8 sps:$4 sm:$0xff]  }
 0x42c   :  { %13934 = vmatpush1.bf16.msra.mxu0 %v18834_v56  ;;  %12787 = vmatprep.subr.bf16.mxu1 %v18839_v18  ;;  %v18912_v56 = vld [vmem:[%s26709_s1 + $0x2d70] ss:$8 sps:$4 sm:$0xff]   ;;  %v18917_v18 = vld [vmem:[%s26709_s1 + $0x1184] ss:$8 sps:$4 sm:$0xff]  }
 0x42d   :  { %13935 = vmatprep.subr.bf16.mxu0 %v18842_v19  ;;  %v18920_v19 = vld [vmem:[%s26709_s1 + $0x2d84] ss:$8 sps:$4 sm:$0xff]  }
 0x42f   :  { %12788 = vmatpush1.bf16.msra.mxu1 %v18837_v59  ;;  %v18915_v59 = vld [vmem:[%s26709_s1 + $0x1180] ss:$8 sps:$4 sm:$0xff]  }
 0x430   :  { %13936 = vmatpush1.bf16.msra.mxu0 %v18840_v2  ;;  %12789 = vmatprep.subr.bf16.mxu1 %v18845_v22  ;;  %v18918_v2 = vld [vmem:[%s26709_s1 + $0x2d80] ss:$8 sps:$4 sm:$0xff]   ;;  %v18923_v22 = vld [vmem:[%s26709_s1 + $0x1194] ss:$8 sps:$4 sm:$0xff]  }
 0x431   :  { %13937 = vmatprep.subr.bf16.mxu0 %v18848_v31  ;;  %v18926_v31 = vld [vmem:[%s26709_s1 + $0x2d94] ss:$8 sps:$4 sm:$0xff]  }
 0x433   :  { %12790 = vmatpush1.bf16.msra.mxu1 %v18843_v24  ;;  %v18921_v24 = vld [vmem:[%s26709_s1 + $0x1190] ss:$8 sps:$4 sm:$0xff]  }
 0x434   :  { %13938 = vmatpush1.bf16.msra.mxu0 %v18846_v25  ;;  %12791 = vmatprep.subr.bf16.mxu1 %v18851_v26  ;;  %v18924_v25 = vld [vmem:[%s26709_s1 + $0x2d90] ss:$8 sps:$4 sm:$0xff]   ;;  %v18929_v26 = vld [vmem:[%s26709_s1 + $0x11a4] ss:$8 sps:$4 sm:$0xff]  }
 0x435   :  { %13939 = vmatprep.subr.bf16.mxu0 %v18854_v27  ;;  %v18932_v27 = vld [vmem:[%s26709_s1 + $0x2da4] ss:$8 sps:$4 sm:$0xff]  }
 0x437   :  { %12792 = vmatpush1.bf16.msra.mxu1 %v18849_v3  ;;  %v18927_v3 = vld [vmem:[%s26709_s1 + $0x11a0] ss:$8 sps:$4 sm:$0xff]  }
 0x438   :  { %13940 = vmatpush1.bf16.msra.mxu0 %v18852_v10  ;;  %12793 = vmatprep.subr.bf16.mxu1 %v18857_v30  ;;  %v18930_v10 = vld [vmem:[%s26709_s1 + $0x2da0] ss:$8 sps:$4 sm:$0xff]   ;;  %v18935_v30 = vld [vmem:[%s26709_s1 + $0x11b4] ss:$8 sps:$4 sm:$0xff]  }
 0x439   :  { %13941 = vmatprep.subr.bf16.mxu0 %v18860_v44  ;;  %v18938_v44 = vld [vmem:[%s26709_s1 + $0x2db4] ss:$8 sps:$4 sm:$0xff]  }
 0x43b   :  { %12794 = vmatpush1.bf16.msra.mxu1 %v18855_v34  ;;  %v18941_v34 = vld [vmem:[%s26709_s1 + $0x11c4] ss:$8 sps:$4 sm:$0xff]  }
 0x43c   :  { %13942 = vmatpush1.bf16.msra.mxu0 %v18858_v11  ;;  %12795 = vmatprep.subr.bf16.mxu1 %v18863_v9  ;;  %v18944_v11 = vld [vmem:[%s26709_s1 + $0x2dc4] ss:$8 sps:$4 sm:$0xff]   ;;  %v18939_v9 = vld [vmem:[%s26709_s1 + $0x11c0] ss:$8 sps:$4 sm:$0xff]  }
 0x43d   :  { %13943 = vmatprep.subr.bf16.mxu0 %v18866_v20  ;;  %v18942_v20 = vld [vmem:[%s26709_s1 + $0x2dc0] ss:$8 sps:$4 sm:$0xff]  }
 0x43f   :  { %12796 = vmatpush1.bf16.msra.mxu1 %v18861_v39  ;;  %v18947_v39 = vld [vmem:[%s26709_s1 + $0x11d4] ss:$8 sps:$4 sm:$0xff]  }
 0x440   :  { %13944 = vmatpush1.bf16.msra.mxu0 %v18864_v35  ;;  %12806 = vmatprep.subr.bf16.mxu1 %v18869_v42  ;;  %v18950_v35 = vld [vmem:[%s26709_s1 + $0x2dd4] ss:$8 sps:$4 sm:$0xff]   ;;  %v18945_v42 = vld [vmem:[%s26709_s1 + $0x11d0] ss:$8 sps:$4 sm:$0xff]  }
 0x441   :  { %13954 = vmatprep.subr.bf16.mxu0 %v18872_v57  ;;  %v18948_v57 = vld [vmem:[%s26709_s1 + $0x2dd0] ss:$8 sps:$4 sm:$0xff]  }
 0x442   :  { %12798 = vmatmul.mubr.bf16.vlgmr.msra.gmra.mrb[0].mxu1 %v750_v47  ;;  %v23962_v47 = vld [vmem:[%s26710_s0 + $0x48] sm:$0xff] }
 0x443   :  { %13946 = vmatmul.mubr.bf16.vlgmr.msra.gmra.mrb[0].mxu0 %v806_v36  ;;  %12807 = vmatpush1.bf16.msra.mxu1 %v18867_v21  ;;  %v23967_v36 = vld [vmem:[%s26710_s0 + $0xb8] sm:$0xff]  ;;  %v18951_v21 = vld [vmem:[%s26709_s1 + $0x11e0] ss:$8 sps:$4 sm:$0xff]  }
 0x444   :  { %13955 = vmatpush1.bf16.msra.mxu0 %v18870_v28  ;;  %12808 = vmatprep.subr.bf16.mxu1 %v18875_v52  ;;  %v18954_v28 = vld [vmem:[%s26709_s1 + $0x2de0] ss:$8 sps:$4 sm:$0xff]   ;;  %v18959_v52 = vld [vmem:[%s26709_s1 + $0x11f4] ss:$8 sps:$4 sm:$0xff]  }
 0x445   :  { %13956 = vmatprep.subr.bf16.mxu0 %v18878_v61  ;;  %12838 = vmatprep.mubr.bf16.mxu1 %v753_v23  ;;  %v18962_v61 = vld [vmem:[%s26709_s1 + $0x2df4] ss:$8 sps:$4 sm:$0xff]   ;;  %v23983_v23 = vrot.slane %v23962_v47, %v20275_v49 }
 0x446   :  { %13986 = vmatprep.mubr.bf16.mxu0 %v809_v53  ;;  %v23987_v53 = vrot.slane %v23967_v36, %v20275_v49 }
 0x447   :  { %12809 = vmatpush1.bf16.msra.mxu1 %v18873_v54  ;;  %v18957_v54 = vld [vmem:[%s26709_s1 + $0x11f0] ss:$8 sps:$4 sm:$0xff]  }
 0x448   :  { %13957 = vmatpush1.bf16.msra.mxu0 %v18876_v55  ;;  %12810 = vmatprep.subr.bf16.mxu1 %v18881_v15  ;;  %v18960_v55 = vld [vmem:[%s26709_s1 + $0x2df0] ss:$8 sps:$4 sm:$0xff]   ;;  %v18966_v15 = vld [vmem:[%s26709_s1 + $0x1204] ss:$8 sps:$4 sm:$0xff]  }
 0x449   :  { %13958 = vmatprep.subr.bf16.mxu0 %v18884_v40  ;;  %v18970_v40 = vld [vmem:[%s26709_s1 + $0x2e04] ss:$8 sps:$4 sm:$0xff]  }
 0x44b   :  { %12811 = vmatpush1.bf16.msra.mxu1 %v18879_v29  ;;  %v267_v29 = vcombine.high %v23983_v23, %v23983_v23 }
 0x44c   :  { %13959 = vmatpush1.bf16.msra.mxu0 %v18882_v37  ;;  %12812 = vmatprep.subr.bf16.mxu1 %v18887_v60  ;;  %v505_v37 = vcombine.high %v23987_v53, %v23987_v53  ;;  %v752_v60 = vpack.c.bf16 %v23766_v38, %v23766_v38  ;;  %v18976_v38 = vld [vmem:[%s26709_s1 + $0x2e14] ss:$8 sps:$4 sm:$0xff]  }
 0x44d   :  { %13960 = vmatprep.subr.bf16.mxu0 %v18890_v5  ;;  %v808_v5 = vpack.c.bf16 %v23769_v14, %v23769_v14  ;;  %v755_v14 = vpack.c.bf16 %v267_v29, %v267_v29  ;;  %v19043_v29 = vld [vmem:[%s26709_s1 + $0x12d0] ss:$8 sps:$4 sm:$0xff]  }
 0x44f   :  { %12813 = vmatpush1.bf16.msra.mxu1 %v18885_v62  ;;  %v18964_v62 = vld [vmem:[%s26709_s1 + $0x1200] ss:$8 sps:$4 sm:$0xff]  }
 0x450   :  { %13961 = vmatpush1.bf16.msra.mxu0 %v18888_v63  ;;  %12814 = vmatprep.subr.bf16.mxu1 %v18893_v0  ;;  %v18968_v63 = vld [vmem:[%s26709_s1 + $0x2e00] ss:$8 sps:$4 sm:$0xff]   ;;  %v18973_v0 = vld [vmem:[%s26709_s1 + $0x1214] ss:$8 sps:$4 sm:$0xff]  }
 0x451   :  { %13962 = vmatprep.subr.bf16.mxu0 %v18896_v1  ;;  %v811_v1 = vpack.c.bf16 %v505_v37, %v505_v37  ;;  %v19046_v37 = vld [vmem:[%s26709_s1 + $0x2ed0] ss:$8 sps:$4 sm:$0xff]  }
 0x453   :  { %12815 = vmatpush1.bf16.msra.mxu1 %v18891_v41  ;;  %v18971_v41 = vld [vmem:[%s26709_s1 + $0x1210] ss:$8 sps:$4 sm:$0xff]  }
 0x454   :  { %13963 = vmatpush1.bf16.msra.mxu0 %v18894_v50  ;;  %12816 = vmatprep.subr.bf16.mxu1 %v18899_v4  ;;  %v18974_v50 = vld [vmem:[%s26709_s1 + $0x2e10] ss:$8 sps:$4 sm:$0xff]   ;;  %v18979_v4 = vld [vmem:[%s26709_s1 + $0x1224] ss:$8 sps:$4 sm:$0xff]  }
 0x455   :  { %13964 = vmatprep.subr.bf16.mxu0 %v18902_v17  ;;  %v18982_v17 = vld [vmem:[%s26709_s1 + $0x2e24] ss:$8 sps:$4 sm:$0xff]  }
 0x457   :  { %12817 = vmatpush1.bf16.msra.mxu1 %v18897_v6  ;;  %v18977_v6 = vld [vmem:[%s26709_s1 + $0x1220] ss:$8 sps:$4 sm:$0xff]  }
 0x458   :  { %13965 = vmatpush1.bf16.msra.mxu0 %v18900_v7  ;;  %12818 = vmatprep.subr.bf16.mxu1 %v18905_v8  ;;  %v18980_v7 = vld [vmem:[%s26709_s1 + $0x2e20] ss:$8 sps:$4 sm:$0xff]   ;;  %v18985_v8 = vld [vmem:[%s26709_s1 + $0x1234] ss:$8 sps:$4 sm:$0xff]  }
 0x459   :  { %13966 = vmatprep.subr.bf16.mxu0 %v18908_v51  ;;  %v18988_v51 = vld [vmem:[%s26709_s1 + $0x2e34] ss:$8 sps:$4 sm:$0xff]  }
 0x45b   :  { %12819 = vmatpush1.bf16.msra.mxu1 %v18903_v48  ;;  %v18983_v48 = vld [vmem:[%s26709_s1 + $0x1230] ss:$8 sps:$4 sm:$0xff]  }
 0x45c   :  { %13967 = vmatpush1.bf16.msra.mxu0 %v18906_v58  ;;  %12820 = vmatprep.subr.bf16.mxu1 %v18911_v12  ;;  %v18986_v58 = vld [vmem:[%s26709_s1 + $0x2e30] ss:$8 sps:$4 sm:$0xff]   ;;  %v18991_v12 = vld [vmem:[%s26709_s1 + $0x1244] ss:$8 sps:$4 sm:$0xff]  }
 0x45d   :  { %13968 = vmatprep.subr.bf16.mxu0 %v18914_v13  ;;  %v18994_v13 = vld [vmem:[%s26709_s1 + $0x2e44] ss:$8 sps:$4 sm:$0xff]  }
 0x45f   :  { %12821 = vmatpush1.bf16.msra.mxu1 %v18909_v16  ;;  %v18989_v16 = vld [vmem:[%s26709_s1 + $0x1240] ss:$8 sps:$4 sm:$0xff]  }
 0x460   :  { %13969 = vmatpush1.bf16.msra.mxu0 %v18912_v56  ;;  %12822 = vmatprep.subr.bf16.mxu1 %v18917_v18  ;;  %v18992_v56 = vld [vmem:[%s26709_s1 + $0x2e40] ss:$8 sps:$4 sm:$0xff]   ;;  %v18997_v18 = vld [vmem:[%s26709_s1 + $0x1254] ss:$8 sps:$4 sm:$0xff]  }
 0x461   :  { %13970 = vmatprep.subr.bf16.mxu0 %v18920_v19  ;;  %v19000_v19 = vld [vmem:[%s26709_s1 + $0x2e54] ss:$8 sps:$4 sm:$0xff]  }
 0x463   :  { %12823 = vmatpush1.bf16.msra.mxu1 %v18915_v59  ;;  %v18995_v59 = vld [vmem:[%s26709_s1 + $0x1250] ss:$8 sps:$4 sm:$0xff]  }
 0x464   :  { %13971 = vmatpush1.bf16.msra.mxu0 %v18918_v2  ;;  %12824 = vmatprep.subr.bf16.mxu1 %v18923_v22  ;;  %v18998_v2 = vld [vmem:[%s26709_s1 + $0x2e50] ss:$8 sps:$4 sm:$0xff]   ;;  %v19003_v22 = vld [vmem:[%s26709_s1 + $0x1264] ss:$8 sps:$4 sm:$0xff]  }
 0x465   :  { %13972 = vmatprep.subr.bf16.mxu0 %v18926_v31  ;;  %v19006_v31 = vld [vmem:[%s26709_s1 + $0x2e64] ss:$8 sps:$4 sm:$0xff]  }
 0x467   :  { %12825 = vmatpush1.bf16.msra.mxu1 %v18921_v24  ;;  %v19001_v24 = vld [vmem:[%s26709_s1 + $0x1260] ss:$8 sps:$4 sm:$0xff]  }
 0x468   :  { %13973 = vmatpush1.bf16.msra.mxu0 %v18924_v25  ;;  %12826 = vmatprep.subr.bf16.mxu1 %v18929_v26  ;;  %v19004_v25 = vld [vmem:[%s26709_s1 + $0x2e60] ss:$8 sps:$4 sm:$0xff]   ;;  %v19009_v26 = vld [vmem:[%s26709_s1 + $0x1274] ss:$8 sps:$4 sm:$0xff]  }
 0x469   :  { %13974 = vmatprep.subr.bf16.mxu0 %v18932_v27  ;;  %v19012_v27 = vld [vmem:[%s26709_s1 + $0x2e74] ss:$8 sps:$4 sm:$0xff]  }
 0x46b   :  { %12827 = vmatpush1.bf16.msra.mxu1 %v18927_v3  ;;  %v19007_v3 = vld [vmem:[%s26709_s1 + $0x1270] ss:$8 sps:$4 sm:$0xff]  }
 0x46c   :  { %13975 = vmatpush1.bf16.msra.mxu0 %v18930_v10  ;;  %12828 = vmatprep.subr.bf16.mxu1 %v18935_v30  ;;  %v19010_v10 = vld [vmem:[%s26709_s1 + $0x2e70] ss:$8 sps:$4 sm:$0xff]   ;;  %v19015_v30 = vld [vmem:[%s26709_s1 + $0x1284] ss:$8 sps:$4 sm:$0xff]  }
 0x46d   :  { %13976 = vmatprep.subr.bf16.mxu0 %v18938_v44  ;;  %v19018_v44 = vld [vmem:[%s26709_s1 + $0x2e84] ss:$8 sps:$4 sm:$0xff]  }
 0x46f   :  { %12829 = vmatpush1.bf16.msra.mxu1 %v18933_v32  ;;  %v19013_v32 = vld [vmem:[%s26709_s1 + $0x1280] ss:$8 sps:$4 sm:$0xff]  }
 0x470   :  { %13977 = vmatpush1.bf16.msra.mxu0 %v18936_v33  ;;  %12830 = vmatprep.subr.bf16.mxu1 %v18941_v34  ;;  %v19016_v33 = vld [vmem:[%s26709_s1 + $0x2e80] ss:$8 sps:$4 sm:$0xff]   ;;  %v19021_v34 = vld [vmem:[%s26709_s1 + $0x1294] ss:$8 sps:$4 sm:$0xff]  }
 0x471   :  { %13978 = vmatprep.subr.bf16.mxu0 %v18944_v11  ;;  %v19024_v11 = vld [vmem:[%s26709_s1 + $0x2e94] ss:$8 sps:$4 sm:$0xff]  }
 0x473   :  { %12831 = vmatpush1.bf16.msra.mxu1 %v18939_v9  ;;  %v19019_v9 = vld [vmem:[%s26709_s1 + $0x1290] ss:$8 sps:$4 sm:$0xff]  }
 0x474   :  { %13979 = vmatpush1.bf16.msra.mxu0 %v18942_v20  ;;  %12832 = vmatprep.subr.bf16.mxu1 %v18947_v39  ;;  %v19022_v20 = vld [vmem:[%s26709_s1 + $0x2e90] ss:$8 sps:$4 sm:$0xff]   ;;  %v19027_v39 = vld [vmem:[%s26709_s1 + $0x12a4] ss:$8 sps:$4 sm:$0xff]  }
 0x475   :  { %13980 = vmatprep.subr.bf16.mxu0 %v18950_v35  ;;  %v19030_v35 = vld [vmem:[%s26709_s1 + $0x2ea4] ss:$8 sps:$4 sm:$0xff]  }
 0x477   :  { %12833 = vmatpush1.bf16.msra.mxu1 %v18945_v42  ;;  %v19025_v42 = vld [vmem:[%s26709_s1 + $0x12a0] ss:$8 sps:$4 sm:$0xff]  }
 0x478   :  { %13981 = vmatpush1.bf16.msra.mxu0 %v18948_v57  ;;  %12834 = vmatprep.subr.bf16.mxu1 %v18953_v45  ;;  %v19028_v57 = vld [vmem:[%s26709_s1 + $0x2ea0] ss:$8 sps:$4 sm:$0xff]   ;;  %v19033_v45 = vld [vmem:[%s26709_s1 + $0x12b4] ss:$8 sps:$4 sm:$0xff]  }
 0x479   :  { %13982 = vmatprep.subr.bf16.mxu0 %v18956_v46  ;;  %v19036_v46 = vld [vmem:[%s26709_s1 + $0x2eb4] ss:$8 sps:$4 sm:$0xff]  }
 0x47b   :  { %12835 = vmatpush1.bf16.msra.mxu1 %v18951_v21  ;;  %v19031_v21 = vld [vmem:[%s26709_s1 + $0x12b0] ss:$8 sps:$4 sm:$0xff]  }
 0x47c   :  { %13983 = vmatpush1.bf16.msra.mxu0 %v18954_v28  ;;  %12836 = vmatprep.subr.bf16.mxu1 %v18959_v52  ;;  %v19034_v28 = vld [vmem:[%s26709_s1 + $0x2eb0] ss:$8 sps:$4 sm:$0xff]   ;;  %v19039_v52 = vld [vmem:[%s26709_s1 + $0x12c4] ss:$8 sps:$4 sm:$0xff]  }
 0x47d   :  { %13984 = vmatprep.subr.bf16.mxu0 %v18962_v61  ;;  %v19042_v61 = vld [vmem:[%s26709_s1 + $0x2ec4] ss:$8 sps:$4 sm:$0xff]  }
 0x47f   :  { %12837 = vmatpush1.bf16.msra.mxu1 %v18957_v54  ;;  %v19037_v54 = vld [vmem:[%s26709_s1 + $0x12c0] ss:$8 sps:$4 sm:$0xff]  }
 0x480   :  { %13985 = vmatpush1.bf16.msra.mxu0 %v18960_v55  ;;  %12847 = vmatprep.subr.bf16.mxu1 %v18966_v15  ;;  %v19040_v55 = vld [vmem:[%s26709_s1 + $0x2ec0] ss:$8 sps:$4 sm:$0xff]   ;;  %v19045_v15 = vld [vmem:[%s26709_s1 + $0x12d4] ss:$8 sps:$4 sm:$0xff]  }
 0x481   :  { %13995 = vmatprep.subr.bf16.mxu0 %v18970_v40  ;;  %v19048_v40 = vld [vmem:[%s26709_s1 + $0x2ed4] ss:$8 sps:$4 sm:$0xff]  }
 0x482   :  { %12839 = vmatmul.mubr.bf16.vlgmr.msra.gmra.mrb[0].mxu1 %v752_v60  ;;  %v19051_v60 = vld [vmem:[%s26709_s1 + $0x12e4] ss:$8 sps:$4 sm:$0xff]  }
 0x483   :  { %13987 = vmatmul.mubr.bf16.vlgmr.msra.gmra.mrb[0].mxu0 %v808_v5  ;;  %12848 = vmatpush1.bf16.msra.mxu1 %v18964_v62  ;;  %v19054_v5 = vld [vmem:[%s26709_s1 + $0x2ee4] ss:$8 sps:$4 sm:$0xff]   ;;  %v252_v62 = vcombine.high %v23962_v47, %v23962_v47  ;;  %v19060_v47 = vld [vmem:[%s26709_s1 + $0x2ef4] ss:$8 sps:$4 sm:$0xff]  }
 0x484   :  { %13996 = vmatpush1.bf16.msra.mxu0 %v18968_v63  ;;  %12849 = vmatprep.subr.bf16.mxu1 %v18973_v0  ;;  %v490_v63 = vcombine.high %v23967_v36, %v23967_v36  ;;  %v19049_v0 = vld [vmem:[%s26709_s1 + $0x12e0] ss:$8 sps:$4 sm:$0xff]  }
 0x485   :  { %13997 = vmatprep.subr.bf16.mxu0 %v18976_v38  ;;  %12879 = vmatprep.mubr.bf16.mxu1 %v755_v14  ;;  %v19052_v38 = vld [vmem:[%s26709_s1 + $0x2ee0] ss:$8 sps:$4 sm:$0xff]   ;;  %v19057_v14 = vld [vmem:[%s26709_s1 + $0x12f4] ss:$8 sps:$4 sm:$0xff]   ;;  %v24194_v36 = vrot.slane %v252_v62, %v20275_v49  ;;  %v19127_v62 = vld [vmem:[%s26709_s1 + $0x13b0] ss:$8 sps:$4 sm:$0xff]  }
 0x486   :  { %14027 = vmatprep.mubr.bf16.mxu0 %v811_v1  ;;  %v24197_v1 = vrot.slane %v490_v63, %v20275_v49  ;;  %v19130_v63 = vld [vmem:[%s26709_s1 + $0x2fb0] ss:$8 sps:$4 sm:$0xff]  }
 0x487   :  { %12850 = vmatpush1.bf16.msra.mxu1 %v18971_v41  ;;  %v19055_v41 = vld [vmem:[%s26709_s1 + $0x12f0] ss:$8 sps:$4 sm:$0xff]  }
 0x488   :  { %13998 = vmatpush1.bf16.msra.mxu0 %v18974_v50  ;;  %12851 = vmatprep.subr.bf16.mxu1 %v18979_v4  ;;  %v19058_v50 = vld [vmem:[%s26709_s1 + $0x2ef0] ss:$8 sps:$4 sm:$0xff]   ;;  %v19063_v4 = vld [vmem:[%s26709_s1 + $0x1304] ss:$8 sps:$4 sm:$0xff]  }
 0x489   :  { %13999 = vmatprep.subr.bf16.mxu0 %v18982_v17  ;;  %v19066_v17 = vld [vmem:[%s26709_s1 + $0x2f04] ss:$8 sps:$4 sm:$0xff]  }
 0x48b   :  { %12852 = vmatpush1.bf16.msra.mxu1 %v18977_v6  ;;  %v268_v6 = vcombine.high %v24194_v36, %v24194_v36 }
 0x48c   :  { %14000 = vmatpush1.bf16.msra.mxu0 %v18980_v7  ;;  %12853 = vmatprep.subr.bf16.mxu1 %v18985_v8  ;;  %v506_v7 = vcombine.high %v24197_v1, %v24197_v1  ;;  %v754_v8 = vpack.c.bf16 %v23983_v23, %v23983_v23  ;;  %v19072_v23 = vld [vmem:[%s26709_s1 + $0x2f14] ss:$8 sps:$4 sm:$0xff]  }
 0x48d   :  { %14001 = vmatprep.subr.bf16.mxu0 %v18988_v51  ;;  %v810_v51 = vpack.c.bf16 %v23987_v53, %v23987_v53  ;;  %v757_v53 = vpack.c.bf16 %v268_v6, %v268_v6  ;;  %v19147_v6 = vld [vmem:[%s26709_s1 + $0x13e4] ss:$8 sps:$4 sm:$0xff]  }
 0x48f   :  { %12854 = vmatpush1.bf16.msra.mxu1 %v18983_v48  ;;  %v19061_v48 = vld [vmem:[%s26709_s1 + $0x1300] ss:$8 sps:$4 sm:$0xff]  }
 0x490   :  { %14002 = vmatpush1.bf16.msra.mxu0 %v18986_v58  ;;  %12855 = vmatprep.subr.bf16.mxu1 %v18991_v12  ;;  %v19064_v58 = vld [vmem:[%s26709_s1 + $0x2f00] ss:$8 sps:$4 sm:$0xff]   ;;  %v19069_v12 = vld [vmem:[%s26709_s1 + $0x1314] ss:$8 sps:$4 sm:$0xff]  }
 0x491   :  { %14003 = vmatprep.subr.bf16.mxu0 %v18994_v13  ;;  %v813_v13 = vpack.c.bf16 %v506_v7, %v506_v7  ;;  %v19150_v7 = vld [vmem:[%s26709_s1 + $0x2fe4] ss:$8 sps:$4 sm:$0xff]  }
 0x493   :  { %12856 = vmatpush1.bf16.msra.mxu1 %v18989_v16  ;;  %v19067_v16 = vld [vmem:[%s26709_s1 + $0x1310] ss:$8 sps:$4 sm:$0xff]  }
 0x494   :  { %14004 = vmatpush1.bf16.msra.mxu0 %v18992_v56  ;;  %12857 = vmatprep.subr.bf16.mxu1 %v18997_v18  ;;  %v19070_v56 = vld [vmem:[%s26709_s1 + $0x2f10] ss:$8 sps:$4 sm:$0xff]   ;;  %v19075_v18 = vld [vmem:[%s26709_s1 + $0x1324] ss:$8 sps:$4 sm:$0xff]  }
 0x495   :  { %14005 = vmatprep.subr.bf16.mxu0 %v19000_v19  ;;  %v19078_v19 = vld [vmem:[%s26709_s1 + $0x2f24] ss:$8 sps:$4 sm:$0xff]  }
 0x497   :  { %12858 = vmatpush1.bf16.msra.mxu1 %v18995_v59  ;;  %v19073_v59 = vld [vmem:[%s26709_s1 + $0x1320] ss:$8 sps:$4 sm:$0xff]  }
 0x498   :  { %14006 = vmatpush1.bf16.msra.mxu0 %v18998_v2  ;;  %12859 = vmatprep.subr.bf16.mxu1 %v19003_v22  ;;  %v19076_v2 = vld [vmem:[%s26709_s1 + $0x2f20] ss:$8 sps:$4 sm:$0xff]   ;;  %v19081_v22 = vld [vmem:[%s26709_s1 + $0x1334] ss:$8 sps:$4 sm:$0xff]  }
 0x499   :  { %14007 = vmatprep.subr.bf16.mxu0 %v19006_v31  ;;  %v19084_v31 = vld [vmem:[%s26709_s1 + $0x2f34] ss:$8 sps:$4 sm:$0xff]  }
 0x49b   :  { %12860 = vmatpush1.bf16.msra.mxu1 %v19001_v24  ;;  %v19079_v24 = vld [vmem:[%s26709_s1 + $0x1330] ss:$8 sps:$4 sm:$0xff]  }
 0x49c   :  { %14008 = vmatpush1.bf16.msra.mxu0 %v19004_v25  ;;  %12861 = vmatprep.subr.bf16.mxu1 %v19009_v26  ;;  %v19082_v25 = vld [vmem:[%s26709_s1 + $0x2f30] ss:$8 sps:$4 sm:$0xff]   ;;  %v19087_v26 = vld [vmem:[%s26709_s1 + $0x1344] ss:$8 sps:$4 sm:$0xff]  }
 0x49d   :  { %14009 = vmatprep.subr.bf16.mxu0 %v19012_v27  ;;  %v19090_v27 = vld [vmem:[%s26709_s1 + $0x2f44] ss:$8 sps:$4 sm:$0xff]  }
 0x49f   :  { %12862 = vmatpush1.bf16.msra.mxu1 %v19007_v3  ;;  %v19085_v3 = vld [vmem:[%s26709_s1 + $0x1340] ss:$8 sps:$4 sm:$0xff]  }
 0x4a0   :  { %14010 = vmatpush1.bf16.msra.mxu0 %v19010_v10  ;;  %12863 = vmatprep.subr.bf16.mxu1 %v19015_v30  ;;  %v19088_v10 = vld [vmem:[%s26709_s1 + $0x2f40] ss:$8 sps:$4 sm:$0xff]   ;;  %v19093_v30 = vld [vmem:[%s26709_s1 + $0x1354] ss:$8 sps:$4 sm:$0xff]  }
 0x4a1   :  { %14011 = vmatprep.subr.bf16.mxu0 %v19018_v44  ;;  %v19096_v44 = vld [vmem:[%s26709_s1 + $0x2f54] ss:$8 sps:$4 sm:$0xff]  }
 0x4a3   :  { %12864 = vmatpush1.bf16.msra.mxu1 %v19013_v32  ;;  %v19091_v32 = vld [vmem:[%s26709_s1 + $0x1350] ss:$8 sps:$4 sm:$0xff]  }
 0x4a4   :  { %14012 = vmatpush1.bf16.msra.mxu0 %v19016_v33  ;;  %12865 = vmatprep.subr.bf16.mxu1 %v19021_v34  ;;  %v19094_v33 = vld [vmem:[%s26709_s1 + $0x2f50] ss:$8 sps:$4 sm:$0xff]   ;;  %v19099_v34 = vld [vmem:[%s26709_s1 + $0x1364] ss:$8 sps:$4 sm:$0xff]  }
 0x4a5   :  { %14013 = vmatprep.subr.bf16.mxu0 %v19024_v11  ;;  %v19102_v11 = vld [vmem:[%s26709_s1 + $0x2f64] ss:$8 sps:$4 sm:$0xff]  }
 0x4a7   :  { %12866 = vmatpush1.bf16.msra.mxu1 %v19019_v9  ;;  %v19097_v9 = vld [vmem:[%s26709_s1 + $0x1360] ss:$8 sps:$4 sm:$0xff]  }
 0x4a8   :  { %14014 = vmatpush1.bf16.msra.mxu0 %v19022_v20  ;;  %12867 = vmatprep.subr.bf16.mxu1 %v19027_v39  ;;  %v19100_v20 = vld [vmem:[%s26709_s1 + $0x2f60] ss:$8 sps:$4 sm:$0xff]   ;;  %v19105_v39 = vld [vmem:[%s26709_s1 + $0x1374] ss:$8 sps:$4 sm:$0xff]  }
 0x4a9   :  { %14015 = vmatprep.subr.bf16.mxu0 %v19030_v35  ;;  %v19108_v35 = vld [vmem:[%s26709_s1 + $0x2f74] ss:$8 sps:$4 sm:$0xff]  }
 0x4ab   :  { %12868 = vmatpush1.bf16.msra.mxu1 %v19025_v42  ;;  %v19103_v42 = vld [vmem:[%s26709_s1 + $0x1370] ss:$8 sps:$4 sm:$0xff]  }
 0x4ac   :  { %14016 = vmatpush1.bf16.msra.mxu0 %v19028_v57  ;;  %12869 = vmatprep.subr.bf16.mxu1 %v19033_v45  ;;  %v19106_v57 = vld [vmem:[%s26709_s1 + $0x2f70] ss:$8 sps:$4 sm:$0xff]   ;;  %v19111_v45 = vld [vmem:[%s26709_s1 + $0x1384] ss:$8 sps:$4 sm:$0xff]  }
 0x4ad   :  { %14017 = vmatprep.subr.bf16.mxu0 %v19036_v46  ;;  %v19114_v46 = vld [vmem:[%s26709_s1 + $0x2f84] ss:$8 sps:$4 sm:$0xff]  }
 0x4af   :  { %12870 = vmatpush1.bf16.msra.mxu1 %v19031_v21  ;;  %v19109_v21 = vld [vmem:[%s26709_s1 + $0x1380] ss:$8 sps:$4 sm:$0xff]  }
 0x4b0   :  { %14018 = vmatpush1.bf16.msra.mxu0 %v19034_v28  ;;  %12871 = vmatprep.subr.bf16.mxu1 %v19039_v52  ;;  %v19112_v28 = vld [vmem:[%s26709_s1 + $0x2f80] ss:$8 sps:$4 sm:$0xff]   ;;  %v19117_v52 = vld [vmem:[%s26709_s1 + $0x1394] ss:$8 sps:$4 sm:$0xff]  }
 0x4b1   :  { %14019 = vmatprep.subr.bf16.mxu0 %v19042_v61  ;;  %v19120_v61 = vld [vmem:[%s26709_s1 + $0x2f94] ss:$8 sps:$4 sm:$0xff]  }
 0x4b3   :  { %12872 = vmatpush1.bf16.msra.mxu1 %v19037_v54  ;;  %v19115_v54 = vld [vmem:[%s26709_s1 + $0x1390] ss:$8 sps:$4 sm:$0xff]  }
 0x4b4   :  { %14020 = vmatpush1.bf16.msra.mxu0 %v19040_v55  ;;  %12873 = vmatprep.subr.bf16.mxu1 %v19045_v15  ;;  %v19118_v55 = vld [vmem:[%s26709_s1 + $0x2f90] ss:$8 sps:$4 sm:$0xff]   ;;  %v19123_v15 = vld [vmem:[%s26709_s1 + $0x13a4] ss:$8 sps:$4 sm:$0xff]  }
 0x4b5   :  { %14021 = vmatprep.subr.bf16.mxu0 %v19048_v40  ;;  %v19126_v40 = vld [vmem:[%s26709_s1 + $0x2fa4] ss:$8 sps:$4 sm:$0xff]  }
 0x4b7   :  { %12874 = vmatpush1.bf16.msra.mxu1 %v19043_v29  ;;  %v19121_v29 = vld [vmem:[%s26709_s1 + $0x13a0] ss:$8 sps:$4 sm:$0xff]  }
 0x4b8   :  { %14022 = vmatpush1.bf16.msra.mxu0 %v19046_v37  ;;  %12875 = vmatprep.subr.bf16.mxu1 %v19051_v60  ;;  %v19124_v37 = vld [vmem:[%s26709_s1 + $0x2fa0] ss:$8 sps:$4 sm:$0xff]   ;;  %v19129_v60 = vld [vmem:[%s26709_s1 + $0x13b4] ss:$8 sps:$4 sm:$0xff]  }
 0x4b9   :  { %14023 = vmatprep.subr.bf16.mxu0 %v19054_v5  ;;  %v19132_v5 = vld [vmem:[%s26709_s1 + $0x2fb4] ss:$8 sps:$4 sm:$0xff]  }
 0x4bb   :  { %12876 = vmatpush1.bf16.msra.mxu1 %v19049_v0  ;;  %v19135_v0 = vld [vmem:[%s26709_s1 + $0x13c4] ss:$8 sps:$4 sm:$0xff]  }
 0x4bc   :  { %14024 = vmatpush1.bf16.msra.mxu0 %v19052_v38  ;;  %12877 = vmatprep.subr.bf16.mxu1 %v19057_v14  ;;  %v19138_v38 = vld [vmem:[%s26709_s1 + $0x2fc4] ss:$8 sps:$4 sm:$0xff]   ;;  %v19133_v14 = vld [vmem:[%s26709_s1 + $0x13c0] ss:$8 sps:$4 sm:$0xff]  }
 0x4bd   :  { %14025 = vmatprep.subr.bf16.mxu0 %v19060_v47  ;;  %v19136_v47 = vld [vmem:[%s26709_s1 + $0x2fc0] ss:$8 sps:$4 sm:$0xff]  }
 0x4bf   :  { %12878 = vmatpush1.bf16.msra.mxu1 %v19055_v41  ;;  %v19141_v41 = vld [vmem:[%s26709_s1 + $0x13d4] ss:$8 sps:$4 sm:$0xff]  }
 0x4c0   :  { %14026 = vmatpush1.bf16.msra.mxu0 %v19058_v50  ;;  %12888 = vmatprep.subr.bf16.mxu1 %v19063_v4  ;;  %v19144_v50 = vld [vmem:[%s26709_s1 + $0x2fd4] ss:$8 sps:$4 sm:$0xff]   ;;  %v19139_v4 = vld [vmem:[%s26709_s1 + $0x13d0] ss:$8 sps:$4 sm:$0xff]  }
 0x4c1   :  { %14036 = vmatprep.subr.bf16.mxu0 %v19066_v17  ;;  %v19142_v17 = vld [vmem:[%s26709_s1 + $0x2fd0] ss:$8 sps:$4 sm:$0xff]  }
 0x4c2   :  { %12880 = vmatmul.mubr.bf16.vlgmr.msra.gmra.mrb[0].mxu1 %v754_v8  ;;  %v24390_v8 = vld [vmem:[%s26710_s0 + $0x50] sm:$0xff] }
 0x4c3   :  { %14028 = vmatmul.mubr.bf16.vlgmr.msra.gmra.mrb[0].mxu0 %v810_v51  ;;  %12889 = vmatpush1.bf16.msra.mxu1 %v19061_v48  ;;  %v24395_v51 = vld [vmem:[%s26710_s0 + $0xc0] sm:$0xff] }
 0x4c4   :  { %14037 = vmatpush1.bf16.msra.mxu0 %v19064_v58  ;;  %12890 = vmatprep.subr.bf16.mxu1 %v19069_v12  ;;  %v19145_v48 = vld [vmem:[%s26709_s1 + $0x13e0] ss:$8 sps:$4 sm:$0xff]   ;;  %v19153_v12 = vld [vmem:[%s26709_s1 + $0x13f4] ss:$8 sps:$4 sm:$0xff]  }
 0x4c5   :  { %14038 = vmatprep.subr.bf16.mxu0 %v19072_v23  ;;  %12920 = vmatprep.mubr.bf16.mxu1 %v757_v53  ;;  %v19148_v58 = vld [vmem:[%s26709_s1 + $0x2fe0] ss:$8 sps:$4 sm:$0xff]   ;;  %v19156_v23 = vld [vmem:[%s26709_s1 + $0x2ff4] ss:$8 sps:$4 sm:$0xff]   ;;  %v24411_v53 = vrot.slane %v24390_v8, %v20275_v49 }
 0x4c6   :  { %14068 = vmatprep.mubr.bf16.mxu0 %v813_v13  ;;  %v24415_v13 = vrot.slane %v24395_v51, %v20275_v49 }
 0x4c7   :  { %12891 = vmatpush1.bf16.msra.mxu1 %v19067_v16  ;;  %v19151_v16 = vld [vmem:[%s26709_s1 + $0x13f0] ss:$8 sps:$4 sm:$0xff]  }
 0x4c8   :  { %14039 = vmatpush1.bf16.msra.mxu0 %v19070_v56  ;;  %12892 = vmatprep.subr.bf16.mxu1 %v19075_v18  ;;  %v19154_v56 = vld [vmem:[%s26709_s1 + $0x2ff0] ss:$8 sps:$4 sm:$0xff]   ;;  %v19160_v18 = vld [vmem:[%s26709_s1 + $0x1404] ss:$8 sps:$4 sm:$0xff]  }
 0x4c9   :  { %14040 = vmatprep.subr.bf16.mxu0 %v19078_v19  ;;  %v19164_v19 = vld [vmem:[%s26709_s1 + $0x3004] ss:$8 sps:$4 sm:$0xff]  }
 0x4cb   :  { %12893 = vmatpush1.bf16.msra.mxu1 %v19073_v59  ;;  %v284_v59 = vcombine.high %v24411_v53, %v24411_v53 }
 0x4cc   :  { %14041 = vmatpush1.bf16.msra.mxu0 %v19076_v2  ;;  %12894 = vmatprep.subr.bf16.mxu1 %v19081_v22  ;;  %v522_v2 = vcombine.high %v24415_v13, %v24415_v13  ;;  %v756_v22 = vpack.c.bf16 %v24194_v36, %v24194_v36  ;;  %v19170_v36 = vld [vmem:[%s26709_s1 + $0x3014] ss:$8 sps:$4 sm:$0xff]  }
 0x4cd   :  { %14042 = vmatprep.subr.bf16.mxu0 %v19084_v31  ;;  %v812_v31 = vpack.c.bf16 %v24197_v1, %v24197_v1  ;;  %v759_v1 = vpack.c.bf16 %v284_v59, %v284_v59  ;;  %v19237_v59 = vld [vmem:[%s26709_s1 + $0x14d0] ss:$8 sps:$4 sm:$0xff]  }
 0x4cf   :  { %12895 = vmatpush1.bf16.msra.mxu1 %v19079_v24  ;;  %v19158_v24 = vld [vmem:[%s26709_s1 + $0x1400] ss:$8 sps:$4 sm:$0xff]  }
 0x4d0   :  { %14043 = vmatpush1.bf16.msra.mxu0 %v19082_v25  ;;  %12896 = vmatprep.subr.bf16.mxu1 %v19087_v26  ;;  %v19162_v25 = vld [vmem:[%s26709_s1 + $0x3000] ss:$8 sps:$4 sm:$0xff]   ;;  %v19167_v26 = vld [vmem:[%s26709_s1 + $0x1414] ss:$8 sps:$4 sm:$0xff]  }
 0x4d1   :  { %14044 = vmatprep.subr.bf16.mxu0 %v19090_v27  ;;  %v815_v27 = vpack.c.bf16 %v522_v2, %v522_v2  ;;  %v19240_v2 = vld [vmem:[%s26709_s1 + $0x30d0] ss:$8 sps:$4 sm:$0xff]  }
 0x4d3   :  { %12897 = vmatpush1.bf16.msra.mxu1 %v19085_v3  ;;  %v19165_v3 = vld [vmem:[%s26709_s1 + $0x1410] ss:$8 sps:$4 sm:$0xff]  }
 0x4d4   :  { %14045 = vmatpush1.bf16.msra.mxu0 %v19088_v10  ;;  %12898 = vmatprep.subr.bf16.mxu1 %v19093_v30  ;;  %v19168_v10 = vld [vmem:[%s26709_s1 + $0x3010] ss:$8 sps:$4 sm:$0xff]   ;;  %v19173_v30 = vld [vmem:[%s26709_s1 + $0x1424] ss:$8 sps:$4 sm:$0xff]  }
 0x4d5   :  { %14046 = vmatprep.subr.bf16.mxu0 %v19096_v44  ;;  %v19176_v44 = vld [vmem:[%s26709_s1 + $0x3024] ss:$8 sps:$4 sm:$0xff]  }
 0x4d7   :  { %12899 = vmatpush1.bf16.msra.mxu1 %v19091_v32  ;;  %v19171_v32 = vld [vmem:[%s26709_s1 + $0x1420] ss:$8 sps:$4 sm:$0xff]  }
 0x4d8   :  { %14047 = vmatpush1.bf16.msra.mxu0 %v19094_v33  ;;  %12900 = vmatprep.subr.bf16.mxu1 %v19099_v34  ;;  %v19174_v33 = vld [vmem:[%s26709_s1 + $0x3020] ss:$8 sps:$4 sm:$0xff]   ;;  %v19179_v34 = vld [vmem:[%s26709_s1 + $0x1434] ss:$8 sps:$4 sm:$0xff]  }
 0x4d9   :  { %14048 = vmatprep.subr.bf16.mxu0 %v19102_v11  ;;  %v19182_v11 = vld [vmem:[%s26709_s1 + $0x3034] ss:$8 sps:$4 sm:$0xff]  }
 0x4db   :  { %12901 = vmatpush1.bf16.msra.mxu1 %v19097_v9  ;;  %v19177_v9 = vld [vmem:[%s26709_s1 + $0x1430] ss:$8 sps:$4 sm:$0xff]  }
 0x4dc   :  { %14049 = vmatpush1.bf16.msra.mxu0 %v19100_v20  ;;  %12902 = vmatprep.subr.bf16.mxu1 %v19105_v39  ;;  %v19180_v20 = vld [vmem:[%s26709_s1 + $0x3030] ss:$8 sps:$4 sm:$0xff]   ;;  %v19185_v39 = vld [vmem:[%s26709_s1 + $0x1444] ss:$8 sps:$4 sm:$0xff]  }
 0x4dd   :  { %14050 = vmatprep.subr.bf16.mxu0 %v19108_v35  ;;  %v19188_v35 = vld [vmem:[%s26709_s1 + $0x3044] ss:$8 sps:$4 sm:$0xff]  }
 0x4df   :  { %12903 = vmatpush1.bf16.msra.mxu1 %v19103_v42  ;;  %v19183_v42 = vld [vmem:[%s26709_s1 + $0x1440] ss:$8 sps:$4 sm:$0xff]  }
 0x4e0   :  { %14051 = vmatpush1.bf16.msra.mxu0 %v19106_v57  ;;  %12904 = vmatprep.subr.bf16.mxu1 %v19111_v45  ;;  %v19186_v57 = vld [vmem:[%s26709_s1 + $0x3040] ss:$8 sps:$4 sm:$0xff]   ;;  %v19191_v45 = vld [vmem:[%s26709_s1 + $0x1454] ss:$8 sps:$4 sm:$0xff]  }
 0x4e1   :  { %14052 = vmatprep.subr.bf16.mxu0 %v19114_v46  ;;  %v19194_v46 = vld [vmem:[%s26709_s1 + $0x3054] ss:$8 sps:$4 sm:$0xff]  }
 0x4e3   :  { %12905 = vmatpush1.bf16.msra.mxu1 %v19109_v21  ;;  %v19189_v21 = vld [vmem:[%s26709_s1 + $0x1450] ss:$8 sps:$4 sm:$0xff]  }
 0x4e4   :  { %14053 = vmatpush1.bf16.msra.mxu0 %v19112_v28  ;;  %12906 = vmatprep.subr.bf16.mxu1 %v19117_v52  ;;  %v19192_v28 = vld [vmem:[%s26709_s1 + $0x3050] ss:$8 sps:$4 sm:$0xff]   ;;  %v19197_v52 = vld [vmem:[%s26709_s1 + $0x1464] ss:$8 sps:$4 sm:$0xff]  }
 0x4e5   :  { %14054 = vmatprep.subr.bf16.mxu0 %v19120_v61  ;;  %v19200_v61 = vld [vmem:[%s26709_s1 + $0x3064] ss:$8 sps:$4 sm:$0xff]  }
 0x4e7   :  { %12907 = vmatpush1.bf16.msra.mxu1 %v19115_v54  ;;  %v19195_v54 = vld [vmem:[%s26709_s1 + $0x1460] ss:$8 sps:$4 sm:$0xff]  }
 0x4e8   :  { %14055 = vmatpush1.bf16.msra.mxu0 %v19118_v55  ;;  %12908 = vmatprep.subr.bf16.mxu1 %v19123_v15  ;;  %v19198_v55 = vld [vmem:[%s26709_s1 + $0x3060] ss:$8 sps:$4 sm:$0xff]   ;;  %v19203_v15 = vld [vmem:[%s26709_s1 + $0x1474] ss:$8 sps:$4 sm:$0xff]  }
 0x4e9   :  { %14056 = vmatprep.subr.bf16.mxu0 %v19126_v40  ;;  %v19206_v40 = vld [vmem:[%s26709_s1 + $0x3074] ss:$8 sps:$4 sm:$0xff]  }
 0x4eb   :  { %12909 = vmatpush1.bf16.msra.mxu1 %v19121_v29  ;;  %v19201_v29 = vld [vmem:[%s26709_s1 + $0x1470] ss:$8 sps:$4 sm:$0xff]  }
 0x4ec   :  { %14057 = vmatpush1.bf16.msra.mxu0 %v19124_v37  ;;  %12910 = vmatprep.subr.bf16.mxu1 %v19129_v60  ;;  %v19204_v37 = vld [vmem:[%s26709_s1 + $0x3070] ss:$8 sps:$4 sm:$0xff]   ;;  %v19209_v60 = vld [vmem:[%s26709_s1 + $0x1484] ss:$8 sps:$4 sm:$0xff]  }
 0x4ed   :  { %14058 = vmatprep.subr.bf16.mxu0 %v19132_v5  ;;  %v19212_v5 = vld [vmem:[%s26709_s1 + $0x3084] ss:$8 sps:$4 sm:$0xff]  }
 0x4ef   :  { %12911 = vmatpush1.bf16.msra.mxu1 %v19127_v62  ;;  %v19207_v62 = vld [vmem:[%s26709_s1 + $0x1480] ss:$8 sps:$4 sm:$0xff]  }
 0x4f0   :  { %14059 = vmatpush1.bf16.msra.mxu0 %v19130_v63  ;;  %12912 = vmatprep.subr.bf16.mxu1 %v19135_v0  ;;  %v19210_v63 = vld [vmem:[%s26709_s1 + $0x3080] ss:$8 sps:$4 sm:$0xff]   ;;  %v19215_v0 = vld [vmem:[%s26709_s1 + $0x1494] ss:$8 sps:$4 sm:$0xff]  }
 0x4f1   :  { %14060 = vmatprep.subr.bf16.mxu0 %v19138_v38  ;;  %v19218_v38 = vld [vmem:[%s26709_s1 + $0x3094] ss:$8 sps:$4 sm:$0xff]  }
 0x4f3   :  { %12913 = vmatpush1.bf16.msra.mxu1 %v19133_v14  ;;  %v19213_v14 = vld [vmem:[%s26709_s1 + $0x1490] ss:$8 sps:$4 sm:$0xff]  }
 0x4f4   :  { %14061 = vmatpush1.bf16.msra.mxu0 %v19136_v47  ;;  %12914 = vmatprep.subr.bf16.mxu1 %v19141_v41  ;;  %v19216_v47 = vld [vmem:[%s26709_s1 + $0x3090] ss:$8 sps:$4 sm:$0xff]   ;;  %v19221_v41 = vld [vmem:[%s26709_s1 + $0x14a4] ss:$8 sps:$4 sm:$0xff]  }
 0x4f5   :  { %14062 = vmatprep.subr.bf16.mxu0 %v19144_v50  ;;  %v19224_v50 = vld [vmem:[%s26709_s1 + $0x30a4] ss:$8 sps:$4 sm:$0xff]  }
 0x4f7   :  { %12915 = vmatpush1.bf16.msra.mxu1 %v19139_v4  ;;  %v19219_v4 = vld [vmem:[%s26709_s1 + $0x14a0] ss:$8 sps:$4 sm:$0xff]  }
 0x4f8   :  { %14063 = vmatpush1.bf16.msra.mxu0 %v19142_v17  ;;  %12916 = vmatprep.subr.bf16.mxu1 %v19147_v6  ;;  %v19222_v17 = vld [vmem:[%s26709_s1 + $0x30a0] ss:$8 sps:$4 sm:$0xff]   ;;  %v19227_v6 = vld [vmem:[%s26709_s1 + $0x14b4] ss:$8 sps:$4 sm:$0xff]  }
 0x4f9   :  { %14064 = vmatprep.subr.bf16.mxu0 %v19150_v7  ;;  %v19230_v7 = vld [vmem:[%s26709_s1 + $0x30b4] ss:$8 sps:$4 sm:$0xff]  }
 0x4fb   :  { %12917 = vmatpush1.bf16.msra.mxu1 %v19145_v48  ;;  %v19225_v48 = vld [vmem:[%s26709_s1 + $0x14b0] ss:$8 sps:$4 sm:$0xff]  }
 0x4fc   :  { %14065 = vmatpush1.bf16.msra.mxu0 %v19148_v58  ;;  %12918 = vmatprep.subr.bf16.mxu1 %v19153_v12  ;;  %v19228_v58 = vld [vmem:[%s26709_s1 + $0x30b0] ss:$8 sps:$4 sm:$0xff]   ;;  %v19233_v12 = vld [vmem:[%s26709_s1 + $0x14c4] ss:$8 sps:$4 sm:$0xff]  }
 0x4fd   :  { %14066 = vmatprep.subr.bf16.mxu0 %v19156_v23  ;;  %v19236_v23 = vld [vmem:[%s26709_s1 + $0x30c4] ss:$8 sps:$4 sm:$0xff]  }
 0x4ff   :  { %12919 = vmatpush1.bf16.msra.mxu1 %v19151_v16  ;;  %v19231_v16 = vld [vmem:[%s26709_s1 + $0x14c0] ss:$8 sps:$4 sm:$0xff]  }
 0x500   :  { %14067 = vmatpush1.bf16.msra.mxu0 %v19154_v56  ;;  %12929 = vmatprep.subr.bf16.mxu1 %v19160_v18  ;;  %v19234_v56 = vld [vmem:[%s26709_s1 + $0x30c0] ss:$8 sps:$4 sm:$0xff]   ;;  %v19239_v18 = vld [vmem:[%s26709_s1 + $0x14d4] ss:$8 sps:$4 sm:$0xff]  }
 0x501   :  { %14077 = vmatprep.subr.bf16.mxu0 %v19164_v19  ;;  %v19242_v19 = vld [vmem:[%s26709_s1 + $0x30d4] ss:$8 sps:$4 sm:$0xff]  }
 0x502   :  { %12921 = vmatmul.mubr.bf16.vlgmr.msra.gmra.mrb[0].mxu1 %v756_v22  ;;  %v19245_v22 = vld [vmem:[%s26709_s1 + $0x14e4] ss:$8 sps:$4 sm:$0xff]  }
 0x503   :  { %14069 = vmatmul.mubr.bf16.vlgmr.msra.gmra.mrb[0].mxu0 %v812_v31  ;;  %12930 = vmatpush1.bf16.msra.mxu1 %v19158_v24  ;;  %v19248_v31 = vld [vmem:[%s26709_s1 + $0x30e4] ss:$8 sps:$4 sm:$0xff]   ;;  %v269_v24 = vcombine.high %v24390_v8, %v24390_v8  ;;  %v19254_v8 = vld [vmem:[%s26709_s1 + $0x30f4] ss:$8 sps:$4 sm:$0xff]  }
 0x504   :  { %14078 = vmatpush1.bf16.msra.mxu0 %v19162_v25  ;;  %12931 = vmatprep.subr.bf16.mxu1 %v19167_v26  ;;  %v507_v25 = vcombine.high %v24395_v51, %v24395_v51  ;;  %v19243_v26 = vld [vmem:[%s26709_s1 + $0x14e0] ss:$8 sps:$4 sm:$0xff]  }
 0x505   :  { %14079 = vmatprep.subr.bf16.mxu0 %v19170_v36  ;;  %12961 = vmatprep.mubr.bf16.mxu1 %v759_v1  ;;  %v19246_v36 = vld [vmem:[%s26709_s1 + $0x30e0] ss:$8 sps:$4 sm:$0xff]   ;;  %v19251_v1 = vld [vmem:[%s26709_s1 + $0x14f4] ss:$8 sps:$4 sm:$0xff]   ;;  %v24622_v51 = vrot.slane %v269_v24, %v20275_v49  ;;  %v19321_v24 = vld [vmem:[%s26709_s1 + $0x15b0] ss:$8 sps:$4 sm:$0xff]  }
 0x506   :  { %14109 = vmatprep.mubr.bf16.mxu0 %v815_v27  ;;  %v24625_v27 = vrot.slane %v507_v25, %v20275_v49  ;;  %v19324_v25 = vld [vmem:[%s26709_s1 + $0x31b0] ss:$8 sps:$4 sm:$0xff]  }
 0x507   :  { %12932 = vmatpush1.bf16.msra.mxu1 %v19165_v3  ;;  %v19249_v3 = vld [vmem:[%s26709_s1 + $0x14f0] ss:$8 sps:$4 sm:$0xff]  }
 0x508   :  { %14080 = vmatpush1.bf16.msra.mxu0 %v19168_v10  ;;  %12933 = vmatprep.subr.bf16.mxu1 %v19173_v30  ;;  %v19252_v10 = vld [vmem:[%s26709_s1 + $0x30f0] ss:$8 sps:$4 sm:$0xff]   ;;  %v19257_v30 = vld [vmem:[%s26709_s1 + $0x1504] ss:$8 sps:$4 sm:$0xff]  }
 0x509   :  { %14081 = vmatprep.subr.bf16.mxu0 %v19176_v44  ;;  %v19260_v44 = vld [vmem:[%s26709_s1 + $0x3104] ss:$8 sps:$4 sm:$0xff]  }
 0x50b   :  { %12934 = vmatpush1.bf16.msra.mxu1 %v19171_v32  ;;  %v285_v32 = vcombine.high %v24622_v51, %v24622_v51 }
 0x50c   :  { %14082 = vmatpush1.bf16.msra.mxu0 %v19174_v33  ;;  %12935 = vmatprep.subr.bf16.mxu1 %v19179_v34  ;;  %v523_v33 = vcombine.high %v24625_v27, %v24625_v27  ;;  %v758_v34 = vpack.c.bf16 %v24411_v53, %v24411_v53  ;;  %v19266_v53 = vld [vmem:[%s26709_s1 + $0x3114] ss:$8 sps:$4 sm:$0xff]  }
 0x50d   :  { %14083 = vmatprep.subr.bf16.mxu0 %v19182_v11  ;;  %v814_v11 = vpack.c.bf16 %v24415_v13, %v24415_v13  ;;  %v761_v13 = vpack.c.bf16 %v285_v32, %v285_v32  ;;  %v19341_v32 = vld [vmem:[%s26709_s1 + $0x15e4] ss:$8 sps:$4 sm:$0xff]  }
 0x50f   :  { %12936 = vmatpush1.bf16.msra.mxu1 %v19177_v9  ;;  %v19255_v9 = vld [vmem:[%s26709_s1 + $0x1500] ss:$8 sps:$4 sm:$0xff]  }
 0x510   :  { %14084 = vmatpush1.bf16.msra.mxu0 %v19180_v20  ;;  %12937 = vmatprep.subr.bf16.mxu1 %v19185_v39  ;;  %v19258_v20 = vld [vmem:[%s26709_s1 + $0x3100] ss:$8 sps:$4 sm:$0xff]   ;;  %v19263_v39 = vld [vmem:[%s26709_s1 + $0x1514] ss:$8 sps:$4 sm:$0xff]  }
 0x511   :  { %14085 = vmatprep.subr.bf16.mxu0 %v19188_v35  ;;  %v817_v35 = vpack.c.bf16 %v523_v33, %v523_v33  ;;  %v19344_v33 = vld [vmem:[%s26709_s1 + $0x31e4] ss:$8 sps:$4 sm:$0xff]  }
 0x513   :  { %12938 = vmatpush1.bf16.msra.mxu1 %v19183_v42  ;;  %v19261_v42 = vld [vmem:[%s26709_s1 + $0x1510] ss:$8 sps:$4 sm:$0xff]  }
 0x514   :  { %14086 = vmatpush1.bf16.msra.mxu0 %v19186_v57  ;;  %12939 = vmatprep.subr.bf16.mxu1 %v19191_v45  ;;  %v19264_v57 = vld [vmem:[%s26709_s1 + $0x3110] ss:$8 sps:$4 sm:$0xff]   ;;  %v19269_v45 = vld [vmem:[%s26709_s1 + $0x1524] ss:$8 sps:$4 sm:$0xff]  }
 0x515   :  { %14087 = vmatprep.subr.bf16.mxu0 %v19194_v46  ;;  %v19272_v46 = vld [vmem:[%s26709_s1 + $0x3124] ss:$8 sps:$4 sm:$0xff]  }
 0x517   :  { %12940 = vmatpush1.bf16.msra.mxu1 %v19189_v21  ;;  %v19267_v21 = vld [vmem:[%s26709_s1 + $0x1520] ss:$8 sps:$4 sm:$0xff]  }
 0x518   :  { %14088 = vmatpush1.bf16.msra.mxu0 %v19192_v28  ;;  %12941 = vmatprep.subr.bf16.mxu1 %v19197_v52  ;;  %v19270_v28 = vld [vmem:[%s26709_s1 + $0x3120] ss:$8 sps:$4 sm:$0xff]   ;;  %v19275_v52 = vld [vmem:[%s26709_s1 + $0x1534] ss:$8 sps:$4 sm:$0xff]  }
 0x519   :  { %14089 = vmatprep.subr.bf16.mxu0 %v19200_v61  ;;  %v19278_v61 = vld [vmem:[%s26709_s1 + $0x3134] ss:$8 sps:$4 sm:$0xff]  }
 0x51b   :  { %12942 = vmatpush1.bf16.msra.mxu1 %v19195_v54  ;;  %v19273_v54 = vld [vmem:[%s26709_s1 + $0x1530] ss:$8 sps:$4 sm:$0xff]  }
 0x51c   :  { %14090 = vmatpush1.bf16.msra.mxu0 %v19198_v55  ;;  %12943 = vmatprep.subr.bf16.mxu1 %v19203_v15  ;;  %v19276_v55 = vld [vmem:[%s26709_s1 + $0x3130] ss:$8 sps:$4 sm:$0xff]   ;;  %v19281_v15 = vld [vmem:[%s26709_s1 + $0x1544] ss:$8 sps:$4 sm:$0xff]  }
 0x51d   :  { %14091 = vmatprep.subr.bf16.mxu0 %v19206_v40  ;;  %v19284_v40 = vld [vmem:[%s26709_s1 + $0x3144] ss:$8 sps:$4 sm:$0xff]  }
 0x51f   :  { %12944 = vmatpush1.bf16.msra.mxu1 %v19201_v29  ;;  %v19279_v29 = vld [vmem:[%s26709_s1 + $0x1540] ss:$8 sps:$4 sm:$0xff]  }
 0x520   :  { %14092 = vmatpush1.bf16.msra.mxu0 %v19204_v37  ;;  %12945 = vmatprep.subr.bf16.mxu1 %v19209_v60  ;;  %v19282_v37 = vld [vmem:[%s26709_s1 + $0x3140] ss:$8 sps:$4 sm:$0xff]   ;;  %v19287_v60 = vld [vmem:[%s26709_s1 + $0x1554] ss:$8 sps:$4 sm:$0xff]  }
 0x521   :  { %14093 = vmatprep.subr.bf16.mxu0 %v19212_v5  ;;  %v19290_v5 = vld [vmem:[%s26709_s1 + $0x3154] ss:$8 sps:$4 sm:$0xff]  }
 0x523   :  { %12946 = vmatpush1.bf16.msra.mxu1 %v19207_v62  ;;  %v19285_v62 = vld [vmem:[%s26709_s1 + $0x1550] ss:$8 sps:$4 sm:$0xff]  }
 0x524   :  { %14094 = vmatpush1.bf16.msra.mxu0 %v19210_v63  ;;  %12947 = vmatprep.subr.bf16.mxu1 %v19215_v0  ;;  %v19288_v63 = vld [vmem:[%s26709_s1 + $0x3150] ss:$8 sps:$4 sm:$0xff]   ;;  %v19293_v0 = vld [vmem:[%s26709_s1 + $0x1564] ss:$8 sps:$4 sm:$0xff]  }
 0x525   :  { %14095 = vmatprep.subr.bf16.mxu0 %v19218_v38  ;;  %v19296_v38 = vld [vmem:[%s26709_s1 + $0x3164] ss:$8 sps:$4 sm:$0xff]  }
 0x527   :  { %12948 = vmatpush1.bf16.msra.mxu1 %v19213_v14  ;;  %v19291_v14 = vld [vmem:[%s26709_s1 + $0x1560] ss:$8 sps:$4 sm:$0xff]  }
 0x528   :  { %14096 = vmatpush1.bf16.msra.mxu0 %v19216_v47  ;;  %12949 = vmatprep.subr.bf16.mxu1 %v19221_v41  ;;  %v19294_v47 = vld [vmem:[%s26709_s1 + $0x3160] ss:$8 sps:$4 sm:$0xff]   ;;  %v19299_v41 = vld [vmem:[%s26709_s1 + $0x1574] ss:$8 sps:$4 sm:$0xff]  }
 0x529   :  { %14097 = vmatprep.subr.bf16.mxu0 %v19224_v50  ;;  %v19302_v50 = vld [vmem:[%s26709_s1 + $0x3174] ss:$8 sps:$4 sm:$0xff]  }
 0x52b   :  { %12950 = vmatpush1.bf16.msra.mxu1 %v19219_v4  ;;  %v19297_v4 = vld [vmem:[%s26709_s1 + $0x1570] ss:$8 sps:$4 sm:$0xff]  }
 0x52c   :  { %14098 = vmatpush1.bf16.msra.mxu0 %v19222_v17  ;;  %12951 = vmatprep.subr.bf16.mxu1 %v19227_v6  ;;  %v19300_v17 = vld [vmem:[%s26709_s1 + $0x3170] ss:$8 sps:$4 sm:$0xff]   ;;  %v19305_v6 = vld [vmem:[%s26709_s1 + $0x1584] ss:$8 sps:$4 sm:$0xff]  }
 0x52d   :  { %14099 = vmatprep.subr.bf16.mxu0 %v19230_v7  ;;  %v19308_v7 = vld [vmem:[%s26709_s1 + $0x3184] ss:$8 sps:$4 sm:$0xff]  }
 0x52f   :  { %12952 = vmatpush1.bf16.msra.mxu1 %v19225_v48  ;;  %v19303_v48 = vld [vmem:[%s26709_s1 + $0x1580] ss:$8 sps:$4 sm:$0xff]  }
 0x530   :  { %14100 = vmatpush1.bf16.msra.mxu0 %v19228_v58  ;;  %12953 = vmatprep.subr.bf16.mxu1 %v19233_v12  ;;  %v19306_v58 = vld [vmem:[%s26709_s1 + $0x3180] ss:$8 sps:$4 sm:$0xff]   ;;  %v19311_v12 = vld [vmem:[%s26709_s1 + $0x1594] ss:$8 sps:$4 sm:$0xff]  }
 0x531   :  { %14101 = vmatprep.subr.bf16.mxu0 %v19236_v23  ;;  %v19314_v23 = vld [vmem:[%s26709_s1 + $0x3194] ss:$8 sps:$4 sm:$0xff]  }
 0x533   :  { %12954 = vmatpush1.bf16.msra.mxu1 %v19231_v16  ;;  %v19309_v16 = vld [vmem:[%s26709_s1 + $0x1590] ss:$8 sps:$4 sm:$0xff]  }
 0x534   :  { %14102 = vmatpush1.bf16.msra.mxu0 %v19234_v56  ;;  %12955 = vmatprep.subr.bf16.mxu1 %v19239_v18  ;;  %v19312_v56 = vld [vmem:[%s26709_s1 + $0x3190] ss:$8 sps:$4 sm:$0xff]   ;;  %v19317_v18 = vld [vmem:[%s26709_s1 + $0x15a4] ss:$8 sps:$4 sm:$0xff]  }
 0x535   :  { %14103 = vmatprep.subr.bf16.mxu0 %v19242_v19  ;;  %v19320_v19 = vld [vmem:[%s26709_s1 + $0x31a4] ss:$8 sps:$4 sm:$0xff]  }
 0x537   :  { %12956 = vmatpush1.bf16.msra.mxu1 %v19237_v59  ;;  %v19315_v59 = vld [vmem:[%s26709_s1 + $0x15a0] ss:$8 sps:$4 sm:$0xff]  }
 0x538   :  { %14104 = vmatpush1.bf16.msra.mxu0 %v19240_v2  ;;  %12957 = vmatprep.subr.bf16.mxu1 %v19245_v22  ;;  %v19318_v2 = vld [vmem:[%s26709_s1 + $0x31a0] ss:$8 sps:$4 sm:$0xff]   ;;  %v19323_v22 = vld [vmem:[%s26709_s1 + $0x15b4] ss:$8 sps:$4 sm:$0xff]  }
 0x539   :  { %14105 = vmatprep.subr.bf16.mxu0 %v19248_v31  ;;  %v19326_v31 = vld [vmem:[%s26709_s1 + $0x31b4] ss:$8 sps:$4 sm:$0xff]  }
 0x53b   :  { %12958 = vmatpush1.bf16.msra.mxu1 %v19243_v26  ;;  %v19329_v26 = vld [vmem:[%s26709_s1 + $0x15c4] ss:$8 sps:$4 sm:$0xff]  }
 0x53c   :  { %14106 = vmatpush1.bf16.msra.mxu0 %v19246_v36  ;;  %12959 = vmatprep.subr.bf16.mxu1 %v19251_v1  ;;  %v19332_v36 = vld [vmem:[%s26709_s1 + $0x31c4] ss:$8 sps:$4 sm:$0xff]   ;;  %v19327_v1 = vld [vmem:[%s26709_s1 + $0x15c0] ss:$8 sps:$4 sm:$0xff]  }
 0x53d   :  { %14107 = vmatprep.subr.bf16.mxu0 %v19254_v8  ;;  %v19330_v8 = vld [vmem:[%s26709_s1 + $0x31c0] ss:$8 sps:$4 sm:$0xff]  }
 0x53f   :  { %12960 = vmatpush1.bf16.msra.mxu1 %v19249_v3  ;;  %v19335_v3 = vld [vmem:[%s26709_s1 + $0x15d4] ss:$8 sps:$4 sm:$0xff]  }
 0x540   :  { %14108 = vmatpush1.bf16.msra.mxu0 %v19252_v10  ;;  %12970 = vmatprep.subr.bf16.mxu1 %v19257_v30  ;;  %v19338_v10 = vld [vmem:[%s26709_s1 + $0x31d4] ss:$8 sps:$4 sm:$0xff]   ;;  %v19333_v30 = vld [vmem:[%s26709_s1 + $0x15d0] ss:$8 sps:$4 sm:$0xff]  }
 0x541   :  { %14118 = vmatprep.subr.bf16.mxu0 %v19260_v44  ;;  %v19336_v44 = vld [vmem:[%s26709_s1 + $0x31d0] ss:$8 sps:$4 sm:$0xff]  }
 0x542   :  { %12962 = vmatmul.mubr.bf16.vlgmr.msra.gmra.mrb[0].mxu1 %v758_v34  ;;  %v24818_v34 = vld [vmem:[%s26710_s0 + $0x58] sm:$0xff] }
 0x543   :  { %14110 = vmatmul.mubr.bf16.vlgmr.msra.gmra.mrb[0].mxu0 %v814_v11  ;;  %12971 = vmatpush1.bf16.msra.mxu1 %v19255_v9  ;;  %v24823_v11 = vld [vmem:[%s26710_s0 + $0xc8] sm:$0xff] }
 0x544   :  { %14119 = vmatpush1.bf16.msra.mxu0 %v19258_v20  ;;  %12972 = vmatprep.subr.bf16.mxu1 %v19263_v39  ;;  %v19339_v9 = vld [vmem:[%s26709_s1 + $0x15e0] ss:$8 sps:$4 sm:$0xff]   ;;  %v19347_v39 = vld [vmem:[%s26709_s1 + $0x15f4] ss:$8 sps:$4 sm:$0xff]  }
 0x545   :  { %14120 = vmatprep.subr.bf16.mxu0 %v19266_v53  ;;  %13002 = vmatprep.mubr.bf16.mxu1 %v761_v13  ;;  %v19342_v20 = vld [vmem:[%s26709_s1 + $0x31e0] ss:$8 sps:$4 sm:$0xff]   ;;  %v19350_v53 = vld [vmem:[%s26709_s1 + $0x31f4] ss:$8 sps:$4 sm:$0xff]   ;;  %v24839_v13 = vrot.slane %v24818_v34, %v20275_v49 }
 0x546   :  { %14150 = vmatprep.mubr.bf16.mxu0 %v817_v35  ;;  %v24843_v35 = vrot.slane %v24823_v11, %v20275_v49 }
 0x547   :  { %12973 = vmatpush1.bf16.msra.mxu1 %v19261_v42  ;;  %v19345_v42 = vld [vmem:[%s26709_s1 + $0x15f0] ss:$8 sps:$4 sm:$0xff]  }
 0x548   :  { %14121 = vmatpush1.bf16.msra.mxu0 %v19264_v57  ;;  %12974 = vmatprep.subr.bf16.mxu1 %v19269_v45  ;;  %v19348_v57 = vld [vmem:[%s26709_s1 + $0x31f0] ss:$8 sps:$4 sm:$0xff]   ;;  %v19354_v45 = vld [vmem:[%s26709_s1 + $0x1604] ss:$8 sps:$4 sm:$0xff]  }
 0x549   :  { %14122 = vmatprep.subr.bf16.mxu0 %v19272_v46  ;;  %v19358_v46 = vld [vmem:[%s26709_s1 + $0x3204] ss:$8 sps:$4 sm:$0xff]  }
 0x54b   :  { %12975 = vmatpush1.bf16.msra.mxu1 %v19267_v21  ;;  %v301_v21 = vcombine.high %v24839_v13, %v24839_v13 }
 0x54c   :  { %14123 = vmatpush1.bf16.msra.mxu0 %v19270_v28  ;;  %12976 = vmatprep.subr.bf16.mxu1 %v19275_v52  ;;  %v539_v28 = vcombine.high %v24843_v35, %v24843_v35  ;;  %v760_v52 = vpack.c.bf16 %v24622_v51, %v24622_v51  ;;  %v19364_v51 = vld [vmem:[%s26709_s1 + $0x3214] ss:$8 sps:$4 sm:$0xff]  }
 0x54d   :  { %14124 = vmatprep.subr.bf16.mxu0 %v19278_v61  ;;  %v816_v61 = vpack.c.bf16 %v24625_v27, %v24625_v27  ;;  %v763_v27 = vpack.c.bf16 %v301_v21, %v301_v21  ;;  %v19431_v21 = vld [vmem:[%s26709_s1 + $0x16d0] ss:$8 sps:$4 sm:$0xff]  }
 0x54f   :  { %12977 = vmatpush1.bf16.msra.mxu1 %v19273_v54  ;;  %v19352_v54 = vld [vmem:[%s26709_s1 + $0x1600] ss:$8 sps:$4 sm:$0xff]  }
 0x550   :  { %14125 = vmatpush1.bf16.msra.mxu0 %v19276_v55  ;;  %12978 = vmatprep.subr.bf16.mxu1 %v19281_v15  ;;  %v19356_v55 = vld [vmem:[%s26709_s1 + $0x3200] ss:$8 sps:$4 sm:$0xff]   ;;  %v19361_v15 = vld [vmem:[%s26709_s1 + $0x1614] ss:$8 sps:$4 sm:$0xff]  }
 0x551   :  { %14126 = vmatprep.subr.bf16.mxu0 %v19284_v40  ;;  %v819_v40 = vpack.c.bf16 %v539_v28, %v539_v28  ;;  %v19434_v28 = vld [vmem:[%s26709_s1 + $0x32d0] ss:$8 sps:$4 sm:$0xff]  }
 0x553   :  { %12979 = vmatpush1.bf16.msra.mxu1 %v19279_v29  ;;  %v19359_v29 = vld [vmem:[%s26709_s1 + $0x1610] ss:$8 sps:$4 sm:$0xff]  }
 0x554   :  { %14127 = vmatpush1.bf16.msra.mxu0 %v19282_v37  ;;  %12980 = vmatprep.subr.bf16.mxu1 %v19287_v60  ;;  %v19362_v37 = vld [vmem:[%s26709_s1 + $0x3210] ss:$8 sps:$4 sm:$0xff]   ;;  %v19367_v60 = vld [vmem:[%s26709_s1 + $0x1624] ss:$8 sps:$4 sm:$0xff]  }
 0x555   :  { %14128 = vmatprep.subr.bf16.mxu0 %v19290_v5  ;;  %v19370_v5 = vld [vmem:[%s26709_s1 + $0x3224] ss:$8 sps:$4 sm:$0xff]  }
 0x557   :  { %12981 = vmatpush1.bf16.msra.mxu1 %v19285_v62  ;;  %v19365_v62 = vld [vmem:[%s26709_s1 + $0x1620] ss:$8 sps:$4 sm:$0xff]  }
 0x558   :  { %14129 = vmatpush1.bf16.msra.mxu0 %v19288_v63  ;;  %12982 = vmatprep.subr.bf16.mxu1 %v19293_v0  ;;  %v19368_v63 = vld [vmem:[%s26709_s1 + $0x3220] ss:$8 sps:$4 sm:$0xff]   ;;  %v19373_v0 = vld [vmem:[%s26709_s1 + $0x1634] ss:$8 sps:$4 sm:$0xff]  }
 0x559   :  { %14130 = vmatprep.subr.bf16.mxu0 %v19296_v38  ;;  %v19376_v38 = vld [vmem:[%s26709_s1 + $0x3234] ss:$8 sps:$4 sm:$0xff]  }
 0x55b   :  { %12983 = vmatpush1.bf16.msra.mxu1 %v19291_v14  ;;  %v19371_v14 = vld [vmem:[%s26709_s1 + $0x1630] ss:$8 sps:$4 sm:$0xff]  }
 0x55c   :  { %14131 = vmatpush1.bf16.msra.mxu0 %v19294_v47  ;;  %12984 = vmatprep.subr.bf16.mxu1 %v19299_v41  ;;  %v19374_v47 = vld [vmem:[%s26709_s1 + $0x3230] ss:$8 sps:$4 sm:$0xff]   ;;  %v19379_v41 = vld [vmem:[%s26709_s1 + $0x1644] ss:$8 sps:$4 sm:$0xff]  }
 0x55d   :  { %14132 = vmatprep.subr.bf16.mxu0 %v19302_v50  ;;  %v19382_v50 = vld [vmem:[%s26709_s1 + $0x3244] ss:$8 sps:$4 sm:$0xff]  }
 0x55f   :  { %12985 = vmatpush1.bf16.msra.mxu1 %v19297_v4  ;;  %v19377_v4 = vld [vmem:[%s26709_s1 + $0x1640] ss:$8 sps:$4 sm:$0xff]  }
 0x560   :  { %14133 = vmatpush1.bf16.msra.mxu0 %v19300_v17  ;;  %12986 = vmatprep.subr.bf16.mxu1 %v19305_v6  ;;  %v19380_v17 = vld [vmem:[%s26709_s1 + $0x3240] ss:$8 sps:$4 sm:$0xff]   ;;  %v19385_v6 = vld [vmem:[%s26709_s1 + $0x1654] ss:$8 sps:$4 sm:$0xff]  }
 0x561   :  { %14134 = vmatprep.subr.bf16.mxu0 %v19308_v7  ;;  %v19388_v7 = vld [vmem:[%s26709_s1 + $0x3254] ss:$8 sps:$4 sm:$0xff]  }
 0x563   :  { %12987 = vmatpush1.bf16.msra.mxu1 %v19303_v48  ;;  %v19383_v48 = vld [vmem:[%s26709_s1 + $0x1650] ss:$8 sps:$4 sm:$0xff]  }
 0x564   :  { %14135 = vmatpush1.bf16.msra.mxu0 %v19306_v58  ;;  %12988 = vmatprep.subr.bf16.mxu1 %v19311_v12  ;;  %v19386_v58 = vld [vmem:[%s26709_s1 + $0x3250] ss:$8 sps:$4 sm:$0xff]   ;;  %v19391_v12 = vld [vmem:[%s26709_s1 + $0x1664] ss:$8 sps:$4 sm:$0xff]  }
 0x565   :  { %14136 = vmatprep.subr.bf16.mxu0 %v19314_v23  ;;  %v19394_v23 = vld [vmem:[%s26709_s1 + $0x3264] ss:$8 sps:$4 sm:$0xff]  }
 0x567   :  { %12989 = vmatpush1.bf16.msra.mxu1 %v19309_v16  ;;  %v19389_v16 = vld [vmem:[%s26709_s1 + $0x1660] ss:$8 sps:$4 sm:$0xff]  }
 0x568   :  { %14137 = vmatpush1.bf16.msra.mxu0 %v19312_v56  ;;  %12990 = vmatprep.subr.bf16.mxu1 %v19317_v18  ;;  %v19392_v56 = vld [vmem:[%s26709_s1 + $0x3260] ss:$8 sps:$4 sm:$0xff]   ;;  %v19397_v18 = vld [vmem:[%s26709_s1 + $0x1674] ss:$8 sps:$4 sm:$0xff]  }
 0x569   :  { %14138 = vmatprep.subr.bf16.mxu0 %v19320_v19  ;;  %v19400_v19 = vld [vmem:[%s26709_s1 + $0x3274] ss:$8 sps:$4 sm:$0xff]  }
 0x56b   :  { %12991 = vmatpush1.bf16.msra.mxu1 %v19315_v59  ;;  %v19395_v59 = vld [vmem:[%s26709_s1 + $0x1670] ss:$8 sps:$4 sm:$0xff]  }
 0x56c   :  { %14139 = vmatpush1.bf16.msra.mxu0 %v19318_v2  ;;  %12992 = vmatprep.subr.bf16.mxu1 %v19323_v22  ;;  %v19398_v2 = vld [vmem:[%s26709_s1 + $0x3270] ss:$8 sps:$4 sm:$0xff]   ;;  %v19403_v22 = vld [vmem:[%s26709_s1 + $0x1684] ss:$8 sps:$4 sm:$0xff]  }
 0x56d   :  { %14140 = vmatprep.subr.bf16.mxu0 %v19326_v31  ;;  %v19406_v31 = vld [vmem:[%s26709_s1 + $0x3284] ss:$8 sps:$4 sm:$0xff]  }
 0x56f   :  { %12993 = vmatpush1.bf16.msra.mxu1 %v19321_v24  ;;  %v19401_v24 = vld [vmem:[%s26709_s1 + $0x1680] ss:$8 sps:$4 sm:$0xff]  }
 0x570   :  { %14141 = vmatpush1.bf16.msra.mxu0 %v19324_v25  ;;  %12994 = vmatprep.subr.bf16.mxu1 %v19329_v26  ;;  %v19404_v25 = vld [vmem:[%s26709_s1 + $0x3280] ss:$8 sps:$4 sm:$0xff]   ;;  %v19409_v26 = vld [vmem:[%s26709_s1 + $0x1694] ss:$8 sps:$4 sm:$0xff]  }
 0x571   :  { %14142 = vmatprep.subr.bf16.mxu0 %v19332_v36  ;;  %v19412_v36 = vld [vmem:[%s26709_s1 + $0x3294] ss:$8 sps:$4 sm:$0xff]  }
 0x573   :  { %12995 = vmatpush1.bf16.msra.mxu1 %v19327_v1  ;;  %v19407_v1 = vld [vmem:[%s26709_s1 + $0x1690] ss:$8 sps:$4 sm:$0xff]  }
 0x574   :  { %14143 = vmatpush1.bf16.msra.mxu0 %v19330_v8  ;;  %12996 = vmatprep.subr.bf16.mxu1 %v19335_v3  ;;  %v19410_v8 = vld [vmem:[%s26709_s1 + $0x3290] ss:$8 sps:$4 sm:$0xff]   ;;  %v19415_v3 = vld [vmem:[%s26709_s1 + $0x16a4] ss:$8 sps:$4 sm:$0xff]  }
 0x575   :  { %14144 = vmatprep.subr.bf16.mxu0 %v19338_v10  ;;  %v19418_v10 = vld [vmem:[%s26709_s1 + $0x32a4] ss:$8 sps:$4 sm:$0xff]  }
 0x577   :  { %12997 = vmatpush1.bf16.msra.mxu1 %v19333_v30  ;;  %v19413_v30 = vld [vmem:[%s26709_s1 + $0x16a0] ss:$8 sps:$4 sm:$0xff]  }
 0x578   :  { %14145 = vmatpush1.bf16.msra.mxu0 %v19336_v44  ;;  %12998 = vmatprep.subr.bf16.mxu1 %v19341_v32  ;;  %v19416_v44 = vld [vmem:[%s26709_s1 + $0x32a0] ss:$8 sps:$4 sm:$0xff]   ;;  %v19421_v32 = vld [vmem:[%s26709_s1 + $0x16b4] ss:$8 sps:$4 sm:$0xff]  }
 0x579   :  { %14146 = vmatprep.subr.bf16.mxu0 %v19344_v33  ;;  %v19424_v33 = vld [vmem:[%s26709_s1 + $0x32b4] ss:$8 sps:$4 sm:$0xff]  }
 0x57b   :  { %12999 = vmatpush1.bf16.msra.mxu1 %v19339_v9  ;;  %v19419_v9 = vld [vmem:[%s26709_s1 + $0x16b0] ss:$8 sps:$4 sm:$0xff]  }
 0x57c   :  { %14147 = vmatpush1.bf16.msra.mxu0 %v19342_v20  ;;  %13000 = vmatprep.subr.bf16.mxu1 %v19347_v39  ;;  %v19422_v20 = vld [vmem:[%s26709_s1 + $0x32b0] ss:$8 sps:$4 sm:$0xff]   ;;  %v19427_v39 = vld [vmem:[%s26709_s1 + $0x16c4] ss:$8 sps:$4 sm:$0xff]  }
 0x57d   :  { %14148 = vmatprep.subr.bf16.mxu0 %v19350_v53  ;;  %v19430_v53 = vld [vmem:[%s26709_s1 + $0x32c4] ss:$8 sps:$4 sm:$0xff]  }
 0x57f   :  { %13001 = vmatpush1.bf16.msra.mxu1 %v19345_v42  ;;  %v19425_v42 = vld [vmem:[%s26709_s1 + $0x16c0] ss:$8 sps:$4 sm:$0xff]  }
 0x580   :  { %14149 = vmatpush1.bf16.msra.mxu0 %v19348_v57  ;;  %13011 = vmatprep.subr.bf16.mxu1 %v19354_v45  ;;  %v19428_v57 = vld [vmem:[%s26709_s1 + $0x32c0] ss:$8 sps:$4 sm:$0xff]   ;;  %v19433_v45 = vld [vmem:[%s26709_s1 + $0x16d4] ss:$8 sps:$4 sm:$0xff]  }
 0x581   :  { %14159 = vmatprep.subr.bf16.mxu0 %v19358_v46  ;;  %v19436_v46 = vld [vmem:[%s26709_s1 + $0x32d4] ss:$8 sps:$4 sm:$0xff]  }
 0x582   :  { %13003 = vmatmul.mubr.bf16.vlgmr.msra.gmra.mrb[0].mxu1 %v760_v52  ;;  %v19439_v52 = vld [vmem:[%s26709_s1 + $0x16e4] ss:$8 sps:$4 sm:$0xff]  }
 0x583   :  { %14151 = vmatmul.mubr.bf16.vlgmr.msra.gmra.mrb[0].mxu0 %v816_v61  ;;  %13012 = vmatpush1.bf16.msra.mxu1 %v19352_v54  ;;  %v19442_v61 = vld [vmem:[%s26709_s1 + $0x32e4] ss:$8 sps:$4 sm:$0xff]   ;;  %v286_v54 = vcombine.high %v24818_v34, %v24818_v34  ;;  %v19448_v34 = vld [vmem:[%s26709_s1 + $0x32f4] ss:$8 sps:$4 sm:$0xff]  }
 0x584   :  { %14160 = vmatpush1.bf16.msra.mxu0 %v19356_v55  ;;  %13013 = vmatprep.subr.bf16.mxu1 %v19361_v15  ;;  %v524_v55 = vcombine.high %v24823_v11, %v24823_v11  ;;  %v19437_v15 = vld [vmem:[%s26709_s1 + $0x16e0] ss:$8 sps:$4 sm:$0xff]  }
 0x585   :  { %14161 = vmatprep.subr.bf16.mxu0 %v19364_v51  ;;  %13043 = vmatprep.mubr.bf16.mxu1 %v763_v27  ;;  %v19440_v51 = vld [vmem:[%s26709_s1 + $0x32e0] ss:$8 sps:$4 sm:$0xff]   ;;  %v19445_v27 = vld [vmem:[%s26709_s1 + $0x16f4] ss:$8 sps:$4 sm:$0xff]   ;;  %v25050_v11 = vrot.slane %v286_v54, %v20275_v49  ;;  %v19515_v54 = vld [vmem:[%s26709_s1 + $0x17b0] ss:$8 sps:$4 sm:$0xff]  }
 0x586   :  { %14191 = vmatprep.mubr.bf16.mxu0 %v819_v40  ;;  %v25053_v40 = vrot.slane %v524_v55, %v20275_v49  ;;  %v19518_v55 = vld [vmem:[%s26709_s1 + $0x33b0] ss:$8 sps:$4 sm:$0xff]  }
 0x587   :  { %13014 = vmatpush1.bf16.msra.mxu1 %v19359_v29  ;;  %v19443_v29 = vld [vmem:[%s26709_s1 + $0x16f0] ss:$8 sps:$4 sm:$0xff]  }
 0x588   :  { %14162 = vmatpush1.bf16.msra.mxu0 %v19362_v37  ;;  %13015 = vmatprep.subr.bf16.mxu1 %v19367_v60  ;;  %v19446_v37 = vld [vmem:[%s26709_s1 + $0x32f0] ss:$8 sps:$4 sm:$0xff]   ;;  %v19451_v60 = vld [vmem:[%s26709_s1 + $0x1704] ss:$8 sps:$4 sm:$0xff]  }
 0x589   :  { %14163 = vmatprep.subr.bf16.mxu0 %v19370_v5  ;;  %v19454_v5 = vld [vmem:[%s26709_s1 + $0x3304] ss:$8 sps:$4 sm:$0xff]  }
 0x58b   :  { %13016 = vmatpush1.bf16.msra.mxu1 %v19365_v62  ;;  %v302_v62 = vcombine.high %v25050_v11, %v25050_v11 }
 0x58c   :  { %14164 = vmatpush1.bf16.msra.mxu0 %v19368_v63  ;;  %13017 = vmatprep.subr.bf16.mxu1 %v19373_v0  ;;  %v540_v63 = vcombine.high %v25053_v40, %v25053_v40  ;;  %v762_v0 = vpack.c.bf16 %v24839_v13, %v24839_v13  ;;  %v19460_v13 = vld [vmem:[%s26709_s1 + $0x3314] ss:$8 sps:$4 sm:$0xff]  }
 0x58d   :  { %14165 = vmatprep.subr.bf16.mxu0 %v19376_v38  ;;  %v818_v38 = vpack.c.bf16 %v24843_v35, %v24843_v35  ;;  %v765_v35 = vpack.c.bf16 %v302_v62, %v302_v62  ;;  %v19535_v62 = vld [vmem:[%s26709_s1 + $0x17e4] ss:$8 sps:$4 sm:$0xff]  }
 0x58f   :  { %13018 = vmatpush1.bf16.msra.mxu1 %v19371_v14  ;;  %v19449_v14 = vld [vmem:[%s26709_s1 + $0x1700] ss:$8 sps:$4 sm:$0xff]  }
 0x590   :  { %14166 = vmatpush1.bf16.msra.mxu0 %v19374_v47  ;;  %13019 = vmatprep.subr.bf16.mxu1 %v19379_v41  ;;  %v19452_v47 = vld [vmem:[%s26709_s1 + $0x3300] ss:$8 sps:$4 sm:$0xff]   ;;  %v19457_v41 = vld [vmem:[%s26709_s1 + $0x1714] ss:$8 sps:$4 sm:$0xff]  }
 0x591   :  { %14167 = vmatprep.subr.bf16.mxu0 %v19382_v50  ;;  %v821_v50 = vpack.c.bf16 %v540_v63, %v540_v63  ;;  %v19538_v63 = vld [vmem:[%s26709_s1 + $0x33e4] ss:$8 sps:$4 sm:$0xff]  }
 0x593   :  { %13020 = vmatpush1.bf16.msra.mxu1 %v19377_v4  ;;  %v19455_v4 = vld [vmem:[%s26709_s1 + $0x1710] ss:$8 sps:$4 sm:$0xff]  }
 0x594   :  { %14168 = vmatpush1.bf16.msra.mxu0 %v19380_v17  ;;  %13021 = vmatprep.subr.bf16.mxu1 %v19385_v6  ;;  %v19458_v17 = vld [vmem:[%s26709_s1 + $0x3310] ss:$8 sps:$4 sm:$0xff]   ;;  %v19463_v6 = vld [vmem:[%s26709_s1 + $0x1724] ss:$8 sps:$4 sm:$0xff]  }
 0x595   :  { %14169 = vmatprep.subr.bf16.mxu0 %v19388_v7  ;;  %v19466_v7 = vld [vmem:[%s26709_s1 + $0x3324] ss:$8 sps:$4 sm:$0xff]  }
 0x597   :  { %13022 = vmatpush1.bf16.msra.mxu1 %v19383_v48  ;;  %v19461_v48 = vld [vmem:[%s26709_s1 + $0x1720] ss:$8 sps:$4 sm:$0xff]  }
 0x598   :  { %14170 = vmatpush1.bf16.msra.mxu0 %v19386_v58  ;;  %13023 = vmatprep.subr.bf16.mxu1 %v19391_v12  ;;  %v19464_v58 = vld [vmem:[%s26709_s1 + $0x3320] ss:$8 sps:$4 sm:$0xff]   ;;  %v19469_v12 = vld [vmem:[%s26709_s1 + $0x1734] ss:$8 sps:$4 sm:$0xff]  }
 0x599   :  { %14171 = vmatprep.subr.bf16.mxu0 %v19394_v23  ;;  %v19472_v23 = vld [vmem:[%s26709_s1 + $0x3334] ss:$8 sps:$4 sm:$0xff]  }
 0x59b   :  { %13024 = vmatpush1.bf16.msra.mxu1 %v19389_v16  ;;  %v19467_v16 = vld [vmem:[%s26709_s1 + $0x1730] ss:$8 sps:$4 sm:$0xff]  }
 0x59c   :  { %14172 = vmatpush1.bf16.msra.mxu0 %v19392_v56  ;;  %13025 = vmatprep.subr.bf16.mxu1 %v19397_v18  ;;  %v19470_v56 = vld [vmem:[%s26709_s1 + $0x3330] ss:$8 sps:$4 sm:$0xff]   ;;  %v19475_v18 = vld [vmem:[%s26709_s1 + $0x1744] ss:$8 sps:$4 sm:$0xff]  }
 0x59d   :  { %14173 = vmatprep.subr.bf16.mxu0 %v19400_v19  ;;  %v19478_v19 = vld [vmem:[%s26709_s1 + $0x3344] ss:$8 sps:$4 sm:$0xff]  }
 0x59f   :  { %13026 = vmatpush1.bf16.msra.mxu1 %v19395_v59  ;;  %v19473_v59 = vld [vmem:[%s26709_s1 + $0x1740] ss:$8 sps:$4 sm:$0xff]  }
 0x5a0   :  { %14174 = vmatpush1.bf16.msra.mxu0 %v19398_v2  ;;  %13027 = vmatprep.subr.bf16.mxu1 %v19403_v22  ;;  %v19476_v2 = vld [vmem:[%s26709_s1 + $0x3340] ss:$8 sps:$4 sm:$0xff]   ;;  %v19481_v22 = vld [vmem:[%s26709_s1 + $0x1754] ss:$8 sps:$4 sm:$0xff]  }
 0x5a1   :  { %14175 = vmatprep.subr.bf16.mxu0 %v19406_v31  ;;  %v19484_v31 = vld [vmem:[%s26709_s1 + $0x3354] ss:$8 sps:$4 sm:$0xff]  }
 0x5a3   :  { %13028 = vmatpush1.bf16.msra.mxu1 %v19401_v24  ;;  %v19479_v24 = vld [vmem:[%s26709_s1 + $0x1750] ss:$8 sps:$4 sm:$0xff]  }
 0x5a4   :  { %14176 = vmatpush1.bf16.msra.mxu0 %v19404_v25  ;;  %13029 = vmatprep.subr.bf16.mxu1 %v19409_v26  ;;  %v19482_v25 = vld [vmem:[%s26709_s1 + $0x3350] ss:$8 sps:$4 sm:$0xff]   ;;  %v19487_v26 = vld [vmem:[%s26709_s1 + $0x1764] ss:$8 sps:$4 sm:$0xff]  }
 0x5a5   :  { %14177 = vmatprep.subr.bf16.mxu0 %v19412_v36  ;;  %v19490_v36 = vld [vmem:[%s26709_s1 + $0x3364] ss:$8 sps:$4 sm:$0xff]  }
 0x5a7   :  { %13030 = vmatpush1.bf16.msra.mxu1 %v19407_v1  ;;  %v19485_v1 = vld [vmem:[%s26709_s1 + $0x1760] ss:$8 sps:$4 sm:$0xff]  }
 0x5a8   :  { %14178 = vmatpush1.bf16.msra.mxu0 %v19410_v8  ;;  %13031 = vmatprep.subr.bf16.mxu1 %v19415_v3  ;;  %v19488_v8 = vld [vmem:[%s26709_s1 + $0x3360] ss:$8 sps:$4 sm:$0xff]   ;;  %v19493_v3 = vld [vmem:[%s26709_s1 + $0x1774] ss:$8 sps:$4 sm:$0xff]  }
 0x5a9   :  { %14179 = vmatprep.subr.bf16.mxu0 %v19418_v10  ;;  %v19496_v10 = vld [vmem:[%s26709_s1 + $0x3374] ss:$8 sps:$4 sm:$0xff]  }
 0x5ab   :  { %13032 = vmatpush1.bf16.msra.mxu1 %v19413_v30  ;;  %v19491_v30 = vld [vmem:[%s26709_s1 + $0x1770] ss:$8 sps:$4 sm:$0xff]  }
 0x5ac   :  { %14180 = vmatpush1.bf16.msra.mxu0 %v19416_v44  ;;  %13033 = vmatprep.subr.bf16.mxu1 %v19421_v32  ;;  %v19494_v44 = vld [vmem:[%s26709_s1 + $0x3370] ss:$8 sps:$4 sm:$0xff]   ;;  %v19499_v32 = vld [vmem:[%s26709_s1 + $0x1784] ss:$8 sps:$4 sm:$0xff]  }
 0x5ad   :  { %14181 = vmatprep.subr.bf16.mxu0 %v19424_v33  ;;  %v19502_v33 = vld [vmem:[%s26709_s1 + $0x3384] ss:$8 sps:$4 sm:$0xff]  }
 0x5af   :  { %13034 = vmatpush1.bf16.msra.mxu1 %v19419_v9  ;;  %v19497_v9 = vld [vmem:[%s26709_s1 + $0x1780] ss:$8 sps:$4 sm:$0xff]  }
 0x5b0   :  { %14182 = vmatpush1.bf16.msra.mxu0 %v19422_v20  ;;  %13035 = vmatprep.subr.bf16.mxu1 %v19427_v39  ;;  %v19500_v20 = vld [vmem:[%s26709_s1 + $0x3380] ss:$8 sps:$4 sm:$0xff]   ;;  %v19505_v39 = vld [vmem:[%s26709_s1 + $0x1794] ss:$8 sps:$4 sm:$0xff]  }
 0x5b1   :  { %14183 = vmatprep.subr.bf16.mxu0 %v19430_v53  ;;  %v19508_v53 = vld [vmem:[%s26709_s1 + $0x3394] ss:$8 sps:$4 sm:$0xff]  }
 0x5b3   :  { %13036 = vmatpush1.bf16.msra.mxu1 %v19425_v42  ;;  %v19503_v42 = vld [vmem:[%s26709_s1 + $0x1790] ss:$8 sps:$4 sm:$0xff]  }
 0x5b4   :  { %14184 = vmatpush1.bf16.msra.mxu0 %v19428_v57  ;;  %13037 = vmatprep.subr.bf16.mxu1 %v19433_v45  ;;  %v19506_v57 = vld [vmem:[%s26709_s1 + $0x3390] ss:$8 sps:$4 sm:$0xff]   ;;  %v19511_v45 = vld [vmem:[%s26709_s1 + $0x17a4] ss:$8 sps:$4 sm:$0xff]  }
 0x5b5   :  { %14185 = vmatprep.subr.bf16.mxu0 %v19436_v46  ;;  %v19514_v46 = vld [vmem:[%s26709_s1 + $0x33a4] ss:$8 sps:$4 sm:$0xff]  }
 0x5b7   :  { %13038 = vmatpush1.bf16.msra.mxu1 %v19431_v21  ;;  %v19509_v21 = vld [vmem:[%s26709_s1 + $0x17a0] ss:$8 sps:$4 sm:$0xff]  }
 0x5b8   :  { %14186 = vmatpush1.bf16.msra.mxu0 %v19434_v28  ;;  %13039 = vmatprep.subr.bf16.mxu1 %v19439_v52  ;;  %v19512_v28 = vld [vmem:[%s26709_s1 + $0x33a0] ss:$8 sps:$4 sm:$0xff]   ;;  %v19517_v52 = vld [vmem:[%s26709_s1 + $0x17b4] ss:$8 sps:$4 sm:$0xff]  }
 0x5b9   :  { %14187 = vmatprep.subr.bf16.mxu0 %v19442_v61  ;;  %v19520_v61 = vld [vmem:[%s26709_s1 + $0x33b4] ss:$8 sps:$4 sm:$0xff]  }
 0x5bb   :  { %13040 = vmatpush1.bf16.msra.mxu1 %v19437_v15  ;;  %v19523_v15 = vld [vmem:[%s26709_s1 + $0x17c4] ss:$8 sps:$4 sm:$0xff]  }
 0x5bc   :  { %14188 = vmatpush1.bf16.msra.mxu0 %v19440_v51  ;;  %13041 = vmatprep.subr.bf16.mxu1 %v19445_v27  ;;  %v19526_v51 = vld [vmem:[%s26709_s1 + $0x33c4] ss:$8 sps:$4 sm:$0xff]   ;;  %v19521_v27 = vld [vmem:[%s26709_s1 + $0x17c0] ss:$8 sps:$4 sm:$0xff]  }
 0x5bd   :  { %14189 = vmatprep.subr.bf16.mxu0 %v19448_v34  ;;  %v19524_v34 = vld [vmem:[%s26709_s1 + $0x33c0] ss:$8 sps:$4 sm:$0xff]  }
 0x5bf   :  { %13042 = vmatpush1.bf16.msra.mxu1 %v19443_v29  ;;  %v19529_v29 = vld [vmem:[%s26709_s1 + $0x17d4] ss:$8 sps:$4 sm:$0xff]  }
 0x5c0   :  { %14190 = vmatpush1.bf16.msra.mxu0 %v19446_v37  ;;  %13052 = vmatprep.subr.bf16.mxu1 %v19451_v60  ;;  %v19532_v37 = vld [vmem:[%s26709_s1 + $0x33d4] ss:$8 sps:$4 sm:$0xff]   ;;  %v19527_v60 = vld [vmem:[%s26709_s1 + $0x17d0] ss:$8 sps:$4 sm:$0xff]  }
 0x5c1   :  { %14200 = vmatprep.subr.bf16.mxu0 %v19454_v5  ;;  %v19530_v5 = vld [vmem:[%s26709_s1 + $0x33d0] ss:$8 sps:$4 sm:$0xff]  }
 0x5c2   :  { %13044 = vmatmul.mubr.bf16.vlgmr.msra.gmra.mrb[0].mxu1 %v762_v0  ;;  %v25246_v0 = vld [vmem:[%s26710_s0 + $0x60] sm:$0xff] }
 0x5c3   :  { %14192 = vmatmul.mubr.bf16.vlgmr.msra.gmra.mrb[0].mxu0 %v818_v38  ;;  %13053 = vmatpush1.bf16.msra.mxu1 %v19449_v14  ;;  %v25251_v38 = vld [vmem:[%s26710_s0 + $0xd0] sm:$0xff]  ;;  %v19533_v14 = vld [vmem:[%s26709_s1 + $0x17e0] ss:$8 sps:$4 sm:$0xff]  }
 0x5c4   :  { %14201 = vmatpush1.bf16.msra.mxu0 %v19452_v47  ;;  %13054 = vmatprep.subr.bf16.mxu1 %v19457_v41  ;;  %v19536_v47 = vld [vmem:[%s26709_s1 + $0x33e0] ss:$8 sps:$4 sm:$0xff]   ;;  %v19541_v41 = vld [vmem:[%s26709_s1 + $0x17f4] ss:$8 sps:$4 sm:$0xff]  }
 0x5c5   :  { %14202 = vmatprep.subr.bf16.mxu0 %v19460_v13  ;;  %13084 = vmatprep.mubr.bf16.mxu1 %v765_v35  ;;  %v19544_v13 = vld [vmem:[%s26709_s1 + $0x33f4] ss:$8 sps:$4 sm:$0xff]   ;;  %v25267_v35 = vrot.slane %v25246_v0, %v20275_v49 }
 0x5c6   :  { %14232 = vmatprep.mubr.bf16.mxu0 %v821_v50  ;;  %v25271_v50 = vrot.slane %v25251_v38, %v20275_v49 }
 0x5c7   :  { %13055 = vmatpush1.bf16.msra.mxu1 %v19455_v4  ;;  %v19539_v4 = vld [vmem:[%s26709_s1 + $0x17f0] ss:$8 sps:$4 sm:$0xff]  }
 0x5c8   :  { %14203 = vmatpush1.bf16.msra.mxu0 %v19458_v17  ;;  %13056 = vmatprep.subr.bf16.mxu1 %v19463_v6  ;;  %v19542_v17 = vld [vmem:[%s26709_s1 + $0x33f0] ss:$8 sps:$4 sm:$0xff]   ;;  %v19548_v6 = vld [vmem:[%s26709_s1 + $0x1804] ss:$8 sps:$4 sm:$0xff]  }
 0x5c9   :  { %14204 = vmatprep.subr.bf16.mxu0 %v19466_v7  ;;  %v19552_v7 = vld [vmem:[%s26709_s1 + $0x3404] ss:$8 sps:$4 sm:$0xff]  }
 0x5cb   :  { %13057 = vmatpush1.bf16.msra.mxu1 %v19461_v48  ;;  %v318_v48 = vcombine.high %v25267_v35, %v25267_v35 }
 0x5cc   :  { %14205 = vmatpush1.bf16.msra.mxu0 %v19464_v58  ;;  %13058 = vmatprep.subr.bf16.mxu1 %v19469_v12  ;;  %v556_v58 = vcombine.high %v25271_v50, %v25271_v50  ;;  %v764_v12 = vpack.c.bf16 %v25050_v11, %v25050_v11  ;;  %v19558_v11 = vld [vmem:[%s26709_s1 + $0x3414] ss:$8 sps:$4 sm:$0xff]  }
 0x5cd   :  { %14206 = vmatprep.subr.bf16.mxu0 %v19472_v23  ;;  %v820_v23 = vpack.c.bf16 %v25053_v40, %v25053_v40  ;;  %v767_v40 = vpack.c.bf16 %v318_v48, %v318_v48  ;;  %v19625_v48 = vld [vmem:[%s26709_s1 + $0x18d0] ss:$8 sps:$4 sm:$0xff]  }
 0x5cf   :  { %13059 = vmatpush1.bf16.msra.mxu1 %v19467_v16  ;;  %v19546_v16 = vld [vmem:[%s26709_s1 + $0x1800] ss:$8 sps:$4 sm:$0xff]  }
 0x5d0   :  { %14207 = vmatpush1.bf16.msra.mxu0 %v19470_v56  ;;  %13060 = vmatprep.subr.bf16.mxu1 %v19475_v18  ;;  %v19550_v56 = vld [vmem:[%s26709_s1 + $0x3400] ss:$8 sps:$4 sm:$0xff]   ;;  %v19555_v18 = vld [vmem:[%s26709_s1 + $0x1814] ss:$8 sps:$4 sm:$0xff]  }
 0x5d1   :  { %14208 = vmatprep.subr.bf16.mxu0 %v19478_v19  ;;  %v823_v19 = vpack.c.bf16 %v556_v58, %v556_v58  ;;  %v19628_v58 = vld [vmem:[%s26709_s1 + $0x34d0] ss:$8 sps:$4 sm:$0xff]  }
 0x5d3   :  { %13061 = vmatpush1.bf16.msra.mxu1 %v19473_v59  ;;  %v19553_v59 = vld [vmem:[%s26709_s1 + $0x1810] ss:$8 sps:$4 sm:$0xff]  }
 0x5d4   :  { %14209 = vmatpush1.bf16.msra.mxu0 %v19476_v2  ;;  %13062 = vmatprep.subr.bf16.mxu1 %v19481_v22  ;;  %v19556_v2 = vld [vmem:[%s26709_s1 + $0x3410] ss:$8 sps:$4 sm:$0xff]   ;;  %v19561_v22 = vld [vmem:[%s26709_s1 + $0x1824] ss:$8 sps:$4 sm:$0xff]  }
 0x5d5   :  { %14210 = vmatprep.subr.bf16.mxu0 %v19484_v31  ;;  %v19564_v31 = vld [vmem:[%s26709_s1 + $0x3424] ss:$8 sps:$4 sm:$0xff]  }
 0x5d7   :  { %13063 = vmatpush1.bf16.msra.mxu1 %v19479_v24  ;;  %v19559_v24 = vld [vmem:[%s26709_s1 + $0x1820] ss:$8 sps:$4 sm:$0xff]  }
 0x5d8   :  { %14211 = vmatpush1.bf16.msra.mxu0 %v19482_v25  ;;  %13064 = vmatprep.subr.bf16.mxu1 %v19487_v26  ;;  %v19562_v25 = vld [vmem:[%s26709_s1 + $0x3420] ss:$8 sps:$4 sm:$0xff]   ;;  %v19567_v26 = vld [vmem:[%s26709_s1 + $0x1834] ss:$8 sps:$4 sm:$0xff]  }
 0x5d9   :  { %14212 = vmatprep.subr.bf16.mxu0 %v19490_v36  ;;  %v19570_v36 = vld [vmem:[%s26709_s1 + $0x3434] ss:$8 sps:$4 sm:$0xff]  }
 0x5db   :  { %13065 = vmatpush1.bf16.msra.mxu1 %v19485_v1  ;;  %v19565_v1 = vld [vmem:[%s26709_s1 + $0x1830] ss:$8 sps:$4 sm:$0xff]  }
 0x5dc   :  { %14213 = vmatpush1.bf16.msra.mxu0 %v19488_v8  ;;  %13066 = vmatprep.subr.bf16.mxu1 %v19493_v3  ;;  %v19568_v8 = vld [vmem:[%s26709_s1 + $0x3430] ss:$8 sps:$4 sm:$0xff]   ;;  %v19573_v3 = vld [vmem:[%s26709_s1 + $0x1844] ss:$8 sps:$4 sm:$0xff]  }
 0x5dd   :  { %14214 = vmatprep.subr.bf16.mxu0 %v19496_v10  ;;  %v19576_v10 = vld [vmem:[%s26709_s1 + $0x3444] ss:$8 sps:$4 sm:$0xff]  }
 0x5df   :  { %13067 = vmatpush1.bf16.msra.mxu1 %v19491_v30  ;;  %v19571_v30 = vld [vmem:[%s26709_s1 + $0x1840] ss:$8 sps:$4 sm:$0xff]  }
 0x5e0   :  { %14215 = vmatpush1.bf16.msra.mxu0 %v19494_v44  ;;  %13068 = vmatprep.subr.bf16.mxu1 %v19499_v32  ;;  %v19574_v44 = vld [vmem:[%s26709_s1 + $0x3440] ss:$8 sps:$4 sm:$0xff]   ;;  %v19579_v32 = vld [vmem:[%s26709_s1 + $0x1854] ss:$8 sps:$4 sm:$0xff]  }
 0x5e1   :  { %14216 = vmatprep.subr.bf16.mxu0 %v19502_v33  ;;  %v19582_v33 = vld [vmem:[%s26709_s1 + $0x3454] ss:$8 sps:$4 sm:$0xff]  }
 0x5e3   :  { %13069 = vmatpush1.bf16.msra.mxu1 %v19497_v9  ;;  %v19577_v9 = vld [vmem:[%s26709_s1 + $0x1850] ss:$8 sps:$4 sm:$0xff]  }
 0x5e4   :  { %14217 = vmatpush1.bf16.msra.mxu0 %v19500_v20  ;;  %13070 = vmatprep.subr.bf16.mxu1 %v19505_v39  ;;  %v19580_v20 = vld [vmem:[%s26709_s1 + $0x3450] ss:$8 sps:$4 sm:$0xff]   ;;  %v19585_v39 = vld [vmem:[%s26709_s1 + $0x1864] ss:$8 sps:$4 sm:$0xff]  }
 0x5e5   :  { %14218 = vmatprep.subr.bf16.mxu0 %v19508_v53  ;;  %v19588_v53 = vld [vmem:[%s26709_s1 + $0x3464] ss:$8 sps:$4 sm:$0xff]  }
 0x5e7   :  { %13071 = vmatpush1.bf16.msra.mxu1 %v19503_v42  ;;  %v19583_v42 = vld [vmem:[%s26709_s1 + $0x1860] ss:$8 sps:$4 sm:$0xff]  }
 0x5e8   :  { %14219 = vmatpush1.bf16.msra.mxu0 %v19506_v57  ;;  %13072 = vmatprep.subr.bf16.mxu1 %v19511_v45  ;;  %v19586_v57 = vld [vmem:[%s26709_s1 + $0x3460] ss:$8 sps:$4 sm:$0xff]   ;;  %v19591_v45 = vld [vmem:[%s26709_s1 + $0x1874] ss:$8 sps:$4 sm:$0xff]  }
 0x5e9   :  { %14220 = vmatprep.subr.bf16.mxu0 %v19514_v46  ;;  %v19594_v46 = vld [vmem:[%s26709_s1 + $0x3474] ss:$8 sps:$4 sm:$0xff]  }
 0x5eb   :  { %13073 = vmatpush1.bf16.msra.mxu1 %v19509_v21  ;;  %v19589_v21 = vld [vmem:[%s26709_s1 + $0x1870] ss:$8 sps:$4 sm:$0xff]  }
 0x5ec   :  { %14221 = vmatpush1.bf16.msra.mxu0 %v19512_v28  ;;  %13074 = vmatprep.subr.bf16.mxu1 %v19517_v52  ;;  %v19592_v28 = vld [vmem:[%s26709_s1 + $0x3470] ss:$8 sps:$4 sm:$0xff]   ;;  %v19597_v52 = vld [vmem:[%s26709_s1 + $0x1884] ss:$8 sps:$4 sm:$0xff]  }
 0x5ed   :  { %14222 = vmatprep.subr.bf16.mxu0 %v19520_v61  ;;  %v19600_v61 = vld [vmem:[%s26709_s1 + $0x3484] ss:$8 sps:$4 sm:$0xff]  }
 0x5ef   :  { %13075 = vmatpush1.bf16.msra.mxu1 %v19515_v54  ;;  %v19595_v54 = vld [vmem:[%s26709_s1 + $0x1880] ss:$8 sps:$4 sm:$0xff]  }
 0x5f0   :  { %14223 = vmatpush1.bf16.msra.mxu0 %v19518_v55  ;;  %13076 = vmatprep.subr.bf16.mxu1 %v19523_v15  ;;  %v19598_v55 = vld [vmem:[%s26709_s1 + $0x3480] ss:$8 sps:$4 sm:$0xff]   ;;  %v19603_v15 = vld [vmem:[%s26709_s1 + $0x1894] ss:$8 sps:$4 sm:$0xff]  }
 0x5f1   :  { %14224 = vmatprep.subr.bf16.mxu0 %v19526_v51  ;;  %v19606_v51 = vld [vmem:[%s26709_s1 + $0x3494] ss:$8 sps:$4 sm:$0xff]  }
 0x5f3   :  { %13077 = vmatpush1.bf16.msra.mxu1 %v19521_v27  ;;  %v19601_v27 = vld [vmem:[%s26709_s1 + $0x1890] ss:$8 sps:$4 sm:$0xff]  }
 0x5f4   :  { %14225 = vmatpush1.bf16.msra.mxu0 %v19524_v34  ;;  %13078 = vmatprep.subr.bf16.mxu1 %v19529_v29  ;;  %v19604_v34 = vld [vmem:[%s26709_s1 + $0x3490] ss:$8 sps:$4 sm:$0xff]   ;;  %v19609_v29 = vld [vmem:[%s26709_s1 + $0x18a4] ss:$8 sps:$4 sm:$0xff]  }
 0x5f5   :  { %14226 = vmatprep.subr.bf16.mxu0 %v19532_v37  ;;  %v19612_v37 = vld [vmem:[%s26709_s1 + $0x34a4] ss:$8 sps:$4 sm:$0xff]  }
 0x5f7   :  { %13079 = vmatpush1.bf16.msra.mxu1 %v19527_v60  ;;  %v19607_v60 = vld [vmem:[%s26709_s1 + $0x18a0] ss:$8 sps:$4 sm:$0xff]  }
 0x5f8   :  { %14227 = vmatpush1.bf16.msra.mxu0 %v19530_v5  ;;  %13080 = vmatprep.subr.bf16.mxu1 %v19535_v62  ;;  %v19610_v5 = vld [vmem:[%s26709_s1 + $0x34a0] ss:$8 sps:$4 sm:$0xff]   ;;  %v19615_v62 = vld [vmem:[%s26709_s1 + $0x18b4] ss:$8 sps:$4 sm:$0xff]  }
 0x5f9   :  { %14228 = vmatprep.subr.bf16.mxu0 %v19538_v63  ;;  %v19618_v63 = vld [vmem:[%s26709_s1 + $0x34b4] ss:$8 sps:$4 sm:$0xff]  }
 0x5fb   :  { %13081 = vmatpush1.bf16.msra.mxu1 %v19533_v14  ;;  %v19613_v14 = vld [vmem:[%s26709_s1 + $0x18b0] ss:$8 sps:$4 sm:$0xff]  }
 0x5fc   :  { %14229 = vmatpush1.bf16.msra.mxu0 %v19536_v47  ;;  %13082 = vmatprep.subr.bf16.mxu1 %v19541_v41  ;;  %v19616_v47 = vld [vmem:[%s26709_s1 + $0x34b0] ss:$8 sps:$4 sm:$0xff]   ;;  %v19621_v41 = vld [vmem:[%s26709_s1 + $0x18c4] ss:$8 sps:$4 sm:$0xff]  }
 0x5fd   :  { %14230 = vmatprep.subr.bf16.mxu0 %v19544_v13  ;;  %v19624_v13 = vld [vmem:[%s26709_s1 + $0x34c4] ss:$8 sps:$4 sm:$0xff]  }
 0x5ff   :  { %13083 = vmatpush1.bf16.msra.mxu1 %v19539_v4  ;;  %v19619_v4 = vld [vmem:[%s26709_s1 + $0x18c0] ss:$8 sps:$4 sm:$0xff]  }
 0x600   :  { %14231 = vmatpush1.bf16.msra.mxu0 %v19542_v17  ;;  %13093 = vmatprep.subr.bf16.mxu1 %v19548_v6  ;;  %v19622_v17 = vld [vmem:[%s26709_s1 + $0x34c0] ss:$8 sps:$4 sm:$0xff]   ;;  %v19627_v6 = vld [vmem:[%s26709_s1 + $0x18d4] ss:$8 sps:$4 sm:$0xff]  }
 0x601   :  { %14241 = vmatprep.subr.bf16.mxu0 %v19552_v7  ;;  %v19630_v7 = vld [vmem:[%s26709_s1 + $0x34d4] ss:$8 sps:$4 sm:$0xff]  }
 0x602   :  { %13085 = vmatmul.mubr.bf16.vlgmr.msra.gmra.mrb[0].mxu1 %v764_v12  ;;  %v19633_v12 = vld [vmem:[%s26709_s1 + $0x18e4] ss:$8 sps:$4 sm:$0xff]  }
 0x603   :  { %14233 = vmatmul.mubr.bf16.vlgmr.msra.gmra.mrb[0].mxu0 %v820_v23  ;;  %13094 = vmatpush1.bf16.msra.mxu1 %v19546_v16  ;;  %v19636_v23 = vld [vmem:[%s26709_s1 + $0x34e4] ss:$8 sps:$4 sm:$0xff]   ;;  %v303_v16 = vcombine.high %v25246_v0, %v25246_v0  ;;  %v19642_v0 = vld [vmem:[%s26709_s1 + $0x34f4] ss:$8 sps:$4 sm:$0xff]  }
 0x604   :  { %14242 = vmatpush1.bf16.msra.mxu0 %v19550_v56  ;;  %13095 = vmatprep.subr.bf16.mxu1 %v19555_v18  ;;  %v541_v56 = vcombine.high %v25251_v38, %v25251_v38  ;;  %v19631_v18 = vld [vmem:[%s26709_s1 + $0x18e0] ss:$8 sps:$4 sm:$0xff]  }
 0x605   :  { %14243 = vmatprep.subr.bf16.mxu0 %v19558_v11  ;;  %13125 = vmatprep.mubr.bf16.mxu1 %v767_v40  ;;  %v19634_v11 = vld [vmem:[%s26709_s1 + $0x34e0] ss:$8 sps:$4 sm:$0xff]   ;;  %v19639_v40 = vld [vmem:[%s26709_s1 + $0x18f4] ss:$8 sps:$4 sm:$0xff]   ;;  %v25478_v38 = vrot.slane %v303_v16, %v20275_v49  ;;  %v19709_v16 = vld [vmem:[%s26709_s1 + $0x19b0] ss:$8 sps:$4 sm:$0xff]  }
 0x606   :  { %14273 = vmatprep.mubr.bf16.mxu0 %v823_v19  ;;  %v25481_v19 = vrot.slane %v541_v56, %v20275_v49  ;;  %v19712_v56 = vld [vmem:[%s26709_s1 + $0x35b0] ss:$8 sps:$4 sm:$0xff]  }
 0x607   :  { %13096 = vmatpush1.bf16.msra.mxu1 %v19553_v59  ;;  %v19637_v59 = vld [vmem:[%s26709_s1 + $0x18f0] ss:$8 sps:$4 sm:$0xff]  }
 0x608   :  { %14244 = vmatpush1.bf16.msra.mxu0 %v19556_v2  ;;  %13097 = vmatprep.subr.bf16.mxu1 %v19561_v22  ;;  %v19640_v2 = vld [vmem:[%s26709_s1 + $0x34f0] ss:$8 sps:$4 sm:$0xff]   ;;  %v19645_v22 = vld [vmem:[%s26709_s1 + $0x1904] ss:$8 sps:$4 sm:$0xff]  }
 0x609   :  { %14245 = vmatprep.subr.bf16.mxu0 %v19564_v31  ;;  %v19648_v31 = vld [vmem:[%s26709_s1 + $0x3504] ss:$8 sps:$4 sm:$0xff]  }
 0x60b   :  { %13098 = vmatpush1.bf16.msra.mxu1 %v19559_v24  ;;  %v319_v24 = vcombine.high %v25478_v38, %v25478_v38 }
 0x60c   :  { %14246 = vmatpush1.bf16.msra.mxu0 %v19562_v25  ;;  %13099 = vmatprep.subr.bf16.mxu1 %v19567_v26  ;;  %v557_v25 = vcombine.high %v25481_v19, %v25481_v19  ;;  %v766_v26 = vpack.c.bf16 %v25267_v35, %v25267_v35  ;;  %v19654_v35 = vld [vmem:[%s26709_s1 + $0x3514] ss:$8 sps:$4 sm:$0xff]  }
 0x60d   :  { %14247 = vmatprep.subr.bf16.mxu0 %v19570_v36  ;;  %v822_v36 = vpack.c.bf16 %v25271_v50, %v25271_v50  ;;  %v769_v50 = vpack.c.bf16 %v319_v24, %v319_v24  ;;  %v19729_v24 = vld [vmem:[%s26709_s1 + $0x19e4] ss:$8 sps:$4 sm:$0xff]  }
 0x60f   :  { %13100 = vmatpush1.bf16.msra.mxu1 %v19565_v1  ;;  %v19643_v1 = vld [vmem:[%s26709_s1 + $0x1900] ss:$8 sps:$4 sm:$0xff]  }
 0x610   :  { %14248 = vmatpush1.bf16.msra.mxu0 %v19568_v8  ;;  %13101 = vmatprep.subr.bf16.mxu1 %v19573_v3  ;;  %v19646_v8 = vld [vmem:[%s26709_s1 + $0x3500] ss:$8 sps:$4 sm:$0xff]   ;;  %v19651_v3 = vld [vmem:[%s26709_s1 + $0x1914] ss:$8 sps:$4 sm:$0xff]  }
 0x611   :  { %14249 = vmatprep.subr.bf16.mxu0 %v19576_v10  ;;  %v825_v10 = vpack.c.bf16 %v557_v25, %v557_v25  ;;  %v19732_v25 = vld [vmem:[%s26709_s1 + $0x35e4] ss:$8 sps:$4 sm:$0xff]  }
 0x613   :  { %13102 = vmatpush1.bf16.msra.mxu1 %v19571_v30  ;;  %v19649_v30 = vld [vmem:[%s26709_s1 + $0x1910] ss:$8 sps:$4 sm:$0xff]  }
 0x614   :  { %14250 = vmatpush1.bf16.msra.mxu0 %v19574_v44  ;;  %13103 = vmatprep.subr.bf16.mxu1 %v19579_v32  ;;  %v19652_v44 = vld [vmem:[%s26709_s1 + $0x3510] ss:$8 sps:$4 sm:$0xff]   ;;  %v19657_v32 = vld [vmem:[%s26709_s1 + $0x1924] ss:$8 sps:$4 sm:$0xff]  }
 0x615   :  { %14251 = vmatprep.subr.bf16.mxu0 %v19582_v33  ;;  %v19660_v33 = vld [vmem:[%s26709_s1 + $0x3524] ss:$8 sps:$4 sm:$0xff]  }
 0x617   :  { %13104 = vmatpush1.bf16.msra.mxu1 %v19577_v9  ;;  %v19655_v9 = vld [vmem:[%s26709_s1 + $0x1920] ss:$8 sps:$4 sm:$0xff]  }
 0x618   :  { %14252 = vmatpush1.bf16.msra.mxu0 %v19580_v20  ;;  %13105 = vmatprep.subr.bf16.mxu1 %v19585_v39  ;;  %v19658_v20 = vld [vmem:[%s26709_s1 + $0x3520] ss:$8 sps:$4 sm:$0xff]   ;;  %v19663_v39 = vld [vmem:[%s26709_s1 + $0x1934] ss:$8 sps:$4 sm:$0xff]  }
 0x619   :  { %14253 = vmatprep.subr.bf16.mxu0 %v19588_v53  ;;  %v19666_v53 = vld [vmem:[%s26709_s1 + $0x3534] ss:$8 sps:$4 sm:$0xff]  }
 0x61b   :  { %13106 = vmatpush1.bf16.msra.mxu1 %v19583_v42  ;;  %v19661_v42 = vld [vmem:[%s26709_s1 + $0x1930] ss:$8 sps:$4 sm:$0xff]  }
 0x61c   :  { %14254 = vmatpush1.bf16.msra.mxu0 %v19586_v57  ;;  %13107 = vmatprep.subr.bf16.mxu1 %v19591_v45  ;;  %v19664_v57 = vld [vmem:[%s26709_s1 + $0x3530] ss:$8 sps:$4 sm:$0xff]   ;;  %v19669_v45 = vld [vmem:[%s26709_s1 + $0x1944] ss:$8 sps:$4 sm:$0xff]  }
 0x61d   :  { %14255 = vmatprep.subr.bf16.mxu0 %v19594_v46  ;;  %v19672_v46 = vld [vmem:[%s26709_s1 + $0x3544] ss:$8 sps:$4 sm:$0xff]  }
 0x61f   :  { %13108 = vmatpush1.bf16.msra.mxu1 %v19589_v21  ;;  %v19667_v21 = vld [vmem:[%s26709_s1 + $0x1940] ss:$8 sps:$4 sm:$0xff]  }
 0x620   :  { %14256 = vmatpush1.bf16.msra.mxu0 %v19592_v28  ;;  %13109 = vmatprep.subr.bf16.mxu1 %v19597_v52  ;;  %v19670_v28 = vld [vmem:[%s26709_s1 + $0x3540] ss:$8 sps:$4 sm:$0xff]   ;;  %v19675_v52 = vld [vmem:[%s26709_s1 + $0x1954] ss:$8 sps:$4 sm:$0xff]  }
 0x621   :  { %14257 = vmatprep.subr.bf16.mxu0 %v19600_v61  ;;  %v19678_v61 = vld [vmem:[%s26709_s1 + $0x3554] ss:$8 sps:$4 sm:$0xff]  }
 0x623   :  { %13110 = vmatpush1.bf16.msra.mxu1 %v19595_v54  ;;  %v19673_v54 = vld [vmem:[%s26709_s1 + $0x1950] ss:$8 sps:$4 sm:$0xff]  }
 0x624   :  { %14258 = vmatpush1.bf16.msra.mxu0 %v19598_v55  ;;  %13111 = vmatprep.subr.bf16.mxu1 %v19603_v15  ;;  %v19676_v55 = vld [vmem:[%s26709_s1 + $0x3550] ss:$8 sps:$4 sm:$0xff]   ;;  %v19681_v15 = vld [vmem:[%s26709_s1 + $0x1964] ss:$8 sps:$4 sm:$0xff]  }
 0x625   :  { %14259 = vmatprep.subr.bf16.mxu0 %v19606_v51  ;;  %v19684_v51 = vld [vmem:[%s26709_s1 + $0x3564] ss:$8 sps:$4 sm:$0xff]  }
 0x627   :  { %13112 = vmatpush1.bf16.msra.mxu1 %v19601_v27  ;;  %v19679_v27 = vld [vmem:[%s26709_s1 + $0x1960] ss:$8 sps:$4 sm:$0xff]  }
 0x628   :  { %14260 = vmatpush1.bf16.msra.mxu0 %v19604_v34  ;;  %13113 = vmatprep.subr.bf16.mxu1 %v19609_v29  ;;  %v19682_v34 = vld [vmem:[%s26709_s1 + $0x3560] ss:$8 sps:$4 sm:$0xff]   ;;  %v19687_v29 = vld [vmem:[%s26709_s1 + $0x1974] ss:$8 sps:$4 sm:$0xff]  }
 0x629   :  { %14261 = vmatprep.subr.bf16.mxu0 %v19612_v37  ;;  %v19690_v37 = vld [vmem:[%s26709_s1 + $0x3574] ss:$8 sps:$4 sm:$0xff]  }
 0x62b   :  { %13114 = vmatpush1.bf16.msra.mxu1 %v19607_v60  ;;  %v19685_v60 = vld [vmem:[%s26709_s1 + $0x1970] ss:$8 sps:$4 sm:$0xff]  }
 0x62c   :  { %14262 = vmatpush1.bf16.msra.mxu0 %v19610_v5  ;;  %13115 = vmatprep.subr.bf16.mxu1 %v19615_v62  ;;  %v19688_v5 = vld [vmem:[%s26709_s1 + $0x3570] ss:$8 sps:$4 sm:$0xff]   ;;  %v19693_v62 = vld [vmem:[%s26709_s1 + $0x1984] ss:$8 sps:$4 sm:$0xff]  }
 0x62d   :  { %14263 = vmatprep.subr.bf16.mxu0 %v19618_v63  ;;  %v19696_v63 = vld [vmem:[%s26709_s1 + $0x3584] ss:$8 sps:$4 sm:$0xff]  }
 0x62f   :  { %13116 = vmatpush1.bf16.msra.mxu1 %v19613_v14  ;;  %v19691_v14 = vld [vmem:[%s26709_s1 + $0x1980] ss:$8 sps:$4 sm:$0xff]  }
 0x630   :  { %14264 = vmatpush1.bf16.msra.mxu0 %v19616_v47  ;;  %13117 = vmatprep.subr.bf16.mxu1 %v19621_v41  ;;  %v19694_v47 = vld [vmem:[%s26709_s1 + $0x3580] ss:$8 sps:$4 sm:$0xff]   ;;  %v19699_v41 = vld [vmem:[%s26709_s1 + $0x1994] ss:$8 sps:$4 sm:$0xff]  }
 0x631   :  { %14265 = vmatprep.subr.bf16.mxu0 %v19624_v13  ;;  %v19702_v13 = vld [vmem:[%s26709_s1 + $0x3594] ss:$8 sps:$4 sm:$0xff]  }
 0x633   :  { %13118 = vmatpush1.bf16.msra.mxu1 %v19619_v4  ;;  %v19697_v4 = vld [vmem:[%s26709_s1 + $0x1990] ss:$8 sps:$4 sm:$0xff]  }
 0x634   :  { %14266 = vmatpush1.bf16.msra.mxu0 %v19622_v17  ;;  %13119 = vmatprep.subr.bf16.mxu1 %v19627_v6  ;;  %v19700_v17 = vld [vmem:[%s26709_s1 + $0x3590] ss:$8 sps:$4 sm:$0xff]   ;;  %v19705_v6 = vld [vmem:[%s26709_s1 + $0x19a4] ss:$8 sps:$4 sm:$0xff]  }
 0x635   :  { %14267 = vmatprep.subr.bf16.mxu0 %v19630_v7  ;;  %v19708_v7 = vld [vmem:[%s26709_s1 + $0x35a4] ss:$8 sps:$4 sm:$0xff]  }
 0x637   :  { %13120 = vmatpush1.bf16.msra.mxu1 %v19625_v48  ;;  %v19703_v48 = vld [vmem:[%s26709_s1 + $0x19a0] ss:$8 sps:$4 sm:$0xff]  }
 0x638   :  { %14268 = vmatpush1.bf16.msra.mxu0 %v19628_v58  ;;  %13121 = vmatprep.subr.bf16.mxu1 %v19633_v12  ;;  %v19706_v58 = vld [vmem:[%s26709_s1 + $0x35a0] ss:$8 sps:$4 sm:$0xff]   ;;  %v19711_v12 = vld [vmem:[%s26709_s1 + $0x19b4] ss:$8 sps:$4 sm:$0xff]  }
 0x639   :  { %14269 = vmatprep.subr.bf16.mxu0 %v19636_v23  ;;  %v19714_v23 = vld [vmem:[%s26709_s1 + $0x35b4] ss:$8 sps:$4 sm:$0xff]  }
 0x63b   :  { %13122 = vmatpush1.bf16.msra.mxu1 %v19631_v18  ;;  %v19717_v18 = vld [vmem:[%s26709_s1 + $0x19c4] ss:$8 sps:$4 sm:$0xff]  }
 0x63c   :  { %14270 = vmatpush1.bf16.msra.mxu0 %v19634_v11  ;;  %13123 = vmatprep.subr.bf16.mxu1 %v19639_v40  ;;  %v19720_v11 = vld [vmem:[%s26709_s1 + $0x35c4] ss:$8 sps:$4 sm:$0xff]   ;;  %v19715_v40 = vld [vmem:[%s26709_s1 + $0x19c0] ss:$8 sps:$4 sm:$0xff]  }
 0x63d   :  { %14271 = vmatprep.subr.bf16.mxu0 %v19642_v0  ;;  %v19718_v0 = vld [vmem:[%s26709_s1 + $0x35c0] ss:$8 sps:$4 sm:$0xff]  }
 0x63f   :  { %13124 = vmatpush1.bf16.msra.mxu1 %v19637_v59  ;;  %v19723_v59 = vld [vmem:[%s26709_s1 + $0x19d4] ss:$8 sps:$4 sm:$0xff]  }
 0x640   :  { %14272 = vmatpush1.bf16.msra.mxu0 %v19640_v2  ;;  %13134 = vmatprep.subr.bf16.mxu1 %v19645_v22  ;;  %v19726_v2 = vld [vmem:[%s26709_s1 + $0x35d4] ss:$8 sps:$4 sm:$0xff]   ;;  %v19721_v22 = vld [vmem:[%s26709_s1 + $0x19d0] ss:$8 sps:$4 sm:$0xff]  }
 0x641   :  { %14282 = vmatprep.subr.bf16.mxu0 %v19648_v31  ;;  %v19724_v31 = vld [vmem:[%s26709_s1 + $0x35d0] ss:$8 sps:$4 sm:$0xff]  }
 0x642   :  { %13126 = vmatmul.mubr.bf16.vlgmr.msra.gmra.mrb[0].mxu1 %v766_v26  ;;  %v25674_v26 = vld [vmem:[%s26710_s0 + $0x68] sm:$0xff] }
 0x643   :  { %14274 = vmatmul.mubr.bf16.vlgmr.msra.gmra.mrb[0].mxu0 %v822_v36  ;;  %13135 = vmatpush1.bf16.msra.mxu1 %v19643_v1  ;;  %v25679_v36 = vld [vmem:[%s26710_s0 + $0xd8] sm:$0xff]  ;;  %v19727_v1 = vld [vmem:[%s26709_s1 + $0x19e0] ss:$8 sps:$4 sm:$0xff]  }
 0x644   :  { %14283 = vmatpush1.bf16.msra.mxu0 %v19646_v8  ;;  %13136 = vmatprep.subr.bf16.mxu1 %v19651_v3  ;;  %v19730_v8 = vld [vmem:[%s26709_s1 + $0x35e0] ss:$8 sps:$4 sm:$0xff]   ;;  %v19735_v3 = vld [vmem:[%s26709_s1 + $0x19f4] ss:$8 sps:$4 sm:$0xff]  }
 0x645   :  { %14284 = vmatprep.subr.bf16.mxu0 %v19654_v35  ;;  %13166 = vmatprep.mubr.bf16.mxu1 %v769_v50  ;;  %v19738_v35 = vld [vmem:[%s26709_s1 + $0x35f4] ss:$8 sps:$4 sm:$0xff]   ;;  %v25695_v50 = vrot.slane %v25674_v26, %v20275_v49 }
 0x646   :  { %14314 = vmatprep.mubr.bf16.mxu0 %v825_v10  ;;  %v25699_v10 = vrot.slane %v25679_v36, %v20275_v49 }
 0x647   :  { %13137 = vmatpush1.bf16.msra.mxu1 %v19649_v30  ;;  %v19733_v30 = vld [vmem:[%s26709_s1 + $0x19f0] ss:$8 sps:$4 sm:$0xff]  }
 0x648   :  { %14285 = vmatpush1.bf16.msra.mxu0 %v19652_v44  ;;  %13138 = vmatprep.subr.bf16.mxu1 %v19657_v32  ;;  %v19736_v44 = vld [vmem:[%s26709_s1 + $0x35f0] ss:$8 sps:$4 sm:$0xff]   ;;  %v19742_v32 = vld [vmem:[%s26709_s1 + $0x1a04] ss:$8 sps:$4 sm:$0xff]  }
 0x649   :  { %14286 = vmatprep.subr.bf16.mxu0 %v19660_v33  ;;  %v19746_v33 = vld [vmem:[%s26709_s1 + $0x3604] ss:$8 sps:$4 sm:$0xff]  }
 0x64b   :  { %13139 = vmatpush1.bf16.msra.mxu1 %v19655_v9  ;;  %v335_v9 = vcombine.high %v25695_v50, %v25695_v50 }
 0x64c   :  { %14287 = vmatpush1.bf16.msra.mxu0 %v19658_v20  ;;  %13140 = vmatprep.subr.bf16.mxu1 %v19663_v39  ;;  %v573_v20 = vcombine.high %v25699_v10, %v25699_v10  ;;  %v768_v39 = vpack.c.bf16 %v25478_v38, %v25478_v38  ;;  %v19752_v38 = vld [vmem:[%s26709_s1 + $0x3614] ss:$8 sps:$4 sm:$0xff]  }
 0x64d   :  { %14288 = vmatprep.subr.bf16.mxu0 %v19666_v53  ;;  %v824_v53 = vpack.c.bf16 %v25481_v19, %v25481_v19  ;;  %v771_v19 = vpack.c.bf16 %v335_v9, %v335_v9  ;;  %v19819_v9 = vld [vmem:[%s26709_s1 + $0x1ad0] ss:$8 sps:$4 sm:$0xff]  }
 0x64f   :  { %13141 = vmatpush1.bf16.msra.mxu1 %v19661_v42  ;;  %v19740_v42 = vld [vmem:[%s26709_s1 + $0x1a00] ss:$8 sps:$4 sm:$0xff]  }
 0x650   :  { %14289 = vmatpush1.bf16.msra.mxu0 %v19664_v57  ;;  %13142 = vmatprep.subr.bf16.mxu1 %v19669_v45  ;;  %v19744_v57 = vld [vmem:[%s26709_s1 + $0x3600] ss:$8 sps:$4 sm:$0xff]   ;;  %v19749_v45 = vld [vmem:[%s26709_s1 + $0x1a14] ss:$8 sps:$4 sm:$0xff]  }
 0x651   :  { %14290 = vmatprep.subr.bf16.mxu0 %v19672_v46  ;;  %v827_v46 = vpack.c.bf16 %v573_v20, %v573_v20  ;;  %v19822_v20 = vld [vmem:[%s26709_s1 + $0x36d0] ss:$8 sps:$4 sm:$0xff]  }
 0x653   :  { %13143 = vmatpush1.bf16.msra.mxu1 %v19667_v21  ;;  %v19747_v21 = vld [vmem:[%s26709_s1 + $0x1a10] ss:$8 sps:$4 sm:$0xff]  }
 0x654   :  { %14291 = vmatpush1.bf16.msra.mxu0 %v19670_v28  ;;  %13144 = vmatprep.subr.bf16.mxu1 %v19675_v52  ;;  %v19750_v28 = vld [vmem:[%s26709_s1 + $0x3610] ss:$8 sps:$4 sm:$0xff]   ;;  %v19755_v52 = vld [vmem:[%s26709_s1 + $0x1a24] ss:$8 sps:$4 sm:$0xff]  }
 0x655   :  { %14292 = vmatprep.subr.bf16.mxu0 %v19678_v61  ;;  %v19758_v61 = vld [vmem:[%s26709_s1 + $0x3624] ss:$8 sps:$4 sm:$0xff]  }
 0x657   :  { %13145 = vmatpush1.bf16.msra.mxu1 %v19673_v54  ;;  %v19753_v54 = vld [vmem:[%s26709_s1 + $0x1a20] ss:$8 sps:$4 sm:$0xff]  }
 0x658   :  { %14293 = vmatpush1.bf16.msra.mxu0 %v19676_v55  ;;  %13146 = vmatprep.subr.bf16.mxu1 %v19681_v15  ;;  %v19756_v55 = vld [vmem:[%s26709_s1 + $0x3620] ss:$8 sps:$4 sm:$0xff]   ;;  %v19761_v15 = vld [vmem:[%s26709_s1 + $0x1a34] ss:$8 sps:$4 sm:$0xff]  }
 0x659   :  { %14294 = vmatprep.subr.bf16.mxu0 %v19684_v51  ;;  %v19764_v51 = vld [vmem:[%s26709_s1 + $0x3634] ss:$8 sps:$4 sm:$0xff]  }
 0x65b   :  { %13147 = vmatpush1.bf16.msra.mxu1 %v19679_v27  ;;  %v19759_v27 = vld [vmem:[%s26709_s1 + $0x1a30] ss:$8 sps:$4 sm:$0xff]  }
 0x65c   :  { %14295 = vmatpush1.bf16.msra.mxu0 %v19682_v34  ;;  %13148 = vmatprep.subr.bf16.mxu1 %v19687_v29  ;;  %v19762_v34 = vld [vmem:[%s26709_s1 + $0x3630] ss:$8 sps:$4 sm:$0xff]   ;;  %v19767_v29 = vld [vmem:[%s26709_s1 + $0x1a44] ss:$8 sps:$4 sm:$0xff]  }
 0x65d   :  { %14296 = vmatprep.subr.bf16.mxu0 %v19690_v37  ;;  %v19770_v37 = vld [vmem:[%s26709_s1 + $0x3644] ss:$8 sps:$4 sm:$0xff]  }
 0x65f   :  { %13149 = vmatpush1.bf16.msra.mxu1 %v19685_v60  ;;  %v19765_v60 = vld [vmem:[%s26709_s1 + $0x1a40] ss:$8 sps:$4 sm:$0xff]  }
 0x660   :  { %14297 = vmatpush1.bf16.msra.mxu0 %v19688_v5  ;;  %13150 = vmatprep.subr.bf16.mxu1 %v19693_v62  ;;  %v19768_v5 = vld [vmem:[%s26709_s1 + $0x3640] ss:$8 sps:$4 sm:$0xff]   ;;  %v19773_v62 = vld [vmem:[%s26709_s1 + $0x1a54] ss:$8 sps:$4 sm:$0xff]  }
 0x661   :  { %14298 = vmatprep.subr.bf16.mxu0 %v19696_v63  ;;  %v19776_v63 = vld [vmem:[%s26709_s1 + $0x3654] ss:$8 sps:$4 sm:$0xff]  }
 0x663   :  { %13151 = vmatpush1.bf16.msra.mxu1 %v19691_v14  ;;  %v19771_v14 = vld [vmem:[%s26709_s1 + $0x1a50] ss:$8 sps:$4 sm:$0xff]  }
 0x664   :  { %14299 = vmatpush1.bf16.msra.mxu0 %v19694_v47  ;;  %13152 = vmatprep.subr.bf16.mxu1 %v19699_v41  ;;  %v19774_v47 = vld [vmem:[%s26709_s1 + $0x3650] ss:$8 sps:$4 sm:$0xff]   ;;  %v19779_v41 = vld [vmem:[%s26709_s1 + $0x1a64] ss:$8 sps:$4 sm:$0xff]  }
 0x665   :  { %14300 = vmatprep.subr.bf16.mxu0 %v19702_v13  ;;  %v19782_v13 = vld [vmem:[%s26709_s1 + $0x3664] ss:$8 sps:$4 sm:$0xff]  }
 0x667   :  { %13153 = vmatpush1.bf16.msra.mxu1 %v19697_v4  ;;  %v19777_v4 = vld [vmem:[%s26709_s1 + $0x1a60] ss:$8 sps:$4 sm:$0xff]  }
 0x668   :  { %14301 = vmatpush1.bf16.msra.mxu0 %v19700_v17  ;;  %13154 = vmatprep.subr.bf16.mxu1 %v19705_v6  ;;  %v19780_v17 = vld [vmem:[%s26709_s1 + $0x3660] ss:$8 sps:$4 sm:$0xff]   ;;  %v19785_v6 = vld [vmem:[%s26709_s1 + $0x1a74] ss:$8 sps:$4 sm:$0xff]  }
 0x669   :  { %14302 = vmatprep.subr.bf16.mxu0 %v19708_v7  ;;  %v19788_v7 = vld [vmem:[%s26709_s1 + $0x3674] ss:$8 sps:$4 sm:$0xff]  }
 0x66b   :  { %13155 = vmatpush1.bf16.msra.mxu1 %v19703_v48  ;;  %v19783_v48 = vld [vmem:[%s26709_s1 + $0x1a70] ss:$8 sps:$4 sm:$0xff]  }
 0x66c   :  { %14303 = vmatpush1.bf16.msra.mxu0 %v19706_v58  ;;  %13156 = vmatprep.subr.bf16.mxu1 %v19711_v12  ;;  %v19786_v58 = vld [vmem:[%s26709_s1 + $0x3670] ss:$8 sps:$4 sm:$0xff]   ;;  %v19791_v12 = vld [vmem:[%s26709_s1 + $0x1a84] ss:$8 sps:$4 sm:$0xff]  }
 0x66d   :  { %14304 = vmatprep.subr.bf16.mxu0 %v19714_v23  ;;  %v19794_v23 = vld [vmem:[%s26709_s1 + $0x3684] ss:$8 sps:$4 sm:$0xff]  }
 0x66f   :  { %13157 = vmatpush1.bf16.msra.mxu1 %v19709_v16  ;;  %v19789_v16 = vld [vmem:[%s26709_s1 + $0x1a80] ss:$8 sps:$4 sm:$0xff]  }
 0x670   :  { %14305 = vmatpush1.bf16.msra.mxu0 %v19712_v56  ;;  %13158 = vmatprep.subr.bf16.mxu1 %v19717_v18  ;;  %v19792_v56 = vld [vmem:[%s26709_s1 + $0x3680] ss:$8 sps:$4 sm:$0xff]   ;;  %v19797_v18 = vld [vmem:[%s26709_s1 + $0x1a94] ss:$8 sps:$4 sm:$0xff]  }
 0x671   :  { %14306 = vmatprep.subr.bf16.mxu0 %v19720_v11  ;;  %v19800_v11 = vld [vmem:[%s26709_s1 + $0x3694] ss:$8 sps:$4 sm:$0xff]  }
 0x673   :  { %13159 = vmatpush1.bf16.msra.mxu1 %v19715_v40  ;;  %v19795_v40 = vld [vmem:[%s26709_s1 + $0x1a90] ss:$8 sps:$4 sm:$0xff]  }
 0x674   :  { %14307 = vmatpush1.bf16.msra.mxu0 %v19718_v0  ;;  %13160 = vmatprep.subr.bf16.mxu1 %v19723_v59  ;;  %v19798_v0 = vld [vmem:[%s26709_s1 + $0x3690] ss:$8 sps:$4 sm:$0xff]   ;;  %v19803_v59 = vld [vmem:[%s26709_s1 + $0x1aa4] ss:$8 sps:$4 sm:$0xff]  }
 0x675   :  { %14308 = vmatprep.subr.bf16.mxu0 %v19726_v2  ;;  %v19806_v2 = vld [vmem:[%s26709_s1 + $0x36a4] ss:$8 sps:$4 sm:$0xff]  }
 0x677   :  { %13161 = vmatpush1.bf16.msra.mxu1 %v19721_v22  ;;  %v19801_v22 = vld [vmem:[%s26709_s1 + $0x1aa0] ss:$8 sps:$4 sm:$0xff]  }
 0x678   :  { %14309 = vmatpush1.bf16.msra.mxu0 %v19724_v31  ;;  %13162 = vmatprep.subr.bf16.mxu1 %v19729_v24  ;;  %v19804_v31 = vld [vmem:[%s26709_s1 + $0x36a0] ss:$8 sps:$4 sm:$0xff]   ;;  %v19809_v24 = vld [vmem:[%s26709_s1 + $0x1ab4] ss:$8 sps:$4 sm:$0xff]  }
 0x679   :  { %14310 = vmatprep.subr.bf16.mxu0 %v19732_v25  ;;  %v19812_v25 = vld [vmem:[%s26709_s1 + $0x36b4] ss:$8 sps:$4 sm:$0xff]  }
 0x67b   :  { %13163 = vmatpush1.bf16.msra.mxu1 %v19727_v1  ;;  %v19807_v1 = vld [vmem:[%s26709_s1 + $0x1ab0] ss:$8 sps:$4 sm:$0xff]  }
 0x67c   :  { %14311 = vmatpush1.bf16.msra.mxu0 %v19730_v8  ;;  %13164 = vmatprep.subr.bf16.mxu1 %v19735_v3  ;;  %v19810_v8 = vld [vmem:[%s26709_s1 + $0x36b0] ss:$8 sps:$4 sm:$0xff]   ;;  %v19815_v3 = vld [vmem:[%s26709_s1 + $0x1ac4] ss:$8 sps:$4 sm:$0xff]  }
 0x67d   :  { %14312 = vmatprep.subr.bf16.mxu0 %v19738_v35  ;;  %v19818_v35 = vld [vmem:[%s26709_s1 + $0x36c4] ss:$8 sps:$4 sm:$0xff]  }
 0x67f   :  { %13165 = vmatpush1.bf16.msra.mxu1 %v19733_v30  ;;  %v19813_v30 = vld [vmem:[%s26709_s1 + $0x1ac0] ss:$8 sps:$4 sm:$0xff]  }
 0x680   :  { %14313 = vmatpush1.bf16.msra.mxu0 %v19736_v44  ;;  %13175 = vmatprep.subr.bf16.mxu1 %v19742_v32  ;;  %v19816_v44 = vld [vmem:[%s26709_s1 + $0x36c0] ss:$8 sps:$4 sm:$0xff]   ;;  %v19821_v32 = vld [vmem:[%s26709_s1 + $0x1ad4] ss:$8 sps:$4 sm:$0xff]  }
 0x681   :  { %14323 = vmatprep.subr.bf16.mxu0 %v19746_v33  ;;  %v19824_v33 = vld [vmem:[%s26709_s1 + $0x36d4] ss:$8 sps:$4 sm:$0xff]  }
 0x682   :  { %13167 = vmatmul.mubr.bf16.vlgmr.msra.gmra.mrb[0].mxu1 %v768_v39  ;;  %v19827_v39 = vld [vmem:[%s26709_s1 + $0x1ae4] ss:$8 sps:$4 sm:$0xff]  }
 0x683   :  { %14315 = vmatmul.mubr.bf16.vlgmr.msra.gmra.mrb[0].mxu0 %v824_v53  ;;  %13176 = vmatpush1.bf16.msra.mxu1 %v19740_v42  ;;  %v19830_v53 = vld [vmem:[%s26709_s1 + $0x36e4] ss:$8 sps:$4 sm:$0xff]   ;;  %v320_v42 = vcombine.high %v25674_v26, %v25674_v26  ;;  %v19836_v26 = vld [vmem:[%s26709_s1 + $0x36f4] ss:$8 sps:$4 sm:$0xff]  }
 0x684   :  { %14324 = vmatpush1.bf16.msra.mxu0 %v19744_v57  ;;  %13177 = vmatprep.subr.bf16.mxu1 %v19749_v45  ;;  %v558_v57 = vcombine.high %v25679_v36, %v25679_v36  ;;  %v19825_v45 = vld [vmem:[%s26709_s1 + $0x1ae0] ss:$8 sps:$4 sm:$0xff]  }
 0x685   :  { %14325 = vmatprep.subr.bf16.mxu0 %v19752_v38  ;;  %13207 = vmatprep.mubr.bf16.mxu1 %v771_v19  ;;  %v19828_v38 = vld [vmem:[%s26709_s1 + $0x36e0] ss:$8 sps:$4 sm:$0xff]   ;;  %v19833_v19 = vld [vmem:[%s26709_s1 + $0x1af4] ss:$8 sps:$4 sm:$0xff]   ;;  %v25906_v36 = vrot.slane %v320_v42, %v20275_v49  ;;  %v19903_v42 = vld [vmem:[%s26709_s1 + $0x1bb0] ss:$8 sps:$4 sm:$0xff]  }
 0x686   :  { %14355 = vmatprep.mubr.bf16.mxu0 %v827_v46  ;;  %v25909_v46 = vrot.slane %v558_v57, %v20275_v49  ;;  %v19906_v57 = vld [vmem:[%s26709_s1 + $0x37b0] ss:$8 sps:$4 sm:$0xff]  }
 0x687   :  { %13178 = vmatpush1.bf16.msra.mxu1 %v19747_v21  ;;  %v19831_v21 = vld [vmem:[%s26709_s1 + $0x1af0] ss:$8 sps:$4 sm:$0xff]  }
 0x688   :  { %14326 = vmatpush1.bf16.msra.mxu0 %v19750_v28  ;;  %13179 = vmatprep.subr.bf16.mxu1 %v19755_v52  ;;  %v19834_v28 = vld [vmem:[%s26709_s1 + $0x36f0] ss:$8 sps:$4 sm:$0xff]   ;;  %v19839_v52 = vld [vmem:[%s26709_s1 + $0x1b04] ss:$8 sps:$4 sm:$0xff]  }
 0x689   :  { %14327 = vmatprep.subr.bf16.mxu0 %v19758_v61  ;;  %v19842_v61 = vld [vmem:[%s26709_s1 + $0x3704] ss:$8 sps:$4 sm:$0xff]  }
 0x68b   :  { %13180 = vmatpush1.bf16.msra.mxu1 %v19753_v54  ;;  %v336_v54 = vcombine.high %v25906_v36, %v25906_v36 }
 0x68c   :  { %14328 = vmatpush1.bf16.msra.mxu0 %v19756_v55  ;;  %13181 = vmatprep.subr.bf16.mxu1 %v19761_v15  ;;  %v574_v55 = vcombine.high %v25909_v46, %v25909_v46  ;;  %v770_v15 = vpack.c.bf16 %v25695_v50, %v25695_v50  ;;  %v19848_v50 = vld [vmem:[%s26709_s1 + $0x3714] ss:$8 sps:$4 sm:$0xff]  }
 0x68d   :  { %14329 = vmatprep.subr.bf16.mxu0 %v19764_v51  ;;  %v826_v51 = vpack.c.bf16 %v25699_v10, %v25699_v10  ;;  %v773_v10 = vpack.c.bf16 %v336_v54, %v336_v54  ;;  %v19923_v54 = vld [vmem:[%s26709_s1 + $0x1be4] ss:$8 sps:$4 sm:$0xff]  }
 0x68f   :  { %13182 = vmatpush1.bf16.msra.mxu1 %v19759_v27  ;;  %v19837_v27 = vld [vmem:[%s26709_s1 + $0x1b00] ss:$8 sps:$4 sm:$0xff]  }
 0x690   :  { %14330 = vmatpush1.bf16.msra.mxu0 %v19762_v34  ;;  %13183 = vmatprep.subr.bf16.mxu1 %v19767_v29  ;;  %v19840_v34 = vld [vmem:[%s26709_s1 + $0x3700] ss:$8 sps:$4 sm:$0xff]   ;;  %v19845_v29 = vld [vmem:[%s26709_s1 + $0x1b14] ss:$8 sps:$4 sm:$0xff]  }
 0x691   :  { %14331 = vmatprep.subr.bf16.mxu0 %v19770_v37  ;;  %v829_v37 = vpack.c.bf16 %v574_v55, %v574_v55  ;;  %v19926_v55 = vld [vmem:[%s26709_s1 + $0x37e4] ss:$8 sps:$4 sm:$0xff]  }
 0x693   :  { %13184 = vmatpush1.bf16.msra.mxu1 %v19765_v60  ;;  %v19843_v60 = vld [vmem:[%s26709_s1 + $0x1b10] ss:$8 sps:$4 sm:$0xff]  }
 0x694   :  { %14332 = vmatpush1.bf16.msra.mxu0 %v19768_v5  ;;  %13185 = vmatprep.subr.bf16.mxu1 %v19773_v62  ;;  %v19846_v5 = vld [vmem:[%s26709_s1 + $0x3710] ss:$8 sps:$4 sm:$0xff]   ;;  %v19851_v62 = vld [vmem:[%s26709_s1 + $0x1b24] ss:$8 sps:$4 sm:$0xff]  }
 0x695   :  { %14333 = vmatprep.subr.bf16.mxu0 %v19776_v63  ;;  %v19854_v63 = vld [vmem:[%s26709_s1 + $0x3724] ss:$8 sps:$4 sm:$0xff]  }
 0x697   :  { %13186 = vmatpush1.bf16.msra.mxu1 %v19771_v14  ;;  %v19849_v14 = vld [vmem:[%s26709_s1 + $0x1b20] ss:$8 sps:$4 sm:$0xff]  }
 0x698   :  { %14334 = vmatpush1.bf16.msra.mxu0 %v19774_v47  ;;  %13187 = vmatprep.subr.bf16.mxu1 %v19779_v41  ;;  %v19852_v47 = vld [vmem:[%s26709_s1 + $0x3720] ss:$8 sps:$4 sm:$0xff]   ;;  %v19857_v41 = vld [vmem:[%s26709_s1 + $0x1b34] ss:$8 sps:$4 sm:$0xff]  }
 0x699   :  { %14335 = vmatprep.subr.bf16.mxu0 %v19782_v13  ;;  %v19860_v13 = vld [vmem:[%s26709_s1 + $0x3734] ss:$8 sps:$4 sm:$0xff]  }
 0x69b   :  { %13188 = vmatpush1.bf16.msra.mxu1 %v19777_v4  ;;  %v19855_v4 = vld [vmem:[%s26709_s1 + $0x1b30] ss:$8 sps:$4 sm:$0xff]  }
 0x69c   :  { %14336 = vmatpush1.bf16.msra.mxu0 %v19780_v17  ;;  %13189 = vmatprep.subr.bf16.mxu1 %v19785_v6  ;;  %v19858_v17 = vld [vmem:[%s26709_s1 + $0x3730] ss:$8 sps:$4 sm:$0xff]   ;;  %v19863_v6 = vld [vmem:[%s26709_s1 + $0x1b44] ss:$8 sps:$4 sm:$0xff]  }
 0x69d   :  { %14337 = vmatprep.subr.bf16.mxu0 %v19788_v7  ;;  %v19866_v7 = vld [vmem:[%s26709_s1 + $0x3744] ss:$8 sps:$4 sm:$0xff]  }
 0x69f   :  { %13190 = vmatpush1.bf16.msra.mxu1 %v19783_v48  ;;  %v19861_v48 = vld [vmem:[%s26709_s1 + $0x1b40] ss:$8 sps:$4 sm:$0xff]  }
 0x6a0   :  { %14338 = vmatpush1.bf16.msra.mxu0 %v19786_v58  ;;  %13191 = vmatprep.subr.bf16.mxu1 %v19791_v12  ;;  %v19864_v58 = vld [vmem:[%s26709_s1 + $0x3740] ss:$8 sps:$4 sm:$0xff]   ;;  %v19869_v12 = vld [vmem:[%s26709_s1 + $0x1b54] ss:$8 sps:$4 sm:$0xff]  }
 0x6a1   :  { %14339 = vmatprep.subr.bf16.mxu0 %v19794_v23  ;;  %v19872_v23 = vld [vmem:[%s26709_s1 + $0x3754] ss:$8 sps:$4 sm:$0xff]  }
 0x6a3   :  { %13192 = vmatpush1.bf16.msra.mxu1 %v19789_v16  ;;  %v19867_v16 = vld [vmem:[%s26709_s1 + $0x1b50] ss:$8 sps:$4 sm:$0xff]  }
 0x6a4   :  { %14340 = vmatpush1.bf16.msra.mxu0 %v19792_v56  ;;  %13193 = vmatprep.subr.bf16.mxu1 %v19797_v18  ;;  %v19870_v56 = vld [vmem:[%s26709_s1 + $0x3750] ss:$8 sps:$4 sm:$0xff]   ;;  %v19875_v18 = vld [vmem:[%s26709_s1 + $0x1b64] ss:$8 sps:$4 sm:$0xff]  }
 0x6a5   :  { %14341 = vmatprep.subr.bf16.mxu0 %v19800_v11  ;;  %v19878_v11 = vld [vmem:[%s26709_s1 + $0x3764] ss:$8 sps:$4 sm:$0xff]  }
 0x6a7   :  { %13194 = vmatpush1.bf16.msra.mxu1 %v19795_v40  ;;  %v19873_v40 = vld [vmem:[%s26709_s1 + $0x1b60] ss:$8 sps:$4 sm:$0xff]  }
 0x6a8   :  { %14342 = vmatpush1.bf16.msra.mxu0 %v19798_v0  ;;  %13195 = vmatprep.subr.bf16.mxu1 %v19803_v59  ;;  %v19876_v0 = vld [vmem:[%s26709_s1 + $0x3760] ss:$8 sps:$4 sm:$0xff]   ;;  %v19881_v59 = vld [vmem:[%s26709_s1 + $0x1b74] ss:$8 sps:$4 sm:$0xff]  }
 0x6a9   :  { %14343 = vmatprep.subr.bf16.mxu0 %v19806_v2  ;;  %v19884_v2 = vld [vmem:[%s26709_s1 + $0x3774] ss:$8 sps:$4 sm:$0xff]  }
 0x6ab   :  { %13196 = vmatpush1.bf16.msra.mxu1 %v19801_v22  ;;  %v19879_v22 = vld [vmem:[%s26709_s1 + $0x1b70] ss:$8 sps:$4 sm:$0xff]  }
 0x6ac   :  { %14344 = vmatpush1.bf16.msra.mxu0 %v19804_v31  ;;  %13197 = vmatprep.subr.bf16.mxu1 %v19809_v24  ;;  %v19882_v31 = vld [vmem:[%s26709_s1 + $0x3770] ss:$8 sps:$4 sm:$0xff]   ;;  %v19887_v24 = vld [vmem:[%s26709_s1 + $0x1b84] ss:$8 sps:$4 sm:$0xff]  }
 0x6ad   :  { %14345 = vmatprep.subr.bf16.mxu0 %v19812_v25  ;;  %v19890_v25 = vld [vmem:[%s26709_s1 + $0x3784] ss:$8 sps:$4 sm:$0xff]  }
 0x6af   :  { %13198 = vmatpush1.bf16.msra.mxu1 %v19807_v1  ;;  %v19885_v1 = vld [vmem:[%s26709_s1 + $0x1b80] ss:$8 sps:$4 sm:$0xff]  }
 0x6b0   :  { %14346 = vmatpush1.bf16.msra.mxu0 %v19810_v8  ;;  %13199 = vmatprep.subr.bf16.mxu1 %v19815_v3  ;;  %v19888_v8 = vld [vmem:[%s26709_s1 + $0x3780] ss:$8 sps:$4 sm:$0xff]   ;;  %v19893_v3 = vld [vmem:[%s26709_s1 + $0x1b94] ss:$8 sps:$4 sm:$0xff]  }
 0x6b1   :  { %14347 = vmatprep.subr.bf16.mxu0 %v19818_v35  ;;  %v19896_v35 = vld [vmem:[%s26709_s1 + $0x3794] ss:$8 sps:$4 sm:$0xff]  }
 0x6b3   :  { %13200 = vmatpush1.bf16.msra.mxu1 %v19813_v30  ;;  %v19891_v30 = vld [vmem:[%s26709_s1 + $0x1b90] ss:$8 sps:$4 sm:$0xff]  }
 0x6b4   :  { %14348 = vmatpush1.bf16.msra.mxu0 %v19816_v44  ;;  %13201 = vmatprep.subr.bf16.mxu1 %v19821_v32  ;;  %v19894_v44 = vld [vmem:[%s26709_s1 + $0x3790] ss:$8 sps:$4 sm:$0xff]   ;;  %v19899_v32 = vld [vmem:[%s26709_s1 + $0x1ba4] ss:$8 sps:$4 sm:$0xff]  }
 0x6b5   :  { %14349 = vmatprep.subr.bf16.mxu0 %v19824_v33  ;;  %v19902_v33 = vld [vmem:[%s26709_s1 + $0x37a4] ss:$8 sps:$4 sm:$0xff]  }
 0x6b7   :  { %13202 = vmatpush1.bf16.msra.mxu1 %v19819_v9  ;;  %v19897_v9 = vld [vmem:[%s26709_s1 + $0x1ba0] ss:$8 sps:$4 sm:$0xff]  }
 0x6b8   :  { %14350 = vmatpush1.bf16.msra.mxu0 %v19822_v20  ;;  %13203 = vmatprep.subr.bf16.mxu1 %v19827_v39  ;;  %v19900_v20 = vld [vmem:[%s26709_s1 + $0x37a0] ss:$8 sps:$4 sm:$0xff]   ;;  %v19905_v39 = vld [vmem:[%s26709_s1 + $0x1bb4] ss:$8 sps:$4 sm:$0xff]  }
 0x6b9   :  { %14351 = vmatprep.subr.bf16.mxu0 %v19830_v53  ;;  %v19908_v53 = vld [vmem:[%s26709_s1 + $0x37b4] ss:$8 sps:$4 sm:$0xff]  }
 0x6bb   :  { %13204 = vmatpush1.bf16.msra.mxu1 %v19825_v45  ;;  %v19911_v45 = vld [vmem:[%s26709_s1 + $0x1bc4] ss:$8 sps:$4 sm:$0xff]  }
 0x6bc   :  { %14352 = vmatpush1.bf16.msra.mxu0 %v19828_v38  ;;  %13205 = vmatprep.subr.bf16.mxu1 %v19833_v19  ;;  %v19914_v38 = vld [vmem:[%s26709_s1 + $0x37c4] ss:$8 sps:$4 sm:$0xff]   ;;  %v19909_v19 = vld [vmem:[%s26709_s1 + $0x1bc0] ss:$8 sps:$4 sm:$0xff]  }
 0x6bd   :  { %14353 = vmatprep.subr.bf16.mxu0 %v19836_v26  ;;  %v19912_v26 = vld [vmem:[%s26709_s1 + $0x37c0] ss:$8 sps:$4 sm:$0xff]  }
 0x6bf   :  { %13206 = vmatpush1.bf16.msra.mxu1 %v19831_v21  ;;  %v19917_v21 = vld [vmem:[%s26709_s1 + $0x1bd4] ss:$8 sps:$4 sm:$0xff]  }
 0x6c0   :  { %14354 = vmatpush1.bf16.msra.mxu0 %v19834_v28  ;;  %13216 = vmatprep.subr.bf16.mxu1 %v19839_v52  ;;  %v19920_v28 = vld [vmem:[%s26709_s1 + $0x37d4] ss:$8 sps:$4 sm:$0xff]   ;;  %v19915_v52 = vld [vmem:[%s26709_s1 + $0x1bd0] ss:$8 sps:$4 sm:$0xff]  }
 0x6c1   :  { %14364 = vmatprep.subr.bf16.mxu0 %v19842_v61  ;;  %v19918_v61 = vld [vmem:[%s26709_s1 + $0x37d0] ss:$8 sps:$4 sm:$0xff]  }
 0x6c2   :  { %13208 = vmatmul.mubr.bf16.vlgmr.msra.gmra.mrb[0].mxu1 %v770_v15  ;;  %v26102_v15 = vld [vmem:[%s26710_s0 + $0xe0] sm:$0xff] }
 0x6c3   :  { %14356 = vmatmul.mubr.bf16.vlgmr.msra.gmra.mrb[0].mxu0 %v826_v51  ;;  %13217 = vmatpush1.bf16.msra.mxu1 %v19837_v27  ;;  %v19921_v51 = vld [vmem:[%s26709_s1 + $0x1be0] ss:$8 sps:$4 sm:$0xff]  }
 0x6c4   :  { %14365 = vmatpush1.bf16.msra.mxu0 %v19840_v34  ;;  %13218 = vmatprep.subr.bf16.mxu1 %v19845_v29  ;;  %v19924_v27 = vld [vmem:[%s26709_s1 + $0x37e0] ss:$8 sps:$4 sm:$0xff]   ;;  %v26112_v34 = vrot.slane %v26102_v15, %v20275_v49  ;;  %v19929_v29 = vld [vmem:[%s26709_s1 + $0x1bf4] ss:$8 sps:$4 sm:$0xff]  }
 0x6c5   :  { %14366 = vmatprep.subr.bf16.mxu0 %v19848_v50  ;;  %13248 = vmatprep.mubr.bf16.mxu1 %v773_v10  ;;  %v19932_v50 = vld [vmem:[%s26709_s1 + $0x37f4] ss:$8 sps:$4 sm:$0xff]   ;;  %v19927_v10 = vld [vmem:[%s26709_s1 + $0x1bf0] ss:$8 sps:$4 sm:$0xff]  }
 0x6c6   :  { %14396 = vmatprep.mubr.bf16.mxu0 %v829_v37  ;;  %v19930_v37 = vld [vmem:[%s26709_s1 + $0x37f0] ss:$8 sps:$4 sm:$0xff]  }
 0x6c7   :  { %13219 = vmatpush1.bf16.msra.mxu1 %v19843_v60  ;;  %v19937_v60 = vld [vmem:[%s26709_s1 + $0x3804] ss:$8 sps:$4 sm:$0xff]  }
 0x6c8   :  { %14367 = vmatpush1.bf16.msra.mxu0 %v19846_v5  ;;  %13220 = vmatprep.subr.bf16.mxu1 %v19851_v62  ;;  %v590_v5 = vcombine.high %v26112_v34, %v26112_v34  ;;  %v20003_v62 = vld [vmem:[%s26709_s1 + $0x3a04] ss:$8 sps:$4 sm:$0xff]  }
 0x6c9   :  { %14368 = vmatprep.subr.bf16.mxu0 %v19854_v63  ;;  %v26137_v63 = vld.sshfl [vmem:[%s26710_s0 + $0xe8] sm:$0x33 pattern:$0x76325410] }
 0x6cb   :  { %13221 = vmatpush1.bf16.msra.mxu1 %v19849_v14  ;;  %v599_v14 = vcombine.high %v26137_v63, %v26137_v63 }
 0x6cc   :  { %14369 = vmatpush1.bf16.msra.mxu0 %v19852_v47  ;;  %13222 = vmatprep.subr.bf16.mxu1 %v19857_v41  ;;  %v772_v47 = vpack.c.bf16 %v25906_v36, %v25906_v36  ;;  %v828_v41 = vpack.c.bf16 %v25909_v46, %v25909_v46  ;;  %v20009_v36 = vld [vmem:[%s26709_s1 + $0x3a14] ss:$8 sps:$4 sm:$0xff]  }
 0x6cd   :  { %14370 = vmatprep.subr.bf16.mxu0 %v19860_v13  ;;  %v19935_v13 = vld [vmem:[%s26709_s1 + $0x3800] ss:$8 sps:$4 sm:$0xff]   ;;  %v835_v46 = vpack.c.bf16 %v599_v14, %v599_v14  ;;  %v19985_v14 = vld [vmem:[%s26709_s1 + $0x3904] ss:$8 sps:$4 sm:$0xff]  }
 0x6cf   :  { %13223 = vmatpush1.bf16.msra.mxu1 %v19855_v4  ;;  %v831_v4 = vpack.c.bf16 %v590_v5, %v590_v5 }
 0x6d0   :  { %14371 = vmatpush1.bf16.msra.mxu0 %v19858_v17  ;;  %13224 = vmatprep.subr.bf16.mxu1 %v19863_v6  ;;  %v19940_v17 = vld [vmem:[%s26709_s1 + $0x3814] ss:$8 sps:$4 sm:$0xff]   ;;  %v20001_v6 = vld [vmem:[%s26709_s1 + $0x3a00] ss:$8 sps:$4 sm:$0xff]  }
 0x6d1   :  { %14372 = vmatprep.subr.bf16.mxu0 %v19866_v7  ;;  %v19938_v7 = vld [vmem:[%s26709_s1 + $0x3810] ss:$8 sps:$4 sm:$0xff]  }
 0x6d3   :  { %13225 = vmatpush1.bf16.msra.mxu1 %v19861_v48  ;;  %v19943_v48 = vld [vmem:[%s26709_s1 + $0x3824] ss:$8 sps:$4 sm:$0xff]  }
 0x6d4   :  { %14373 = vmatpush1.bf16.msra.mxu0 %v19864_v58  ;;  %13226 = vmatprep.subr.bf16.mxu1 %v19869_v12  ;;  %v20007_v58 = vld [vmem:[%s26709_s1 + $0x3a10] ss:$8 sps:$4 sm:$0xff]   ;;  %v20015_v12 = vld [vmem:[%s26709_s1 + $0x3a24] ss:$8 sps:$4 sm:$0xff]  }
 0x6d5   :  { %14374 = vmatprep.subr.bf16.mxu0 %v19872_v23  ;;  %v19941_v23 = vld [vmem:[%s26709_s1 + $0x3820] ss:$8 sps:$4 sm:$0xff]  }
 0x6d7   :  { %13227 = vmatpush1.bf16.msra.mxu1 %v19867_v16  ;;  %v19946_v16 = vld [vmem:[%s26709_s1 + $0x3834] ss:$8 sps:$4 sm:$0xff]  }
 0x6d8   :  { %14375 = vmatpush1.bf16.msra.mxu0 %v19870_v56  ;;  %13228 = vmatprep.subr.bf16.mxu1 %v19875_v18  ;;  %v20013_v56 = vld [vmem:[%s26709_s1 + $0x3a20] ss:$8 sps:$4 sm:$0xff]   ;;  %v20021_v18 = vld [vmem:[%s26709_s1 + $0x3a34] ss:$8 sps:$4 sm:$0xff]  }
 0x6d9   :  { %14376 = vmatprep.subr.bf16.mxu0 %v19878_v11  ;;  %v19944_v11 = vld [vmem:[%s26709_s1 + $0x3830] ss:$8 sps:$4 sm:$0xff]  }
 0x6db   :  { %13229 = vmatpush1.bf16.msra.mxu1 %v19873_v40  ;;  %v19949_v40 = vld [vmem:[%s26709_s1 + $0x3844] ss:$8 sps:$4 sm:$0xff]  }
 0x6dc   :  { %14377 = vmatpush1.bf16.msra.mxu0 %v19876_v0  ;;  %13230 = vmatprep.subr.bf16.mxu1 %v19881_v59  ;;  %v20019_v0 = vld [vmem:[%s26709_s1 + $0x3a30] ss:$8 sps:$4 sm:$0xff]   ;;  %v20027_v59 = vld [vmem:[%s26709_s1 + $0x3a44] ss:$8 sps:$4 sm:$0xff]  }
 0x6dd   :  { %14378 = vmatprep.subr.bf16.mxu0 %v19884_v2  ;;  %v19947_v2 = vld [vmem:[%s26709_s1 + $0x3840] ss:$8 sps:$4 sm:$0xff]  }
 0x6df   :  { %13231 = vmatpush1.bf16.msra.mxu1 %v19879_v22  ;;  %v19952_v22 = vld [vmem:[%s26709_s1 + $0x3854] ss:$8 sps:$4 sm:$0xff]  }
 0x6e0   :  { %14379 = vmatpush1.bf16.msra.mxu0 %v19882_v31  ;;  %13232 = vmatprep.subr.bf16.mxu1 %v19887_v24  ;;  %v20025_v31 = vld [vmem:[%s26709_s1 + $0x3a40] ss:$8 sps:$4 sm:$0xff]   ;;  %v20033_v24 = vld [vmem:[%s26709_s1 + $0x3a54] ss:$8 sps:$4 sm:$0xff]  }
 0x6e1   :  { %14380 = vmatprep.subr.bf16.mxu0 %v19890_v25  ;;  %v19950_v25 = vld [vmem:[%s26709_s1 + $0x3850] ss:$8 sps:$4 sm:$0xff]  }
 0x6e3   :  { %13233 = vmatpush1.bf16.msra.mxu1 %v19885_v1  ;;  %v19955_v1 = vld [vmem:[%s26709_s1 + $0x3864] ss:$8 sps:$4 sm:$0xff]  }
 0x6e4   :  { %14381 = vmatpush1.bf16.msra.mxu0 %v19888_v8  ;;  %13234 = vmatprep.subr.bf16.mxu1 %v19893_v3  ;;  %v20031_v8 = vld [vmem:[%s26709_s1 + $0x3a50] ss:$8 sps:$4 sm:$0xff]   ;;  %v20039_v3 = vld [vmem:[%s26709_s1 + $0x3a64] ss:$8 sps:$4 sm:$0xff]  }
 0x6e5   :  { %14382 = vmatprep.subr.bf16.mxu0 %v19896_v35  ;;  %v19953_v35 = vld [vmem:[%s26709_s1 + $0x3860] ss:$8 sps:$4 sm:$0xff]  }
 0x6e7   :  { %13235 = vmatpush1.bf16.msra.mxu1 %v19891_v30  ;;  %v19958_v30 = vld [vmem:[%s26709_s1 + $0x3874] ss:$8 sps:$4 sm:$0xff]  }
 0x6e8   :  { %14383 = vmatpush1.bf16.msra.mxu0 %v19894_v44  ;;  %13236 = vmatprep.subr.bf16.mxu1 %v19899_v32  ;;  %v20037_v44 = vld [vmem:[%s26709_s1 + $0x3a60] ss:$8 sps:$4 sm:$0xff]   ;;  %v20045_v32 = vld [vmem:[%s26709_s1 + $0x3a74] ss:$8 sps:$4 sm:$0xff]  }
 0x6e9   :  { %14384 = vmatprep.subr.bf16.mxu0 %v19902_v33  ;;  %v19956_v33 = vld [vmem:[%s26709_s1 + $0x3870] ss:$8 sps:$4 sm:$0xff]  }
 0x6eb   :  { %13237 = vmatpush1.bf16.msra.mxu1 %v19897_v9  ;;  %v19961_v9 = vld [vmem:[%s26709_s1 + $0x3884] ss:$8 sps:$4 sm:$0xff]  }
 0x6ec   :  { %14385 = vmatpush1.bf16.msra.mxu0 %v19900_v20  ;;  %13238 = vmatprep.subr.bf16.mxu1 %v19905_v39  ;;  %v20043_v20 = vld [vmem:[%s26709_s1 + $0x3a70] ss:$8 sps:$4 sm:$0xff]   ;;  %v20051_v39 = vld [vmem:[%s26709_s1 + $0x3a84] ss:$8 sps:$4 sm:$0xff]  }
 0x6ed   :  { %14386 = vmatprep.subr.bf16.mxu0 %v19908_v53  ;;  %v2710_v53 = vld [vmem:[%s26709_s1 + $0x3a90] sm:$0xff] }
 0x6ef   :  { %13239 = vmatpush1.bf16.msra.mxu1 %v19903_v42  ;;  %v19959_v42 = vld [vmem:[%s26709_s1 + $0x3880] ss:$8 sps:$4 sm:$0xff]  }
 0x6f0   :  { %14387 = vmatpush1.bf16.msra.mxu0 %v19906_v57  ;;  %13240 = vmatprep.subr.bf16.mxu1 %v19911_v45  ;;  %v19964_v57 = vld [vmem:[%s26709_s1 + $0x3894] ss:$8 sps:$4 sm:$0xff]   ;;  %v20049_v45 = vld [vmem:[%s26709_s1 + $0x3a80] ss:$8 sps:$4 sm:$0xff]  }
 0x6f1   :  { %14388 = vmatprep.subr.bf16.mxu0 %v19914_v38  ;;  %v16840_v38 = vcombine.high %v2710_v53, %v2710_v53 }
 0x6f3   :  { %13241 = vmatpush1.bf16.msra.mxu1 %v19909_v19  ;;  %v16839_v19 = vcombine.low %v2710_v53, %v2710_v53  ;;  %v20024_v53 = vld [vmem:[%s26709_s1 + $0x3994] ss:$8 sps:$4 sm:$0xff]  }
 0x6f4   :  { %14389 = vmatpush1.bf16.msra.mxu0 %v19912_v26  ;;  %13242 = vmatprep.subr.bf16.mxu1 %v19917_v21  ;;  %v19962_v26 = vld [vmem:[%s26709_s1 + $0x3890] ss:$8 sps:$4 sm:$0xff]   ;;  %v19967_v21 = vld [vmem:[%s26709_s1 + $0x38a4] ss:$8 sps:$4 sm:$0xff]  }
 0x6f5   :  { %14390 = vmatprep.subr.bf16.mxu0 %v19920_v28  ;;  %v12104_v28 = vsel %vm12102_vm1, %v16839_v19, 0  ;;  %v20022_v19 = vld [vmem:[%s26709_s1 + $0x3990] ss:$8 sps:$4 sm:$0xff]  }
 0x6f7   :  { %13243 = vmatpush1.bf16.msra.mxu1 %v19915_v52  ;;  %v19965_v52 = vld [vmem:[%s26709_s1 + $0x38a0] ss:$8 sps:$4 sm:$0xff]  }
 0x6f8   :  { %14391 = vmatpush1.bf16.msra.mxu0 %v19918_v61  ;;  %13244 = vmatprep.subr.bf16.mxu1 %v19923_v54  ;;  %v834_v61 = vpack.c.bf16 %v26137_v63, %v26137_v63  ;;  %v19970_v54 = vld [vmem:[%s26709_s1 + $0x38b4] ss:$8 sps:$4 sm:$0xff]  }
 0x6f9   :  { %14392 = vmatprep.subr.bf16.mxu0 %v19926_v55  ;;  %v19968_v55 = vld [vmem:[%s26709_s1 + $0x38b0] ss:$8 sps:$4 sm:$0xff]  }
 0x6fb   :  { %13245 = vmatpush1.bf16.msra.mxu1 %v19921_v51  ;;  %v19973_v51 = vld [vmem:[%s26709_s1 + $0x38c4] ss:$8 sps:$4 sm:$0xff]  }
 0x6fc   :  { %14393 = vmatpush1.bf16.msra.mxu0 %v19924_v27  ;;  %13246 = vmatprep.subr.bf16.mxu1 %v19929_v29  ;;  %v19971_v27 = vld [vmem:[%s26709_s1 + $0x38c0] ss:$8 sps:$4 sm:$0xff]   ;;  %v19976_v29 = vld [vmem:[%s26709_s1 + $0x38d4] ss:$8 sps:$4 sm:$0xff]  }
 0x6fd   :  { %14394 = vmatprep.subr.bf16.mxu0 %v19932_v50  ;;  %v19974_v50 = vld [vmem:[%s26709_s1 + $0x38d0] ss:$8 sps:$4 sm:$0xff]  }
 0x6ff   :  { %13247 = vmatpush1.bf16.msra.mxu1 %v19927_v10  ;;  %v575_v10 = vcombine.high %v26102_v15, %v26102_v15  ;;  %v19980_v15 = vld [vmem:[%s26709_s1 + $0x38f0] ss:$8 sps:$4 sm:$0xff]  }
 0x700   :  { %14395 = vmatpush1.bf16.msra.mxu0 %v19930_v37  ;;  %14487 = vmatprep.subr.bf16.mxu1 %v20003_v62  ;;  %v19979_v37 = vld [vmem:[%s26709_s1 + $0x38e4] ss:$8 sps:$4 sm:$0xff]   ;;  %v19982_v62 = vld [vmem:[%s26709_s1 + $0x38f4] ss:$8 sps:$4 sm:$0xff]  }
 0x701   :  { %14405 = vmatprep.subr.bf16.mxu0 %v19937_v60  ;;  %v19977_v60 = vld [vmem:[%s26709_s1 + $0x38e0] ss:$8 sps:$4 sm:$0xff]   ;;  %v26291_v5 = vrot.slane %v575_v10, %v20275_v49  ;;  %v830_v49 = vpack.c.bf16 %v26112_v34, %v26112_v34  ;;  %v19991_v34 = vld [vmem:[%s26709_s1 + $0x3924] ss:$8 sps:$4 sm:$0xff]  }
 0x702   :  { %13249 = vmatmul.mubr.bf16.vlgmr.msra.gmra.mrb[0].mxu1 %v772_v47  ;;  %v19983_v47 = vld [vmem:[%s26709_s1 + $0x3900] ss:$8 sps:$4 sm:$0xff]  }
 0x703   :  { %14397 = vmatmul.mubr.bf16.vlgmr.msra.gmra.mrb[0].mxu0 %v828_v41  ;;  %14488 = vmatpush1.bf16.msra.mxu1 %v20001_v6  ;;  %v591_v63 = vcombine.high %v26291_v5, %v26291_v5  ;;  %v19994_v6 = vld [vmem:[%s26709_s1 + $0x3934] ss:$8 sps:$4 sm:$0xff]  }
 0x704   :  { %14406 = vmatpush1.bf16.msra.mxu0 %v19935_v13  ;;  %14437 = vmatprep.mubr.bf16.mxu0 %v831_v4  ;;  %v19988_v13 = vld [vmem:[%s26709_s1 + $0x3914] ss:$8 sps:$4 sm:$0xff]   ;;  %v19986_v4 = vld [vmem:[%s26709_s1 + $0x3910] ss:$8 sps:$4 sm:$0xff]  }
 0x705   :  { %14407 = vmatprep.subr.bf16.mxu0 %v19940_v17  ;;  %14489 = vmatprep.subr.bf16.mxu1 %v20009_v36  ;;  %v833_v41 = vpack.c.bf16 %v591_v63, %v591_v63  ;;  %v19989_v17 = vld [vmem:[%s26709_s1 + $0x3920] ss:$8 sps:$4 sm:$0xff]   ;;  %v19992_v36 = vld [vmem:[%s26709_s1 + $0x3930] ss:$8 sps:$4 sm:$0xff]  }
 0x706   :  { %16842 = vmatprep.mubr.msk.bf16.mxu1 %vm12098_vm0, %v835_v46  ;;  %v19997_v46 = vld [vmem:[%s26709_s1 + $0x3944] ss:$8 sps:$4 sm:$0xff]  }
 0x707   :  { %14490 = vmatpush1.bf16.msra.mxu1 %v20007_v58  ;;  %v19998_v58 = vld [vmem:[%s26709_s1 + $0x3950] ss:$8 sps:$4 sm:$0xff]   ;;  %v14555_v63 = vld [vmem:[%s26711_s3 + $0xc8] sm:$0xff] }
 0x708   :  { %14408 = vmatpush1.bf16.msra.mxu0 %v19938_v7  ;;  %14491 = vmatprep.subr.bf16.mxu1 %v20015_v12  ;;  %v19995_v7 = vld [vmem:[%s26709_s1 + $0x3940] ss:$8 sps:$4 sm:$0xff]   ;;  %v20006_v12 = vld [vmem:[%s26709_s1 + $0x3964] ss:$8 sps:$4 sm:$0xff]  }
 0x709   :  { %14409 = vmatprep.subr.bf16.mxu0 %v19943_v48  ;;  %v20000_v48 = vld [vmem:[%s26709_s1 + $0x3954] ss:$8 sps:$4 sm:$0xff]  }
 0x70b   :  { %14492 = vmatpush1.bf16.msra.mxu1 %v20013_v56  ;;  %v20010_v56 = vld [vmem:[%s26709_s1 + $0x3970] ss:$8 sps:$4 sm:$0xff]  }
 0x70c   :  { %14410 = vmatpush1.bf16.msra.mxu0 %v19941_v23  ;;  %14493 = vmatprep.subr.bf16.mxu1 %v20021_v18  ;;  %v20004_v23 = vld [vmem:[%s26709_s1 + $0x3960] ss:$8 sps:$4 sm:$0xff]  }
 0x70d   :  { %14411 = vmatprep.subr.bf16.mxu0 %v19946_v16  ;;  %v20012_v16 = vld [vmem:[%s26709_s1 + $0x3974] ss:$8 sps:$4 sm:$0xff]   ;;  %v14531_v18 = vld [vmem:[%s26711_s3 + $0x8] sm:$0xff] }
 0x70f   :  { %14494 = vmatpush1.bf16.msra.mxu1 %v20019_v0 }
 0x710   :  { %14412 = vmatpush1.bf16.msra.mxu0 %v19944_v11  ;;  %14495 = vmatprep.subr.bf16.mxu1 %v20027_v59  ;;  %v14533_v11 = vld [vmem:[%s26711_s3 + $0x18] sm:$0xff]  ;;  %v14532_v59 = vld [vmem:[%s26711_s3 + $0x10] sm:$0xff] }
 0x711   :  { %14413 = vmatprep.subr.bf16.mxu0 %v19949_v40  ;;  %v14530_v40 = vld [vmem:[%s26711_s3] sm:$0xff]  ;;  %v16887_v0 = vpack.c.bf16 %v14533_v11, %v14531_v18  ;;  %v20058_v18 = vld [vmem:[%s26709_s1 + $0x39f4] ss:$8 sps:$4 sm:$0xff]   ;;  %v20056_v11 = vld [vmem:[%s26709_s1 + $0x39f0] ss:$8 sps:$4 sm:$0xff]  }
 0x713   :  { %14496 = vmatpush1.bf16.msra.mxu1 %v20025_v31  ;;  %v16889_v31 = vpack.c.bf16 %v14532_v59, %v14530_v40  ;;  %v832_v40 = vpack.c.bf16 %v26291_v5, %v26291_v5  ;;  %v14565_v59 = vld [vmem:[%s26711_s3 + $0x118] sm:$0xff] }
 0x714   :  { %14414 = vmatpush1.bf16.msra.mxu0 %v19947_v2  ;;  %14497 = vmatprep.subr.bf16.mxu1 %v20033_v24  ;;  %v14535_v2 = vld [vmem:[%s26711_s3 + $0x28] sm:$0xff] }
 0x715   :  { %14415 = vmatprep.subr.bf16.mxu0 %v19952_v22  ;;  %v14537_v22 = vld [vmem:[%s26711_s3 + $0x38] sm:$0xff] }
 0x716   :  { %v16891_v24 = vpack.c.bf16 %v14537_v22, %v14535_v2  ;;  %v14562_v22 = vld [vmem:[%s26711_s3 + $0x100] sm:$0xff] }
 0x717   :  { %14498 = vmatpush1.bf16.msra.mxu1 %v20031_v8  ;;  %v14539_v8 = vld [vmem:[%s26711_s3 + $0x48] sm:$0xff] }
 0x718   :  { %14416 = vmatpush1.bf16.msra.mxu0 %v19950_v25  ;;  %14499 = vmatprep.subr.bf16.mxu1 %v20039_v3  ;;  %v14534_v25 = vld [vmem:[%s26711_s3 + $0x20] sm:$0xff] }
 0x719   :  { %14417 = vmatprep.subr.bf16.mxu0 %v19955_v1  ;;  %v14536_v1 = vld [vmem:[%s26711_s3 + $0x30] sm:$0xff]  ;;  %v20018_v3 = vld [vmem:[%s26709_s1 + $0x3984] ss:$8 sps:$4 sm:$0xff]  }
 0x71b   :  { %14500 = vmatpush1.bf16.msra.mxu1 %v20037_v44 }
 0x71c   :  { %14418 = vmatpush1.bf16.msra.mxu0 %v19953_v35  ;;  %14501 = vmatprep.subr.bf16.mxu1 %v20045_v32  ;;  %v14541_v35 = vld [vmem:[%s26711_s3 + $0x58] sm:$0xff]  ;;  %v14538_v32 = vld [vmem:[%s26711_s3 + $0x40] sm:$0xff] }
 0x71d   :  { %14419 = vmatprep.subr.bf16.mxu0 %v19958_v30  ;;  %v16893_v30 = vpack.c.bf16 %v14536_v1, %v14534_v25  ;;  %v16895_v44 = vpack.c.bf16 %v14541_v35, %v14539_v8  ;;  %v14567_v1 = vld [vmem:[%s26711_s3 + $0x128] sm:$0xff]  ;;  %v14569_v8 = vld [vmem:[%s26711_s3 + $0x138] sm:$0xff] }
 0x71e   :  { %v16923_v35 = vpack.c.bf16 %v14569_v8, %v14567_v1  ;;  %v14684_v1 = vld [vmem:[%s26713_s5 + $0x68] sm:$0xff] }
 0x71f   :  { %14502 = vmatpush1.bf16.msra.mxu1 %v20043_v20  ;;  %v14543_v20 = vld [vmem:[%s26711_s3 + $0x68] sm:$0xff] }
 0x720   :  { %14420 = vmatpush1.bf16.msra.mxu0 %v19956_v33  ;;  %14503 = vmatprep.subr.bf16.mxu1 %v20051_v39  ;;  %v14540_v33 = vld [vmem:[%s26711_s3 + $0x50] sm:$0xff]  ;;  %v14545_v39 = vld [vmem:[%s26711_s3 + $0x78] sm:$0xff] }
 0x721   :  { %14421 = vmatprep.subr.bf16.mxu0 %v19961_v9  ;;  %v20016_v9 = vld [vmem:[%s26709_s1 + $0x3980] ss:$8 sps:$4 sm:$0xff]  }
 0x723   :  { %14504 = vmatpush1.bf16.msra.mxu1 %v20049_v45  ;;  %v14542_v45 = vld [vmem:[%s26711_s3 + $0x60] sm:$0xff] }
 0x724   :  { %14422 = vmatpush1.bf16.msra.mxu0 %v19959_v42  ;;  %16841 = vmatprep.subr.msk.bf16.mxu1 %vm12102_vm1, %v16840_v38  ;;  %v16897_v42 = vpack.c.bf16 %v14540_v33, %v14538_v32  ;;  %v14544_v38 = vld [vmem:[%s26711_s3 + $0x70] sm:$0xff] }
 0x725   :  { %14423 = vmatprep.subr.bf16.mxu0 %v19964_v57  ;;  %v16899_v57 = vpack.c.bf16 %v14545_v39, %v14543_v20  ;;  %v14573_v20 = vld [vmem:[%s26711_s3 + $0x158] sm:$0xff] }
 0x727   :  { %14506 = vmatpush1.bf16.msra.mxu1 %v12104_v28  ;;  %v20030_v28 = vld [vmem:[%s26709_s1 + $0x39a4] ss:$8 sps:$4 sm:$0xff]  }
 0x728   :  { %14424 = vmatpush1.bf16.msra.mxu0 %v19962_v26  ;;  %16888 = vmatprep.subr.bf16.mxu1 %v16887_v0  ;;  %v14547_v26 = vld [vmem:[%s26711_s3 + $0x88] sm:$0xff] }
 0x729   :  { %14425 = vmatprep.subr.bf16.mxu0 %v19967_v21  ;;  %v14549_v21 = vld [vmem:[%s26711_s3 + $0x98] sm:$0xff]  ;;  %v14563_v0 = vld [vmem:[%s26711_s3 + $0x108] sm:$0xff] }
 0x72a   :  { %14520 = vmatmul.mubr.bf16.vlgmr.msra.gmra.mrb[4].mxu1 %v834_v61  ;;  %v16903_v61 = vpack.c.bf16 %v14549_v21, %v14547_v26  ;;  %v16919_v2 = vpack.c.bf16 %v14565_v59, %v14563_v0  ;;  %v14576_v26 = vld [vmem:[%s26711_s3 + $0x170] sm:$0xff]  ;;  %v14679_v59 = vld [vmem:[%s26713_s5 + $0x40] sm:$0xff] }
 0x72b   :  { %16890 = vmatpush1.bf16.msra.mxu1 %v16889_v31  ;;  %v14564_v31 = vld [vmem:[%s26711_s3 + $0x110] sm:$0xff] }
 0x72c   :  { %14426 = vmatpush1.bf16.msra.mxu0 %v19965_v52  ;;  %16892 = vmatprep.subr.bf16.mxu1 %v16891_v24  ;;  %v16901_v52 = vpack.c.bf16 %v14544_v38, %v14542_v45  ;;  %v16921_v5 = vpack.c.bf16 %v14564_v31, %v14562_v22  ;;  %v14577_v38 = vld [vmem:[%s26711_s3 + $0x178] sm:$0xff]  ;;  %v14681_v31 = vld [vmem:[%s26713_s5 + $0x50] sm:$0xff] }
 0x72d   :  { %14427 = vmatprep.subr.bf16.mxu0 %v19970_v54  ;;  %v14546_v54 = vld [vmem:[%s26711_s3 + $0x80] sm:$0xff] }
 0x72f   :  { %16894 = vmatpush1.bf16.msra.mxu1 %v16893_v30  ;;  %v14566_v30 = vld [vmem:[%s26711_s3 + $0x120] sm:$0xff] }
 0x730   :  { %14428 = vmatpush1.bf16.msra.mxu0 %v19968_v55  ;;  %16896 = vmatprep.subr.bf16.mxu1 %v16895_v44  ;;  %v14548_v55 = vld [vmem:[%s26711_s3 + $0x90] sm:$0xff] }
 0x731   :  { %14429 = vmatprep.subr.bf16.mxu0 %v19973_v51  ;;  %v20028_v51 = vld [vmem:[%s26709_s1 + $0x39a0] ss:$8 sps:$4 sm:$0xff]   ;;  %v16905_v10 = vpack.c.bf16 %v14548_v55, %v14546_v54  ;;  %v14568_v44 = vld [vmem:[%s26711_s3 + $0x130] sm:$0xff]  ;;  %v20076_v54 = vmov 0.0|0.0  }
 0x732   :  { %v16925_v33 = vpack.c.bf16 %v14568_v44, %v14566_v30  ;;  %v14687_v44 = vld [vmem:[%s26713_s5 + $0x80] sm:$0xff] }
 0x733   :  { %16898 = vmatpush1.bf16.msra.mxu1 %v16897_v42  ;;  %v14572_v42 = vld [vmem:[%s26711_s3 + $0x150] sm:$0xff] }
 0x734   :  { %14430 = vmatpush1.bf16.msra.mxu0 %v19971_v27  ;;  %16900 = vmatprep.subr.bf16.mxu1 %v16899_v57  ;;  %v14551_v27 = vld [vmem:[%s26711_s3 + $0xa8] sm:$0xff] }
 0x735   :  { %14431 = vmatprep.subr.bf16.mxu0 %v19976_v29  ;;  %v14553_v29 = vld [vmem:[%s26711_s3 + $0xb8] sm:$0xff]  ;;  %v14575_v57 = vld [vmem:[%s26711_s3 + $0x168] sm:$0xff] }
 0x736   :  { %v16931_v21 = vpack.c.bf16 %v14577_v38, %v14575_v57  ;;  %v14694_v38 = vld [vmem:[%s26713_s5 + $0xb8] sm:$0xff] }
 0x737   :  { %16902 = vmatpush1.bf16.msra.mxu1 %v16901_v52  ;;  %v14579_v52 = vld [vmem:[%s26711_s3 + $0x188] sm:$0xff] }
 0x738   :  { %14432 = vmatpush1.bf16.msra.mxu0 %v19974_v50  ;;  %v20036_v50 = vld [vmem:[%s26709_s1 + $0x39b4] ss:$8 sps:$4 sm:$0xff]   ;;  %16904 = vmatprep.subr.bf16.mxu1 %v16903_v61  ;;  %v14578_v61 = vld [vmem:[%s26711_s3 + $0x180] sm:$0xff] }
 0x739   :  { %14433 = vmatprep.subr.bf16.mxu0 %v19979_v37  ;;  %v16907_v37 = vpack.c.bf16 %v14553_v29, %v14551_v27 }
 0x73b   :  { %16906 = vmatpush1.bf16.msra.mxu1 %v16905_v10  ;;  %v2711_v10 = vld [vmem:[%s26712_s2] sm:$0x3] }
 0x73c   :  { %14434 = vmatpush1.bf16.msra.mxu0 %v19977_v60  ;;  %v14550_v60 = vld [vmem:[%s26711_s3 + $0xa0] sm:$0xff]  ;;  %16908 = vmatprep.subr.bf16.mxu1 %v16907_v37  ;;  %v2719_v37 = vsub.s32 1, %v20257_v43 }
 0x73d   :  { %14435 = vmatprep.subr.bf16.mxu0 %v19982_v62  ;;  %v14552_v62 = vld [vmem:[%s26711_s3 + $0xb0] sm:$0xff] }
 0x740   :  { %14436 = vmatpush1.bf16.msra.mxu0 %v19980_v15  ;;  %v20034_v15 = vld [vmem:[%s26709_s1 + $0x39b0] ss:$8 sps:$4 sm:$0xff]  }
 0x741   :  { %14446 = vmatprep.subr.bf16.mxu0 %v19985_v14  ;;  %v14557_v14 = vld [vmem:[%s26711_s3 + $0xd8] sm:$0xff] }
 0x743   :  { %14438 = vmatmul.mubr.bf16.vlgmr.msra.gmra.mrb[0].mxu0 %v830_v49  ;;  %v20042_v49 = vld [vmem:[%s26709_s1 + $0x39c4] ss:$8 sps:$4 sm:$0xff]  }
 0x744   :  { %14447 = vmatpush1.bf16.msra.mxu0 %v19983_v47  ;;  %14478 = vmatprep.mubr.bf16.mxu0 %v833_v41  ;;  %v16909_v47 = vpack.c.bf16 %v14552_v62, %v14550_v60  ;;  %v16911_v41 = vpack.c.bf16 %v14557_v14, %v14555_v63  ;;  %v2720_v62 = vrot.slane %v2711_v10, %v2719_v37 }
 0x745   :  { %14448 = vmatprep.subr.bf16.mxu0 %v19988_v13  ;;  %v14554_v13 = vld [vmem:[%s26711_s3 + $0xc0] sm:$0xff] }
 0x746   :  { %16910 = vmatpush1.bf16.msra.mxu1 %v16909_v47 }
 0x747   :  { %16912 = vmatprep.subr.bf16.mxu1 %v16911_v41 }
 0x748   :  { %14449 = vmatpush1.bf16.msra.mxu0 %v19986_v4  ;;  %v14556_v4 = vld [vmem:[%s26711_s3 + $0xd0] sm:$0xff] }
 0x749   :  { %14450 = vmatprep.subr.bf16.mxu0 %v19991_v34  ;;  %v20040_v34 = vld [vmem:[%s26709_s1 + $0x39c0] ss:$8 sps:$4 sm:$0xff]  }
 0x74c   :  { %14451 = vmatpush1.bf16.msra.mxu0 %v19989_v17  ;;  %v14559_v17 = vld [vmem:[%s26711_s3 + $0xe8] sm:$0xff] }
 0x74d   :  { %14452 = vmatprep.subr.bf16.mxu0 %v19994_v6  ;;  %v14561_v6 = vld [vmem:[%s26711_s3 + $0xf8] sm:$0xff] }
 0x750   :  { %14453 = vmatpush1.bf16.msra.mxu0 %v19992_v36  ;;  %v20048_v36 = vld [vmem:[%s26709_s1 + $0x39d4] ss:$8 sps:$4 sm:$0xff]  }
 0x751   :  { %14454 = vmatprep.subr.bf16.mxu0 %v19997_v46  ;;  %v16913_v46 = vpack.c.bf16 %v14556_v4, %v14554_v13 }
 0x753   :  { %16914 = vmatpush1.bf16.msra.mxu1 %v16913_v46 }
 0x754   :  { %14455 = vmatpush1.bf16.msra.mxu0 %v19995_v7  ;;  %v16915_v7 = vpack.c.bf16 %v14561_v6, %v14559_v17  ;;  %v14671_v6 = vld [vmem:[%s26713_s5] sm:$0xff] }
 0x755   :  { %14456 = vmatprep.subr.bf16.mxu0 %v20000_v48  ;;  %v14558_v48 = vld [vmem:[%s26711_s3 + $0xe0] sm:$0xff] }
 0x756   :  { %16916 = vmatprep.subr.bf16.mxu1 %v16915_v7 }
 0x758   :  { %14457 = vmatpush1.bf16.msra.mxu0 %v19998_v58  ;;  %v14560_v58 = vld [vmem:[%s26711_s3 + $0xf0] sm:$0xff] }
 0x759   :  { %14458 = vmatprep.subr.bf16.mxu0 %v20006_v12  ;;  %v20046_v12 = vld [vmem:[%s26709_s1 + $0x39d0] ss:$8 sps:$4 sm:$0xff]  }
 0x75c   :  { %14459 = vmatpush1.bf16.msra.mxu0 %v20004_v23  ;;  %v20054_v23 = vld [vmem:[%s26709_s1 + $0x39e4] ss:$8 sps:$4 sm:$0xff]  }
 0x75d   :  { %14460 = vmatprep.subr.bf16.mxu0 %v20012_v16  ;;  %v16917_v16 = vpack.c.bf16 %v14560_v58, %v14558_v48  ;;  %v14673_v48 = vld [vmem:[%s26713_s5 + $0x10] sm:$0xff]  ;;  %v14674_v58 = vld [vmem:[%s26713_s5 + $0x18] sm:$0xff] }
 0x75f   :  { %16918 = vmatpush1.bf16.msra.mxu1 %v16917_v16  ;;  %v14675_v16 = vld [vmem:[%s26713_s5 + $0x20] sm:$0xff] }
 0x760   :  { %14461 = vmatpush1.bf16.msra.mxu0 %v20010_v56  ;;  %v20052_v56 = vld [vmem:[%s26709_s1 + $0x39e0] ss:$8 sps:$4 sm:$0xff]   ;;  %16920 = vmatprep.subr.bf16.mxu1 %v16919_v2 }
 0x761   :  { %14462 = vmatprep.subr.bf16.mxu0 %v20018_v3  ;;  %v14680_v2 = vld [vmem:[%s26713_s5 + $0x48] sm:$0xff] }
 0x762   :  { %v16948_v22 = vpack.c.bf16 %v14680_v2, %v14679_v59 }
 0x763   :  { %16922 = vmatpush1.bf16.msra.mxu1 %v16921_v5  ;;  %v14682_v5 = vld [vmem:[%s26713_s5 + $0x58] sm:$0xff] }
 0x764   :  { %14463 = vmatpush1.bf16.msra.mxu0 %v20016_v9  ;;  %16924 = vmatprep.subr.bf16.mxu1 %v16923_v35  ;;  %v14571_v9 = vld [vmem:[%s26711_s3 + $0x148] sm:$0xff]  ;;  %v14686_v35 = vld [vmem:[%s26713_s5 + $0x78] sm:$0xff] }
 0x765   :  { %14464 = vmatprep.subr.bf16.mxu0 %v20024_v53  ;;  %v16927_v39 = vpack.c.bf16 %v14573_v20, %v14571_v9  ;;  %v14570_v53 = vld [vmem:[%s26711_s3 + $0x140] sm:$0xff]  ;;  %v14689_v9 = vld [vmem:[%s26713_s5 + $0x90] sm:$0xff]  ;;  %v14690_v20 = vld [vmem:[%s26713_s5 + $0x98] sm:$0xff] }
 0x766   :  { %v16929_v45 = vpack.c.bf16 %v14572_v42, %v14570_v53  ;;  %v14691_v53 = vld [vmem:[%s26713_s5 + $0xa0] sm:$0xff]  ;;  %v14692_v42 = vld [vmem:[%s26713_s5 + $0xa8] sm:$0xff] }
 0x767   :  { %16926 = vmatpush1.bf16.msra.mxu1 %v16925_v33  ;;  %v16966_v57 = vpack.c.bf16 %v14692_v42, %v14691_v53 }
 0x768   :  { %14465 = vmatpush1.bf16.msra.mxu0 %v20022_v19  ;;  %v14574_v19 = vld [vmem:[%s26711_s3 + $0x160] sm:$0xff]  ;;  %16928 = vmatprep.subr.bf16.mxu1 %v16927_v39  ;;  %v16963_v39 = vpack.c.bf16 %v14690_v20, %v14689_v9 }
 0x769   :  { %14466 = vmatprep.subr.bf16.mxu0 %v20030_v28  ;;  %v16933_v28 = vpack.c.bf16 %v14576_v26, %v14574_v19  ;;  %v20077_v26 = vmov 0.0  }
 0x76b   :  { %16930 = vmatpush1.bf16.msra.mxu1 %v16929_v45  ;;  %v14693_v45 = vld [vmem:[%s26713_s5 + $0xb0] sm:$0xff] }
 0x76c   :  { %14467 = vmatpush1.bf16.msra.mxu0 %v20028_v51  ;;  %16932 = vmatprep.subr.bf16.mxu1 %v16931_v21  ;;  %v16969_v19 = vpack.c.bf16 %v14694_v38, %v14693_v45  ;;  %v14695_v21 = vld [vmem:[%s26713_s5 + $0xc0] sm:$0xff] }
 0x76d   :  { %14468 = vmatprep.subr.bf16.mxu0 %v20036_v50  ;;  %v2715_v50 = vsub.s32 0, %v20257_v43  ;;  %v14777_v43 = vld [vmem:[%s26715_s7] sm:$0xff] }
 0x76f   :  { %16934 = vmatpush1.bf16.msra.mxu1 %v16933_v28  ;;  %v2716_v60 = vrot.slane %v2711_v10, %v2715_v50  ;;  %v14580_v28 = vld [vmem:[%s26714_s4] sm:$0x3] }
 0x770   :  { %14469 = vmatpush1.bf16.msra.mxu0 %v20034_v15  ;;  %14644 = vmatprep.subr.mxu1 %v14579_v52  ;;  %v14585_v52 = vrot.slane %v14580_v28, %v2715_v50  ;;  %v14778_v50 = vld [vmem:[%s26715_s7 + $0x8] sm:$0xff] }
 0x771   :  { %14470 = vmatprep.subr.bf16.mxu0 %v20042_v49 }
 0x773   :  { %14645 = vmatpush1.msra.mxu1 %v14578_v61  ;;  %v14589_v61 = vrot.slane %v14580_v28, %v2719_v37  ;;  %v16972_v37 = vpack.c.bf16 %v14778_v50, %v14777_v43 }
 0x774   :  { %14471 = vmatpush1.bf16.msra.mxu0 %v20040_v34  ;;  %16935 = vmatprep.subr.bf16.mxu1 %v20076_v54 }
 0x775   :  { %14472 = vmatprep.subr.bf16.mxu0 %v20048_v36  ;;  %v14672_v36 = vld [vmem:[%s26713_s5 + $0x8] sm:$0xff] }
 0x776   :  { %v16936_v46 = vpack.c.bf16 %v14672_v36, %v14671_v6 }
 0x778   :  { %14473 = vmatpush1.bf16.msra.mxu0 %v20046_v12 }
 0x779   :  { %14474 = vmatprep.subr.bf16.mxu0 %v20054_v23  ;;  %v16939_v23 = vpack.c.bf16 %v14674_v58, %v14673_v48  ;;  %v16846_v58 = vld [vmem:[%s26718_s8] ss:$0 sm:$0xff] }
 0x77c   :  { %14475 = vmatpush1.bf16.msra.mxu0 %v20052_v56  ;;  %v14676_v56 = vld [vmem:[%s26713_s5 + $0x28] sm:$0xff] }
 0x77d   :  { %14476 = vmatprep.subr.bf16.mxu0 %v20058_v18  ;;  %v16942_v18 = vpack.c.bf16 %v14676_v56, %v14675_v16 }
 0x780   :  { %14477 = vmatpush1.bf16.msra.mxu0 %v20056_v11  ;;  %v14677_v11 = vld [vmem:[%s26713_s5 + $0x30] sm:$0xff] }
 0x781   :  { %16971 = vmatprep.subr.bf16.mxu0 %v20076_v54 }
 0x783   :  { %14479 = vmatmul.mubr.bf16.vlgmr.msra.gmra.mrb[0].mxu0 %v832_v40  ;;  %v14678_v40 = vld [vmem:[%s26713_s5 + $0x38] sm:$0xff] }
 0x784   :  { %v16945_v0 = vpack.c.bf16 %v14678_v40, %v14677_v11  ;;  %16973 = vmatpush3.bf16.msra.mxu0 %v16972_v37  ;;  %16877 = vmatprep.mubr.msk.f32.mxu0 %vm20078_vm3, %v20077_v26 }
 0x785   :  { %16974 = vmatprep.subr.bf16.mxu0 %v20076_v54 }
 0x7d5   :  { %v13250_v24 = vpop.f32.mrb[0].mxu1 }
 0x7d6   :  { %v13252_v25 = vpop.f32.mrb[1].mxu1  ;;  %v16984_v15 = vadd.f32 %v13250_v24, %v2716_v60  ;;  %v16951_v24 = vpack.c.bf16 %v14682_v5, %v14681_v31 }
 0x7d7   :  { %v13254_v3 = vpop.f32.mrb[2].mxu1  ;;  %v16987_v63 = vadd.f32 %v13252_v25, %v2720_v62  ;;  %v14683_v25 = vld [vmem:[%s26713_s5 + $0x60] sm:$0xff] }
 0x7d8   :  { %v13255_v32 = vpop.f32.mrb[3].mxu1  ;;  %v16954_v8 = vpack.c.bf16 %v14684_v1, %v14683_v25  ;;  %v14685_v3 = vld [vmem:[%s26713_s5 + $0x70] sm:$0xff] }
 0x7d9   :  { %v16957_v30 = vpack.c.bf16 %v14686_v35, %v14685_v3  ;;  %v14688_v32 = vld [vmem:[%s26713_s5 + $0x88] sm:$0xff] }
 0x7da   :  { %v16960_v33 = vpack.c.bf16 %v14688_v32, %v14687_v44 }
 0x7fd   :  { %v14521_v55 = vpop.f32.mrb[4].mxu1 }
 0x7fe   :  { %v14523_v51 = vpop.f32.mrb[5].mxu1 }
 0x7ff   :  { %v14525_v27 = vpop.f32.mrb[6].mxu1 }
 0x800   :  { %v14526_v29 = vpop.f32.mrb[7].mxu1 }
 0x856   :  { %v14480_v14 = vpop.f32.mrb[0].mxu0 }
 0x857   :  { %v16985_v49 = vadd.f32 %v16984_v15, %v14480_v14  ;;  %v14482_v47 = vpop.f32.mrb[1].mxu0  ;;  %v14780_v14 = vld [vmem:[%s26715_s7 + $0x18] sm:$0xff] }
 0x858   :  { %v16988_v41 = vadd.f32 %v16987_v63, %v14482_v47  ;;  %v14484_v13 = vpop.f32.mrb[2].mxu0  ;;  %v14779_v63 = vld [vmem:[%s26715_s7 + $0x10] sm:$0xff]  ;;  %v14781_v47 = vld [vmem:[%s26715_s7 + $0x20] sm:$0xff] }
 0x859   :  { %v16986_v4 = vadd.f32 %v16985_v49, %v14521_v55  ;;  %v14485_v34 = vpop.f32.mrb[3].mxu0  ;;  %v16975_v49 = vpack.c.bf16 %v14780_v14, %v14779_v63 }
 0x85a   :  { %v16989_v17 = vadd.f32 %v16988_v41, %v14523_v51  ;;  %v14782_v41 = vld [vmem:[%s26715_s7 + $0x28] sm:$0xff]  ;;  %v16844_v34 = vld [vmem:[%s26716_s6] ss:$0 sm:$0xff] }
 0x85b   :  { %16976 = vmatpush3.bf16.msra.mxu0 %v16975_v49  ;;  %v16978_v13 = vpack.c.bf16 %v14782_v41, %v14781_v47 }
 0x85c   :  { %20061 = vtanh.f32 %v16989_v17  ;;  %16977 = vmatprep.subr.bf16.mxu0 %v20076_v54 }
 0x85d   :  { %20063 = vtanh.f32 %v16986_v4  ;;  %v14783_v4 = vld [vmem:[%s26715_s7 + $0x30] sm:$0x3] }
 0x85f   :  { %16979 = vmatpush3.bf16.msra.mxu0 %v16978_v13 }
 0x860   :  { %16875 = vmatprep.subr.mxu0 %v20077_v26 }
 0x863   :  { %16876 = vmatpush3.msk.msra.mxu0 %vm14795_vm4, %v14783_v4 }
 0x866   :  { %v26568_v7 = vpop.eup %20061 }
 0x867   :  { %v26576_v12 = vpop.eup %20063  ;;  %16843 = vmatprep.mubr.msk.f32.mxu1 %vm14592_vm2, %v26568_v7 }
 0x868   :  { %14661 = vmatmul.mubr.f32.vlgmr.msra.gmra.mrb[8].mxu1 %v26576_v12 }
 0x869   :  { %16937 = vmatpush1.bf16.msra.mxu1 %v16936_v46 }
 0x86a   :  { %16938 = vmatprep.subr.bf16.mxu1 %v20076_v54 }
 0x86d   :  { %16940 = vmatpush1.bf16.msra.mxu1 %v16939_v23 }
 0x86e   :  { %16941 = vmatprep.subr.bf16.mxu1 %v20076_v54 }
 0x871   :  { %16943 = vmatpush1.bf16.msra.mxu1 %v16942_v18  ;;  %v16849_v18 = vld [vmem:[%s26719_s10] ss:$0 sm:$0xff] }
 0x872   :  { %16944 = vmatprep.subr.bf16.mxu1 %v20076_v54 }
 0x875   :  { %16946 = vmatpush1.bf16.msra.mxu1 %v16945_v0 }
 0x876   :  { %16947 = vmatprep.subr.bf16.mxu1 %v20076_v54 }
 0x879   :  { %16949 = vmatpush1.bf16.msra.mxu1 %v16948_v22 }
 0x87a   :  { %16950 = vmatprep.subr.bf16.mxu1 %v20076_v54 }
 0x87d   :  { %16952 = vmatpush1.bf16.msra.mxu1 %v16951_v24 }
 0x87e   :  { %16953 = vmatprep.subr.bf16.mxu1 %v20076_v54 }
 0x881   :  { %16955 = vmatpush1.bf16.msra.mxu1 %v16954_v8 }
 0x882   :  { %16956 = vmatprep.subr.bf16.mxu1 %v20076_v54 }
 0x885   :  { %16958 = vmatpush1.bf16.msra.mxu1 %v16957_v30 }
 0x886   :  { %16959 = vmatprep.subr.bf16.mxu1 %v20076_v54 }
 0x889   :  { %16961 = vmatpush1.bf16.msra.mxu1 %v16960_v33 }
 0x88a   :  { %16962 = vmatprep.subr.bf16.mxu1 %v20076_v54 }
 0x88d   :  { %16964 = vmatpush1.bf16.msra.mxu1 %v16963_v39 }
 0x88e   :  { %16965 = vmatprep.subr.bf16.mxu1 %v20076_v54 }
 0x891   :  { %16967 = vmatpush1.bf16.msra.mxu1 %v16966_v57 }
 0x892   :  { %16968 = vmatprep.subr.bf16.mxu1 %v20076_v54 }
 0x895   :  { %16970 = vmatpush1.bf16.msra.mxu1 %v16969_v19 }
 0x896   :  { %14754 = vmatprep.subr.mxu1 %v20077_v26 }
 0x899   :  { %14755 = vmatpush1.msra.mxu1 %v14695_v21 }
 0x89a   :  { %16980 = vmatprep.subr.bf16.mxu1 %v20076_v54  ;;  %v14870_v54 = vld [vmem:[%s26717_s9] sm:$0xff] }
 0x93b   :  { %v14662_v55 = vpop.f32.mrb[8].mxu1 }
 0x93c   :  { %v14663_v51 = vadd.f32 %v14662_v55, %v14585_v52  ;;  %v14664_v27 = vpop.f32.mrb[9].mxu1 }
 0x93d   :  { %v14665_v29 = vadd.f32 %v14664_v27, %v14589_v61 }
 0x93e   :  { %20065 = vtanh.f32 %v14663_v51 }
 0x93f   :  { %20067 = vtanh.f32 %v14665_v29 }
 0x948   :  { %v20066_v10 = vpop.eup %20065 }
 0x949   :  { %v20068_v60 = vpop.eup %20067  ;;  %v14669_v15 = vadd.f32 %v20066_v10, %v26576_v12 }
 0x94a   :  { %v14670_v62 = vadd.f32 %v20068_v60, %v26568_v7  ;;  %v14871_v7 = vld [vmem:[%s26717_s9 + $0x8] sm:$0x3] }
 0x94b   :  { %v16981_v48 = vpack.c.bf16 %v14871_v7, %v14870_v54 }
 0x94c   :  { %16845 = vmatprep.mubr.msk.f32.mxu1 %vm14592_vm2, %v14670_v62 }
 0x94d   :  { %14771 = vmatmul.mubr.f32.vlgmr.msra.gmra.mrb[10].mxu1 %v14669_v15 }
 0x94e   :  { %16884 = vmatprep.mubr.msk.f32.mxu1 %vm20078_vm3, %v20077_v26  ;;  %16983 = vmatpush3.bf16.msk.msra.mxu1 %vm16982_vm7, %v16981_v48 }
 0xa20   :  { %v14772_v17 = vpop.f32.mrb[10].mxu1 }
 0xa21   :  { %v14773_v6 = vadd.f32 %v16844_v34, %v14772_v17  ;;  %v14774_v36 = vpop.f32.mrb[11].mxu1 }
 0xa23   :  { %20069 = vtanh.f32 %v14773_v6 }
 0xa2d   :  { %v20070_v46 = vpop.eup %20069 }
 0xa2e   :  { %16878 = vmatmul.mubr.msk.f32.vlgmr.msra.gmra.mrb[4].mxu0 %vm14791_vm5, %v20070_v46 }
 0xb01   :  { %v14865_v12 = vpop.f32.mrb[4].mxu0 }
 0xb02   :  { %v14866_v23 = vadd.f32 %v16846_v58, %v14865_v12  ;;  %v16879_v16 = vpop.f32.mrb[5].mxu0 }
 0xb04   :  { %20071 = vtanh.f32 %v14866_v23 }
 0xb0e   :  { %v20072_v56 = vpop.eup %20071 }
 0xb0f   :  { %16885 = vmatmul.mubr.msk.f32.vlgmr.msra.gmra.mrb[12].mxu1 %vm14879_vm8, %v20072_v56 }
 0xbe2   :  { %v14952_v11 = vpop.f32.mrb[12].mxu1 }
 0xbe3   :  { %v14953_v40 = vadd.f32 %v16849_v18, %v14952_v11  ;;  %v16886_v0 = vpop.f32.mrb[13].mxu1 }
 0xbe5   :  { %20073 = vtanh.f32 %v14953_v40 }
 0xbef   :  { %v20074_v59 = vpop.eup %20073 }
 0xbf0   :  { %v14957_v2 = vadd.f32 %v20074_v59, %v20072_v56 }
 0xbf2   :  { %14959 = vst.msk [vmem:[%s26720_s11] sm:$0x3] %vm14958_vm9, %v14957_v2 }

</bundles_post_ra>
